<compile_context>
chip_gen: v5e
topology: v5e:2x2
jax: 0.10.0
libtpu: 0.0.40
codegen_flags: <defaults>
</compile_context>

<pallas_src>
import functools

import jax
import jax.numpy as jnp
import numpy as np
from jax.experimental import pallas as pl
from jax.experimental.pallas import tpu as pltpu


def _halo_rows(W):
    # Top/bottom halo of the flattened (H*W) image, rounded up to a multiple of
    # 16 rows so the bf16 centre store is sublane-packing aligned. Must be >= W+1.
    return ((W + 1 + 15) // 16) * 16


def _sphere_block_kernel(x_ref, w1_ref, s1_ref, b1_ref, w2_ref, s2_ref, b2_ref,
                         o_ref, pbuf, *, H, W, C):
    """Fused SphereBasicBlock for one batch element, fully resident in VMEM.

    Activations are (H*W, C) slabs. A 3x3 tap with offset (dy, dx) is a flat
    shift of dy*W + dx read from a zero-haloed bf16 VMEM scratch (pbuf); the
    row-wrap positions of the dx = +/-1 taps are masked with an (HW, 1) mask.
    Each conv is nine K=C bf16 matmuls accumulated in f32 on the MXU.
    """
    HW = H * W
    PAD = _halo_rows(W)

    # Zero the halo every step (see header note about megacore scratch); the
    # centre region is (re)written for each conv stage.
    halo_zeros = jnp.zeros((PAD, C), jnp.bfloat16)
    pbuf[pl.ds(0, PAD), :] = halo_zeros
    pbuf[pl.ds(PAD + HW, PAD), :] = halo_zeros

    # (HW, 1) column-of-image masks for the horizontal taps (their flat-index
    # shift wraps across image rows -> those positions must contribute zero).
    col = jax.lax.broadcasted_iota(jnp.int32, (HW, 1), 0) % W
    valid_left = col >= 1         # tap dx = -1
    valid_right = col <= W - 2    # tap dx = +1

    def conv3x3(src_f32, w_ref):
        # MXU operands live as bf16 in pbuf; accumulation stays f32.
        pbuf[pl.ds(PAD, HW), :] = src_f32.astype(jnp.bfloat16)
        acc = jnp.zeros((HW, C), jnp.float32)
        for k in range(9):
            dy, dx = k // 3 - 1, k % 3 - 1
            tap = pbuf[pl.ds(PAD + dy * W + dx, HW), :]
            if dx == -1:
                tap = jnp.where(valid_left, tap, 0.0)
            elif dx == 1:
                tap = jnp.where(valid_right, tap, 0.0)
            # K = C matmul straight from pbuf (no im2col slab).
            acc = acc + jnp.dot(tap, w_ref[k * C:(k + 1) * C, :],
                                preferred_element_type=jnp.float32)
        return acc

    identity = x_ref[0].astype(jnp.float32)                          # (HW, C)

    y = conv3x3(identity, w1_ref)
    y = jnp.maximum(y * s1_ref[...] + b1_ref[...], 0.0)              # BN1 + ReLU (f32)
    y = conv3x3(y, w2_ref)                                           # stays in VMEM
    y = jnp.maximum(y * s2_ref[...] + b2_ref[...] + identity, 0.0)   # BN2 + add + ReLU

    o_ref[0] = y.astype(o_ref.dtype)


def sphere_basic_block(x_nchw, params):
    """Forward pass of SphereBasicBlock (stride=1, downsample=None). Input NCHW.

    TODO(synk): keep activations NHWC end-to-end in the surrounding model to
    drop the two full-activation transposes at the kernel boundary.
    """
    x = jnp.transpose(x_nchw, (0, 2, 3, 1))                 # NCHW -> NHWC
    N, H, W, C = x.shape
    if params["w1"].shape[-1] != C or params["w2"].shape[-1] != C:
        raise ValueError("stride=1 / downsample=None requires inplanes == planes")
    HW = H * W
    PAD = _halo_rows(W)

    x_flat = x.reshape(N, HW, C)                            # wrapper-side flatten (free)

    # HWIO (3,3,Cin,Cout) -> (9*Cin, Cout): row index (ky*3+kx)*Cin + cin
    # matches the tap order in the kernel.  bf16 MXU operands.
    w1 = params["w1"].reshape(9 * C, C).astype(jnp.bfloat16)
    w2 = params["w2"].reshape(9 * C, C).astype(jnp.bfloat16)
    s1 = params["scale1"].reshape(1, C).astype(jnp.float32)
    b1 = params["shift1"].reshape(1, C).astype(jnp.float32)
    s2 = params["scale2"].reshape(1, C).astype(jnp.float32)
    b2 = params["shift2"].reshape(1, C).astype(jnp.float32)

    kernel = functools.partial(_sphere_block_kernel, H=H, W=W, C=C)

    def wspec():
        return pl.BlockSpec((9 * C, C), lambda n: (0, 0))

    def vspec():
        return pl.BlockSpec((1, C), lambda n: (0, 0))

    # Deliberate VMEM budget: pbuf + double-buffered in/out blocks + f32
    # temporaries (identity, conv accumulators, tap casts) + weights, ~50% headroom.
    pbuf_bytes = (HW + 2 * PAD) * C * 2
    io_bytes = 2 * 2 * HW * C * 4
    tmp_bytes = 10 * HW * C * 4
    w_bytes = 2 * 2 * (9 * C * C) * 2 + 4 * 2 * C * 4
    vmem_limit = int(min(max(1.5 * (pbuf_bytes + io_bytes + tmp_bytes + w_bytes),
                             32 * 2**20), 96 * 2**20))

    grid_spec = pltpu.PrefetchScalarGridSpec(
        num_scalar_prefetch=0,
        grid=(N,),
        in_specs=[
            pl.BlockSpec((1, HW, C), lambda n: (n, 0, 0)),
            wspec(), vspec(), vspec(),
            wspec(), vspec(), vspec(),
        ],
        out_specs=pl.BlockSpec((1, HW, C), lambda n: (n, 0, 0)),
        scratch_shapes=[
            pltpu.VMEM((HW + 2 * PAD, C), jnp.bfloat16),    # zero-haloed bf16 activation
        ],
    )
    out_flat = pl.pallas_call(
        kernel,
        out_shape=jax.ShapeDtypeStruct((N, HW, C), x.dtype),
        grid_spec=grid_spec,
        compiler_params=pltpu.CompilerParams(
            dimension_semantics=("parallel",),   # batch (N>=2) shards over v7x's 2 TCs
            vmem_limit_bytes=vmem_limit),
    )(x_flat, w1, s1, b1, w2, s2, b2)
    out = out_flat.reshape(N, H, W, C)
    return jnp.transpose(out, (0, 3, 1, 2))                 # NHWC -> NCHW


def _fold_bn(gamma, beta, mean, var, eps=1e-5):
    scale = gamma / jnp.sqrt(var + eps)
    shift = beta - mean * scale
    return scale, shift


def _reference(x_nchw, params):
    """Pure-JAX reference mirroring the kernel's numerics:
    bf16 conv operands, f32 accumulation, f32 elementwise/residual."""
    dn = ("NHWC", "HWIO", "NHWC")
    x = jnp.transpose(x_nchw, (0, 2, 3, 1)).astype(jnp.float32)
    w1 = params["w1"].astype(jnp.bfloat16)
    w2 = params["w2"].astype(jnp.bfloat16)
    y = jax.lax.conv_general_dilated(x.astype(jnp.bfloat16), w1, (1, 1),
                                     ((1, 1), (1, 1)), dimension_numbers=dn,
                                     preferred_element_type=jnp.float32)
    y = jnp.maximum(y * params["scale1"] + params["shift1"], 0.0)
    z = jax.lax.conv_general_dilated(y.astype(jnp.bfloat16), w2, (1, 1),
                                     ((1, 1), (1, 1)), dimension_numbers=dn,
                                     preferred_element_type=jnp.float32)
    z = jnp.maximum(z * params["scale2"] + params["shift2"] + x, 0.0)
    return jnp.transpose(z, (0, 3, 1, 2))


if __name__ == "__main__":
    # Small shapes: batch=2, inplanes=planes=16, H=W=16, stride=1, downsample=None.
    N, C, H, W = 2, 16, 16, 16
    key = jax.random.PRNGKey(0)
    kx, kw1, kw2, kb = jax.random.split(key, 4)

    x = jax.random.normal(kx, (N, C, H, W), dtype=jnp.float32)

    # Conv weights: PyTorch layout (Cout, Cin, 3, 3) -> HWIO (3, 3, Cin, Cout).
    fan_in = C * 3 * 3
    w1_oihw = jax.random.normal(kw1, (C, C, 3, 3), jnp.float32) * (2.0 / fan_in) ** 0.5
    w2_oihw = jax.random.normal(kw2, (C, C, 3, 3), jnp.float32) * (2.0 / fan_in) ** 0.5
    w1 = jnp.transpose(w1_oihw, (2, 3, 1, 0))
    w2 = jnp.transpose(w2_oihw, (2, 3, 1, 0))

    # Deterministic BatchNorm params / running stats (inference mode).
    b1k, b2k, b3k, b4k = jax.random.split(kb, 4)
    g1 = 1.0 + 0.1 * jax.random.normal(b1k, (C,), jnp.float32)
    be1 = 0.1 * jax.random.normal(b2k, (C,), jnp.float32)
    g2 = 1.0 + 0.1 * jax.random.normal(b3k, (C,), jnp.float32)
    be2 = 0.1 * jax.random.normal(b4k, (C,), jnp.float32)
    m1 = jnp.linspace(-0.2, 0.2, C, dtype=jnp.float32)
    v1 = jnp.linspace(0.8, 1.2, C, dtype=jnp.float32)
    m2 = jnp.linspace(0.2, -0.2, C, dtype=jnp.float32)
    v2 = jnp.linspace(1.2, 0.8, C, dtype=jnp.float32)
    scale1, shift1 = _fold_bn(g1, be1, m1, v1)
    scale2, shift2 = _fold_bn(g2, be2, m2, v2)

    params = dict(w1=w1, w2=w2, scale1=scale1, shift1=shift1,
                  scale2=scale2, shift2=shift2)

    out = jax.block_until_ready(sphere_basic_block(x, params))
    ref = jax.block_until_ready(_reference(x, params))

    assert out.shape == (N, C, H, W)
    np.testing.assert_allclose(np.asarray(out), np.asarray(ref), rtol=5e-3, atol=5e-3)
    print("KERNEL_OK")
</pallas_src>

<mosaic_0001>
module attributes {stable_mosaic.version = 11 : i64} {
  func.func @_sphere_block_kernel(%arg0: i32, %arg1: memref<1x256x16xf32, #tpu.memory_space<vmem>>, %arg2: memref<144x16xbf16, #tpu.memory_space<vmem>>, %arg3: memref<1x16xf32, #tpu.memory_space<vmem>>, %arg4: memref<1x16xf32, #tpu.memory_space<vmem>>, %arg5: memref<144x16xbf16, #tpu.memory_space<vmem>>, %arg6: memref<1x16xf32, #tpu.memory_space<vmem>>, %arg7: memref<1x16xf32, #tpu.memory_space<vmem>>, %arg8: memref<1x256x16xf32, #tpu.memory_space<vmem>>, %arg9: memref<320x16xbf16, #tpu.memory_space<vmem>>) attributes {dimension_semantics = [#tpu.dimension_semantics<parallel>], iteration_bounds = array<i64: 2>, scalar_prefetch = 0 : i64, scratch_operands = 1 : i64, tpu.core_type = #tpu.core_type<tc>, window_params = [{transform_indices = @transform_0, window_bounds = array<i64: 1, 256, 16>}, {pipeline_mode = #tpu.pipeline_mode<synchronous>, transform_indices = @transform_1, window_bounds = array<i64: 144, 16>}, {pipeline_mode = #tpu.pipeline_mode<synchronous>, transform_indices = @transform_2, window_bounds = array<i64: 1, 16>}, {pipeline_mode = #tpu.pipeline_mode<synchronous>, transform_indices = @transform_3, window_bounds = array<i64: 1, 16>}, {pipeline_mode = #tpu.pipeline_mode<synchronous>, transform_indices = @transform_4, window_bounds = array<i64: 144, 16>}, {pipeline_mode = #tpu.pipeline_mode<synchronous>, transform_indices = @transform_5, window_bounds = array<i64: 1, 16>}, {pipeline_mode = #tpu.pipeline_mode<synchronous>, transform_indices = @transform_6, window_bounds = array<i64: 1, 16>}, {transform_indices = @transform_7, window_bounds = array<i64: 1, 256, 16>}]} {
    %cst = arith.constant 0.000000e+00 : bf16
    %0 = vector.broadcast %cst : bf16 to vector<32x16xbf16>
    %c0 = arith.constant 0 : index
    %c0_0 = arith.constant 0 : index
    %1 = vector.load %arg9[%c0, %c0_0] : memref<320x16xbf16, #tpu.memory_space<vmem>>, vector<32x16xbf16>
    tpu.vector_store %arg9[%c0, %c0_0], %0 {strides = array<i32>} : memref<320x16xbf16, #tpu.memory_space<vmem>>, vector<32x16xbf16>,
    %c288 = arith.constant 288 : index
    %c0_1 = arith.constant 0 : index
    %2 = vector.load %arg9[%c288, %c0_1] : memref<320x16xbf16, #tpu.memory_space<vmem>>, vector<32x16xbf16>
    tpu.vector_store %arg9[%c288, %c0_1], %0 {strides = array<i32>} : memref<320x16xbf16, #tpu.memory_space<vmem>>, vector<32x16xbf16>,
    %3 = tpu.iota {dimensions = array<i32: 0>} : vector<256x1xi32>
    %c16_i32 = arith.constant 16 : i32
    %c0_i32 = arith.constant 0 : i32
    %4 = arith.cmpi eq, %c16_i32, %c0_i32 : i32
    %c1_i32 = arith.constant 1 : i32
    %5 = arith.select %4, %c1_i32, %c16_i32 : i32
    %6 = vector.broadcast %5 : i32 to vector<256x1xi32>
    %7 = arith.remsi %3, %6 : vector<256x1xi32>
    %c0_i32_2 = arith.constant 0 : i32
    %8 = vector.broadcast %c0_i32_2 : i32 to vector<256x1xi32>
    %9 = arith.cmpi ne, %7, %8 : vector<256x1xi32>
    %c0_i32_3 = arith.constant 0 : i32
    %10 = vector.broadcast %c0_i32_3 : i32 to vector<256x1xi32>
    %11 = arith.cmpi slt, %7, %10 : vector<256x1xi32>
    %c0_i32_4 = arith.constant 0 : i32
    %12 = arith.cmpi slt, %5, %c0_i32_4 : i32
    %13 = vector.broadcast %12 : i1 to vector<256x1xi1>
    %14 = vector.broadcast %13 : vector<256x1xi1> to vector<256x1xi1>
    %15 = arith.xori %11, %14 : vector<256x1xi1>
    %16 = arith.andi %15, %9 : vector<256x1xi1>
    %17 = vector.broadcast %5 : i32 to vector<256x1xi32>
    %18 = arith.addi %7, %17 : vector<256x1xi32>
    %19 = arith.select %16, %18, %7 : vector<256x1xi1>, vector<256x1xi32>
    %c1_i32_5 = arith.constant 1 : i32
    %20 = vector.broadcast %c1_i32_5 : i32 to vector<256x1xi32>
    %21 = arith.cmpi sge, %19, %20 : vector<256x1xi32>
    %c14_i32 = arith.constant 14 : i32
    %22 = vector.broadcast %c14_i32 : i32 to vector<256x1xi32>
    %23 = arith.cmpi sle, %19, %22 : vector<256x1xi32>
    %c0_6 = arith.constant 0 : index
    %c0_7 = arith.constant 0 : index
    %c0_8 = arith.constant 0 : index
    %24 = vector.load %arg1[%c0_6, %c0_7, %c0_8] : memref<1x256x16xf32, #tpu.memory_space<vmem>>, vector<1x256x16xf32>
    %25 = vector.shape_cast %24 : vector<1x256x16xf32> to vector<256x16xf32>
    %26 = arith.truncf %25 : vector<256x16xf32> to vector<256x16xbf16>
    %c32 = arith.constant 32 : index
    %c0_9 = arith.constant 0 : index
    %27 = vector.load %arg9[%c32, %c0_9] : memref<320x16xbf16, #tpu.memory_space<vmem>>, vector<256x16xbf16>
    tpu.vector_store %arg9[%c32, %c0_9], %26 {strides = array<i32>} : memref<320x16xbf16, #tpu.memory_space<vmem>>, vector<256x16xbf16>,
    %cst_10 = arith.constant 0.000000e+00 : f32
    %28 = vector.broadcast %cst_10 : f32 to vector<256x16xf32>
    %c15 = arith.constant 15 : index
    %c0_11 = arith.constant 0 : index
    %29 = vector.load %arg9[%c15, %c0_11] : memref<320x16xbf16, #tpu.memory_space<vmem>>, vector<256x16xbf16>
    %cst_12 = arith.constant 0.000000e+00 : f32
    %30 = arith.truncf %cst_12 : f32 to bf16
    %31 = vector.shape_cast %21 : vector<256x1xi1> to vector<256x1xi1>
    %32 = vector.broadcast %31 : vector<256x1xi1> to vector<256x16xi1>
    %33 = vector.broadcast %30 : bf16 to vector<256x16xbf16>
    %34 = arith.select %32, %29, %33 : vector<256x16xi1>, vector<256x16xbf16>
    %c0_13 = arith.constant 0 : index
    %c0_14 = arith.constant 0 : index
    %35 = vector.load %arg2[%c0_13, %c0_14] : memref<144x16xbf16, #tpu.memory_space<vmem>>, vector<16x16xbf16>
    %cst_15 = arith.constant dense<0.000000e+00> : vector<256x16xf32>
    %36 = tpu.matmul %34, %35, %cst_15 {dimension_numbers = #tpu.dot_dimension_numbers<[1], [0], [0], [1], [0, 0, 1, 1], [], []>} : vector<256x16xbf16>, vector<16x16xbf16>, vector<256x16xf32> -> vector<256x16xf32>
    %37 = arith.addf %28, %36 : vector<256x16xf32>
    %c16 = arith.constant 16 : index
    %c0_16 = arith.constant 0 : index
    %38 = vector.load %arg9[%c16, %c0_16] : memref<320x16xbf16, #tpu.memory_space<vmem>>, vector<256x16xbf16>
    %c16_17 = arith.constant 16 : index
    %c0_18 = arith.constant 0 : index
    %39 = vector.load %arg2[%c16_17, %c0_18] : memref<144x16xbf16, #tpu.memory_space<vmem>>, vector<16x16xbf16>
    %cst_19 = arith.constant dense<0.000000e+00> : vector<256x16xf32>
    %40 = tpu.matmul %38, %39, %cst_19 {dimension_numbers = #tpu.dot_dimension_numbers<[1], [0], [0], [1], [0, 0, 1, 1], [], []>} : vector<256x16xbf16>, vector<16x16xbf16>, vector<256x16xf32> -> vector<256x16xf32>
    %41 = arith.addf %37, %40 : vector<256x16xf32>
    %c17 = arith.constant 17 : index
    %c0_20 = arith.constant 0 : index
    %42 = vector.load %arg9[%c17, %c0_20] : memref<320x16xbf16, #tpu.memory_space<vmem>>, vector<256x16xbf16>
    %cst_21 = arith.constant 0.000000e+00 : f32
    %43 = arith.truncf %cst_21 : f32 to bf16
    %44 = vector.shape_cast %23 : vector<256x1xi1> to vector<256x1xi1>
    %45 = vector.broadcast %44 : vector<256x1xi1> to vector<256x16xi1>
    %46 = vector.broadcast %43 : bf16 to vector<256x16xbf16>
    %47 = arith.select %45, %42, %46 : vector<256x16xi1>, vector<256x16xbf16>
    %c32_22 = arith.constant 32 : index
    %c0_23 = arith.constant 0 : index
    %48 = vector.load %arg2[%c32_22, %c0_23] : memref<144x16xbf16, #tpu.memory_space<vmem>>, vector<16x16xbf16>
    %cst_24 = arith.constant dense<0.000000e+00> : vector<256x16xf32>
    %49 = tpu.matmul %47, %48, %cst_24 {dimension_numbers = #tpu.dot_dimension_numbers<[1], [0], [0], [1], [0, 0, 1, 1], [], []>} : vector<256x16xbf16>, vector<16x16xbf16>, vector<256x16xf32> -> vector<256x16xf32>
    %50 = arith.addf %41, %49 : vector<256x16xf32>
    %c31 = arith.constant 31 : index
    %c0_25 = arith.constant 0 : index
    %51 = vector.load %arg9[%c31, %c0_25] : memref<320x16xbf16, #tpu.memory_space<vmem>>, vector<256x16xbf16>
    %cst_26 = arith.constant 0.000000e+00 : f32
    %52 = arith.truncf %cst_26 : f32 to bf16
    %53 = vector.shape_cast %21 : vector<256x1xi1> to vector<256x1xi1>
    %54 = vector.broadcast %53 : vector<256x1xi1> to vector<256x16xi1>
    %55 = vector.broadcast %52 : bf16 to vector<256x16xbf16>
    %56 = arith.select %54, %51, %55 : vector<256x16xi1>, vector<256x16xbf16>
    %c48 = arith.constant 48 : index
    %c0_27 = arith.constant 0 : index
    %57 = vector.load %arg2[%c48, %c0_27] : memref<144x16xbf16, #tpu.memory_space<vmem>>, vector<16x16xbf16>
    %cst_28 = arith.constant dense<0.000000e+00> : vector<256x16xf32>
    %58 = tpu.matmul %56, %57, %cst_28 {dimension_numbers = #tpu.dot_dimension_numbers<[1], [0], [0], [1], [0, 0, 1, 1], [], []>} : vector<256x16xbf16>, vector<16x16xbf16>, vector<256x16xf32> -> vector<256x16xf32>
    %59 = arith.addf %50, %58 : vector<256x16xf32>
    %c32_29 = arith.constant 32 : index
    %c0_30 = arith.constant 0 : index
    %60 = vector.load %arg9[%c32_29, %c0_30] : memref<320x16xbf16, #tpu.memory_space<vmem>>, vector<256x16xbf16>
    %c64 = arith.constant 64 : index
    %c0_31 = arith.constant 0 : index
    %61 = vector.load %arg2[%c64, %c0_31] : memref<144x16xbf16, #tpu.memory_space<vmem>>, vector<16x16xbf16>
    %cst_32 = arith.constant dense<0.000000e+00> : vector<256x16xf32>
    %62 = tpu.matmul %60, %61, %cst_32 {dimension_numbers = #tpu.dot_dimension_numbers<[1], [0], [0], [1], [0, 0, 1, 1], [], []>} : vector<256x16xbf16>, vector<16x16xbf16>, vector<256x16xf32> -> vector<256x16xf32>
    %63 = arith.addf %59, %62 : vector<256x16xf32>
    %c33 = arith.constant 33 : index
    %c0_33 = arith.constant 0 : index
    %64 = vector.load %arg9[%c33, %c0_33] : memref<320x16xbf16, #tpu.memory_space<vmem>>, vector<256x16xbf16>
    %cst_34 = arith.constant 0.000000e+00 : f32
    %65 = arith.truncf %cst_34 : f32 to bf16
    %66 = vector.shape_cast %23 : vector<256x1xi1> to vector<256x1xi1>
    %67 = vector.broadcast %66 : vector<256x1xi1> to vector<256x16xi1>
    %68 = vector.broadcast %65 : bf16 to vector<256x16xbf16>
    %69 = arith.select %67, %64, %68 : vector<256x16xi1>, vector<256x16xbf16>
    %c80 = arith.constant 80 : index
    %c0_35 = arith.constant 0 : index
    %70 = vector.load %arg2[%c80, %c0_35] : memref<144x16xbf16, #tpu.memory_space<vmem>>, vector<16x16xbf16>
    %cst_36 = arith.constant dense<0.000000e+00> : vector<256x16xf32>
    %71 = tpu.matmul %69, %70, %cst_36 {dimension_numbers = #tpu.dot_dimension_numbers<[1], [0], [0], [1], [0, 0, 1, 1], [], []>} : vector<256x16xbf16>, vector<16x16xbf16>, vector<256x16xf32> -> vector<256x16xf32>
    %72 = arith.addf %63, %71 : vector<256x16xf32>
    %c47 = arith.constant 47 : index
    %c0_37 = arith.constant 0 : index
    %73 = vector.load %arg9[%c47, %c0_37] : memref<320x16xbf16, #tpu.memory_space<vmem>>, vector<256x16xbf16>
    %cst_38 = arith.constant 0.000000e+00 : f32
    %74 = arith.truncf %cst_38 : f32 to bf16
    %75 = vector.shape_cast %21 : vector<256x1xi1> to vector<256x1xi1>
    %76 = vector.broadcast %75 : vector<256x1xi1> to vector<256x16xi1>
    %77 = vector.broadcast %74 : bf16 to vector<256x16xbf16>
    %78 = arith.select %76, %73, %77 : vector<256x16xi1>, vector<256x16xbf16>
    %c96 = arith.constant 96 : index
    %c0_39 = arith.constant 0 : index
    %79 = vector.load %arg2[%c96, %c0_39] : memref<144x16xbf16, #tpu.memory_space<vmem>>, vector<16x16xbf16>
    %cst_40 = arith.constant dense<0.000000e+00> : vector<256x16xf32>
    %80 = tpu.matmul %78, %79, %cst_40 {dimension_numbers = #tpu.dot_dimension_numbers<[1], [0], [0], [1], [0, 0, 1, 1], [], []>} : vector<256x16xbf16>, vector<16x16xbf16>, vector<256x16xf32> -> vector<256x16xf32>
    %81 = arith.addf %72, %80 : vector<256x16xf32>
    %c48_41 = arith.constant 48 : index
    %c0_42 = arith.constant 0 : index
    %82 = vector.load %arg9[%c48_41, %c0_42] : memref<320x16xbf16, #tpu.memory_space<vmem>>, vector<256x16xbf16>
    %c112 = arith.constant 112 : index
    %c0_43 = arith.constant 0 : index
    %83 = vector.load %arg2[%c112, %c0_43] : memref<144x16xbf16, #tpu.memory_space<vmem>>, vector<16x16xbf16>
    %cst_44 = arith.constant dense<0.000000e+00> : vector<256x16xf32>
    %84 = tpu.matmul %82, %83, %cst_44 {dimension_numbers = #tpu.dot_dimension_numbers<[1], [0], [0], [1], [0, 0, 1, 1], [], []>} : vector<256x16xbf16>, vector<16x16xbf16>, vector<256x16xf32> -> vector<256x16xf32>
    %85 = arith.addf %81, %84 : vector<256x16xf32>
    %c49 = arith.constant 49 : index
    %c0_45 = arith.constant 0 : index
    %86 = vector.load %arg9[%c49, %c0_45] : memref<320x16xbf16, #tpu.memory_space<vmem>>, vector<256x16xbf16>
    %cst_46 = arith.constant 0.000000e+00 : f32
    %87 = arith.truncf %cst_46 : f32 to bf16
    %88 = vector.shape_cast %23 : vector<256x1xi1> to vector<256x1xi1>
    %89 = vector.broadcast %88 : vector<256x1xi1> to vector<256x16xi1>
    %90 = vector.broadcast %87 : bf16 to vector<256x16xbf16>
    %91 = arith.select %89, %86, %90 : vector<256x16xi1>, vector<256x16xbf16>
    %c128 = arith.constant 128 : index
    %c0_47 = arith.constant 0 : index
    %92 = vector.load %arg2[%c128, %c0_47] : memref<144x16xbf16, #tpu.memory_space<vmem>>, vector<16x16xbf16>
    %cst_48 = arith.constant dense<0.000000e+00> : vector<256x16xf32>
    %93 = tpu.matmul %91, %92, %cst_48 {dimension_numbers = #tpu.dot_dimension_numbers<[1], [0], [0], [1], [0, 0, 1, 1], [], []>} : vector<256x16xbf16>, vector<16x16xbf16>, vector<256x16xf32> -> vector<256x16xf32>
    %94 = arith.addf %85, %93 : vector<256x16xf32>
    %c0_49 = arith.constant 0 : index
    %c0_50 = arith.constant 0 : index
    %95 = vector.load %arg3[%c0_49, %c0_50] : memref<1x16xf32, #tpu.memory_space<vmem>>, vector<1x16xf32>
    %96 = vector.broadcast %95 : vector<1x16xf32> to vector<256x16xf32>
    %97 = arith.mulf %94, %96 : vector<256x16xf32>
    %c0_51 = arith.constant 0 : index
    %c0_52 = arith.constant 0 : index
    %98 = vector.load %arg4[%c0_51, %c0_52] : memref<1x16xf32, #tpu.memory_space<vmem>>, vector<1x16xf32>
    %99 = vector.broadcast %98 : vector<1x16xf32> to vector<256x16xf32>
    %100 = arith.addf %97, %99 : vector<256x16xf32>
    %cst_53 = arith.constant 0.000000e+00 : f32
    %101 = vector.broadcast %cst_53 : f32 to vector<256x16xf32>
    %102 = arith.maximumf %100, %101 : vector<256x16xf32>
    %103 = arith.truncf %102 : vector<256x16xf32> to vector<256x16xbf16>
    %c32_54 = arith.constant 32 : index
    %c0_55 = arith.constant 0 : index
    %104 = vector.load %arg9[%c32_54, %c0_55] : memref<320x16xbf16, #tpu.memory_space<vmem>>, vector<256x16xbf16>
    tpu.vector_store %arg9[%c32_54, %c0_55], %103 {strides = array<i32>} : memref<320x16xbf16, #tpu.memory_space<vmem>>, vector<256x16xbf16>,
    %cst_56 = arith.constant 0.000000e+00 : f32
    %105 = vector.broadcast %cst_56 : f32 to vector<256x16xf32>
    %c15_57 = arith.constant 15 : index
    %c0_58 = arith.constant 0 : index
    %106 = vector.load %arg9[%c15_57, %c0_58] : memref<320x16xbf16, #tpu.memory_space<vmem>>, vector<256x16xbf16>
    %cst_59 = arith.constant 0.000000e+00 : f32
    %107 = arith.truncf %cst_59 : f32 to bf16
    %108 = vector.shape_cast %21 : vector<256x1xi1> to vector<256x1xi1>
    %109 = vector.broadcast %108 : vector<256x1xi1> to vector<256x16xi1>
    %110 = vector.broadcast %107 : bf16 to vector<256x16xbf16>
    %111 = arith.select %109, %106, %110 : vector<256x16xi1>, vector<256x16xbf16>
    %c0_60 = arith.constant 0 : index
    %c0_61 = arith.constant 0 : index
    %112 = vector.load %arg5[%c0_60, %c0_61] : memref<144x16xbf16, #tpu.memory_space<vmem>>, vector<16x16xbf16>
    %cst_62 = arith.constant dense<0.000000e+00> : vector<256x16xf32>
    %113 = tpu.matmul %111, %112, %cst_62 {dimension_numbers = #tpu.dot_dimension_numbers<[1], [0], [0], [1], [0, 0, 1, 1], [], []>} : vector<256x16xbf16>, vector<16x16xbf16>, vector<256x16xf32> -> vector<256x16xf32>
    %114 = arith.addf %105, %113 : vector<256x16xf32>
    %c16_63 = arith.constant 16 : index
    %c0_64 = arith.constant 0 : index
    %115 = vector.load %arg9[%c16_63, %c0_64] : memref<320x16xbf16, #tpu.memory_space<vmem>>, vector<256x16xbf16>
    %c16_65 = arith.constant 16 : index
    %c0_66 = arith.constant 0 : index
    %116 = vector.load %arg5[%c16_65, %c0_66] : memref<144x16xbf16, #tpu.memory_space<vmem>>, vector<16x16xbf16>
    %cst_67 = arith.constant dense<0.000000e+00> : vector<256x16xf32>
    %117 = tpu.matmul %115, %116, %cst_67 {dimension_numbers = #tpu.dot_dimension_numbers<[1], [0], [0], [1], [0, 0, 1, 1], [], []>} : vector<256x16xbf16>, vector<16x16xbf16>, vector<256x16xf32> -> vector<256x16xf32>
    %118 = arith.addf %114, %117 : vector<256x16xf32>
    %c17_68 = arith.constant 17 : index
    %c0_69 = arith.constant 0 : index
    %119 = vector.load %arg9[%c17_68, %c0_69] : memref<320x16xbf16, #tpu.memory_space<vmem>>, vector<256x16xbf16>
    %cst_70 = arith.constant 0.000000e+00 : f32
    %120 = arith.truncf %cst_70 : f32 to bf16
    %121 = vector.shape_cast %23 : vector<256x1xi1> to vector<256x1xi1>
    %122 = vector.broadcast %121 : vector<256x1xi1> to vector<256x16xi1>
    %123 = vector.broadcast %120 : bf16 to vector<256x16xbf16>
    %124 = arith.select %122, %119, %123 : vector<256x16xi1>, vector<256x16xbf16>
    %c32_71 = arith.constant 32 : index
    %c0_72 = arith.constant 0 : index
    %125 = vector.load %arg5[%c32_71, %c0_72] : memref<144x16xbf16, #tpu.memory_space<vmem>>, vector<16x16xbf16>
    %cst_73 = arith.constant dense<0.000000e+00> : vector<256x16xf32>
    %126 = tpu.matmul %124, %125, %cst_73 {dimension_numbers = #tpu.dot_dimension_numbers<[1], [0], [0], [1], [0, 0, 1, 1], [], []>} : vector<256x16xbf16>, vector<16x16xbf16>, vector<256x16xf32> -> vector<256x16xf32>
    %127 = arith.addf %118, %126 : vector<256x16xf32>
    %c31_74 = arith.constant 31 : index
    %c0_75 = arith.constant 0 : index
    %128 = vector.load %arg9[%c31_74, %c0_75] : memref<320x16xbf16, #tpu.memory_space<vmem>>, vector<256x16xbf16>
    %cst_76 = arith.constant 0.000000e+00 : f32
    %129 = arith.truncf %cst_76 : f32 to bf16
    %130 = vector.shape_cast %21 : vector<256x1xi1> to vector<256x1xi1>
    %131 = vector.broadcast %130 : vector<256x1xi1> to vector<256x16xi1>
    %132 = vector.broadcast %129 : bf16 to vector<256x16xbf16>
    %133 = arith.select %131, %128, %132 : vector<256x16xi1>, vector<256x16xbf16>
    %c48_77 = arith.constant 48 : index
    %c0_78 = arith.constant 0 : index
    %134 = vector.load %arg5[%c48_77, %c0_78] : memref<144x16xbf16, #tpu.memory_space<vmem>>, vector<16x16xbf16>
    %cst_79 = arith.constant dense<0.000000e+00> : vector<256x16xf32>
    %135 = tpu.matmul %133, %134, %cst_79 {dimension_numbers = #tpu.dot_dimension_numbers<[1], [0], [0], [1], [0, 0, 1, 1], [], []>} : vector<256x16xbf16>, vector<16x16xbf16>, vector<256x16xf32> -> vector<256x16xf32>
    %136 = arith.addf %127, %135 : vector<256x16xf32>
    %c32_80 = arith.constant 32 : index
    %c0_81 = arith.constant 0 : index
    %137 = vector.load %arg9[%c32_80, %c0_81] : memref<320x16xbf16, #tpu.memory_space<vmem>>, vector<256x16xbf16>
    %c64_82 = arith.constant 64 : index
    %c0_83 = arith.constant 0 : index
    %138 = vector.load %arg5[%c64_82, %c0_83] : memref<144x16xbf16, #tpu.memory_space<vmem>>, vector<16x16xbf16>
    %cst_84 = arith.constant dense<0.000000e+00> : vector<256x16xf32>
    %139 = tpu.matmul %137, %138, %cst_84 {dimension_numbers = #tpu.dot_dimension_numbers<[1], [0], [0], [1], [0, 0, 1, 1], [], []>} : vector<256x16xbf16>, vector<16x16xbf16>, vector<256x16xf32> -> vector<256x16xf32>
    %140 = arith.addf %136, %139 : vector<256x16xf32>
    %c33_85 = arith.constant 33 : index
    %c0_86 = arith.constant 0 : index
    %141 = vector.load %arg9[%c33_85, %c0_86] : memref<320x16xbf16, #tpu.memory_space<vmem>>, vector<256x16xbf16>
    %cst_87 = arith.constant 0.000000e+00 : f32
    %142 = arith.truncf %cst_87 : f32 to bf16
    %143 = vector.shape_cast %23 : vector<256x1xi1> to vector<256x1xi1>
    %144 = vector.broadcast %143 : vector<256x1xi1> to vector<256x16xi1>
    %145 = vector.broadcast %142 : bf16 to vector<256x16xbf16>
    %146 = arith.select %144, %141, %145 : vector<256x16xi1>, vector<256x16xbf16>
    %c80_88 = arith.constant 80 : index
    %c0_89 = arith.constant 0 : index
    %147 = vector.load %arg5[%c80_88, %c0_89] : memref<144x16xbf16, #tpu.memory_space<vmem>>, vector<16x16xbf16>
    %cst_90 = arith.constant dense<0.000000e+00> : vector<256x16xf32>
    %148 = tpu.matmul %146, %147, %cst_90 {dimension_numbers = #tpu.dot_dimension_numbers<[1], [0], [0], [1], [0, 0, 1, 1], [], []>} : vector<256x16xbf16>, vector<16x16xbf16>, vector<256x16xf32> -> vector<256x16xf32>
    %149 = arith.addf %140, %148 : vector<256x16xf32>
    %c47_91 = arith.constant 47 : index
    %c0_92 = arith.constant 0 : index
    %150 = vector.load %arg9[%c47_91, %c0_92] : memref<320x16xbf16, #tpu.memory_space<vmem>>, vector<256x16xbf16>
    %cst_93 = arith.constant 0.000000e+00 : f32
    %151 = arith.truncf %cst_93 : f32 to bf16
    %152 = vector.shape_cast %21 : vector<256x1xi1> to vector<256x1xi1>
    %153 = vector.broadcast %152 : vector<256x1xi1> to vector<256x16xi1>
    %154 = vector.broadcast %151 : bf16 to vector<256x16xbf16>
    %155 = arith.select %153, %150, %154 : vector<256x16xi1>, vector<256x16xbf16>
    %c96_94 = arith.constant 96 : index
    %c0_95 = arith.constant 0 : index
    %156 = vector.load %arg5[%c96_94, %c0_95] : memref<144x16xbf16, #tpu.memory_space<vmem>>, vector<16x16xbf16>
    %cst_96 = arith.constant dense<0.000000e+00> : vector<256x16xf32>
    %157 = tpu.matmul %155, %156, %cst_96 {dimension_numbers = #tpu.dot_dimension_numbers<[1], [0], [0], [1], [0, 0, 1, 1], [], []>} : vector<256x16xbf16>, vector<16x16xbf16>, vector<256x16xf32> -> vector<256x16xf32>
    %158 = arith.addf %149, %157 : vector<256x16xf32>
    %c48_97 = arith.constant 48 : index
    %c0_98 = arith.constant 0 : index
    %159 = vector.load %arg9[%c48_97, %c0_98] : memref<320x16xbf16, #tpu.memory_space<vmem>>, vector<256x16xbf16>
    %c112_99 = arith.constant 112 : index
    %c0_100 = arith.constant 0 : index
    %160 = vector.load %arg5[%c112_99, %c0_100] : memref<144x16xbf16, #tpu.memory_space<vmem>>, vector<16x16xbf16>
    %cst_101 = arith.constant dense<0.000000e+00> : vector<256x16xf32>
    %161 = tpu.matmul %159, %160, %cst_101 {dimension_numbers = #tpu.dot_dimension_numbers<[1], [0], [0], [1], [0, 0, 1, 1], [], []>} : vector<256x16xbf16>, vector<16x16xbf16>, vector<256x16xf32> -> vector<256x16xf32>
    %162 = arith.addf %158, %161 : vector<256x16xf32>
    %c49_102 = arith.constant 49 : index
    %c0_103 = arith.constant 0 : index
    %163 = vector.load %arg9[%c49_102, %c0_103] : memref<320x16xbf16, #tpu.memory_space<vmem>>, vector<256x16xbf16>
    %cst_104 = arith.constant 0.000000e+00 : f32
    %164 = arith.truncf %cst_104 : f32 to bf16
    %165 = vector.shape_cast %23 : vector<256x1xi1> to vector<256x1xi1>
    %166 = vector.broadcast %165 : vector<256x1xi1> to vector<256x16xi1>
    %167 = vector.broadcast %164 : bf16 to vector<256x16xbf16>
    %168 = arith.select %166, %163, %167 : vector<256x16xi1>, vector<256x16xbf16>
    %c128_105 = arith.constant 128 : index
    %c0_106 = arith.constant 0 : index
    %169 = vector.load %arg5[%c128_105, %c0_106] : memref<144x16xbf16, #tpu.memory_space<vmem>>, vector<16x16xbf16>
    %cst_107 = arith.constant dense<0.000000e+00> : vector<256x16xf32>
    %170 = tpu.matmul %168, %169, %cst_107 {dimension_numbers = #tpu.dot_dimension_numbers<[1], [0], [0], [1], [0, 0, 1, 1], [], []>} : vector<256x16xbf16>, vector<16x16xbf16>, vector<256x16xf32> -> vector<256x16xf32>
    %171 = arith.addf %162, %170 : vector<256x16xf32>
    %c0_108 = arith.constant 0 : index
    %c0_109 = arith.constant 0 : index
    %172 = vector.load %arg6[%c0_108, %c0_109] : memref<1x16xf32, #tpu.memory_space<vmem>>, vector<1x16xf32>
    %173 = vector.broadcast %172 : vector<1x16xf32> to vector<256x16xf32>
    %174 = arith.mulf %171, %173 : vector<256x16xf32>
    %c0_110 = arith.constant 0 : index
    %c0_111 = arith.constant 0 : index
    %175 = vector.load %arg7[%c0_110, %c0_111] : memref<1x16xf32, #tpu.memory_space<vmem>>, vector<1x16xf32>
    %176 = vector.broadcast %175 : vector<1x16xf32> to vector<256x16xf32>
    %177 = arith.addf %174, %176 : vector<256x16xf32>
    %178 = arith.addf %177, %25 : vector<256x16xf32>
    %cst_112 = arith.constant 0.000000e+00 : f32
    %179 = vector.broadcast %cst_112 : f32 to vector<256x16xf32>
    %180 = arith.maximumf %178, %179 : vector<256x16xf32>
    %c0_113 = arith.constant 0 : index
    %c0_114 = arith.constant 0 : index
    %c0_115 = arith.constant 0 : index
    %181 = vector.load %arg8[%c0_113, %c0_114, %c0_115] : memref<1x256x16xf32, #tpu.memory_space<vmem>>, vector<1x256x16xf32>
    %182 = vector.shape_cast %181 : vector<1x256x16xf32> to vector<256x16xf32>
    %183 = vector.shape_cast %180 : vector<256x16xf32> to vector<1x256x16xf32>
    tpu.vector_store %arg8[%c0_113, %c0_114, %c0_115], %183 {strides = array<i32>} : memref<1x256x16xf32, #tpu.memory_space<vmem>>, vector<1x256x16xf32>,
    return
  }
  func.func @transform_0(%arg0: i32) -> (i32, i32, i32) {
    %c0_i32 = arith.constant 0 : i32
    %c0_i32_0 = arith.constant 0 : i32
    %c0_i32_1 = arith.constant 0 : i32
    return %arg0, %c0_i32, %c0_i32_0 : i32, i32, i32
  }
  func.func @transform_1(%arg0: i32) -> (i32, i32) {
    %c0_i32 = arith.constant 0 : i32
    %c0_i32_0 = arith.constant 0 : i32
    %c0_i32_1 = arith.constant 0 : i32
    return %c0_i32, %c0_i32_0 : i32, i32
  }
  func.func @transform_2(%arg0: i32) -> (i32, i32) {
    %c0_i32 = arith.constant 0 : i32
    %c0_i32_0 = arith.constant 0 : i32
    %c0_i32_1 = arith.constant 0 : i32
    return %c0_i32, %c0_i32_0 : i32, i32
  }
  func.func @transform_3(%arg0: i32) -> (i32, i32) {
    %c0_i32 = arith.constant 0 : i32
    %c0_i32_0 = arith.constant 0 : i32
    %c0_i32_1 = arith.constant 0 : i32
    return %c0_i32, %c0_i32_0 : i32, i32
  }
  func.func @transform_4(%arg0: i32) -> (i32, i32) {
    %c0_i32 = arith.constant 0 : i32
    %c0_i32_0 = arith.constant 0 : i32
    %c0_i32_1 = arith.constant 0 : i32
    return %c0_i32, %c0_i32_0 : i32, i32
  }
  func.func @transform_5(%arg0: i32) -> (i32, i32) {
    %c0_i32 = arith.constant 0 : i32
    %c0_i32_0 = arith.constant 0 : i32
    %c0_i32_1 = arith.constant 0 : i32
    return %c0_i32, %c0_i32_0 : i32, i32
  }
  func.func @transform_6(%arg0: i32) -> (i32, i32) {
    %c0_i32 = arith.constant 0 : i32
    %c0_i32_0 = arith.constant 0 : i32
    %c0_i32_1 = arith.constant 0 : i32
    return %c0_i32, %c0_i32_0 : i32, i32
  }
  func.func @transform_7(%arg0: i32) -> (i32, i32, i32) {
    %c0_i32 = arith.constant 0 : i32
    %c0_i32_0 = arith.constant 0 : i32
    %c0_i32_1 = arith.constant 0 : i32
    return %arg0, %c0_i32, %c0_i32_0 : i32, i32, i32
  }
}

</mosaic_0001>

<bundles_post_ra>
// kernel: tpu_custom_call.1
= control target key start
LH: loop header
LB: loop body
LE: loop exit
PB: predicated region body
PF: predicated region fallthrough
CT: control target
= control target key end

     0   :  { %s10593_s24 = smov 0   ;;  %s15286_s0 = inlined_call_operand.vmem [shape: f32[2,256,16], index: 0, kind: input, shape index: {}]   ;;  %s15287_s1 = inlined_call_operand.vmem [shape: bf16[144,16], index: 1, kind: input, shape index: {}]   ;;  %s15288_s2 = inlined_call_operand.vmem [shape: f32[1,16], index: 2, kind: input, shape index: {}]   ;;  %s15289_s3 = inlined_call_operand.vmem [shape: f32[1,16], index: 3, kind: input, shape index: {}]   ;;  %s15290_s4 = inlined_call_operand.vmem [shape: bf16[144,16], index: 4, kind: input, shape index: {}]   ;;  %s15291_s5 = inlined_call_operand.vmem [shape: f32[1,16], index: 5, kind: input, shape index: {}]   ;;  %s15292_s6 = inlined_call_operand.vmem [shape: f32[1,16], index: 6, kind: input, shape index: {}]   ;;  %s15293_s7 = inlined_call_operand.vmem [shape: f32[2,256,16], index: 7, kind: output, shape index: {}]  }
   0x1 LB: > { %s9622_s25 = sadd.s32 4294967295, %s10549_s24   ;;  %p9626_p0 = scmp.ge.s32.totalorder %s10549_s24, 1  ;;  %s10549_s24 = sphi %s10593_s24, %s17_s24  }
   0x2   : > { %p237_p1 = scmp.lt.s32.totalorder %s10549_s24, 3 }
   0x4   : > { %p238_p2 = pnand %p9626_p0, %p237_p1 }
   0x6   : > { %241 = sbr.rel (%p238_p2) target bundleno = 1526 (0x5f6), region = 48 }
   0xb   : > { %v10396_v0 = vld [vmem:[%s15287_s1 + $0x8] sm:$0xff]  ;;  %vm15294_vm0 = vcmask 125952   ;;  %p269_p3 = scmp.lt.s32.totalorder %s9622_s25, 1  ;;  %v10395_v1 = vld [vmem:[%s15287_s1] sm:$0xff]  ;;  %v291_v2 = vlaneseq  ;;  %v15340_v3 = vmov 0   ;;  %v10397_v4 = vld [vmem:[%s15287_s1 + $0x10] sm:$0xff] }
   0xc   : > { %285 = vst.msk [vmem:[#allocation2 + $0x8] sm:$0xf] %vm15294_vm0, %v15340_v3  ;;  %1761 = vmatpush.bf16.msra.mxu0 %v10396_v0  ;;  %10493 = vmatpush.bf16.msra.mxu2 %v10396_v0  ;;  %vm10552_vm1 = vmmov 1   ;;  %vm1029_vm3 = vsmask.f32 3328  ;;  %vm15296_vm4 = vcmask 130048   ;;  %v10643_v15 = vunpack.c.l.b16 %v15340_v3 }
   0xd   : > { %286 = vst.msk [vmem:[#allocation2 + $0xc] sm:$0xf] %vm15294_vm0, %v15340_v3  ;;  %s17013_s25 = smov (!%p269_p3, %s9622_s25), 1  ;;  %v10616_v5 = vshrl.u32 %v291_v2, 7  ;;  %vm966_vm2 = vmpackc.low %vm10552_vm1, %vm10552_vm1  ;;  %2140 = vmatpush.bf16.msra.mxu1 %v10395_v1  ;;  %10494 = vmatpush.bf16.msra.mxu3 %v10395_v1  ;;  %vm1030_vm5 = vsmask.f32 7440  ;;  %v10651_v23 = vunpack.c.h.b16 %v15340_v3 }
   0xe   : > { %v10619_v6 = vsel %vm966_vm2, 65537, %v15340_v3  ;;  %284 = vst.msk [vmem:[#allocation2 + $0x4] sm:$0xf] %vm15294_vm0, %v15340_v3  ;;  %s10377_s9 = sshll.u32 %s17013_s25, 8  ;;  %vm10679_vm10 = vmor %vm1029_vm3, %vm1030_vm5  ;;  %v15641_v62 = vmov 0 }
   0xf   : > { %v294_v7 = vadd.s32 16, %v10616_v5  ;;  %v328_v8 = vand.u32 15, %v10616_v5  ;;  %287 = vst.msk [vmem:[#allocation2 + $0x90] sm:$0xf] %vm15294_vm0, %v15340_v3  ;;  %s10633_s12 = scalar_lea.vmem %s15286_s0, %s10377_s9  ;;  %v15335_v9 = vshll.u32 %v10619_v6, 16  ;;  %v1046_v10 = vshrl.u32 %v10619_v6, 16  ;;  %s14969_s19 = scalar_lea.vmem %s15293_s7, %s10377_s9 }
  0x10   : > { %3216 = vmatpush.bf16.msrb.mxu2 %v10397_v4  ;;  %288 = vst.msk [vmem:[#allocation2 + $0x94] sm:$0xf] %vm15294_vm0, %v15340_v3  ;;  %v786_v11 = vld [vmem:[%s10633_s12 + $0x70] sm:$0xff]  ;;  %v787_v12 = vld [vmem:[%s10633_s12 + $0x78] sm:$0xff]  ;;  %v772_v13 = vld [vmem:[%s10633_s12] sm:$0xff]  ;;  %v308_v24 = vadd.s32 128, %v10616_v5 }
  0x11   : > { %v342_v14 = vand.u32 15, %v294_v7  ;;  %289 = vst.msk [vmem:[#allocation2 + $0x98] sm:$0xf] %vm15294_vm0, %v15340_v3  ;;  %v818_v16 = vpack.c.bf16 %v786_v11, %v786_v11  ;;  %v819_v17 = vpack.c.bf16 %v787_v12, %v787_v12  ;;  %v773_v18 = vld [vmem:[%s10633_s12 + $0x8] sm:$0xff]  ;;  %v804_v19 = vpack.c.bf16 %v772_v13, %v772_v13  ;;  %v788_v20 = vld [vmem:[%s10633_s12 + $0x80] sm:$0xff]  ;;  %v774_v46 = vld [vmem:[%s10633_s12 + $0x10] sm:$0xff] }
  0x12   : > { %v789_v21 = vld [vmem:[%s10633_s12 + $0x88] sm:$0xff]  ;;  %vm708_vm6 = vcmp.ge.s32.totalorder %v328_v8, 1  ;;  %v805_v22 = vpack.c.bf16 %v773_v18, %v773_v18  ;;  %v820_v27 = vpack.c.bf16 %v788_v20, %v788_v20  ;;  %v310_v30 = vadd.s32 144, %v10616_v5  ;;  %v775_v47 = vld [vmem:[%s10633_s12 + $0x18] sm:$0xff]  ;;  %v790_v53 = vld [vmem:[%s10633_s12 + $0x90] sm:$0xff] }
  0x13   : > { %vm710_vm7 = vcmp.ge.s32.totalorder %v342_v14, 1  ;;  %vm965_vm8 = vmpackc.low %vm708_vm6, %vm708_vm6  ;;  %v785_v25 = vld [vmem:[%s10633_s12 + $0x68] sm:$0xff]  ;;  %850 = vst.msk [vmem:[#allocation2 + $0x48] sm:$0xf] %vm15294_vm0, %v818_v16  ;;  %v821_v28 = vpack.c.bf16 %v789_v21, %v789_v21  ;;  %v10662_v34 = vrot.slane %v15335_v9, 5  ;;  %v1048_v35 = vrot.slane %v1046_v10, 4 }
  0x14   : > { %v10379_v26 = vld [vmem:[#allocation2 + $0x8] sm:$0xff]  ;;  %vm967_vm9 = vmpackc.low %vm710_vm7, %vm710_vm7  ;;  %v997_v29 = vsel %vm965_vm8, 65537, %v15340_v3  ;;  %851 = vst.msk [vmem:[#allocation2 + $0x4c] sm:$0xf] %vm15294_vm0, %v819_v17  ;;  %v817_v37 = vpack.c.bf16 %v785_v25, %v785_v25  ;;  %v10669_v38 = vadd.s32 32, %v10616_v5  ;;  %v440_v42 = vand.u32 15, %v308_v24 }
  0x15   : > { %v999_v31 = vsel %vm967_vm9, 65537, %v15340_v3  ;;  %v1033_v32 = vshll.u32 %v997_v29, 16  ;;  %v1036_v33 = vshrl.u32 %v997_v29, 16  ;;  %9699 = vmatmul.msk.bf16.vlgmr.msra.gmra.mxu0 %vm15296_vm4, %v10379_v26  ;;  %836 = vst.msk [vmem:[#allocation2 + $0x10] sm:$0xf] %vm15294_vm0, %v804_v19  ;;  %v1049_v43 = vor.u32 %v1048_v35, %v10662_v34  ;;  %v10414_v12 = vld [vmem:[%s15287_s1 + $0x18] sm:$0xff] }
  0x16   : > { %v1052_v36 = vshll.u32 %v999_v31, 16  ;;  %837 = vst.msk [vmem:[#allocation2 + $0x14] sm:$0xf] %vm15294_vm0, %v805_v22  ;;  %v1056_v41 = vshrl.u32 %v999_v31, 16  ;;  %v454_v45 = vand.u32 15, %v310_v30  ;;  %vm724_vm11 = vcmp.ge.s32.totalorder %v440_v42, 1  ;;  %3694 = vmatpush.bf16.msrb.mxu3 %v10414_v12 }
  0x17   : > { %v1035_v39 = vrot.slane %v1033_v32, 5  ;;  %v1038_v40 = vrot.slane %v1036_v33, 4  ;;  %852 = vst.msk [vmem:[#allocation2 + $0x50] sm:$0xf] %vm15294_vm0, %v820_v27  ;;  %v10684_v54 = vrot.slane %v1049_v43, 4  ;;  %v806_v56 = vpack.c.bf16 %v774_v46, %v774_v46  ;;  %vm981_vm15 = vmpackc.low %vm724_vm11, %vm724_vm11  ;;  %v10415_v18 = vld [vmem:[%s15287_s1 + $0x20] sm:$0xff] }
  0x18   : > { %v1054_v44 = vrot.slane %v1052_v36, 5  ;;  %853 = vst.msk [vmem:[#allocation2 + $0x54] sm:$0xf] %vm15294_vm0, %v821_v28  ;;  %v1058_v50 = vrot.slane %v1056_v41, 4  ;;  %vm10686_vm12 = vcmp.ge.s32.totalorder %v454_v45, 1  ;;  %v1013_v63 = vsel %vm981_vm15, 65537, %v15340_v3  ;;  %3951 = vmatpush.bf16.msrb.mxu0 %v10415_v18 }
  0x19   : > { %v1039_v49 = vor.u32 %v1038_v40, %v1035_v39  ;;  %v1351_v51 = vunpack.c.l.b16 %v1035_v39  ;;  %v1352_v52 = vunpack.c.h.b16 %v1035_v39  ;;  %849 = vst.msk [vmem:[#allocation2 + $0x44] sm:$0xf] %vm15294_vm0, %v817_v37  ;;  %v868_v57 = vld [vmem:[#allocation2 + $0x4] sm:$0x8]  ;;  %v807_v0 = vpack.c.bf16 %v775_v47, %v775_v47  ;;  %v870_v2 = vld [vmem:[#allocation2 + $0xc] sm:$0xf]  ;;  %vm983_vm2 = vmpackc.low %vm10686_vm12, %vm10686_vm12 }
  0x1a   : > { %v1059_v59 = vor.u32 %v1058_v50, %v1054_v44  ;;  %v1055_v61 = vsel %vm10679_vm10, %v10684_v54, %v1054_v44  ;;  %838 = vst.msk [vmem:[#allocation2 + $0x18] sm:$0xf] %vm15294_vm0, %v806_v56  ;;  %v822_v1 = vpack.c.bf16 %v790_v53, %v790_v53  ;;  %v1015_v17 = vsel %vm983_vm2, 65537, %v15340_v3  ;;  %v869_v19 = vld [vmem:[#allocation2 + $0x8] sm:$0xf]  ;;  %v791_v32 = vld [vmem:[%s10633_s12 + $0x98] sm:$0xff] }
  0x1b   : > { %v1040_v58 = vrot.slane %v1039_v49, 4  ;;  %vm1355_vm13 = vcmp.ne.s32.totalorder %v1351_v51, %v10643_v15  ;;  %vm1356_vm14 = vcmp.ne.s32.totalorder %v1352_v52, %v10651_v23  ;;  %v10387_v60 = vld [vmem:[#allocation2 + $0x48] sm:$0xff]  ;;  %v1365_v8 = vunpack.c.l.b16 %v1055_v61  ;;  %839 = vst.msk [vmem:[#allocation2 + $0x1c] sm:$0xf] %vm15294_vm0, %v807_v0 }
  0x1c   : > { %vm10696_vm1 = vmpackc.low %vm1356_vm14, %vm1355_vm13  ;;  %v1060_v7 = vrot.slane %v1059_v59, 4  ;;  %v1366_v11 = vunpack.c.h.b16 %v1055_v61  ;;  %9707 = vmatmul.msk.bf16.vlgmr.msra.gmra.mxu2 %vm15296_vm4, %v10387_v60  ;;  %854 = vst.msk [vmem:[#allocation2 + $0x58] sm:$0xf] %vm15294_vm0, %v822_v1  ;;  %v871_v22 = vld [vmem:[#allocation2 + $0x10] sm:$0xf]  ;;  %v15644_v24 = vmov 0  ;;  %v823_v45 = vpack.c.bf16 %v791_v32, %v791_v32 }
  0x1d   : > { %v15642_v62 = vsel %vm10696_vm1, 4294967295, %v15641_v62  ;;  %v1045_v4 = vsel %vm10679_vm10, %v1040_v58, %v10662_v34  ;;  %v1582_v16 = vsel %vm10696_vm1, %v868_v57, 0  ;;  %vm1369_vm3 = vcmp.ne.s32.totalorder %v1365_v8, %v10643_v15  ;;  %v10380_v33 = vld [vmem:[#allocation2 + $0x10] sm:$0xff]  ;;  %v886_v18 = vld [vmem:[#allocation2 + $0x4c] sm:$0xf] }
  0x1e   : > { %15643 = vst [vmem:[#allocation3_spill] sm:$0xff] %v15642_v62  ;;  %v1358_v13 = vunpack.c.l.b16 %v1045_v4  ;;  %v1359_v14 = vunpack.c.h.b16 %v1045_v4  ;;  %v1065_v20 = vsel %vm10679_vm10, %v1060_v7, %v10662_v34  ;;  %vm1370_vm5 = vcmp.ne.s32.totalorder %v1366_v11, %v10651_v23  ;;  %v777_v32 = vld [vmem:[%s10633_s12 + $0x28] sm:$0xff] }
  0x1f   : > { %v1876_v21 = vunpack.c.l.b16 %v1582_v16  ;;  %vm10727_vm8 = vmpackc.low %vm1370_vm5, %vm1369_vm3  ;;  %v1372_v25 = vunpack.c.l.b16 %v1065_v20  ;;  %v1373_v26 = vunpack.c.h.b16 %v1065_v20  ;;  %v15647_v27 = vmov 0  ;;  %855 = vst.msk [vmem:[#allocation2 + $0x5c] sm:$0xf] %vm15294_vm0, %v823_v45  ;;  %v10388_v8 = vld [vmem:[#allocation2 + $0x50] sm:$0xff]  ;;  %v885_v20 = vld [vmem:[#allocation2 + $0x48] sm:$0xf] }
  0x20   : > { %vm1362_vm6 = vcmp.ne.s32.totalorder %v1358_v13, %v10643_v15  ;;  %vm1363_vm7 = vcmp.ne.s32.totalorder %v1359_v14, %v10651_v23  ;;  %v15645_v24 = vsel %vm10727_vm8, 4294967295, %v15644_v24  ;;  %v1584_v28 = vsel %vm10727_vm8, %v870_v2, 0  ;;  %v884_v4 = vld [vmem:[#allocation2 + $0x44] sm:$0xf] }
  0x21   : > { %15646 = vst [vmem:[#allocation4_spill] sm:$0xff] %v15645_v24  ;;  %vm10731_vm9 = vmpackc.low %vm1363_vm7, %vm1362_vm6  ;;  %v1192_v29 = vshll.u32 %v1013_v63, 16  ;;  %v1196_v30 = vshrl.u32 %v1013_v63, 16  ;;  %v1212_v31 = vshll.u32 %v1015_v17, 16  ;;  %vm1376_vm11 = vcmp.ne.s32.totalorder %v1372_v25, %v10643_v15 }
  0x22   : > { %v15648_v27 = vsel %vm10731_vm9, 4294967295, %v15647_v27  ;;  %vm1377_vm12 = vcmp.ne.s32.totalorder %v1373_v26, %v10651_v23  ;;  %v1583_v35 = vsel %vm10731_vm9, %v869_v19, 0  ;;  %v1878_v36 = vunpack.c.l.b16 %v1584_v28 }
  0x23   : > { %15649 = vst [vmem:[#allocation5_spill] sm:$0xff] %v15648_v27  ;;  %vm10742_vm13 = vmpackc.low %vm1377_vm12, %vm1376_vm11  ;;  %v15650_v37 = vmov 0  ;;  %v1877_v39 = vunpack.c.l.b16 %v1583_v35  ;;  %v1194_v40 = vrot.slane %v1192_v29, 5  ;;  %v1198_v41 = vrot.slane %v1196_v30, 4  ;;  %v4067_v27 = vld [vmem:[#allocation2 + $0x18] sm:$0xf] }
  0x24   : > { %v15651_v37 = vsel %vm10742_vm13, 4294967295, %v15650_v37  ;;  %v1214_v42 = vrot.slane %v1212_v31, 5  ;;  %v1585_v43 = vsel %vm10742_vm13, %v871_v22, 0  ;;  %vm15295_vm14 = vsmask.f32 4352  ;;  %v776_v31 = vld [vmem:[%s10633_s12 + $0x20] sm:$0xff] }
  0x25   : > { %15652 = vst [vmem:[#allocation6_spill] sm:$0xff] %v15651_v37  ;;  %v1216_v44 = vshrl.u32 %v1015_v17, 16  ;;  %v356_v46 = vand.u32 15, %v10669_v38  ;;  %v1879_v47 = vunpack.c.l.b16 %v1585_v43  ;;  %v1909_v49 = vpack.c.b16 %v1877_v39, %v1876_v21  ;;  %9700 = vmatmul.msk.bf16.gmra.mxu0 %vm15296_vm4, %v10380_v33  ;;  %v887_v33 = vld [vmem:[#allocation2 + $0x50] sm:$0xf] }
  0x26   : > { %v1195_v50 = vsel %vm10679_vm10, %v10684_v54, %v1194_v40  ;;  %v1199_v51 = vor.u32 %v1198_v41, %v1194_v40  ;;  %v1215_v52 = vsel %vm10679_vm10, %v10684_v54, %v1214_v42  ;;  %v15653_v7 = vmov 0  ;;  %v792_v40 = vld [vmem:[%s10633_s12 + $0xa0] sm:$0xff] }
  0x27   : > { %v1218_v53 = vrot.slane %v1216_v44, 4  ;;  %v1463_v55 = vunpack.c.l.b16 %v1195_v50  ;;  %v1464_v56 = vunpack.c.h.b16 %v1195_v50  ;;  %v1910_v57 = vpack.c.b16 %v1879_v47, %v1878_v36 }
  0x28   : > { %v1928_v38 = vshrl.u32 %v1909_v49, 16  ;;  %v1931_v58 = vshll.u32 %v1909_v49, 16  ;;  %v1200_v59 = vrot.slane %v1199_v51, 4  ;;  %v1477_v61 = vunpack.c.l.b16 %v1215_v52 }
  0x29   : > { %v1219_v60 = vor.u32 %v1218_v53, %v1214_v42  ;;  %vm1467_vm15 = vcmp.ne.s32.totalorder %v1463_v55, %v10643_v15  ;;  %vm1468_vm2 = vcmp.ne.s32.totalorder %v1464_v56, %v10651_v23  ;;  %v1936_v1 = vshrl.u32 %v1910_v57, 16 }
  0x2a   : > { %v1930_v63 = vrot.slane %v1928_v38, 3  ;;  %v1933_v0 = vrot.slane %v1931_v58, 4  ;;  %v1939_v2 = vshll.u32 %v1910_v57, 16  ;;  %vm10759_vm3 = vmpackc.low %vm1468_vm2, %vm1467_vm15  ;;  %v1205_v11 = vsel %vm10679_vm10, %v1200_v59, %v10662_v34  ;;  %v793_v58 = vld [vmem:[%s10633_s12 + $0xa8] sm:$0xff] }
  0x2b   : > { %v15654_v7 = vsel %vm10759_vm3, 4294967295, %v15653_v7  ;;  %v1220_v12 = vrot.slane %v1219_v60, 4  ;;  %v1478_v13 = vunpack.c.h.b16 %v1215_v52  ;;  %vm1481_vm5 = vcmp.ne.s32.totalorder %v1477_v61, %v10643_v15  ;;  %v10381_v52 = vld [vmem:[#allocation2 + $0x18] sm:$0xff] }
  0x2c   : > { %15655 = vst [vmem:[#allocation7_spill] sm:$0xff] %v15654_v7  ;;  %v1934_v14 = vor.u32 %v1933_v0, %v1930_v63  ;;  %v1938_v16 = vrot.slane %v1936_v1, 3  ;;  %v1941_v17 = vrot.slane %v1939_v2, 4  ;;  %v1470_v19 = vunpack.c.l.b16 %v1205_v11  ;;  %9708 = vmatmul.msk.bf16.gmra.mxu2 %vm15296_vm4, %v10388_v8 }
  0x2d   : > { %v1225_v21 = vsel %vm10679_vm10, %v1220_v12, %v10662_v34  ;;  %v1471_v22 = vunpack.c.h.b16 %v1205_v11  ;;  %vm1482_vm6 = vcmp.ne.s32.totalorder %v1478_v13, %v10651_v23  ;;  %v1598_v25 = vsel %vm10759_vm3, %v884_v4, 0 }
  0x2e   : > { %v10773_v26 = vor.u32 %v1941_v17, %v1938_v16  ;;  %vm1474_vm7 = vcmp.ne.s32.totalorder %v1470_v19, %v10643_v15  ;;  %vm10776_vm11 = vmpackc.low %vm1482_vm6, %vm1481_vm5  ;;  %v15656_v28 = vmov 0  ;;  %v1484_v29 = vunpack.c.l.b16 %v1225_v21 }
  0x2f   : > { %v15657_v28 = vsel %vm10776_vm11, 4294967295, %v15656_v28  ;;  %v1485_v30 = vunpack.c.h.b16 %v1225_v21  ;;  %vm1475_vm12 = vcmp.ne.s32.totalorder %v1471_v22, %v10651_v23  ;;  %v1600_v35 = vsel %vm10776_vm11, %v886_v18, 0 }
  0x30   : > { %15658 = vst [vmem:[#allocation8_spill] sm:$0xff] %v15657_v28  ;;  %v1892_v36 = vunpack.c.l.b16 %v1598_v25  ;;  %vm10786_vm15 = vcmp.ge.s32.totalorder %v356_v46, 1  ;;  %v1943_v41 = vsel %vm15295_vm14, %v1934_v14, %v10773_v26  ;;  %vm10793_vm2 = vmpackc.low %vm1475_vm12, %vm1474_vm7  ;;  %v15661_v42 = vmov 0 }
  0x31   : > { %v15662_v42 = vsel %vm10793_vm2, 4294967295, %v15661_v42  ;;  %vm1488_vm5 = vcmp.ne.s32.totalorder %v1484_v29, %v10643_v15  ;;  %vm1489_vm6 = vcmp.ne.s32.totalorder %v1485_v30, %v10651_v23  ;;  %v1894_v43 = vunpack.c.l.b16 %v1600_v35  ;;  %9719 = vmatmul.msk.bf16.vlgmr.msra.gmra.mxu1 %vm15296_vm4, %v1943_v41  ;;  %vm969_vm7 = vmpackc.low %vm10786_vm15, %vm10786_vm15  ;;  %v10389_v41 = vld [vmem:[#allocation2 + $0x58] sm:$0xff] }
  0x32   : > { %15663 = vst [vmem:[#allocation9_spill] sm:$0xff] %v15662_v42  ;;  %vm10800_vm0 = vmpackc.low %vm1489_vm6, %vm1488_vm5  ;;  %v15664_v44 = vmov 0  ;;  %v1599_v45 = vsel %vm10793_vm2, %v885_v20, 0  ;;  %v312_v46 = vadd.s32 160, %v10616_v5  ;;  %v808_v47 = vpack.c.bf16 %v776_v31, %v776_v31 }
  0x33   : > { %v15665_v44 = vsel %vm10800_vm0, 4294967295, %v15664_v44  ;;  %v809_v49 = vpack.c.bf16 %v777_v32, %v777_v32  ;;  %v1601_v50 = vsel %vm10800_vm0, %v887_v33, 0  ;;  %v1893_v51 = vunpack.c.l.b16 %v1599_v45  ;;  %v872_v33 = vld [vmem:[#allocation2 + $0x14] sm:$0xf] }
  0x34   : > { %15666 = vst [vmem:[#allocation10_spill] sm:$0xff] %v15665_v44  ;;  %v824_v53 = vpack.c.bf16 %v792_v40, %v792_v40  ;;  %v298_v55 = vadd.s32 48, %v10616_v5  ;;  %v1895_v56 = vunpack.c.l.b16 %v1601_v50  ;;  %v1001_v57 = vsel %vm969_vm7, 65537, %v15340_v3 }
  0x35   : > { %v468_v38 = vand.u32 15, %v312_v46  ;;  %vm15667_vm12 = vcmask 125952   ;;  %v10817_v59 = vadd.s32 176, %v10616_v5  ;;  %v1917_v60 = vpack.c.b16 %v1893_v51, %v1892_v36  ;;  %9701 = vmatmul.msk.bf16.gmra.mxu0 %vm15296_vm4, %v10381_v52 }
  0x36   : > { %840 = vst.msk [vmem:[#allocation2 + $0x20] sm:$0xf] %vm15667_vm12, %v808_v47  ;;  %v1072_v61 = vshll.u32 %v1001_v57, 16  ;;  %v1076_v63 = vshrl.u32 %v1001_v57, 16  ;;  %vm15668_vm5 = vmmov %vm15667_vm12  ;;  %v825_v0 = vpack.c.bf16 %v793_v58, %v793_v58  ;;  %v1918_v1 = vpack.c.b16 %v1895_v56, %v1894_v43  ;;  %v873_v56 = vld [vmem:[#allocation2 + $0x18] sm:$0xf] }
  0x37   : > { %841 = vst.msk [vmem:[#allocation2 + $0x24] sm:$0xf] %vm15668_vm5, %v809_v49  ;;  %vm728_vm15 = vcmp.ge.s32.totalorder %v468_v38, 1  ;;  %vm15669_vm6 = vmmov %vm15668_vm5  ;;  %v370_v2 = vand.u32 15, %v298_v55  ;;  %v482_v4 = vand.u32 15, %v10817_v59  ;;  %v1999_v8 = vshrl.u32 %v1917_v60, 16 }
  0x38   : > { %856 = vst.msk [vmem:[#allocation2 + $0x60] sm:$0xf] %vm15669_vm6, %v824_v53  ;;  %v2002_v11 = vshll.u32 %v1917_v60, 16  ;;  %v1074_v12 = vrot.slane %v1072_v61, 5  ;;  %v1078_v13 = vrot.slane %v1076_v63, 4  ;;  %vm985_vm7 = vmpackc.low %vm728_vm15, %vm728_vm15  ;;  %v2008_v14 = vshrl.u32 %v1918_v1, 16 }
  0x39   : > { %vm15670_vm12 = vmmov %vm15668_vm5  ;;  %v2011_v16 = vshll.u32 %v1918_v1, 16  ;;  %v1017_v17 = vsel %vm985_vm7, 65537, %v15340_v3  ;;  %vm10825_vm5 = vcmp.ge.s32.totalorder %v370_v2, 1  ;;  %v2001_v19 = vrot.slane %v1999_v8, 3 }
  0x3a   : > { %857 = vst.msk [vmem:[#allocation2 + $0x64] sm:$0xf] %vm15670_vm12, %v825_v0  ;;  %v2004_v20 = vrot.slane %v2002_v11, 4  ;;  %v1075_v21 = vsel %vm10679_vm10, %v10684_v54, %v1074_v12  ;;  %v1079_v22 = vor.u32 %v1078_v13, %v1074_v12  ;;  %vm971_vm15 = vmpackc.low %vm10825_vm5, %vm10825_vm5  ;;  %v2010_v25 = vrot.slane %v2008_v14, 3  ;;  %v888_v0 = vld [vmem:[#allocation2 + $0x54] sm:$0xf] }
  0x3b   : > { %v2013_v29 = vrot.slane %v2011_v16, 4  ;;  %v1379_v30 = vunpack.c.l.b16 %v1075_v21  ;;  %v1380_v31 = vunpack.c.h.b16 %v1075_v21  ;;  %v1232_v36 = vshll.u32 %v1017_v17, 16 }
  0x3c   : > { %v10835_v32 = vor.u32 %v2004_v20, %v2001_v19  ;;  %v1080_v35 = vrot.slane %v1079_v22, 4  ;;  %v1236_v39 = vshrl.u32 %v1017_v17, 16  ;;  %v1003_v43 = vsel %vm971_vm15, 65537, %v15340_v3  ;;  %9709 = vmatmul.msk.bf16.gmra.mxu2 %vm15296_vm4, %v10389_v41  ;;  %v778_v19 = vld [vmem:[%s10633_s12 + $0x30] sm:$0xff] }
  0x3d   : > { %v10837_v40 = vor.u32 %v2013_v29, %v2010_v25  ;;  %vm1383_vm6 = vcmp.ne.s32.totalorder %v1379_v30, %v10643_v15  ;;  %vm1384_vm7 = vcmp.ne.s32.totalorder %v1380_v31, %v10651_v23  ;;  %v15673_v46 = vmov 0  ;;  %v874_v29 = vld [vmem:[#allocation2 + $0x1c] sm:$0xf]  ;;  %v889_v31 = vld [vmem:[#allocation2 + $0x58] sm:$0xf] }
  0x3e   : > { %v1085_v45 = vsel %vm10679_vm10, %v1080_v35, %v10662_v34  ;;  %vm10845_vm12 = vmpackc.low %vm1384_vm7, %vm1383_vm6  ;;  %v1234_v47 = vrot.slane %v1232_v36, 5  ;;  %v1238_v49 = vrot.slane %v1236_v39, 4  ;;  %v1092_v50 = vshll.u32 %v1003_v43, 16  ;;  %v10382_v25 = vld [vmem:[#allocation2 + $0x20] sm:$0xff] }
  0x3f   : > { %v15674_v46 = vsel %vm10845_vm12, 4294967295, %v15673_v46  ;;  %v2015_v51 = vsel %vm15295_vm14, %v10835_v32, %v10837_v40  ;;  %v1386_v52 = vunpack.c.l.b16 %v1085_v45  ;;  %v1387_v53 = vunpack.c.h.b16 %v1085_v45 }
  0x40   : > { %15675 = vst [vmem:[#allocation11_spill] sm:$0xff] %v15674_v46  ;;  %v1586_v55 = vsel %vm10845_vm12, %v872_v33, 0  ;;  %9727 = vmatmul.msk.bf16.vlgmr.msra.gmra.mxu3 %vm15296_vm4, %v2015_v51  ;;  %v1235_v38 = vsel %vm10679_vm10, %v10684_v54, %v1234_v47  ;;  %v1239_v58 = vor.u32 %v1238_v49, %v1234_v47  ;;  %v1094_v59 = vrot.slane %v1092_v50, 5  ;;  %v779_v51 = vld [vmem:[%s10633_s12 + $0x38] sm:$0xff] }
  0x41   : > { %v1880_v57 = vunpack.c.l.b16 %v1586_v55  ;;  %vm1390_vm5 = vcmp.ne.s32.totalorder %v1386_v52, %v10643_v15  ;;  %vm1391_vm15 = vcmp.ne.s32.totalorder %v1387_v53, %v10651_v23  ;;  %v1491_v60 = vunpack.c.l.b16 %v1235_v38 }
  0x42   : > { %v1492_v61 = vunpack.c.h.b16 %v1235_v38  ;;  %vm10861_vm6 = vmpackc.low %vm1391_vm15, %vm1390_vm5  ;;  %v15676_v63 = vmov 0  ;;  %v1240_v1 = vrot.slane %v1239_v58, 4  ;;  %v1095_v2 = vsel %vm10679_vm10, %v10684_v54, %v1094_v59 }
  0x43   : > { %v15677_v63 = vsel %vm10861_vm6, 4294967295, %v15676_v63  ;;  %v1096_v8 = vshrl.u32 %v1003_v43, 16  ;;  %vm10868_vm7 = vcmp.ge.s32.totalorder %v482_v4, 1  ;;  %v1587_v12 = vsel %vm10861_vm6, %v873_v56, 0 }
  0x44   : > { %15678 = vst [vmem:[#allocation12_spill] sm:$0xff] %v15677_v63  ;;  %vm1495_vm5 = vcmp.ne.s32.totalorder %v1491_v60, %v10643_v15  ;;  %vm1496_vm15 = vcmp.ne.s32.totalorder %v1492_v61, %v10651_v23  ;;  %v1393_v13 = vunpack.c.l.b16 %v1095_v2  ;;  %v1881_v14 = vunpack.c.l.b16 %v1587_v12  ;;  %v875_v12 = vld [vmem:[#allocation2 + $0x20] sm:$0xf] }
  0x45   : > { %v1245_v4 = vsel %vm10679_vm10, %v1240_v1, %v10662_v34  ;;  %vm10882_vm4 = vmpackc.low %vm1496_vm15, %vm1495_vm5  ;;  %v15681_v16 = vmov 0  ;;  %v1098_v17 = vrot.slane %v1096_v8, 4  ;;  %v1394_v18 = vunpack.c.h.b16 %v1095_v2 }
  0x46   : > { %v15682_v16 = vsel %vm10882_vm4, 4294967295, %v15681_v16  ;;  %v1498_v20 = vunpack.c.l.b16 %v1245_v4  ;;  %v1499_v21 = vunpack.c.h.b16 %v1245_v4  ;;  %v1602_v22 = vsel %vm10882_vm4, %v888_v0, 0  ;;  %vm15687_vm4 = vmpackc.low %vm10868_vm7, %vm10868_vm7 }
  0x47   : > { %15683 = vst [vmem:[#allocation13_spill] sm:$0xff] %v15682_v16  ;;  %vm1397_vm14 = vcmp.ne.s32.totalorder %v1393_v13, %v10643_v15  ;;  %v1911_v30 = vpack.c.b16 %v1881_v14, %v1880_v57  ;;  %v1896_v33 = vunpack.c.l.b16 %v1602_v22  ;;  %v1099_v35 = vor.u32 %v1098_v17, %v1094_v59  ;;  %v794_v57 = vld [vmem:[%s10633_s12 + $0xb0] sm:$0xff]  ;;  %v795_v14 = vld [vmem:[%s10633_s12 + $0xb8] sm:$0xff]  ;;  %v10390_v17 = vld [vmem:[#allocation2 + $0x60] sm:$0xff] }
  0x48   : > { %vm1398_vm5 = vcmp.ne.s32.totalorder %v1394_v18, %v10651_v23  ;;  %vm1502_vm15 = vcmp.ne.s32.totalorder %v1498_v20, %v10643_v15  ;;  %vm1503_vm0 = vcmp.ne.s32.totalorder %v1499_v21, %v10651_v23  ;;  %v15684_v36 = vmov 0 }
  0x49   : > { %vm10893_vm11 = vmpackc.low %vm1398_vm5, %vm1397_vm14  ;;  %v1019_v39 = vsel %vm15687_vm4, 65537, %v15340_v3  ;;  %v810_v41 = vpack.c.bf16 %v778_v19, %v778_v19  ;;  %v1945_v43 = vshrl.u32 %v1911_v30, 16  ;;  %v1948_v45 = vshll.u32 %v1911_v30, 16 }
  0x4a   : > { %v15685_v36 = vsel %vm10893_vm11, 4294967295, %v15684_v36  ;;  %vm10903_vm2 = vmpackc.low %vm1503_vm0, %vm1502_vm15  ;;  %v15688_v47 = vmov 0  ;;  %v1100_v49 = vrot.slane %v1099_v35, 4  ;;  %v1588_v50 = vsel %vm10893_vm11, %v874_v29, 0 }
  0x4b   : > { %15686 = vst [vmem:[#allocation14_spill] sm:$0xff] %v15685_v36  ;;  %v15689_v47 = vsel %vm10903_vm2, 4294967295, %v15688_v47  ;;  %v1603_v52 = vsel %vm10903_vm2, %v889_v31, 0  ;;  %vm15691_vm14 = vcmask 130048   ;;  %v1882_v53 = vunpack.c.l.b16 %v1588_v50 }
  0x4c   : > { %15690 = vst [vmem:[#allocation15_spill] sm:$0xff] %v15689_v47  ;;  %9702 = vmatmul.msk.bf16.gmra.mxu0 %vm15691_vm14, %v10382_v25  ;;  %v1252_v55 = vshll.u32 %v1019_v39, 16  ;;  %v1256_v56 = vshrl.u32 %v1019_v39, 16  ;;  %vm15692_vm4 = vcmask 125952   ;;  %v1947_v38 = vrot.slane %v1945_v43, 3 }
  0x4d   : > { %842 = vst.msk [vmem:[#allocation2 + $0x28] sm:$0xf] %vm15692_vm4, %v810_v41  ;;  %v1950_v58 = vrot.slane %v1948_v45, 4  ;;  %v1897_v59 = vunpack.c.l.b16 %v1603_v52  ;;  %v1105_v60 = vsel %vm10679_vm10, %v1100_v49, %v10662_v34  ;;  %v811_v13 = vpack.c.bf16 %v779_v51, %v779_v51  ;;  %vm15697_vm14 = vmmov %vm15692_vm4  ;;  %v890_v43 = vld [vmem:[#allocation2 + $0x5c] sm:$0xf]  ;;  %v780_v45 = vld [vmem:[%s10633_s12 + $0x40] sm:$0xff] }
  0x4e   : > { %v1400_v61 = vunpack.c.l.b16 %v1105_v60  ;;  %v1401_v0 = vunpack.c.h.b16 %v1105_v60  ;;  %v1254_v1 = vrot.slane %v1252_v55, 5  ;;  %v1258_v2 = vrot.slane %v1256_v56, 4  ;;  %vm15699_vm2 = vmmov %vm15697_vm14 }
  0x4f   : > { %v10918_v8 = vor.u32 %v1950_v58, %v1947_v38  ;;  %v1919_v11 = vpack.c.b16 %v1897_v59, %v1896_v33  ;;  %v826_v4 = vpack.c.bf16 %v794_v57, %v794_v57  ;;  %vm15693_vm5 = vsmask.f32 4352  ;;  %843 = vst.msk [vmem:[#allocation2 + $0x2c] sm:$0xf] %vm15697_vm14, %v811_v13  ;;  %vm15701_vm14 = vmmov %vm15699_vm2 }
  0x50   : > { %vm1404_vm0 = vcmp.ne.s32.totalorder %v1400_v61, %v10643_v15  ;;  %vm1405_vm7 = vcmp.ne.s32.totalorder %v1401_v0, %v10651_v23  ;;  %v1255_v18 = vsel %vm10679_vm10, %v10684_v54, %v1254_v1  ;;  %v1259_v19 = vor.u32 %v1258_v2, %v1254_v1  ;;  %v781_v61 = vld [vmem:[%s10633_s12 + $0x48] sm:$0xff]  ;;  %v796_v1 = vld [vmem:[%s10633_s12 + $0xc0] sm:$0xff] }
  0x51   : > { %v1952_v20 = vsel %vm15693_vm5, %v10773_v26, %v10918_v8  ;;  %v2017_v21 = vshrl.u32 %v1919_v11, 16  ;;  %v2020_v22 = vshll.u32 %v1919_v11, 16  ;;  %vm10929_vm15 = vmpackc.low %vm1405_vm7, %vm1404_vm0  ;;  %v15694_v25 = vmov 0  ;;  %858 = vst.msk [vmem:[#allocation2 + $0x68] sm:$0xf] %vm15699_vm2, %v826_v4 }
  0x52   : > { %v15695_v25 = vsel %vm10929_vm15, 4294967295, %v15694_v25  ;;  %v1505_v29 = vunpack.c.l.b16 %v1255_v18  ;;  %vm15698_vm4 = vcmask 130048   ;;  %v1589_v30 = vsel %vm10929_vm15, %v875_v12, 0  ;;  %v891_v12 = vld [vmem:[#allocation2 + $0x60] sm:$0xf] }
  0x53   : > { %15696 = vst [vmem:[#allocation16_spill] sm:$0xff] %v15695_v25  ;;  %9720 = vmatmul.msk.bf16.gmra.mxu1 %vm15698_vm4, %v1952_v20  ;;  %v1260_v31 = vrot.slane %v1259_v19, 4  ;;  %v1506_v33 = vunpack.c.h.b16 %v1255_v18  ;;  %v827_v35 = vpack.c.bf16 %v795_v14, %v795_v14  ;;  %v2019_v26 = vrot.slane %v2017_v21, 3  ;;  %vm15700_vm7 = vmmov %vm15698_vm4 }
  0x54   : > { %v2022_v39 = vrot.slane %v2020_v22, 4  ;;  %v1883_v41 = vunpack.c.l.b16 %v1589_v30  ;;  %vm1509_vm0 = vcmp.ne.s32.totalorder %v1505_v29, %v10643_v15  ;;  %9710 = vmatmul.msk.bf16.gmra.mxu2 %vm15700_vm7, %v10390_v17  ;;  %v300_v50 = vadd.s32 64, %v10616_v5 }
  0x55   : > { %v1265_v49 = vsel %vm10679_vm10, %v1260_v31, %v10662_v34  ;;  %vm1510_vm5 = vcmp.ne.s32.totalorder %v1506_v33, %v10651_v23  ;;  %859 = vst.msk [vmem:[#allocation2 + $0x6c] sm:$0xf] %vm15701_vm14, %v827_v35  ;;  %v316_v51 = vadd.s32 192, %v10616_v5  ;;  %v15702_v56 = vmov 0 }
  0x56   : > { %v10948_v52 = vor.u32 %v2022_v39, %v2019_v26  ;;  %v1912_v55 = vpack.c.b16 %v1883_v41, %v1882_v53  ;;  %vm10950_vm2 = vmpackc.low %vm1510_vm5, %vm1509_vm0  ;;  %v1512_v57 = vunpack.c.l.b16 %v1265_v49  ;;  %v1513_v38 = vunpack.c.h.b16 %v1265_v49  ;;  %v10383_v14 = vld [vmem:[#allocation2 + $0x28] sm:$0xff] }
  0x57   : > { %v15703_v56 = vsel %vm10950_vm2, 4294967295, %v15702_v56  ;;  %v1604_v58 = vsel %vm10950_vm2, %v890_v43, 0  ;;  %v384_v59 = vand.u32 15, %v300_v50  ;;  %v496_v60 = vand.u32 15, %v316_v51 }
  0x58   : > { %15704 = vst [vmem:[#allocation17_spill] sm:$0xff] %v15703_v56  ;;  %v812_v0 = vpack.c.bf16 %v780_v45, %v780_v45  ;;  %vm15705_vm4 = vsmask.f32 4352  ;;  %v1954_v53 = vshrl.u32 %v1912_v55, 16  ;;  %v1957_v11 = vshll.u32 %v1912_v55, 16 }
  0x59   : > { %v2024_v2 = vsel %vm15705_vm4, %v10837_v40, %v10948_v52  ;;  %vm1516_vm0 = vcmp.ne.s32.totalorder %v1512_v57, %v10643_v15  ;;  %vm1517_vm5 = vcmp.ne.s32.totalorder %v1513_v38, %v10651_v23  ;;  %v1898_v13 = vunpack.c.l.b16 %v1604_v58  ;;  %v797_v40 = vld [vmem:[%s10633_s12 + $0xc8] sm:$0xff]  ;;  %v4068_v56 = vld [vmem:[#allocation2 + $0x1c] sm:$0xf] }
  0x5a   : > { %9728 = vmatmul.msk.bf16.gmra.mxu3 %vm15700_vm7, %v2024_v2  ;;  %vm10964_vm14 = vcmp.ge.s32.totalorder %v384_v59, 1  ;;  %vm10968_vm2 = vcmp.ge.s32.totalorder %v496_v60, 1  ;;  %vm15710_vm4 = vcmask 125952   ;;  %v1956_v18 = vrot.slane %v1954_v53, 3  ;;  %vm10974_vm3 = vmpackc.low %vm1517_vm5, %vm1516_vm0 }
  0x5b   : > { %844 = vst.msk [vmem:[#allocation2 + $0x30] sm:$0xf] %vm15710_vm4, %v812_v0  ;;  %v1959_v19 = vrot.slane %v1957_v11, 4  ;;  %v15711_v20 = vmov 0  ;;  %v813_v21 = vpack.c.bf16 %v781_v61, %v781_v61  ;;  %v828_v22 = vpack.c.bf16 %v796_v1, %v796_v1  ;;  %vm973_vm7 = vmpackc.low %vm10964_vm14, %vm10964_vm14 }
  0x5c   : > { %v15712_v20 = vsel %vm10974_vm3, 4294967295, %v15711_v20  ;;  %v1605_v29 = vsel %vm10974_vm3, %v891_v12, 0  ;;  %v829_v30 = vpack.c.bf16 %v797_v40, %v797_v40  ;;  %v302_v31 = vadd.s32 80, %v10616_v5  ;;  %vm989_vm0 = vmpackc.low %vm10968_vm2, %vm10968_vm2  ;;  %v10391_v2 = vld [vmem:[#allocation2 + $0x68] sm:$0xff]  ;;  %v876_v40 = vld [vmem:[#allocation2 + $0x24] sm:$0xf] }
  0x5d   : > { %15713 = vst [vmem:[#allocation18_spill] sm:$0xff] %v15712_v20  ;;  %v318_v33 = vadd.s32 208, %v10616_v5  ;;  %v10985_v35 = vor.u32 %v1959_v19, %v1956_v18  ;;  %v1899_v26 = vunpack.c.l.b16 %v1605_v29  ;;  %v1005_v39 = vsel %vm973_vm7, 65537, %v15340_v3  ;;  %vm15714_vm5 = vmmov %vm15710_vm4 }
  0x5e   : > { %845 = vst.msk [vmem:[#allocation2 + $0x34] sm:$0xf] %vm15714_vm5, %v813_v21  ;;  %vm15715_vm4 = vcmask 130048   ;;  %v1112_v41 = vshll.u32 %v1005_v39, 16  ;;  %v1116_v43 = vshrl.u32 %v1005_v39, 16  ;;  %v1021_v45 = vsel %vm989_vm0, 65537, %v15340_v3  ;;  %vm15716_vm14 = vmmov %vm15714_vm5 }
  0x5f   : > { %9703 = vmatmul.msk.bf16.gmra.mxu0 %vm15715_vm4, %v10383_v14  ;;  %860 = vst.msk [vmem:[#allocation2 + $0x70] sm:$0xf] %vm15716_vm14, %v828_v22  ;;  %v398_v49 = vand.u32 15, %v302_v31  ;;  %vm15717_vm3 = vsmask.f32 4352  ;;  %v1920_v51 = vpack.c.b16 %v1899_v26, %v1898_v13  ;;  %v1272_v55 = vshll.u32 %v1021_v45, 16  ;;  %vm15718_vm7 = vmmov %vm15714_vm5 }
  0x60   : > { %v1961_v50 = vsel %vm15717_vm3, %v10918_v8, %v10985_v35  ;;  %v1276_v57 = vshrl.u32 %v1021_v45, 16  ;;  %861 = vst.msk [vmem:[#allocation2 + $0x74] sm:$0xf] %vm15718_vm7, %v829_v30  ;;  %v1114_v38 = vrot.slane %v1112_v41, 5  ;;  %v1118_v58 = vrot.slane %v1116_v43, 4  ;;  %vm15721_vm5 = vmmov %vm15715_vm4 }
  0x61   : > { %vm718_vm2 = vcmp.ge.s32.totalorder %v398_v49, 1  ;;  %v510_v59 = vand.u32 15, %v318_v33  ;;  %v2026_v60 = vshrl.u32 %v1920_v51, 16  ;;  %v2029_v61 = vshll.u32 %v1920_v51, 16  ;;  %vm15722_vm7 = vmmov %vm15721_vm5  ;;  %v892_v51 = vld [vmem:[#allocation2 + $0x64] sm:$0xf] }
  0x62   : > { %v1274_v0 = vrot.slane %v1272_v55, 5  ;;  %v1278_v1 = vrot.slane %v1276_v57, 4  ;;  %vm975_vm0 = vmpackc.low %vm718_vm2, %vm718_vm2  ;;  %v1115_v53 = vsel %vm10679_vm10, %v10684_v54, %v1114_v38  ;;  %v1119_v8 = vor.u32 %v1118_v58, %v1114_v38  ;;  %v877_v55 = vld [vmem:[#allocation2 + $0x28] sm:$0xf] }
  0x63   : > { %v1007_v11 = vsel %vm975_vm0, 65537, %v15340_v3  ;;  %vm11003_vm3 = vcmp.ge.s32.totalorder %v510_v59, 1  ;;  %v2028_v13 = vrot.slane %v2026_v60, 3  ;;  %v2031_v14 = vrot.slane %v2029_v61, 4  ;;  %9721 = vmatmul.msk.bf16.gmra.mxu1 %vm15721_vm5, %v1961_v50 }
  0x64   : > { %v1407_v4 = vunpack.c.l.b16 %v1115_v53  ;;  %v1408_v17 = vunpack.c.h.b16 %v1115_v53  ;;  %v1120_v18 = vrot.slane %v1119_v8, 4  ;;  %v1275_v19 = vsel %vm10679_vm10, %v10684_v54, %v1274_v0  ;;  %9711 = vmatmul.msk.bf16.gmra.mxu2 %vm15722_vm7, %v10391_v2 }
  0x65   : > { %v1279_v21 = vor.u32 %v1278_v1, %v1274_v0  ;;  %v1132_v22 = vshll.u32 %v1007_v11, 16  ;;  %v11011_v29 = vor.u32 %v2031_v14, %v2028_v13  ;;  %v1519_v30 = vunpack.c.l.b16 %v1275_v19  ;;  %v10384_v1 = vld [vmem:[#allocation2 + $0x30] sm:$0xff] }
  0x66   : > { %vm1411_vm4 = vcmp.ne.s32.totalorder %v1407_v4, %v10643_v15  ;;  %vm1412_vm14 = vcmp.ne.s32.totalorder %v1408_v17, %v10651_v23  ;;  %v1125_v31 = vsel %vm10679_vm10, %v1120_v18, %v10662_v34  ;;  %v15723_v33 = vmov 0  ;;  %v782_v13 = vld [vmem:[%s10633_s12 + $0x50] sm:$0xff] }
  0x67   : > { %vm11019_vm2 = vmpackc.low %vm1412_vm14, %vm1411_vm4  ;;  %v1280_v26 = vrot.slane %v1279_v21, 4  ;;  %v1520_v39 = vunpack.c.h.b16 %v1275_v19  ;;  %v1134_v41 = vrot.slane %v1132_v22, 5  ;;  %vm15726_vm0 = vsmask.f32 4352  ;;  %v783_v19 = vld [vmem:[%s10633_s12 + $0x58] sm:$0xff] }
  0x68   : > { %v15724_v33 = vsel %vm11019_vm2, 4294967295, %v15723_v33  ;;  %v2033_v43 = vsel %vm15726_vm0, %v10948_v52, %v11011_v29  ;;  %v1414_v45 = vunpack.c.l.b16 %v1125_v31  ;;  %v1415_v49 = vunpack.c.h.b16 %v1125_v31  ;;  %v893_v52 = vld [vmem:[#allocation2 + $0x68] sm:$0xf] }
  0x69   : > { %15725 = vst [vmem:[#allocation19_spill] sm:$0xff] %v15724_v33  ;;  %v1590_v50 = vsel %vm11019_vm2, %v876_v40, 0  ;;  %v1285_v38 = vsel %vm10679_vm10, %v1280_v26, %v10662_v34  ;;  %vm1523_vm4 = vcmp.ne.s32.totalorder %v1519_v30, %v10643_v15  ;;  %vm1524_vm14 = vcmp.ne.s32.totalorder %v1520_v39, %v10651_v23 }
  0x6a   : > { %v1884_v57 = vunpack.c.l.b16 %v1590_v50  ;;  %vm1418_vm7 = vcmp.ne.s32.totalorder %v1414_v45, %v10643_v15  ;;  %vm1419_vm0 = vcmp.ne.s32.totalorder %v1415_v49, %v10651_v23  ;;  %vm11038_vm2 = vmpackc.low %vm1524_vm14, %vm1523_vm4  ;;  %v15727_v58 = vmov 0  ;;  %9729 = vmatmul.msk.bf16.gmra.mxu3 %vm15721_vm5, %v2033_v43  ;;  %v878_v43 = vld [vmem:[#allocation2 + $0x2c] sm:$0xf]  ;;  %v798_v49 = vld [vmem:[%s10633_s12 + $0xd0] sm:$0xff] }
  0x6b   : > { %v15728_v58 = vsel %vm11038_vm2, 4294967295, %v15727_v58  ;;  %v1526_v59 = vunpack.c.l.b16 %v1285_v38  ;;  %v1527_v60 = vunpack.c.h.b16 %v1285_v38  ;;  %vm11043_vm15 = vmpackc.low %vm1419_vm0, %vm1418_vm7  ;;  %v15730_v61 = vmov 0 }
  0x6c   : > { %15729 = vst [vmem:[#allocation20_spill] sm:$0xff] %v15728_v58  ;;  %v15731_v61 = vsel %vm11043_vm15, 4294967295, %v15730_v61  ;;  %v1606_v0 = vsel %vm11038_vm2, %v892_v51, 0  ;;  %v1135_v2 = vsel %vm10679_vm10, %v10684_v54, %v1134_v41  ;;  %v1136_v53 = vshrl.u32 %v1007_v11, 16  ;;  %vm15733_vm5 = vmpackc.low %vm11003_vm3, %vm11003_vm3 }
  0x6d   : > { %15732 = vst [vmem:[#allocation21_spill] sm:$0xff] %v15731_v61  ;;  %v1023_v8 = vsel %vm15733_vm5, 65537, %v15340_v3  ;;  %v1591_v14 = vsel %vm11043_vm15, %v877_v55, 0  ;;  %vm1530_vm4 = vcmp.ne.s32.totalorder %v1526_v59, %v10643_v15  ;;  %vm1531_vm14 = vcmp.ne.s32.totalorder %v1527_v60, %v10651_v23 }
  0x6e   : > { %v1900_v4 = vunpack.c.l.b16 %v1606_v0  ;;  %v1885_v17 = vunpack.c.l.b16 %v1591_v14  ;;  %vm11063_vm7 = vmpackc.low %vm1531_vm14, %vm1530_vm4  ;;  %v15734_v11 = vmov 0  ;;  %v1138_v40 = vrot.slane %v1136_v53, 4 }
  0x6f   : > { %v15735_v11 = vsel %vm11063_vm7, 4294967295, %v15734_v11  ;;  %v1421_v18 = vunpack.c.l.b16 %v1135_v2  ;;  %v1422_v12 = vunpack.c.h.b16 %v1135_v2  ;;  %v1607_v21 = vsel %vm11063_vm7, %v893_v52, 0 }
  0x70   : > { %15736 = vst [vmem:[#allocation22_spill] sm:$0xff] %v15735_v11  ;;  %v1292_v22 = vshll.u32 %v1023_v8, 16  ;;  %v1296_v30 = vshrl.u32 %v1023_v8, 16  ;;  %v814_v31 = vpack.c.bf16 %v782_v13, %v782_v13  ;;  %v1913_v26 = vpack.c.b16 %v1885_v17, %v1884_v57 }
  0x71   : > { %v1901_v39 = vunpack.c.l.b16 %v1607_v21  ;;  %vm15737_vm3 = vcmask 130048   ;;  %v1139_v45 = vor.u32 %v1138_v40, %v1134_v41  ;;  %vm1425_vm0 = vcmp.ne.s32.totalorder %v1421_v18, %v10643_v15 }
  0x72   : > { %9704 = vmatmul.msk.bf16.gmra.mxu0 %vm15737_vm3, %v10384_v1  ;;  %vm1426_vm5 = vcmp.ne.s32.totalorder %v1422_v12, %v10651_v23  ;;  %v1294_v50 = vrot.slane %v1292_v22, 5  ;;  %v1298_v51 = vrot.slane %v1296_v30, 4  ;;  %v815_v55 = vpack.c.bf16 %v783_v19, %v783_v19 }
  0x73   : > { %vm15738_vm4 = vcmask 125952   ;;  %v1963_v38 = vshrl.u32 %v1913_v26, 16  ;;  %v1966_v52 = vshll.u32 %v1913_v26, 16  ;;  %v1921_v59 = vpack.c.b16 %v1901_v39, %v1900_v4  ;;  %vm11075_vm14 = vmpackc.low %vm1426_vm5, %vm1425_vm0  ;;  %v10392_v4 = vld [vmem:[#allocation2 + $0x70] sm:$0xff] }
  0x74   : > { %846 = vst.msk [vmem:[#allocation2 + $0x38] sm:$0xf] %vm15738_vm4, %v814_v31  ;;  %v1140_v60 = vrot.slane %v1139_v45, 4  ;;  %v15739_v57 = vmov 0  ;;  %v1592_v41 = vsel %vm11075_vm14, %v878_v43, 0  ;;  %v1295_v0 = vsel %vm10679_vm10, %v10684_v54, %v1294_v50  ;;  %vm15742_vm3 = vmmov %vm15738_vm4  ;;  %v799_v31 = vld [vmem:[%s10633_s12 + $0xd8] sm:$0xff] }
  0x75   : > { %v15740_v57 = vsel %vm11075_vm14, 4294967295, %v15739_v57  ;;  %v1299_v1 = vor.u32 %v1298_v51, %v1294_v50  ;;  %847 = vst.msk [vmem:[#allocation2 + $0x3c] sm:$0xf] %vm15742_vm3, %v815_v55  ;;  %v830_v2 = vpack.c.bf16 %v798_v49, %v798_v49  ;;  %v1965_v53 = vrot.slane %v1963_v38, 3  ;;  %vm15743_vm0 = vmmov %vm15742_vm3  ;;  %v879_v51 = vld [vmem:[#allocation2 + $0x30] sm:$0xf] }
  0x76   : > { %15741 = vst [vmem:[#allocation23_spill] sm:$0xff] %v15740_v57  ;;  %v1968_v8 = vrot.slane %v1966_v52, 4  ;;  %v2035_v13 = vshrl.u32 %v1921_v59, 16  ;;  %v2038_v14 = vshll.u32 %v1921_v59, 16  ;;  %v1145_v17 = vsel %vm10679_vm10, %v1140_v60, %v10662_v34  ;;  %v784_v38 = vld [vmem:[%s10633_s12 + $0x60] sm:$0xff] }
  0x77   : > { %v1886_v40 = vunpack.c.l.b16 %v1592_v41  ;;  %v1300_v18 = vrot.slane %v1299_v1, 4  ;;  %v1533_v12 = vunpack.c.l.b16 %v1295_v0  ;;  %862 = vst.msk [vmem:[#allocation2 + $0x78] sm:$0xf] %vm15743_vm0, %v830_v2  ;;  %v1428_v30 = vunpack.c.l.b16 %v1145_v17  ;;  %v800_v52 = vld [vmem:[%s10633_s12 + $0xe0] sm:$0xff]  ;;  %v894_v59 = vld [vmem:[#allocation2 + $0x6c] sm:$0xf] }
  0x78   : > { %v11089_v19 = vor.u32 %v1968_v8, %v1965_v53  ;;  %v2037_v21 = vrot.slane %v2035_v13, 3  ;;  %v2040_v22 = vrot.slane %v2038_v14, 4  ;;  %v1429_v26 = vunpack.c.h.b16 %v1145_v17  ;;  %v895_v1 = vld [vmem:[#allocation2 + $0x70] sm:$0xf] }
  0x79   : > { %v1305_v39 = vsel %vm10679_vm10, %v1300_v18, %v10662_v34  ;;  %v1534_v43 = vunpack.c.h.b16 %v1295_v0  ;;  %vm11096_vm5 = vcmp.ne.s32.totalorder %v1533_v12, %v10643_v15  ;;  %vm15746_vm4 = vsmask.f32 4352 }
  0x7a   : > { %v1970_v49 = vsel %vm15746_vm4, %v10985_v35, %v11089_v19  ;;  %v11103_v50 = vor.u32 %v2040_v22, %v2037_v21  ;;  %vm15747_vm3 = vcmask 130048   ;;  %vm1432_vm0 = vcmp.ne.s32.totalorder %v1428_v30, %v10643_v15  ;;  %v801_v30 = vld [vmem:[%s10633_s12 + $0xe8] sm:$0xff] }
  0x7b   : > { %9712 = vmatmul.msk.bf16.gmra.mxu2 %vm15747_vm3, %v10392_v4  ;;  %v1540_v55 = vunpack.c.l.b16 %v1305_v39  ;;  %vm15748_vm7 = vmmov %vm15747_vm3  ;;  %vm1433_vm2 = vcmp.ne.s32.totalorder %v1429_v26, %v10651_v23  ;;  %vm1538_vm14 = vcmp.ne.s32.totalorder %v1534_v43, %v10651_v23  ;;  %v1541_v60 = vunpack.c.h.b16 %v1305_v39 }
  0x7c   : > { %9722 = vmatmul.msk.bf16.gmra.mxu1 %vm15748_vm7, %v1970_v49  ;;  %v831_v41 = vpack.c.bf16 %v799_v31, %v799_v31  ;;  %v2042_v35 = vsel %vm15746_vm4, %v11011_v29, %v11103_v50  ;;  %vm11115_vm3 = vmpackc.low %vm1433_vm2, %vm1432_vm0  ;;  %v15749_v0 = vmov 0  ;;  %v304_v2 = vadd.s32 96, %v10616_v5  ;;  %v10385_v12 = vld [vmem:[#allocation2 + $0x38] sm:$0xff] }
  0x7d   : > { %v15750_v0 = vsel %vm11115_vm3, 4294967295, %v15749_v0  ;;  %vm1544_vm15 = vcmp.ne.s32.totalorder %v1540_v55, %v10643_v15  ;;  %v320_v53 = vadd.s32 224, %v10616_v5  ;;  %v1593_v8 = vsel %vm11115_vm3, %v879_v51, 0  ;;  %vm11126_vm7 = vmpackc.low %vm1538_vm14, %vm11096_vm5 }
  0x7e   : > { %15751 = vst [vmem:[#allocation24_spill] sm:$0xff] %v15750_v0  ;;  %v15752_v13 = vmov 0  ;;  %vm1545_vm2 = vcmp.ne.s32.totalorder %v1541_v60, %v10651_v23  ;;  %vm15755_vm0 = vcmask 125952   ;;  %v816_v29 = vpack.c.bf16 %v784_v38, %v784_v38 }
  0x7f   : > { %v15753_v13 = vsel %vm11126_vm7, 4294967295, %v15752_v13  ;;  %863 = vst.msk [vmem:[#allocation2 + $0x7c] sm:$0xf] %vm15755_vm0, %v831_v41  ;;  %v832_v14 = vpack.c.bf16 %v800_v52, %v800_v52  ;;  %vm15756_vm4 = vcmask 130048   ;;  %v1887_v4 = vunpack.c.l.b16 %v1593_v8  ;;  %vm11133_vm11 = vmpackc.low %vm1545_vm2, %vm1544_vm15 }
  0x80   : > { %15754 = vst [vmem:[#allocation25_spill] sm:$0xff] %v15753_v13  ;;  %9730 = vmatmul.msk.bf16.gmra.mxu3 %vm15756_vm4, %v2042_v35  ;;  %v15757_v17 = vmov 0  ;;  %v1608_v18 = vsel %vm11126_vm7, %v894_v59, 0  ;;  %v412_v21 = vand.u32 15, %v304_v2  ;;  %v524_v22 = vand.u32 15, %v320_v53  ;;  %vm15760_vm14 = vmmov %vm15755_vm0 }
  0x81   : > { %v15758_v17 = vsel %vm11133_vm11, 4294967295, %v15757_v17  ;;  %v1609_v31 = vsel %vm11133_vm11, %v895_v1, 0  ;;  %v1902_v26 = vunpack.c.l.b16 %v1608_v18  ;;  %848 = vst.msk [vmem:[#allocation2 + $0x40] sm:$0xf] %vm15760_vm14, %v816_v29  ;;  %v833_v39 = vpack.c.bf16 %v801_v30, %v801_v30  ;;  %vm15763_vm2 = vmmov %vm15755_vm0 }
  0x82   : > { %15759 = vst [vmem:[#allocation26_spill] sm:$0xff] %v15758_v17  ;;  %v306_v43 = vadd.s32 112, %v10616_v5  ;;  %v1914_v45 = vpack.c.b16 %v1887_v4, %v1886_v40  ;;  %v1903_v49 = vunpack.c.l.b16 %v1609_v31  ;;  %vm720_vm15 = vcmp.ge.s32.totalorder %v412_v21, 1  ;;  %vm15764_vm4 = vmmov %vm15763_vm2 }
  0x83   : > { %vm11144_vm5 = vcmp.ge.s32.totalorder %v524_v22, 1  ;;  %864 = vst.msk [vmem:[#allocation2 + $0x80] sm:$0xf] %vm15763_vm2, %v832_v14  ;;  %vm977_vm0 = vmpackc.low %vm720_vm15, %vm720_vm15  ;;  %v11151_v38 = vadd.s32 240, %v10616_v5  ;;  %v11154_v52 = vadd.s32 8, %v10616_v5  ;;  %vm15765_vm14 = vcmask 130048  }
  0x84   : > { %865 = vst.msk [vmem:[#allocation2 + $0x84] sm:$0xf] %vm15764_vm4, %v833_v39  ;;  %v426_v55 = vand.u32 15, %v306_v43  ;;  %v1972_v59 = vshrl.u32 %v1914_v45, 16  ;;  %v1975_v40 = vshll.u32 %v1914_v45, 16  ;;  %v1922_v60 = vpack.c.b16 %v1903_v49, %v1902_v26  ;;  %9705 = vmatmul.msk.bf16.gmra.mxu0 %vm15765_vm14, %v10385_v12  ;;  %vm993_vm15 = vmpackc.low %vm11144_vm5, %vm11144_vm5 }
  0x85   : > { %v1009_v41 = vsel %vm977_vm0, 65537, %v15340_v3  ;;  %v1025_v2 = vsel %vm993_vm15, 65537, %v15340_v3  ;;  %vm15766_vm5 = vsmask.f32 4352  ;;  %vm15820_vm6 = vcmask 130048  }
  0x86   : > { %v1152_v35 = vshll.u32 %v1009_v41, 16  ;;  %v1156_v1 = vshrl.u32 %v1009_v41, 16  ;;  %vm722_vm2 = vcmp.ge.s32.totalorder %v426_v55, 1  ;;  %v1974_v53 = vrot.slane %v1972_v59, 3  ;;  %v10393_v26 = vld [vmem:[#allocation2 + $0x78] sm:$0xff]  ;;  %vm15767_vm0 = vmmov %vm15766_vm5 }
  0x87   : > { %v1977_v8 = vrot.slane %v1975_v40, 4  ;;  %v2044_v29 = vshrl.u32 %v1922_v60, 16  ;;  %v2047_v14 = vshll.u32 %v1922_v60, 16  ;;  %vm979_vm4 = vmpackc.low %vm722_vm2, %vm722_vm2  ;;  %v1312_v21 = vshll.u32 %v1025_v2, 16  ;;  %v880_v41 = vld [vmem:[#allocation2 + $0x34] sm:$0xf] }
  0x88   : > { %v1154_v4 = vrot.slane %v1152_v35, 5  ;;  %v1158_v18 = vrot.slane %v1156_v1, 4  ;;  %v1316_v12 = vshrl.u32 %v1025_v2, 16  ;;  %v1011_v39 = vsel %vm979_vm4, 65537, %v15340_v3  ;;  %vm15768_vm4 = vmmov %vm15765_vm14 }
  0x89   : > { %v11162_v22 = vor.u32 %v1977_v8, %v1974_v53  ;;  %v2046_v30 = vrot.slane %v2044_v29, 3  ;;  %v2049_v31 = vrot.slane %v2047_v14, 4  ;;  %v1314_v49 = vrot.slane %v1312_v21, 5 }
  0x8a   : > { %v1155_v43 = vsel %vm10679_vm10, %v10684_v54, %v1154_v4  ;;  %v1159_v45 = vor.u32 %v1158_v18, %v1154_v4  ;;  %v1318_v51 = vrot.slane %v1316_v12, 4  ;;  %v1172_v53 = vshll.u32 %v1011_v39, 16  ;;  %v899_v48 = vld [vmem:[#allocation2 + $0x80] sm:$0xf] }
  0x8b   : > { %v1979_v55 = vsel %vm15766_vm5, %v11089_v19, %v11162_v22  ;;  %v11171_v59 = vor.u32 %v2049_v31, %v2046_v30  ;;  %v1435_v40 = vunpack.c.l.b16 %v1155_v43  ;;  %v1436_v60 = vunpack.c.h.b16 %v1155_v43  ;;  %9713 = vmatmul.msk.bf16.gmra.mxu2 %vm15765_vm14, %v10393_v26  ;;  %v896_v31 = vld [vmem:[#allocation2 + $0x74] sm:$0xf]  ;;  %v881_v26 = vld [vmem:[#allocation2 + $0x38] sm:$0xf] }
  0x8c   : > { %v1160_v35 = vrot.slane %v1159_v45, 4  ;;  %v1315_v1 = vsel %vm10679_vm10, %v10684_v54, %v1314_v49  ;;  %v1319_v2 = vor.u32 %v1318_v51, %v1314_v49  ;;  %9723 = vmatmul.msk.bf16.gmra.mxu1 %vm15768_vm4, %v1979_v55  ;;  %v15769_v14 = vmov 0 }
  0x8d   : > { %v2051_v8 = vsel %vm15767_vm0, %v11103_v50, %v11171_v59  ;;  %vm1439_vm15 = vcmp.ne.s32.totalorder %v1435_v40, %v10643_v15  ;;  %vm1440_vm2 = vcmp.ne.s32.totalorder %v1436_v60, %v10651_v23  ;;  %v1547_v19 = vunpack.c.l.b16 %v1315_v1  ;;  %v10386_v60 = vld [vmem:[#allocation2 + $0x40] sm:$0xff] }
  0x8e   : > { %v1165_v29 = vsel %vm10679_vm10, %v1160_v35, %v10662_v34  ;;  %vm11186_vm5 = vmpackc.low %vm1440_vm2, %vm1439_vm15  ;;  %v1320_v4 = vrot.slane %v1319_v2, 4  ;;  %v1548_v18 = vunpack.c.h.b16 %v1315_v1  ;;  %v1174_v50 = vrot.slane %v1172_v53, 5  ;;  %v897_v35 = vld [vmem:[#allocation2 + $0x78] sm:$0xf] }
  0x8f   : > { %v15770_v14 = vsel %vm11186_vm5, 4294967295, %v15769_v14  ;;  %v1442_v21 = vunpack.c.l.b16 %v1165_v29  ;;  %v1443_v12 = vunpack.c.h.b16 %v1165_v29  ;;  %v1594_v30 = vsel %vm11186_vm5, %v880_v41, 0  ;;  %vm15772_vm15 = vmmov %vm15768_vm4 }
  0x90   : > { %15771 = vst [vmem:[#allocation27_spill] sm:$0xff] %v15770_v14  ;;  %vm1551_vm0 = vcmp.ne.s32.totalorder %v1547_v19, %v10643_v15  ;;  %v1888_v43 = vunpack.c.l.b16 %v1594_v30  ;;  %v1325_v45 = vsel %vm10679_vm10, %v1320_v4, %v10662_v34  ;;  %vm1552_vm14 = vcmp.ne.s32.totalorder %v1548_v18, %v10651_v23  ;;  %9731 = vmatmul.msk.bf16.gmra.mxu3 %vm15772_vm15, %v2051_v8  ;;  %v882_v4 = vld [vmem:[#allocation2 + $0x3c] sm:$0xf] }
  0x91   : > { %v1175_v49 = vsel %vm10679_vm10, %v10684_v54, %v1174_v50  ;;  %vm1446_vm2 = vcmp.ne.s32.totalorder %v1442_v21, %v10643_v15  ;;  %vm1447_vm4 = vcmp.ne.s32.totalorder %v1443_v12, %v10651_v23  ;;  %vm11203_vm11 = vmpackc.low %vm1552_vm14, %vm1551_vm0  ;;  %v15773_v51 = vmov 0 }
  0x92   : > { %v15774_v51 = vsel %vm11203_vm11, 4294967295, %v15773_v51  ;;  %v1554_v55 = vunpack.c.l.b16 %v1325_v45  ;;  %v1555_v40 = vunpack.c.h.b16 %v1325_v45  ;;  %vm11207_vm7 = vmpackc.low %vm1447_vm4, %vm1446_vm2  ;;  %v15776_v41 = vmov 0 }
  0x93   : > { %15775 = vst [vmem:[#allocation28_spill] sm:$0xff] %v15774_v51  ;;  %v15777_v41 = vsel %vm11207_vm7, 4294967295, %v15776_v41  ;;  %v1610_v1 = vsel %vm11203_vm11, %v896_v31, 0  ;;  %v1176_v2 = vshrl.u32 %v1011_v39, 16  ;;  %v1449_v53 = vunpack.c.l.b16 %v1175_v49  ;;  %v900_v51 = vld [vmem:[#allocation2 + $0x84] sm:$0xf] }
  0x94   : > { %15778 = vst [vmem:[#allocation29_spill] sm:$0xff] %v15777_v41  ;;  %v1450_v8 = vunpack.c.h.b16 %v1175_v49  ;;  %v1595_v19 = vsel %vm11207_vm7, %v881_v26, 0  ;;  %vm1558_vm0 = vcmp.ne.s32.totalorder %v1554_v55, %v10643_v15  ;;  %vm1559_vm14 = vcmp.ne.s32.totalorder %v1555_v40, %v10651_v23 }
  0x95   : > { %v1904_v29 = vunpack.c.l.b16 %v1610_v1  ;;  %v1889_v18 = vunpack.c.l.b16 %v1595_v19  ;;  %vm11217_vm15 = vmpackc.low %vm1559_vm14, %vm1558_vm0  ;;  %v15779_v21 = vmov 0  ;;  %v1178_v12 = vrot.slane %v1176_v2, 4  ;;  %v10394_v19 = vld [vmem:[#allocation2 + $0x80] sm:$0xff] }
  0x96   : > { %v15780_v21 = vsel %vm11217_vm15, 4294967295, %v15779_v21  ;;  %vm1453_vm2 = vcmp.ne.s32.totalorder %v1449_v53, %v10643_v15  ;;  %vm1454_vm4 = vcmp.ne.s32.totalorder %v1450_v8, %v10651_v23  ;;  %v1611_v39 = vsel %vm11217_vm15, %v897_v35, 0 }
  0x97   : > { %15781 = vst [vmem:[#allocation30_spill] sm:$0xff] %v15780_v21  ;;  %vm15782_vm11 = vcmask 130048   ;;  %vm11226_vm7 = vmpackc.low %vm1454_vm4, %vm1453_vm2  ;;  %v15783_v30 = vmov 0  ;;  %v538_v31 = vand.u32 15, %v11151_v38  ;;  %v295_v26 = vadd.s32 24, %v10616_v5 }
  0x98   : > { %9706 = vmatmul.msk.bf16.gmra.mxu0 %vm15782_vm11, %v10386_v60  ;;  %v15784_v30 = vsel %vm11226_vm7, 4294967295, %v15783_v30  ;;  %v335_v45 = vand.u32 15, %v11154_v52  ;;  %v1915_v49 = vpack.c.b16 %v1889_v18, %v1888_v43  ;;  %v1905_v55 = vunpack.c.l.b16 %v1611_v39  ;;  %v3330_v21 = vld [vmem:[#allocation2 + $0xc] sm:$0x8] }
  0x99   : > { %15785 = vst [vmem:[#allocation31_spill] sm:$0xff] %v15784_v30  ;;  %v1179_v40 = vor.u32 %v1178_v12, %v1174_v50  ;;  %v1596_v1 = vsel %vm11226_vm7, %v882_v4, 0  ;;  %vm738_vm0 = vcmp.ge.s32.totalorder %v538_v31, 1  ;;  %v349_v60 = vand.u32 15, %v295_v26 }
  0x9a   : > { %v11235_v2 = vunpack.c.l.b16 %v1596_v1  ;;  %vm11237_vm11 = vcmp.le.s32.totalorder %v335_v45, 14  ;;  %v1981_v53 = vshrl.u32 %v1915_v49, 16  ;;  %v1984_v38 = vshll.u32 %v1915_v49, 16  ;;  %vm995_vm14 = vmpackc.low %vm738_vm0, %vm738_vm0 }
  0x9b   : > { %v1923_v8 = vpack.c.b16 %v1905_v55, %v1904_v29  ;;  %v1180_v9 = vrot.slane %v1179_v40, 4  ;;  %v1027_v52 = vsel %vm995_vm14, 65537, %v15340_v3  ;;  %vm11242_vm2 = vcmp.le.s32.totalorder %v349_v60, 14  ;;  %vm2320_vm4 = vmpackc.low %vm11237_vm11, %vm11237_vm11 }
  0x9c   : > { %vm2383_vm15 = vsmask.f32 256  ;;  %vm2384_vm7 = vsmask.f32 4368  ;;  %v1983_v43 = vrot.slane %v1981_v53, 3  ;;  %v1986_v4 = vrot.slane %v1984_v38, 4  ;;  %vm2322_vm0 = vmpackc.low %vm11242_vm2, %vm11242_vm2 }
  0x9d   : > { %v2053_v18 = vshrl.u32 %v1923_v8, 16  ;;  %v2056_v12 = vshll.u32 %v1923_v8, 16  ;;  %v1185_v29 = vsel %vm10679_vm10, %v1180_v9, %v10662_v34  ;;  %v1332_v39 = vshll.u32 %v1027_v52, 16  ;;  %v883_v8 = vld [vmem:[#allocation2 + $0x40] sm:$0xf] }
  0x9e   : > { %v1336_v31 = vshrl.u32 %v1027_v52, 16  ;;  %v2352_v26 = vsel %vm2320_vm4, 65537, %v15340_v3  ;;  %v11256_v45 = vor.u32 %v1986_v4, %v1983_v43  ;;  %v1456_v40 = vunpack.c.l.b16 %v1185_v29 }
  0x9f   : > { %v2055_v49 = vrot.slane %v2053_v18, 3  ;;  %v2058_v55 = vrot.slane %v2056_v12, 4  ;;  %vm15790_vm11 = vcmask 130048   ;;  %v1457_v1 = vunpack.c.h.b16 %v1185_v29  ;;  %v898_v18 = vld [vmem:[#allocation2 + $0x7c] sm:$0xf] }
  0xa0   : > { %9714 = vmatmul.msk.bf16.gmra.mxu2 %vm15790_vm11, %v10394_v19  ;;  %v1334_v60 = vrot.slane %v1332_v39, 5  ;;  %v1338_v35 = vrot.slane %v1336_v31, 4  ;;  %v2354_v53 = vsel %vm2322_vm0, 65537, %v15340_v3  ;;  %vm15791_vm14 = vsmask.f32 4352  ;;  %vm15792_vm4 = vmmov %vm15790_vm11 }
  0xa1   : > { %v1988_v9 = vsel %vm15791_vm14, %v11162_v22, %v11256_v45  ;;  %v11263_v38 = vor.u32 %v2058_v55, %v2055_v49  ;;  %vm1460_vm2 = vcmp.ne.s32.totalorder %v1456_v40, %v10643_v15  ;;  %v2389_v52 = vrot.slane %v1046_v10, 7  ;;  %vm15793_vm0 = vmmov %vm15791_vm14  ;;  %v10398_v55 = vld [vmem:[#allocation2 + $0x10] sm:$0xff] }
  0xa2   : > { %9724 = vmatmul.msk.bf16.gmra.mxu1 %vm15792_vm4, %v1988_v9  ;;  %vm1461_vm11 = vcmp.ne.s32.totalorder %v1457_v1, %v10651_v23  ;;  %v1335_v19 = vsel %vm10679_vm10, %v10684_v54, %v1334_v60  ;;  %v1339_v50 = vor.u32 %v1338_v35, %v1334_v60  ;;  %v2395_v43 = vshrl.u32 %v2352_v26, 16  ;;  %v11291_v60 = vpop.f32.mrf.mxu0 }
  0xa3   : > { %v2060_v22 = vsel %vm15793_vm0, %v11171_v59, %v11263_v38  ;;  %vm11276_vm14 = vmpackc.low %vm1461_vm11, %vm1460_vm2  ;;  %v15794_v4 = vmov 0  ;;  %v1561_v10 = vunpack.c.l.b16 %v1335_v19  ;;  %v1562_v12 = vunpack.c.h.b16 %v1335_v19 }
  0xa4   : > { %v15795_v4 = vsel %vm11276_vm14, 4294967295, %v15794_v4  ;;  %v15797_v29 = vshll.u32 %v10619_v6, 16  ;;  %9732 = vmatmul.msk.bf16.gmra.mxu3 %vm15792_vm4, %v2060_v22  ;;  %v1597_v31 = vsel %vm11276_vm14, %v883_v8, 0  ;;  %v1340_v49 = vrot.slane %v1339_v50, 4  ;;  %vm11305_vm4 = vmor %vm2383_vm15, %vm2384_vm7 }
  0xa5   : > { %15796 = vst [vmem:[#allocation32_spill] sm:$0xff] %v15795_v4  ;;  %v11287_v40 = vrot.slane %v2389_v52, 4  ;;  %v2397_v59 = vrot.slane %v2395_v43, 7  ;;  %v1891_v1 = vunpack.c.l.b16 %v1597_v31  ;;  %vm1565_vm2 = vcmp.ne.s32.totalorder %v1561_v10, %v10643_v15 }
  0xa6   : > { %v11282_v39 = vor.u32 %v2389_v52, %v15797_v29  ;;  %vm1566_vm11 = vcmp.ne.s32.totalorder %v1562_v12, %v10651_v23  ;;  %v2398_v6 = vshll.u32 %v2352_v26, 16  ;;  %v1345_v35 = vsel %vm10679_vm10, %v1340_v49, %v10662_v34  ;;  %v10433_v34 = vld [vmem:[%s15287_s1 + $0x30] sm:$0xff] }
  0xa7   : > { %vm11296_vm0 = vmpackc.low %vm1566_vm11, %vm1565_vm2  ;;  %v15798_v9 = vmov 0  ;;  %v2402_v8 = vrot.slane %v2397_v59, 4  ;;  %v2413_v52 = vshrl.u32 %v2354_v53, 16  ;;  %v2416_v19 = vshll.u32 %v2354_v53, 16  ;;  %4887 = vmatpush.bf16.msra.mxu2 %v10433_v34 }
  0xa8   : > { %v15799_v9 = vsel %vm11296_vm0, 4294967295, %v15798_v9  ;;  %v1916_v50 = vpack.c.b16 %v1891_v1, %v11235_v2  ;;  %v1568_v43 = vunpack.c.l.b16 %v1345_v35  ;;  %v1569_v22 = vunpack.c.h.b16 %v1345_v35 }
  0xa9   : > { %15800 = vst [vmem:[#allocation33_spill] sm:$0xff] %v15799_v9  ;;  %v1612_v10 = vsel %vm11296_vm0, %v898_v18, 0  ;;  %vm15803_vm10 = vcmask 130048   ;;  %v2400_v2 = vor.u32 %v2398_v6, %v2397_v59  ;;  %v2410_v53 = vsel %vm11305_vm4, %v2402_v8, %v11282_v39  ;;  %v2225_v9 = vld [vmem:[#allocation2 + $0x14] sm:$0xf] }
  0xaa   : > { %v1906_v12 = vunpack.c.l.b16 %v1612_v10  ;;  %9843 = vmatmul.msk.bf16.vlgmr.msrb.gmra.mxu0 %vm15803_vm10, %v10398_v55  ;;  %v11316_v18 = vrot.slane %v2413_v52, 7  ;;  %v1990_v29 = vshrl.u32 %v1916_v50, 16  ;;  %v1993_v31 = vshll.u32 %v1916_v50, 16  ;;  %v11339_v34 = vpop.f32.mrf.mxu0 }
  0xab   : > { %vm1572_vm7 = vcmp.ne.s32.totalorder %v1568_v43, %v10643_v15  ;;  %vm1573_vm15 = vcmp.ne.s32.totalorder %v1569_v22, %v10651_v23  ;;  %v15804_v49 = vmov 0  ;;  %v2401_v55 = vsel %vm11305_vm4, %v11287_v40, %v2400_v2  ;;  %v2222_v22 = vld [vmem:[#allocation2 + $0x8] sm:$0xf]  ;;  %15807 = vst [vmem:[#allocation35_spill] sm:$0xff] %v11339_v34 }
  0xac   : > { %vm11320_vm2 = vmpackc.low %vm1573_vm15, %vm1572_vm7  ;;  %v2418_v59 = vor.u32 %v2416_v19, %v11316_v18  ;;  %v2673_v1 = vunpack.c.l.b16 %v11282_v39  ;;  %v2674_v6 = vunpack.c.h.b16 %v11282_v39  ;;  %v1992_v35 = vrot.slane %v1990_v29, 3 }
  0xad   : > { %v15805_v49 = vsel %vm11320_vm2, 4294967295, %v15804_v49  ;;  %v1995_v8 = vrot.slane %v1993_v31, 4  ;;  %v1613_v52 = vsel %vm11320_vm2, %v899_v48, 0  ;;  %v2680_v50 = vunpack.c.l.b16 %v2401_v55 }
  0xae   : > { %15806 = vst [vmem:[#allocation34_spill] sm:$0xff] %v15805_v49  ;;  %v1907_v43 = vunpack.c.l.b16 %v1613_v52  ;;  %v2419_v10 = vsel %vm11305_vm4, %v11287_v40, %v2418_v59  ;;  %vm2677_vm11 = vcmp.ne.s32.totalorder %v2673_v1, %v10643_v15  ;;  %vm2678_vm10 = vcmp.ne.s32.totalorder %v2674_v6, %v10651_v23  ;;  %v2223_v52 = vld [vmem:[#allocation2 + $0xc] sm:$0xf]  ;;  %v2142_v58 = vpop.f32.mrf.mxu1 }
  0xaf   : > { %v11337_v19 = vor.u32 %v1995_v8, %v1992_v35  ;;  %vm11341_vm7 = vmpackc.low %vm2678_vm10, %vm2677_vm11  ;;  %v15808_v2 = vmov 0  ;;  %v2681_v48 = vunpack.c.h.b16 %v2401_v55  ;;  %vm11346_vm15 = vcmp.ne.s32.totalorder %v2680_v50, %v10643_v15  ;;  %v2224_v8 = vld [vmem:[#allocation2 + $0x10] sm:$0xf] }
  0xb0   : > { %v15809_v2 = vsel %vm11341_vm7, 4294967295, %v15808_v2  ;;  %v2687_v31 = vunpack.c.l.b16 %v2410_v53  ;;  %v1924_v59 = vpack.c.b16 %v1907_v43, %v1906_v12  ;;  %v2688_v1 = vunpack.c.h.b16 %v2410_v53 }
  0xb1   : > { %15810 = vst [vmem:[#allocation36_spill] sm:$0xff] %v15809_v2  ;;  %v2694_v3 = vunpack.c.l.b16 %v2419_v10  ;;  %v2695_v6 = vunpack.c.h.b16 %v2419_v10  ;;  %vm15813_vm2 = vsmask.f32 4352  ;;  %vm2685_vm11 = vcmp.ne.s32.totalorder %v2681_v48, %v10651_v23 }
  0xb2   : > { %v1997_v35 = vsel %vm15813_vm2, %v11256_v45, %v11337_v19  ;;  %vm2691_vm10 = vcmp.ne.s32.totalorder %v2687_v31, %v10643_v15  ;;  %v2904_v55 = vsel %vm11341_vm7, %v2222_v22, 0  ;;  %v2062_v50 = vshrl.u32 %v1924_v59, 16  ;;  %vm11359_vm0 = vmpackc.low %vm2685_vm11, %vm11346_vm15 }
  0xb3   : > { %v2065_v49 = vshll.u32 %v1924_v59, 16  ;;  %v15814_v12 = vmov 0  ;;  %vm2692_vm14 = vcmp.ne.s32.totalorder %v2688_v1, %v10651_v23  ;;  %vm2698_vm2 = vcmp.ne.s32.totalorder %v2694_v3, %v10643_v15  ;;  %9725 = vmatmul.msk.bf16.gmra.mxu1 %vm15820_vm6, %v1997_v35 }
  0xb4   : > { %v15815_v12 = vsel %vm11359_vm0, 4294967295, %v15814_v12  ;;  %vm11365_vm5 = vmpackc.low %vm2692_vm14, %vm2691_vm10  ;;  %v15817_v45 = vmov 0  ;;  %vm2699_vm3 = vcmp.ne.s32.totalorder %v2695_v6, %v10651_v23  ;;  %v2905_v53 = vsel %vm11359_vm0, %v2223_v52, 0  ;;  %v11382_v52 = vpop.f32.mrf.mxu2 }
  0xb5   : > { %15816 = vst [vmem:[#allocation37_spill] sm:$0xff] %v15815_v12  ;;  %v15818_v45 = vsel %vm11365_vm5, 4294967295, %v15817_v45  ;;  %v2972_v43 = vunpack.c.l.b16 %v2904_v55  ;;  %v2064_v22 = vrot.slane %v2062_v50, 3  ;;  %v2067_v10 = vrot.slane %v2065_v49, 4  ;;  %vm11373_vm15 = vmpackc.low %vm2699_vm3, %vm2698_vm2  ;;  %v10399_v50 = vld [vmem:[#allocation2 + $0x18] sm:$0xff] }
  0xb6   : > { %15819 = vst [vmem:[#allocation38_spill] sm:$0xff] %v15818_v45  ;;  %v15821_v48 = vmov 0  ;;  %v2906_v3 = vsel %vm11365_vm5, %v2224_v8, 0  ;;  %v2973_v29 = vunpack.c.l.b16 %v2905_v53  ;;  %v2907_v31 = vsel %vm11373_vm15, %v2225_v9, 0  ;;  %v11392_v9 = vpop.f32.mrf.mxu0 }
  0xb7   : > { %v15822_v48 = vsel %vm11373_vm15, 4294967295, %v15821_v48  ;;  %v2974_v59 = vunpack.c.l.b16 %v2906_v3  ;;  %v1575_v1 = vunpack.c.l.b16 %v10684_v54  ;;  %v11384_v6 = vor.u32 %v2067_v10, %v2064_v22 }
  0xb8   : > { %15823 = vst [vmem:[#allocation39_spill] sm:$0xff] %v15822_v48  ;;  %v2975_v35 = vunpack.c.l.b16 %v2907_v31  ;;  %v3005_v49 = vpack.c.b16 %v2973_v29, %v2972_v43  ;;  %v1576_v55 = vunpack.c.h.b16 %v10684_v54  ;;  %vm15388_vm6 = vsmask.f32 7424  ;;  %v3331_v29 = vld [vmem:[#allocation2 + $0x10] sm:$0xf] }
  0xb9   : > { %vm11388_vm3 = vcmp.ne.s32.totalorder %v1575_v1, %v10643_v15  ;;  %v297_v53 = vadd.s32 40, %v10616_v5  ;;  %v2420_v22 = vrot.slane %v11316_v18, 4  ;;  %vm15826_vm14 = vsmask.f32 4352  ;;  %v3332_v31 = vld [vmem:[#allocation2 + $0x14] sm:$0xf] }
  0xba   : > { %v2069_v43 = vsel %vm15826_vm14, %v11263_v38, %v11384_v6  ;;  %v11399_v54 = vpack.c.b16 %v2975_v35, %v2974_v59  ;;  %v3024_v10 = vshrl.u32 %v3005_v49, 16  ;;  %v3026_v3 = vshll.u32 %v3005_v49, 16  ;;  %v10434_v38 = vld [vmem:[%s15287_s1 + $0x38] sm:$0xff]  ;;  %v10416_v59 = vld [vmem:[%s15287_s1 + $0x28] sm:$0xff] }
  0xbb   : > { %vm15827_vm11 = vcmask 130048   ;;  %vm1580_vm10 = vcmp.ne.s32.totalorder %v1576_v55, %v10651_v23  ;;  %v363_v1 = vand.u32 15, %v297_v53  ;;  %v2428_v17 = vsel %vm11305_vm4, %v2420_v22, %v11282_v39  ;;  %v3333_v22 = vld [vmem:[#allocation2 + $0x18] sm:$0xf]  ;;  %5144 = vmatpush.bf16.msra.mxu3 %v10434_v38  ;;  %4409 = vmatpush.bf16.msrb.mxu1 %v10416_v59 }
  0xbc   : > { %9733 = vmatmul.msk.bf16.gmra.mxu3 %vm15827_vm11, %v2069_v43  ;;  %v3363_v18 = vsel %vm10696_vm1, %v3330_v21, 0  ;;  %v3028_v35 = vrot.slane %v3026_v3, 1  ;;  %v3031_v49 = vshll.u32 %v11399_v54, 16  ;;  %vm11417_vm2 = vmpackc.low %vm1580_vm10, %vm11388_vm3  ;;  %v15828_v55 = vmov 0  ;;  %v10435_v43 = vld [vmem:[%s15287_s1 + $0x40] sm:$0xff]  ;;  %v11434_v11 = vpop.f32.mrf.mxu2 }
  0xbd   : > { %v15829_v55 = vsel %vm11417_vm2, 4294967295, %v15828_v55  ;;  %vm15831_vm14 = vmmov %vm15827_vm11  ;;  %v2701_v21 = vunpack.c.l.b16 %v2428_v17  ;;  %v2702_v53 = vunpack.c.h.b16 %v2428_v17  ;;  %v1614_v3 = vsel %vm11417_vm2, %v900_v51, 0  ;;  %5602 = vmatpush.bf16.msra.mxu0 %v10435_v43  ;;  %v2226_v51 = vld [vmem:[#allocation2 + $0x18] sm:$0xf]  ;;  %v4066_v43 = vld [vmem:[#allocation2 + $0x14] sm:$0xf] }
  0xbe   : > { %15830 = vst [vmem:[#allocation40_spill] sm:$0xff] %v15829_v55  ;;  %9844 = vmatmul.msk.bf16.gmra.mxu0 %vm15831_vm14, %v10399_v50  ;;  %vm745_vm11 = vcmp.le.s32.totalorder %v363_v1, 14  ;;  %v3364_v8 = vsel %vm10731_vm9, %v3331_v29, 0  ;;  %v3365_v62 = vsel %vm10727_vm8, %v3332_v31, 0  ;;  %v3029_v50 = vor.u32 %v3028_v35, %v3024_v10 }
  0xbf   : > { %v11431_v13 = vrot.slane %v3031_v49, 1  ;;  %v1908_v17 = vunpack.c.l.b16 %v1614_v3  ;;  %vm2324_vm3 = vmpackc.low %vm745_vm11, %vm745_vm11  ;;  %vm2705_vm10 = vcmp.ne.s32.totalorder %v2701_v21, %v10643_v15  ;;  %v15832_v1 = vmov 0   ;;  %v4065_v21 = vld [vmem:[#allocation2 + $0x10] sm:$0xf] }
  0xc0   : > { %v2356_v55 = vsel %vm2324_vm3, 65537, %v15832_v1  ;;  %vm2706_vm14 = vcmp.ne.s32.totalorder %v2702_v53, %v10651_v23  ;;  %v3366_v29 = vsel %vm10742_vm13, %v3333_v22, 0  ;;  %v3431_v31 = vunpack.c.l.b16 %v3363_v18  ;;  %v11450_v22 = vpop.f32.mrf.mxu0 }
  0xc1   : > { %v3034_v10 = vsel %vm15388_vm6, %v3029_v50, %v11431_v13  ;;  %v1925_v38 = vpack.c.b16 %v1908_v17, %v1908_v17  ;;  %v2431_v59 = vshrl.u32 %v2356_v55, 16  ;;  %v2434_v35 = vshll.u32 %v2356_v55, 16  ;;  %vm11442_vm11 = vmpackc.low %vm2706_vm14, %vm2705_vm10 }
  0xc2   : > { %v15833_v49 = vmov 0  ;;  %vm15836_vm2 = vcmask 130048   ;;  %vm15837_vm3 = vsmask.f32 4352  ;;  %v3035_v18 = vshrl.u32 %v11399_v54, 16 }
  0xc3   : > { %v15834_v49 = vsel %vm11442_vm11, 4294967295, %v15833_v49  ;;  %9739 = vmatmul.msk.bf16.vlgmr.msrb.gmra.mxu2 %vm15836_vm2, %v3034_v10  ;;  %v2006_v53 = vsel %vm15837_vm3, %v11337_v19, %v10835_v32  ;;  %v3432_v3 = vunpack.c.l.b16 %v3364_v8  ;;  %v3433_v50 = vunpack.c.l.b16 %v3365_v62  ;;  %vm15838_vm10 = vmmov %vm15837_vm3 }
  0xc4   : > { %15835 = vst [vmem:[#allocation41_spill] sm:$0xff] %v15834_v49  ;;  %v2071_v17 = vshrl.u32 %v1925_v38, 16  ;;  %v2074_v55 = vshll.u32 %v1925_v38, 16  ;;  %v2433_v37 = vrot.slane %v2431_v59, 7  ;;  %v2908_v24 = vsel %vm11442_vm11, %v2226_v51, 0  ;;  %9726 = vmatmul.msk.bf16.gmra.mxu1 %vm15836_vm2, %v2006_v53 }
  0xc5   : > { %v3434_v20 = vunpack.c.l.b16 %v3366_v29  ;;  %v3464_v10 = vpack.c.b16 %v3432_v3, %v3431_v31  ;;  %v4098_v32 = vsel %vm11341_vm7, %v4065_v21, 0  ;;  %v4099_v19 = vsel %vm11359_vm0, %v4066_v43, 0  ;;  %v2227_v53 = vld [vmem:[#allocation2 + $0x1c] sm:$0xf] }
  0xc6   : > { %v2073_v54 = vrot.slane %v2071_v17, 3  ;;  %v2076_v8 = vrot.slane %v2074_v55, 4  ;;  %v11460_v62 = vadd.f32 %v2142_v58, %v11291_v60  ;;  %v2436_v38 = vor.u32 %v2434_v35, %v2433_v37 }
  0xc7   : > { %v3465_v59 = vpack.c.b16 %v3434_v20, %v3433_v50  ;;  %v3482_v34 = vshrl.u32 %v3464_v10, 16  ;;  %v3485_v51 = vshll.u32 %v3464_v10, 16  ;;  %v4100_v29 = vsel %vm11365_vm5, %v4067_v27, 0  ;;  %v11474_v50 = vpop.f32.mrf.mxu2  ;;  %v10400_v10 = vld [vmem:[#allocation2 + $0x20] sm:$0xff] }
  0xc8   : > { %v2077_v31 = vor.u32 %v2076_v8, %v2073_v54  ;;  %v2437_v21 = vsel %vm11305_vm4, %v11287_v40, %v2436_v38  ;;  %v4101_v43 = vsel %vm11373_vm15, %v4068_v56, 0  ;;  %v4166_v3 = vunpack.c.l.b16 %v4098_v32  ;;  %v11480_v56 = vpop.f32.mrf.mxu0 }
  0xc9   : > { %v2708_v58 = vunpack.c.l.b16 %v2437_v21  ;;  %v2709_v60 = vunpack.c.h.b16 %v2437_v21  ;;  %v11470_v35 = vrot.slane %v3482_v34, 3  ;;  %v11472_v20 = vrot.slane %v3485_v51, 4  ;;  %v3334_v21 = vld [vmem:[#allocation2 + $0x1c] sm:$0xf] }
  0xca   : > { %v2078_v27 = vsel %vm15838_vm10, %v11384_v6, %v2077_v31  ;;  %v3490_v17 = vshrl.u32 %v3465_v59, 16  ;;  %v3493_v55 = vshll.u32 %v3465_v59, 16  ;;  %v4167_v54 = vunpack.c.l.b16 %v4099_v19 }
  0xcb   : > { %vm2712_vm14 = vcmp.ne.s32.totalorder %v2708_v58, %v10643_v15  ;;  %vm2713_vm3 = vcmp.ne.s32.totalorder %v2709_v60, %v10651_v23  ;;  %v4168_v34 = vunpack.c.l.b16 %v4100_v29  ;;  %v15839_v32 = vmov 0 }
  0xcc   : > { %vm11482_vm2 = vmpackc.low %vm2713_vm3, %vm2712_vm14  ;;  %v2976_v8 = vunpack.c.l.b16 %v2908_v24  ;;  %v3037_v38 = vor.u32 %v3035_v18, %v11431_v13  ;;  %v4169_v6 = vunpack.c.l.b16 %v4101_v43  ;;  %v4199_v51 = vpack.c.b16 %v4167_v54, %v4166_v3  ;;  %v3335_v13 = vld [vmem:[#allocation2 + $0x20] sm:$0xf] }
  0xcd   : > { %v15840_v32 = vsel %vm11482_vm2, 4294967295, %v15839_v32  ;;  %vm15842_vm10 = vcmask 130048   ;;  %v2909_v19 = vsel %vm11482_vm2, %v2227_v53, 0  ;;  %v3488_v59 = vor.u32 %v11472_v20, %v11470_v35 }
  0xce   : > { %15841 = vst [vmem:[#allocation42_spill] sm:$0xff] %v15840_v32  ;;  %9734 = vmatmul.msk.bf16.gmra.mxu3 %vm15842_vm10, %v2078_v27  ;;  %v299_v31 = vadd.s32 56, %v10616_v5  ;;  %v2438_v29 = vrot.slane %v2433_v37, 4  ;;  %v2977_v58 = vunpack.c.l.b16 %v2909_v19  ;;  %v3492_v60 = vrot.slane %v3490_v17, 3  ;;  %vm15843_vm14 = vmmov %vm15842_vm10  ;;  %v4069_v19 = vld [vmem:[#allocation2 + $0x20] sm:$0xf] }
  0xcf   : > { %v3495_v48 = vrot.slane %v3493_v55, 4  ;;  %9845 = vmatmul.msk.bf16.gmra.mxu0 %vm15843_vm14, %v10400_v10  ;;  %v11494_v24 = vpack.c.b16 %v4169_v6, %v4168_v34  ;;  %v4217_v18 = vshrl.u32 %v4199_v51, 16  ;;  %v4219_v43 = vshll.u32 %v4199_v51, 16  ;;  %v11504_v17 = vpop.f32.mrf.mxu2 }
  0xd0   : > { %v377_v3 = vand.u32 15, %v299_v31  ;;  %v2446_v27 = vsel %vm11305_vm4, %v2438_v29, %v11282_v39  ;;  %v11499_v35 = vpack.c.b16 %v2977_v58, %v2976_v8  ;;  %v3367_v53 = vsel %vm10845_vm12, %v3334_v21, 0  ;;  %v4070_v31 = vld [vmem:[#allocation2 + $0x24] sm:$0xf]  ;;  %v11518_v21 = vpop.f32.mrf.mxu0 }
  0xd1   : > { %v4224_v37 = vshll.u32 %v11494_v24, 16  ;;  %v2715_v20 = vunpack.c.l.b16 %v2446_v27  ;;  %v4221_v55 = vrot.slane %v4219_v43, 1  ;;  %v2716_v10 = vunpack.c.h.b16 %v2446_v27 }
  0xd2   : > { %vm747_vm3 = vcmp.le.s32.totalorder %v377_v3, 14  ;;  %vm15844_vm10 = vnez %v15677_v63  ;;  %v3039_v34 = vshll.u32 %v11499_v35, 16  ;;  %v11509_v6 = vor.u32 %v3495_v48, %v3492_v60 }
  0xd3   : > { %v3368_v54 = vsel %vm15844_vm10, %v3335_v13, 0  ;;  %v11511_v8 = vrot.slane %v4224_v37, 1  ;;  %vm2326_vm14 = vmpackc.low %vm747_vm3, %vm747_vm3  ;;  %vm11514_vm6 = vcmp.ne.s32.totalorder %v2715_v20, %v10643_v15  ;;  %v4222_v29 = vor.u32 %v4221_v55, %v4217_v18  ;;  %v2228_v55 = vld [vmem:[#allocation2 + $0x20] sm:$0xf] }
  0xd4   : > { %v2358_v58 = vsel %vm2326_vm14, 65537, %v15832_v1  ;;  %vm2720_vm10 = vcmp.ne.s32.totalorder %v2716_v10, %v10651_v23  ;;  %v3435_v13 = vunpack.c.l.b16 %v3367_v53  ;;  %v11522_v48 = vrot.slane %v3039_v34, 1 }
  0xd5   : > { %v2449_v60 = vshrl.u32 %v2358_v58, 16  ;;  %v2452_v43 = vshll.u32 %v2358_v58, 16  ;;  %v3436_v3 = vunpack.c.l.b16 %v3368_v54  ;;  %vm15847_vm3 = vsmask.f32 7424  ;;  %vm11534_vm14 = vmpackc.low %vm2720_vm10, %vm11514_vm6  ;;  %v11539_v54 = vpop.f32.mrf.mxu1  ;;  %v2182_v58 = vpop.f32.mrf.mxu3 }
  0xd6   : > { %v4227_v27 = vsel %vm15847_vm3, %v4222_v29, %v11511_v8  ;;  %v4102_v37 = vsel %vm11442_vm11, %v4069_v19, 0  ;;  %v4103_v18 = vsel %vm11482_vm2, %v4070_v31, 0  ;;  %vm15848_vm12 = vmmov %vm15847_vm3  ;;  %v15849_v53 = vmov 0 }
  0xd7   : > { %v3042_v20 = vsel %vm15848_vm12, %v3037_v38, %v11522_v48  ;;  %v2451_v10 = vrot.slane %v2449_v60, 7  ;;  %v15850_v53 = vsel %vm11534_vm14, 4294967295, %v15849_v53  ;;  %vm15852_vm13 = vcmask 130048   ;;  %v11550_v46 = vpop.f32.mrf.mxu2 }
  0xd8   : > { %15851 = vst [vmem:[#allocation43_spill] sm:$0xff] %v15850_v53  ;;  %9740 = vmatmul.msk.bf16.gmra.mxu2 %vm15852_vm13, %v3042_v20  ;;  %v3466_v34 = vpack.c.b16 %v3436_v3, %v3435_v13  ;;  %v4170_v19 = vunpack.c.l.b16 %v4102_v37  ;;  %v4171_v29 = vunpack.c.l.b16 %v4103_v18  ;;  %vm15853_vm3 = vsmask.f32 4352  ;;  %vm15854_vm12 = vmmov %vm15852_vm13  ;;  %v3336_v18 = vld [vmem:[#allocation2 + $0x24] sm:$0xf] }
  0xd9   : > { %v3497_v31 = vsel %vm15853_vm3, %v3488_v59, %v11509_v6  ;;  %9863 = vmatmul.msk.bf16.vlgmr.msrb.gmra.mxu1 %vm15854_vm12, %v4227_v27  ;;  %v2454_v38 = vor.u32 %v2452_v43, %v2451_v10  ;;  %v301_v51 = vadd.s32 72, %v10616_v5  ;;  %v2456_v60 = vrot.slane %v2451_v10, 4  ;;  %v10401_v27 = vld [vmem:[#allocation2 + $0x28] sm:$0xff]  ;;  %vm15856_vm6 = vmmov %vm15854_vm12 }
  0xda   : > { %v11546_v63 = vadd.f32 %v2182_v58, %v11382_v52  ;;  %v2910_v20 = vsel %vm11534_vm14, %v2228_v55, 0  ;;  %v11552_v13 = vpack.c.b16 %v4171_v29, %v4170_v19  ;;  %v4228_v3 = vshrl.u32 %v11494_v24, 16  ;;  %v11562_v29 = vpop.f32.mrf.mxu0  ;;  %v3337_v24 = vld [vmem:[#allocation2 + $0x28] sm:$0xf]  ;;  %vm15861_vm1 = vmmov %vm15856_vm6 }
  0xdb   : > { %v2455_v59 = vsel %vm11305_vm4, %v11287_v40, %v2454_v38  ;;  %v3499_v43 = vshrl.u32 %v3466_v34, 16  ;;  %v391_v37 = vand.u32 15, %v301_v51  ;;  %v2464_v52 = vsel %vm11305_vm4, %v2456_v60, %v11282_v39 }
  0xdc   : > { %15855 = vst [vmem:[#allocation44_spill] sm:$0xff] %v11546_v63  ;;  %v2722_v10 = vunpack.c.l.b16 %v2455_v59  ;;  %v2723_v55 = vunpack.c.h.b16 %v2455_v59  ;;  %v3043_v58 = vshrl.u32 %v11499_v35, 16  ;;  %v3502_v19 = vshll.u32 %v3466_v34, 16  ;;  %v2229_v63 = vld [vmem:[#allocation2 + $0x24] sm:$0xf] }
  0xdd   : > { %v4232_v32 = vshll.u32 %v11552_v13, 16  ;;  %vm749_vm13 = vcmp.le.s32.totalorder %v391_v37, 14  ;;  %v2729_v38 = vunpack.c.l.b16 %v2464_v52  ;;  %v2730_v49 = vunpack.c.h.b16 %v2464_v52  ;;  %v4071_v52 = vld [vmem:[#allocation2 + $0x28] sm:$0xf]  ;;  %v2184_v45 = vpop.f32.mrf.mxu3 }
  0xde   : > { %9759 = vmatmul.msk.bf16.vlgmr.msrb.gmra.mxu3 %vm15856_vm6, %v3497_v31  ;;  %vm2726_vm10 = vcmp.ne.s32.totalorder %v2722_v10, %v10643_v15  ;;  %vm2727_vm3 = vcmp.ne.s32.totalorder %v2723_v55, %v10651_v23  ;;  %v2978_v51 = vunpack.c.l.b16 %v2910_v20  ;;  %vm2328_vm12 = vmpackc.low %vm749_vm13, %vm749_vm13  ;;  %vm15857_vm8 = vnez %v15685_v36  ;;  %v4072_v36 = vld [vmem:[#allocation2 + $0x2c] sm:$0xf] }
  0xdf   : > { %v3369_v35 = vsel %vm15857_vm8, %v3336_v18, 0  ;;  %vm11570_vm9 = vmpackc.low %vm2727_vm3, %vm2726_vm10  ;;  %v15858_v34 = vmov 0  ;;  %v3501_v60 = vrot.slane %v3499_v43, 3  ;;  %9846 = vmatmul.msk.bf16.gmra.mxu0 %vm15861_vm1, %v10401_v27  ;;  %v4230_v59 = vor.u32 %v4228_v3, %v11511_v8  ;;  %v2147_v27 = vpop.f32.mrf.mxu1 }
  0xe0   : > { %v15859_v34 = vsel %vm11570_vm9, 4294967295, %v15858_v34  ;;  %v2360_v31 = vsel %vm2328_vm12, 65537, %v15832_v1  ;;  %vm15862_vm6 = vnez %v15695_v25  ;;  %v2911_v20 = vsel %vm11570_vm9, %v2229_v63, 0 }
  0xe1   : > { %15860 = vst [vmem:[#allocation45_spill] sm:$0xff] %v15859_v34  ;;  %v3370_v37 = vsel %vm15862_vm6, %v3337_v24, 0  ;;  %v3504_v10 = vrot.slane %v3502_v19, 4  ;;  %v2467_v18 = vshrl.u32 %v2360_v31, 16  ;;  %v2470_v55 = vshll.u32 %v2360_v31, 16  ;;  %v11596_v19 = vpop.f32.mrf.mxu2 }
  0xe2   : > { %v2979_v12 = vunpack.c.l.b16 %v2911_v20  ;;  %v11581_v43 = vrot.slane %v4232_v32, 1  ;;  %vm11584_vm1 = vcmp.ne.s32.totalorder %v2729_v38, %v10643_v15  ;;  %vm11589_vm13 = vcmp.ne.s32.totalorder %v2730_v49, %v10651_v23 }
  0xe3   : > { %v11594_v63 = vadd.f32 %v2184_v45, %v11434_v11  ;;  %v2469_v24 = vrot.slane %v2467_v18, 7  ;;  %v3437_v31 = vunpack.c.l.b16 %v3369_v35  ;;  %v3438_v32 = vunpack.c.l.b16 %v3370_v37  ;;  %v11608_v45 = vpop.f32.mrf.mxu0  ;;  %vm11614_vm10 = vmpackc.low %vm11589_vm13, %vm11584_vm1 }
  0xe4   : > { %v11599_v20 = vadd.f32 %v2147_v27, %v11392_v9  ;;  %v11601_v38 = vpack.c.b16 %v2979_v12, %v2978_v51  ;;  %v4104_v49 = vsel %vm11534_vm14, %v4071_v52, 0  ;;  %v4105_v25 = vsel %vm11570_vm9, %v4072_v36, 0  ;;  %v2231_v27 = vld [vmem:[#allocation2 + $0x2c] sm:$0xf] }
  0xe5   : > { %15867 = vst [vmem:[#allocation46_spill] sm:$0xff] %v11594_v63  ;;  %v3045_v11 = vor.u32 %v3043_v58, %v11522_v48  ;;  %v2230_v63 = vld [vmem:[#allocation2 + $0x28] sm:$0xf]  ;;  %v2472_v2 = vor.u32 %v2470_v55, %v2469_v24  ;;  %v15869_v9 = vmov 0  ;;  %v4172_v51 = vunpack.c.l.b16 %v4104_v49 }
  0xe6   : > { %15868 = vst [vmem:[#allocation47_spill] sm:$0xff] %v11599_v20  ;;  %v15870_v9 = vsel %vm11614_vm10, 4294967295, %v15869_v9  ;;  %v3047_v12 = vshll.u32 %v11601_v38, 16  ;;  %v4173_v35 = vunpack.c.l.b16 %v4105_v25  ;;  %v303_v36 = vadd.s32 88, %v10616_v5  ;;  %v4074_v20 = vld [vmem:[#allocation2 + $0x34] sm:$0xf] }
  0xe7   : > { %15871 = vst [vmem:[#allocation48_spill] sm:$0xff] %v15870_v9  ;;  %v11620_v37 = vor.u32 %v3504_v10, %v3501_v60  ;;  %vm15872_vm3 = vsmask.f32 7424  ;;  %v2473_v58 = vsel %vm11305_vm4, %v11287_v40, %v2472_v2  ;;  %v3467_v52 = vpack.c.b16 %v3438_v32, %v3437_v31  ;;  %v2149_v2 = vpop.f32.mrf.mxu1 }
  0xe8   : > { %v4235_v48 = vsel %vm15872_vm3, %v4230_v59, %v11581_v43  ;;  %v3049_v18 = vrot.slane %v3047_v12, 1  ;;  %v2736_v55 = vunpack.c.l.b16 %v2473_v58  ;;  %v2737_v8 = vunpack.c.h.b16 %v2473_v58  ;;  %vm15873_vm12 = vmmov %vm15872_vm3 }
  0xe9   : > { %v2912_v3 = vsel %vm11614_vm10, %v2230_v63, 0  ;;  %v405_v25 = vand.u32 15, %v303_v36  ;;  %vm15874_vm1 = vcmask 130048   ;;  %v11633_v60 = vpack.c.b16 %v4173_v35, %v4172_v51  ;;  %v11640_v31 = vpop.f32.mrf.mxu2  ;;  %v10402_v35 = vld [vmem:[#allocation2 + $0x30] sm:$0xff] }
  0xea   : > { %v3050_v49 = vsel %vm15873_vm12, %v3045_v11, %v3049_v18  ;;  %9864 = vmatmul.msk.bf16.gmra.mxu1 %vm15874_vm1, %v4235_v48  ;;  %vm2740_vm13 = vcmp.ne.s32.totalorder %v2736_v55, %v10643_v15  ;;  %vm2741_vm3 = vcmp.ne.s32.totalorder %v2737_v8, %v10651_v23  ;;  %vm15875_vm6 = vmmov %vm15874_vm1  ;;  %v15876_v59 = vmov 0 }
  0xeb   : > { %9741 = vmatmul.msk.bf16.gmra.mxu2 %vm15875_vm6, %v3050_v49  ;;  %vm11636_vm8 = vmpackc.low %vm2741_vm3, %vm2740_vm13  ;;  %v2980_v10 = vunpack.c.l.b16 %v2912_v3  ;;  %v3508_v63 = vshrl.u32 %v3467_v52, 16  ;;  %vm751_vm12 = vcmp.le.s32.totalorder %v405_v25, 14  ;;  %v2474_v32 = vrot.slane %v2469_v24, 4  ;;  %v11652_v8 = vpop.f32.mrf.mxu0  ;;  %v3338_v3 = vld [vmem:[#allocation2 + $0x2c] sm:$0xf] }
  0xec   : > { %v15877_v59 = vsel %vm11636_vm8, 4294967295, %v15876_v59  ;;  %vm15879_vm1 = vsmask.f32 4352  ;;  %v11646_v12 = vadd.f32 %v2149_v2, %v11450_v22  ;;  %v2913_v51 = vsel %vm11636_vm8, %v2231_v27, 0  ;;  %vm2330_vm6 = vmpackc.low %vm751_vm12, %vm751_vm12  ;;  %v3339_v49 = vld [vmem:[#allocation2 + $0x30] sm:$0xf] }
  0xed   : > { %15878 = vst [vmem:[#allocation49_spill] sm:$0xff] %v15877_v59  ;;  %v3506_v11 = vsel %vm15879_vm1, %v11509_v6, %v11620_v37  ;;  %v4236_v36 = vshrl.u32 %v11552_v13, 16  ;;  %v2981_v48 = vunpack.c.l.b16 %v2913_v51  ;;  %v3051_v58 = vshrl.u32 %v11601_v38, 16  ;;  %v2187_v13 = vpop.f32.mrf.mxu3 }
  0xee   : > { %15880 = vst [vmem:[#allocation50_spill] sm:$0xff] %v11646_v12  ;;  %v3511_v55 = vshll.u32 %v3467_v52, 16  ;;  %v2362_v24 = vsel %vm2330_vm6, 65537, %v15832_v1  ;;  %v4240_v6 = vshll.u32 %v11633_v60, 16  ;;  %v2482_v22 = vsel %vm11305_vm4, %v2474_v32, %v11282_v39 }
  0xef   : > { %v2485_v27 = vshrl.u32 %v2362_v24, 16  ;;  %v2488_v25 = vshll.u32 %v2362_v24, 16  ;;  %vm15881_vm13 = vcmask 130048   ;;  %v11660_v2 = vpack.c.b16 %v2981_v48, %v2980_v10  ;;  %v4073_v24 = vld [vmem:[#allocation2 + $0x30] sm:$0xf] }
  0xf0   : > { %9760 = vmatmul.msk.bf16.gmra.mxu3 %vm15881_vm13, %v3506_v11  ;;  %v3510_v38 = vrot.slane %v3508_v63, 3  ;;  %v2743_v52 = vunpack.c.l.b16 %v2482_v22  ;;  %v2744_v51 = vunpack.c.h.b16 %v2482_v22  ;;  %v11663_v34 = vadd.f32 %v2187_v13, %v11474_v50  ;;  %vm15883_vm3 = vmmov %vm15881_vm13 }
  0xf1   : > { %9847 = vmatmul.msk.bf16.gmra.mxu0 %vm15883_vm3, %v10402_v35  ;;  %v4238_v53 = vor.u32 %v4236_v36, %v11581_v43  ;;  %v2487_v12 = vrot.slane %v2485_v27, 7  ;;  %vm15884_vm12 = vnez %v15724_v33  ;;  %v3055_v11 = vshll.u32 %v11660_v2, 16  ;;  %v2232_v43 = vld [vmem:[#allocation2 + $0x30] sm:$0xf]  ;;  %v11680_v22 = vpop.f32.mrf.mxu2 }
  0xf2   : > { %15882 = vst [vmem:[#allocation51_spill] sm:$0xff] %v11663_v34  ;;  %v3371_v32 = vsel %vm15884_vm12, %v3338_v3, 0  ;;  %vm2747_vm1 = vcmp.ne.s32.totalorder %v2743_v52, %v10643_v15  ;;  %vm2748_vm6 = vcmp.ne.s32.totalorder %v2744_v51, %v10651_v23  ;;  %vm15885_vm13 = vnez %v15731_v61  ;;  %v2152_v3 = vpop.f32.mrf.mxu1 }
  0xf3   : > { %v3372_v50 = vsel %vm15885_vm13, %v3339_v49, 0  ;;  %v3053_v10 = vor.u32 %v3051_v58, %v3049_v18  ;;  %v3513_v63 = vrot.slane %v3511_v55, 4  ;;  %v11674_v35 = vrot.slane %v4240_v6, 1  ;;  %vm11676_vm3 = vmpackc.low %vm2748_vm6, %vm2747_vm1  ;;  %v11693_v52 = vpop.f32.mrf.mxu0 }
  0xf4   : > { %v2490_v36 = vor.u32 %v2488_v25, %v2487_v12  ;;  %v15886_v48 = vmov 0  ;;  %v3439_v27 = vunpack.c.l.b16 %v3371_v32  ;;  %v4106_v13 = vsel %vm11614_vm10, %v4073_v24, 0 }
  0xf5   : > { %v15887_v48 = vsel %vm11676_vm3, 4294967295, %v15886_v48  ;;  %v4107_v49 = vsel %vm11636_vm8, %v4074_v20, 0  ;;  %v305_v18 = vadd.s32 104, %v10616_v5  ;;  %v11688_v58 = vadd.f32 %v2152_v3, %v11480_v56  ;;  %v2233_v56 = vld [vmem:[#allocation2 + $0x34] sm:$0xf]  ;;  %v2189_v33 = vpop.f32.mrf.mxu3 }
  0xf6   : > { %15888 = vst [vmem:[#allocation52_spill] sm:$0xff] %v15887_v48  ;;  %v3057_v55 = vrot.slane %v3055_v11, 1  ;;  %v2491_v6 = vsel %vm11305_vm4, %v11287_v40, %v2490_v36  ;;  %v3440_v25 = vunpack.c.l.b16 %v3372_v50  ;;  %v2914_v24 = vsel %vm11676_vm3, %v2232_v43, 0 }
  0xf7   : > { %v2750_v51 = vunpack.c.l.b16 %v2491_v6  ;;  %v2751_v32 = vunpack.c.h.b16 %v2491_v6  ;;  %v11697_v61 = vor.u32 %v3513_v63, %v3510_v38  ;;  %vm15889_vm1 = vsmask.f32 7424 }
  0xf8   : > { %v4243_v20 = vsel %vm15889_vm1, %v4238_v53, %v11674_v35  ;;  %v4174_v3 = vunpack.c.l.b16 %v4106_v13  ;;  %v4175_v11 = vunpack.c.l.b16 %v4107_v49  ;;  %v419_v50 = vand.u32 15, %v305_v18  ;;  %vm15891_vm12 = vmmov %vm15889_vm1 }
  0xf9   : > { %vm2754_vm6 = vcmp.ne.s32.totalorder %v2750_v51, %v10643_v15  ;;  %vm2755_vm13 = vcmp.ne.s32.totalorder %v2751_v32, %v10651_v23  ;;  %v2492_v36 = vrot.slane %v2487_v12, 4  ;;  %v11704_v6 = vadd.f32 %v2189_v33, %v11504_v17 }
  0xfa   : > { %v3058_v43 = vsel %vm15891_vm12, %v3053_v10, %v3057_v55  ;;  %vm11707_vm8 = vmpackc.low %vm2755_vm13, %vm2754_vm6  ;;  %v15892_v38 = vmov 0  ;;  %v2982_v53 = vunpack.c.l.b16 %v2914_v24  ;;  %v3468_v63 = vpack.c.b16 %v3440_v25, %v3439_v27  ;;  %v2154_v27 = vpop.f32.mrf.mxu1  ;;  %v11724_v25 = vpop.f32.mrf.mxu2 }
  0xfb   : > { %15890 = vst [vmem:[#allocation53_spill] sm:$0xff] %v11704_v6  ;;  %v15893_v38 = vsel %vm11707_vm8, 4294967295, %v15892_v38  ;;  %v2915_v13 = vsel %vm11707_vm8, %v2233_v56, 0  ;;  %vm753_vm1 = vcmp.le.s32.totalorder %v419_v50, 14  ;;  %v2500_v49 = vsel %vm11305_vm4, %v2492_v36, %v11282_v39  ;;  %v11733_v50 = vpop.f32.mrf.mxu0  ;;  %v2234_v36 = vld [vmem:[#allocation2 + $0x38] sm:$0xf] }
  0xfc   : > { %15894 = vst [vmem:[#allocation54_spill] sm:$0xff] %v15893_v38  ;;  %vm15895_vm10 = vsmask.f32 4352  ;;  %vm15896_vm9 = vcmask 130048   ;;  %v2983_v17 = vunpack.c.l.b16 %v2915_v13  ;;  %v11720_v12 = vpack.c.b16 %v4175_v11, %v4174_v3  ;;  %vm2332_vm12 = vmpackc.low %vm753_vm1, %vm753_vm1  ;;  %v10403_v11 = vld [vmem:[#allocation2 + $0x38] sm:$0xff] }
  0xfd   : > { %v3515_v33 = vsel %vm15895_vm10, %v11620_v37, %v11697_v61  ;;  %9865 = vmatmul.msk.bf16.gmra.mxu1 %vm15896_vm9, %v4243_v20  ;;  %v2757_v10 = vunpack.c.l.b16 %v2500_v49  ;;  %vm15897_vm13 = vmmov %vm15896_vm9  ;;  %v3059_v18 = vshrl.u32 %v11660_v2, 16  ;;  %v4244_v51 = vshrl.u32 %v11633_v60, 16  ;;  %v4075_v13 = vld [vmem:[#allocation2 + $0x38] sm:$0xf] }
  0xfe   : > { %9742 = vmatmul.msk.bf16.gmra.mxu2 %vm15897_vm13, %v3058_v43  ;;  %v2364_v32 = vsel %vm2332_vm12, 65537, %v15832_v1  ;;  %v2758_v24 = vunpack.c.h.b16 %v2500_v49  ;;  %v11729_v37 = vadd.f32 %v2154_v27, %v11518_v21  ;;  %v11731_v20 = vpack.c.b16 %v2983_v17, %v2982_v53  ;;  %v4076_v49 = vld [vmem:[#allocation2 + $0x3c] sm:$0xf]  ;;  %vm15899_vm6 = vmmov %vm15897_vm13  ;;  %v2192_v21 = vpop.f32.mrf.mxu3  ;;  %v3340_v27 = vld [vmem:[#allocation2 + $0x34] sm:$0xf] }
  0xff   : > { %v3517_v56 = vshrl.u32 %v3468_v63, 16  ;;  %v3520_v3 = vshll.u32 %v3468_v63, 16  ;;  %v2503_v43 = vshrl.u32 %v2364_v32, 16  ;;  %v2506_v2 = vshll.u32 %v2364_v32, 16  ;;  %v3341_v32 = vld [vmem:[#allocation2 + $0x38] sm:$0xf]  ;;  %vm15904_vm12 = vmmov %vm15899_vm6 }
 0x100   : > { %15898 = vst [vmem:[#allocation55_spill] sm:$0xff] %v11729_v37  ;;  %vm2761_vm9 = vcmp.ne.s32.totalorder %v2757_v10, %v10643_v15  ;;  %vm2762_vm10 = vcmp.ne.s32.totalorder %v2758_v24, %v10651_v23  ;;  %v4248_v60 = vshll.u32 %v11720_v12, 16  ;;  %9761 = vmatmul.msk.bf16.gmra.mxu3 %vm15899_vm6, %v3515_v33  ;;  %v3063_v53 = vshll.u32 %v11731_v20, 16 }
 0x101   : > { %v2505_v63 = vrot.slane %v2503_v43, 7  ;;  %vm11740_vm1 = vmpackc.low %vm2762_vm10, %vm2761_vm9  ;;  %v15900_v17 = vmov 0  ;;  %v11745_v10 = vadd.f32 %v2192_v21, %v11550_v46  ;;  %v3061_v24 = vor.u32 %v3059_v18, %v3057_v55  ;;  %9848 = vmatmul.msk.bf16.gmra.mxu0 %vm15904_vm12, %v10403_v11 }
 0x102   : > { %v15901_v17 = vsel %vm11740_vm1, 4294967295, %v15900_v17  ;;  %v3519_v6 = vrot.slane %v3517_v56, 3  ;;  %v4108_v33 = vsel %vm11676_vm3, %v4075_v13, 0  ;;  %v3522_v34 = vrot.slane %v3520_v3, 4  ;;  %v11763_v3 = vpop.f32.mrf.mxu2 }
 0x103   : > { %15902 = vst [vmem:[#allocation56_spill] sm:$0xff] %v15901_v17  ;;  %v4246_v59 = vor.u32 %v4244_v51, %v11674_v35  ;;  %v2508_v43 = vor.u32 %v2506_v2, %v2505_v63  ;;  %v4109_v9 = vsel %vm11707_vm8, %v4076_v49, 0  ;;  %v11753_v37 = vrot.slane %v4248_v60, 1  ;;  %v11771_v21 = vpop.f32.mrf.mxu0 }
 0x104   : > { %15903 = vst [vmem:[#allocation57_spill] sm:$0xff] %v11745_v10  ;;  %v2916_v46 = vsel %vm11740_vm1, %v2234_v36, 0  ;;  %vm15905_vm13 = vnez %v15740_v57  ;;  %vm15906_vm9 = vnez %v15750_v0  ;;  %v11761_v56 = vrot.slane %v3063_v53, 1  ;;  %v2157_v0 = vpop.f32.mrf.mxu1  ;;  %v4078_v10 = vld [vmem:[#allocation2 + $0x44] sm:$0xf] }
 0x105   : > { %v3373_v55 = vsel %vm15905_vm13, %v3340_v27, 0  ;;  %v3374_v18 = vsel %vm15906_vm9, %v3341_v32, 0  ;;  %v2509_v35 = vsel %vm11305_vm4, %v11287_v40, %v2508_v43  ;;  %v4176_v51 = vunpack.c.l.b16 %v4108_v33  ;;  %v2235_v27 = vld [vmem:[#allocation2 + $0x3c] sm:$0xf] }
 0x106   : > { %v307_v11 = vadd.s32 120, %v10616_v5  ;;  %v2764_v2 = vunpack.c.l.b16 %v2509_v35  ;;  %v2765_v60 = vunpack.c.h.b16 %v2509_v35  ;;  %v4177_v36 = vunpack.c.l.b16 %v4109_v9  ;;  %v2194_v35 = vpop.f32.mrf.mxu3 }
 0x107   : > { %v2510_v13 = vrot.slane %v2505_v63, 4  ;;  %v11769_v49 = vor.u32 %v3522_v34, %v3519_v6  ;;  %v3441_v53 = vunpack.c.l.b16 %v3373_v55  ;;  %v3442_v43 = vunpack.c.l.b16 %v3374_v18 }
 0x108   : > { %v433_v32 = vand.u32 15, %v307_v11  ;;  %vm2768_vm10 = vcmp.ne.s32.totalorder %v2764_v2, %v10643_v15  ;;  %vm2769_vm6 = vcmp.ne.s32.totalorder %v2765_v60, %v10651_v23  ;;  %v11779_v9 = vadd.f32 %v2157_v0, %v11562_v29 }
 0x109   : > { %v2518_v33 = vsel %vm11305_vm4, %v2510_v13, %v11282_v39  ;;  %vm15907_vm12 = vsmask.f32 7424  ;;  %vm11783_vm9 = vmpackc.low %vm2769_vm6, %vm2768_vm10  ;;  %v15908_v6 = vmov 0  ;;  %v2984_v63 = vunpack.c.l.b16 %v2916_v46 }
 0x10a   : > { %v4251_v34 = vsel %vm15907_vm12, %v4246_v59, %v11753_v37  ;;  %v15909_v6 = vsel %vm11783_vm9, 4294967295, %v15908_v6  ;;  %vm755_vm13 = vcmp.le.s32.totalorder %v433_v32, 14  ;;  %v11788_v55 = vadd.f32 %v2194_v35, %v11596_v19  ;;  %vm15912_vm8 = vmmov %vm15907_vm12  ;;  %v3342_v32 = vld [vmem:[#allocation2 + $0x3c] sm:$0xf]  ;;  %v10404_v35 = vld [vmem:[#allocation2 + $0x40] sm:$0xff] }
 0x10b   : > { %15910 = vst [vmem:[#allocation58_spill] sm:$0xff] %v15909_v6  ;;  %v3066_v18 = vsel %vm15912_vm8, %v3061_v24, %v11761_v56  ;;  %v2917_v11 = vsel %vm11783_vm9, %v2235_v27, 0  ;;  %v11794_v0 = vpack.c.b16 %v4177_v36, %v4176_v51  ;;  %vm2334_vm3 = vmpackc.low %vm755_vm13, %vm755_vm13  ;;  %v2771_v2 = vunpack.c.l.b16 %v2518_v33  ;;  %v11805_v27 = vpop.f32.mrf.mxu2 }
 0x10c   : > { %15911 = vst [vmem:[#allocation59_spill] sm:$0xff] %v11788_v55  ;;  %v2985_v29 = vunpack.c.l.b16 %v2917_v11  ;;  %v2366_v59 = vsel %vm2334_vm3, 65537, %v15832_v1  ;;  %v2772_v60 = vunpack.c.h.b16 %v2518_v33  ;;  %vm15913_vm10 = vcmask 130048   ;;  %v11809_v11 = vpop.f32.mrf.mxu0 }
 0x10d   : > { %9866 = vmatmul.msk.bf16.gmra.mxu1 %vm15913_vm10, %v4251_v34  ;;  %v3469_v46 = vpack.c.b16 %v3442_v43, %v3441_v53  ;;  %v2521_v13 = vshrl.u32 %v2366_v59, 16  ;;  %v2524_v19 = vshll.u32 %v2366_v59, 16  ;;  %vm15914_vm6 = vmmov %vm15913_vm10  ;;  %v309_v24 = vadd.s32 136, %v10616_v5  ;;  %v3343_v53 = vld [vmem:[#allocation2 + $0x40] sm:$0xf] }
 0x10e   : > { %9743 = vmatmul.msk.bf16.gmra.mxu2 %vm15914_vm6, %v3066_v18  ;;  %vm15915_vm8 = vsmask.f32 4352  ;;  %v11803_v36 = vpack.c.b16 %v2985_v29, %v2984_v63  ;;  %v4252_v33 = vshrl.u32 %v11720_v12, 16  ;;  %v3067_v43 = vshrl.u32 %v11731_v20, 16  ;;  %v2159_v63 = vpop.f32.mrf.mxu1  ;;  %vm15921_vm10 = vmmov %vm15914_vm6  ;;  %v2197_v55 = vpop.f32.mrf.mxu3 }
 0x10f   : > { %v3524_v51 = vsel %vm15915_vm8, %v11697_v61, %v11769_v49  ;;  %v2523_v34 = vrot.slane %v2521_v13, 7  ;;  %v4256_v18 = vshll.u32 %v11794_v0, 16  ;;  %vm11813_vm3 = vcmp.ne.s32.totalorder %v2771_v2, %v10643_v15  ;;  %vm15924_vm8 = vmmov %vm15921_vm10 }
 0x110   : > { %vm11818_vm13 = vcmp.ne.s32.totalorder %v2772_v60, %v10651_v23  ;;  %v3526_v12 = vshrl.u32 %v3469_v46, 16  ;;  %v3529_v29 = vshll.u32 %v3469_v46, 16  ;;  %vm15920_vm12 = vnez %v15770_v14  ;;  %9762 = vmatmul.msk.bf16.gmra.mxu3 %vm15921_vm10, %v3524_v51  ;;  %v4077_v60 = vld [vmem:[#allocation2 + $0x40] sm:$0xf] }
 0x111   : > { %v2526_v13 = vor.u32 %v2524_v19, %v2523_v34  ;;  %v3375_v20 = vsel %vm15920_vm12, %v3342_v32, 0  ;;  %v11826_v2 = vadd.f32 %v2159_v63, %v11608_v45  ;;  %vm15922_vm6 = vnez %v15777_v41  ;;  %9849 = vmatmul.msk.bf16.gmra.mxu0 %vm15924_vm8, %v10404_v35  ;;  %v2236_v32 = vld [vmem:[#allocation2 + $0x40] sm:$0xf]  ;;  %vm11843_vm10 = vmpackc.low %vm11818_vm13, %vm11813_vm3 }
 0x112   : > { %v3376_v57 = vsel %vm15922_vm6, %v3343_v53, 0  ;;  %v447_v38 = vand.u32 15, %v309_v24  ;;  %v11831_v48 = vadd.f32 %v2197_v55, %v11640_v31  ;;  %v3071_v46 = vshll.u32 %v11803_v36, 16  ;;  %v2237_v53 = vld [vmem:[#allocation2 + $0x44] sm:$0xf] }
 0x113   : > { %v4254_v19 = vor.u32 %v4252_v33, %v11753_v37  ;;  %v2527_v45 = vsel %vm11305_vm4, %v11287_v40, %v2526_v13  ;;  %v15925_v24 = vmov 0  ;;  %v11847_v31 = vrot.slane %v4256_v18, 1 }
 0x114   : > { %15923 = vst [vmem:[#allocation60_spill] sm:$0xff] %v11831_v48  ;;  %v15926_v24 = vsel %vm11843_vm10, 4294967295, %v15925_v24  ;;  %v2778_v55 = vunpack.c.l.b16 %v2527_v45  ;;  %v2779_v51 = vunpack.c.h.b16 %v2527_v45  ;;  %v3443_v35 = vunpack.c.l.b16 %v3375_v20  ;;  %v11870_v45 = vpop.f32.mrf.mxu0  ;;  %v2238_v48 = vld [vmem:[#allocation2 + $0x48] sm:$0xf] }
 0x115   : > { %15927 = vst [vmem:[#allocation61_spill] sm:$0xff] %v15926_v24  ;;  %v3444_v37 = vunpack.c.l.b16 %v3376_v57  ;;  %v4110_v33 = vsel %vm11740_vm1, %v4077_v60, 0  ;;  %v4111_v63 = vsel %vm11783_vm9, %v4078_v10, 0  ;;  %v2528_v59 = vrot.slane %v2523_v34, 4 }
 0x116   : > { %vm2782_vm8 = vcmp.ne.s32.totalorder %v2778_v55, %v10643_v15  ;;  %vm2783_vm3 = vcmp.ne.s32.totalorder %v2779_v51, %v10651_v23  ;;  %v2918_v18 = vsel %vm11843_vm10, %v2236_v32, 0  ;;  %vm11857_vm13 = vcmp.le.s32.totalorder %v447_v38, 14  ;;  %v2199_v51 = vpop.f32.mrf.mxu3 }
 0x117   : > { %v3069_v57 = vor.u32 %v3067_v43, %v11761_v56  ;;  %v11862_v13 = vrot.slane %v3071_v46, 1  ;;  %v3528_v20 = vrot.slane %v3526_v12, 3  ;;  %v3531_v60 = vrot.slane %v3529_v29, 4  ;;  %vm11864_vm6 = vmpackc.low %vm2783_vm3, %vm2782_vm8  ;;  %v2162_v56 = vpop.f32.mrf.mxu1  ;;  %v11877_v43 = vpop.f32.mrf.mxu2 }
 0x118   : > { %v15930_v10 = vmov 0  ;;  %vm15933_vm12 = vsmask.f32 7424  ;;  %v2919_v38 = vsel %vm11864_vm6, %v2237_v53, 0  ;;  %v4178_v32 = vunpack.c.l.b16 %v4110_v33  ;;  %vm2336_vm9 = vmpackc.low %vm11857_vm13, %vm11857_vm13 }
 0x119   : > { %v15931_v10 = vsel %vm11864_vm6, 4294967295, %v15930_v10  ;;  %v4259_v34 = vsel %vm15933_vm12, %v4254_v19, %v11847_v31  ;;  %v4179_v55 = vunpack.c.l.b16 %v4111_v63  ;;  %v2986_v12 = vunpack.c.l.b16 %v2918_v18 }
 0x11a   : > { %15932 = vst [vmem:[#allocation62_spill] sm:$0xff] %v15931_v10  ;;  %v3470_v29 = vpack.c.b16 %v3444_v37, %v3443_v35  ;;  %v2368_v46 = vsel %vm2336_vm9, 65537, %v15832_v1  ;;  %v2536_v19 = vsel %vm11305_vm4, %v2528_v59, %v11282_v39  ;;  %v11884_v53 = vadd.f32 %v2162_v56, %v11652_v8 }
 0x11b   : > { %v2987_v33 = vunpack.c.l.b16 %v2919_v38  ;;  %v2539_v63 = vshrl.u32 %v2368_v46, 16  ;;  %v2542_v61 = vshll.u32 %v2368_v46, 16  ;;  %v11887_v41 = vadd.f32 %v2199_v51, %v11680_v22 }
 0x11c   : > { %v3074_v18 = vsel %vm15933_vm12, %v3069_v57, %v11862_v13  ;;  %v11891_v35 = vor.u32 %v3531_v60, %v3528_v20  ;;  %v11893_v37 = vpack.c.b16 %v4179_v55, %v4178_v32  ;;  %v311_v59 = vadd.s32 152, %v10616_v5  ;;  %v10405_v32 = vld [vmem:[#allocation2 + $0x48] sm:$0xff]  ;;  %v3344_v55 = vld [vmem:[#allocation2 + $0x44] sm:$0xf] }
 0x11d   : > { %15934 = vst [vmem:[#allocation63_spill] sm:$0xff] %v11887_v41  ;;  %v2541_v14 = vrot.slane %v2539_v63, 7  ;;  %vm15935_vm9 = vcmask 130048   ;;  %v3075_v8 = vshrl.u32 %v11803_v36, 16  ;;  %v2785_v38 = vunpack.c.l.b16 %v2536_v19  ;;  %v3345_v63 = vld [vmem:[#allocation2 + $0x48] sm:$0xf] }
 0x11e   : > { %9867 = vmatmul.msk.bf16.gmra.mxu1 %vm15935_vm9, %v4259_v34  ;;  %v2786_v56 = vunpack.c.h.b16 %v2536_v19  ;;  %vm15936_vm8 = vmmov %vm15935_vm9  ;;  %v11899_v22 = vpack.c.b16 %v2987_v33, %v2986_v12  ;;  %v3535_v46 = vshrl.u32 %v3470_v29, 16  ;;  %v461_v57 = vand.u32 15, %v311_v59  ;;  %v11904_v34 = vpop.f32.mrf.mxu0  ;;  %v2202_v59 = vpop.f32.mrf.mxu3 }
 0x11f   : > { %9744 = vmatmul.msk.bf16.gmra.mxu2 %vm15936_vm8, %v3074_v18  ;;  %v2544_v51 = vor.u32 %v2542_v61, %v2541_v14  ;;  %vm15937_vm3 = vsmask.f32 4352  ;;  %v3538_v60 = vshll.u32 %v3470_v29, 16  ;;  %v4260_v36 = vshrl.u32 %v11794_v0, 16  ;;  %v2164_v61 = vpop.f32.mrf.mxu1 }
 0x120   : > { %v3533_v20 = vsel %vm15937_vm3, %v11769_v49, %v11891_v35  ;;  %v4264_v19 = vshll.u32 %v11893_v37, 16  ;;  %vm11911_vm13 = vcmp.le.s32.totalorder %v461_v57, 14  ;;  %vm11916_vm12 = vcmp.ne.s32.totalorder %v2785_v38, %v10643_v15 }
 0x121   : > { %v2545_v12 = vsel %vm11305_vm4, %v11287_v40, %v2544_v51  ;;  %vm11921_vm9 = vcmp.ne.s32.totalorder %v2786_v56, %v10651_v23  ;;  %9763 = vmatmul.msk.bf16.gmra.mxu3 %vm15936_vm8, %v3533_v20  ;;  %v11927_v51 = vadd.f32 %v2164_v61, %v11693_v52  ;;  %v3079_v57 = vshll.u32 %v11899_v22, 16  ;;  %v11940_v20 = vpop.f32.mrf.mxu2  ;;  %9850 = vmatmul.msk.bf16.gmra.mxu0 %vm15936_vm8, %v10405_v32  ;;  %v4079_v52 = vld [vmem:[#allocation2 + $0x48] sm:$0xf]  ;;  %v2239_v32 = vld [vmem:[#allocation2 + $0x4c] sm:$0xf] }
 0x122   : > { %v2792_v0 = vunpack.c.l.b16 %v2545_v12  ;;  %v2793_v18 = vunpack.c.h.b16 %v2545_v12  ;;  %vm15944_vm3 = vnez %v15784_v30  ;;  %vm15945_vm1 = vnez %v15795_v4  ;;  %vm11952_vm14 = vmpackc.low %vm11921_vm9, %vm11916_vm12 }
 0x123   : > { %v3377_v38 = vsel %vm15944_vm3, %v3344_v55, 0  ;;  %v3378_v41 = vsel %vm15945_vm1, %v3345_v63, 0  ;;  %v11938_v56 = vadd.f32 %v2202_v59, %v11724_v25  ;;  %v4080_v55 = vld [vmem:[#allocation2 + $0x4c] sm:$0xf]  ;;  %v2546_v12 = vrot.slane %v2541_v14, 4  ;;  %vm15953_vm1 = vmpackc.low %vm11911_vm13, %vm11911_vm13 }
 0x124   : > { %vm2796_vm2 = vcmp.ne.s32.totalorder %v2792_v0, %v10643_v15  ;;  %vm2797_vm11 = vcmp.ne.s32.totalorder %v2793_v18, %v10651_v23  ;;  %v3537_v61 = vrot.slane %v3535_v46, 3  ;;  %v3540_v63 = vrot.slane %v3538_v60, 4 }
 0x125   : > { %15946 = vst [vmem:[#allocation64_spill] sm:$0xff] %v11938_v56  ;;  %v4262_v4 = vor.u32 %v4260_v36, %v11847_v31  ;;  %v11946_v30 = vrot.slane %v4264_v19, 1  ;;  %v15947_v25 = vmov 0  ;;  %vm11956_vm8 = vmpackc.low %vm2797_vm11, %vm2796_vm2  ;;  %v15950_v0 = vmov 0 }
 0x126   : > { %v15948_v25 = vsel %vm11952_vm14, 4294967295, %v15947_v25  ;;  %v15951_v0 = vsel %vm11956_vm8, 4294967295, %v15950_v0  ;;  %v3445_v14 = vunpack.c.l.b16 %v3377_v38  ;;  %v3446_v46 = vunpack.c.l.b16 %v3378_v41  ;;  %v2204_v56 = vpop.f32.mrf.mxu3 }
 0x127   : > { %15949 = vst [vmem:[#allocation65_spill] sm:$0xff] %v15948_v25  ;;  %v2370_v31 = vsel %vm15953_vm1, 65537, %v15832_v1  ;;  %v3077_v60 = vor.u32 %v3075_v8, %v11862_v13  ;;  %v11967_v36 = vrot.slane %v3079_v57, 1  ;;  %v4112_v19 = vsel %vm11843_vm10, %v4079_v52, 0  ;;  %v11982_v8 = vpop.f32.mrf.mxu0  ;;  %v2167_v10 = vpop.f32.mrf.mxu1 }
 0x128   : > { %15952 = vst [vmem:[#allocation66_spill] sm:$0xff] %v15951_v0  ;;  %v4113_v49 = vsel %vm11864_vm6, %v4080_v55, 0  ;;  %v2920_v41 = vsel %vm11952_vm14, %v2238_v48, 0  ;;  %v2554_v29 = vsel %vm11305_vm4, %v2546_v12, %v11282_v39  ;;  %v2557_v33 = vshrl.u32 %v2370_v31, 16  ;;  %v2242_v0 = vld [vmem:[#allocation2 + $0x58] sm:$0xf] }
 0x129   : > { %v2560_v18 = vshll.u32 %v2370_v31, 16  ;;  %v11978_v59 = vor.u32 %v3540_v63, %v3537_v61  ;;  %vm15954_vm11 = vsmask.f32 7424  ;;  %v2921_v57 = vsel %vm11956_vm8, %v2239_v32, 0 }
 0x12a   : > { %v4267_v13 = vsel %vm15954_vm11, %v4262_v4, %v11946_v30  ;;  %v3471_v38 = vpack.c.b16 %v3446_v46, %v3445_v14  ;;  %v4180_v52 = vunpack.c.l.b16 %v4112_v19  ;;  %v4181_v55 = vunpack.c.l.b16 %v4113_v49  ;;  %vm15955_vm2 = vmmov %vm15954_vm11  ;;  %v11997_v46 = vpop.f32.mrf.mxu2 }
 0x12b   : > { %v11986_v48 = vrot.slane %v2557_v33, 7  ;;  %v3082_v12 = vsel %vm15955_vm2, %v3077_v60, %v11967_v36  ;;  %v2988_v61 = vunpack.c.l.b16 %v2920_v41  ;;  %v2799_v63 = vunpack.c.l.b16 %v2554_v29  ;;  %v3347_v33 = vld [vmem:[#allocation2 + $0x50] sm:$0xf] }
 0x12c   : > { %v2800_v31 = vunpack.c.h.b16 %v2554_v29  ;;  %v11991_v4 = vadd.f32 %v2204_v56, %v11763_v3  ;;  %v11994_v24 = vadd.f32 %v2167_v10, %v11733_v50  ;;  %v2989_v32 = vunpack.c.l.b16 %v2921_v57  ;;  %v3346_v29 = vld [vmem:[#allocation2 + $0x4c] sm:$0xf]  ;;  %v2241_v50 = vld [vmem:[#allocation2 + $0x54] sm:$0xf] }
 0x12d   : > { %v2562_v14 = vor.u32 %v2560_v18, %v11986_v48  ;;  %vm15957_vm1 = vcmask 130048   ;;  %v3544_v19 = vshrl.u32 %v3471_v38, 16  ;;  %v12000_v49 = vpack.c.b16 %v4181_v55, %v4180_v52  ;;  %v10406_v52 = vld [vmem:[#allocation2 + $0x50] sm:$0xff] }
 0x12e   : > { %15956 = vst [vmem:[#allocation67_spill] sm:$0xff] %v11991_v4  ;;  %9868 = vmatmul.msk.bf16.gmra.mxu1 %vm15957_vm1, %v4267_v13  ;;  %v313_v3 = vadd.s32 168, %v10616_v5  ;;  %vm15958_vm13 = vmmov %vm15957_vm1  ;;  %vm12008_vm12 = vcmp.ne.s32.totalorder %v2799_v63, %v10643_v15  ;;  %vm12013_vm9 = vcmp.ne.s32.totalorder %v2800_v31, %v10651_v23  ;;  %vm15963_vm11 = vsmask.f32 4352  ;;  %v2240_v31 = vld [vmem:[#allocation2 + $0x50] sm:$0xf] }
 0x12f   : > { %v2563_v60 = vsel %vm11305_vm4, %v11287_v40, %v2562_v14  ;;  %9745 = vmatmul.msk.bf16.gmra.mxu2 %vm15958_vm13, %v3082_v12  ;;  %v3542_v18 = vsel %vm15963_vm11, %v11891_v35, %v11978_v59  ;;  %v12020_v13 = vpack.c.b16 %v2989_v32, %v2988_v61  ;;  %v3547_v57 = vshll.u32 %v3471_v38, 16  ;;  %v12022_v12 = vpop.f32.mrf.mxu0  ;;  %vm12031_vm13 = vmpackc.low %vm12013_vm9, %vm12008_vm12  ;;  %v2207_v32 = vpop.f32.mrf.mxu3 }
 0x130   : > { %v2806_v56 = vunpack.c.l.b16 %v2563_v60  ;;  %v2807_v41 = vunpack.c.h.b16 %v2563_v60  ;;  %v475_v55 = vand.u32 15, %v313_v3  ;;  %v3083_v63 = vshrl.u32 %v11899_v22, 16  ;;  %v2169_v14 = vpop.f32.mrf.mxu1 }
 0x131   : > { %v15964_v35 = vmov 0  ;;  %vm15967_vm11 = vnez %v15654_v7  ;;  %vm15968_vm3 = vnez %v15662_v42  ;;  %vm15969_vm6 = vcmask 130048  }
 0x132   : > { %vm2810_vm2 = vcmp.ne.s32.totalorder %v2806_v56, %v10643_v15  ;;  %vm2811_vm1 = vcmp.ne.s32.totalorder %v2807_v41, %v10651_v23  ;;  %v15965_v35 = vsel %vm12031_vm13, 4294967295, %v15964_v35  ;;  %v3379_v38 = vsel %vm15967_vm11, %v3346_v29, 0  ;;  %9764 = vmatmul.msk.bf16.gmra.mxu3 %vm15969_vm6, %v3542_v18  ;;  %9851 = vmatmul.msk.bf16.gmra.mxu0 %vm15969_vm6, %v10406_v52  ;;  %v12066_v4 = vpop.f32.mrf.mxu2 }
 0x133   : > { %15966 = vst [vmem:[#allocation68_spill] sm:$0xff] %v15965_v35  ;;  %v3380_v61 = vsel %vm15968_vm3, %v3347_v33, 0  ;;  %v3546_v22 = vrot.slane %v3544_v19, 3  ;;  %v4268_v60 = vshrl.u32 %v11893_v37, 16  ;;  %v4272_v3 = vshll.u32 %v12000_v49, 16  ;;  %vm12042_vm12 = vmpackc.low %vm2811_vm1, %vm2810_vm2 }
 0x134   : > { %v15970_v10 = vmov 0  ;;  %vm761_vm9 = vcmp.le.s32.totalorder %v475_v55, 14  ;;  %v12047_v56 = vadd.f32 %v2207_v32, %v11805_v27  ;;  %v12050_v41 = vadd.f32 %v2169_v14, %v11771_v21  ;;  %v4081_v37 = vld [vmem:[#allocation2 + $0x50] sm:$0xf]  ;;  %v4082_v19 = vld [vmem:[#allocation2 + $0x54] sm:$0xf]  ;;  %vm15977_vm1 = vmmov %vm15969_vm6 }
 0x135   : > { %v15971_v10 = vsel %vm12042_vm12, 4294967295, %v15970_v10  ;;  %v3087_v29 = vshll.u32 %v12020_v13, 16  ;;  %v3549_v33 = vrot.slane %v3547_v57, 4  ;;  %vm2340_vm3 = vmpackc.low %vm761_vm9, %vm761_vm9  ;;  %v2922_v18 = vsel %vm12031_vm13, %v2240_v31, 0 }
 0x136   : > { %15972 = vst [vmem:[#allocation69_spill] sm:$0xff] %v15971_v10  ;;  %v3447_v42 = vunpack.c.l.b16 %v3379_v38  ;;  %v3448_v7 = vunpack.c.l.b16 %v3380_v61  ;;  %v2372_v55 = vsel %vm2340_vm3, 65537, %v15832_v1  ;;  %v2923_v27 = vsel %vm12042_vm12, %v2241_v50, 0  ;;  %vm15978_vm9 = vmmov %vm15977_vm1 }
 0x137   : > { %15973 = vst [vmem:[#allocation70_spill] sm:$0xff] %v12047_v56  ;;  %v2564_v21 = vrot.slane %v11986_v48, 4  ;;  %v2575_v32 = vshrl.u32 %v2372_v55, 16  ;;  %v2578_v14 = vshll.u32 %v2372_v55, 16  ;;  %v4270_v57 = vor.u32 %v4268_v60, %v11946_v30  ;;  %v12070_v50 = vpop.f32.mrf.mxu0 }
 0x138   : > { %v4274_v52 = vrot.slane %v4272_v3, 1  ;;  %v4114_v56 = vsel %vm11952_vm14, %v4081_v37, 0  ;;  %v4115_v31 = vsel %vm11956_vm8, %v4082_v19, 0  ;;  %v3085_v38 = vor.u32 %v3083_v63, %v11967_v36  ;;  %v2209_v19 = vpop.f32.mrf.mxu3  ;;  %v2172_v36 = vpop.f32.mrf.mxu1 }
 0x139   : > { %v3089_v61 = vrot.slane %v3087_v29, 1  ;;  %v12068_v6 = vrot.slane %v2575_v32, 7  ;;  %v2990_v48 = vunpack.c.l.b16 %v2922_v18  ;;  %v2991_v55 = vunpack.c.l.b16 %v2923_v27 }
 0x13a   : > { %v3472_v17 = vpack.c.b16 %v3448_v7, %v3447_v42  ;;  %v4182_v30 = vunpack.c.l.b16 %v4114_v56  ;;  %v4183_v60 = vunpack.c.l.b16 %v4115_v31  ;;  %v2572_v3 = vsel %vm11305_vm4, %v2564_v21, %v11282_v39 }
 0x13b   : > { %v2580_v37 = vor.u32 %v2578_v14, %v12068_v6  ;;  %v12076_v63 = vor.u32 %v3549_v33, %v3546_v22  ;;  %vm15974_vm3 = vsmask.f32 7424  ;;  %v315_v32 = vadd.s32 184, %v10616_v5 }
 0x13c   : > { %v4275_v29 = vsel %vm15974_vm3, %v4270_v57, %v4274_v52  ;;  %v12081_v18 = vadd.f32 %v2209_v19, %v11877_v43  ;;  %v12084_v7 = vadd.f32 %v2172_v36, %v11809_v11  ;;  %vm15976_vm2 = vmmov %vm15974_vm3  ;;  %v12090_v27 = vpack.c.b16 %v2991_v55, %v2990_v48  ;;  %v10407_v55 = vld [vmem:[#allocation2 + $0x58] sm:$0xff] }
 0x13d   : > { %v3090_v42 = vsel %vm15976_vm2, %v3085_v38, %v3089_v61  ;;  %v2581_v56 = vsel %vm11305_vm4, %v11287_v40, %v2580_v37  ;;  %v3553_v22 = vshrl.u32 %v3472_v17, 16  ;;  %v2813_v33 = vunpack.c.l.b16 %v2572_v3 }
 0x13e   : > { %15975 = vst [vmem:[#allocation71_spill] sm:$0xff] %v12081_v18  ;;  %v2814_v21 = vunpack.c.h.b16 %v2572_v3  ;;  %9869 = vmatmul.msk.bf16.gmra.mxu1 %vm15977_vm1, %v4275_v29  ;;  %v12093_v14 = vpack.c.b16 %v4183_v60, %v4182_v30  ;;  %v2820_v43 = vunpack.c.l.b16 %v2581_v56  ;;  %v2821_v57 = vunpack.c.h.b16 %v2581_v56  ;;  %v3348_v3 = vld [vmem:[#allocation2 + $0x54] sm:$0xf] }
 0x13f   : > { %v489_v31 = vand.u32 15, %v315_v32  ;;  %9746 = vmatmul.msk.bf16.gmra.mxu2 %vm15978_vm9, %v3090_v42  ;;  %v3091_v11 = vshrl.u32 %v12020_v13, 16  ;;  %vm15979_vm6 = vsmask.f32 4352  ;;  %v3556_v48 = vshll.u32 %v3472_v17, 16  ;;  %v12106_v60 = vpop.f32.mrf.mxu0 }
 0x140   : > { %v3551_v38 = vsel %vm15979_vm6, %v11978_v59, %v12076_v63  ;;  %v4276_v37 = vshrl.u32 %v12000_v49, 16  ;;  %v3095_v30 = vshll.u32 %v12090_v27, 16  ;;  %vm12109_vm2 = vcmp.ne.s32.totalorder %v2813_v33, %v10643_v15  ;;  %v3349_v59 = vld [vmem:[#allocation2 + $0x58] sm:$0xf]  ;;  %v12121_v49 = vpop.f32.mrf.mxu2  ;;  %v2174_v56 = vpop.f32.mrf.mxu1 }
 0x141   : > { %vm12101_vm3 = vcmp.le.s32.totalorder %v489_v31, 14  ;;  %vm12114_vm1 = vcmp.ne.s32.totalorder %v2814_v21, %v10651_v23  ;;  %v3555_v36 = vrot.slane %v3553_v22, 3  ;;  %v4280_v29 = vshll.u32 %v12093_v14, 16  ;;  %v4083_v22 = vld [vmem:[#allocation2 + $0x58] sm:$0xf] }
 0x142   : > { %vm2342_vm9 = vmpackc.low %vm12101_vm3, %vm12101_vm3  ;;  %vm12125_vm6 = vcmp.ne.s32.totalorder %v2820_v43, %v10643_v15  ;;  %vm12130_vm11 = vcmp.ne.s32.totalorder %v2821_v57, %v10651_v23  ;;  %vm15990_vm8 = vcmask 130048   ;;  %v3093_v33 = vor.u32 %v3091_v11, %v3089_v61  ;;  %v4084_v31 = vld [vmem:[#allocation2 + $0x5c] sm:$0xf] }
 0x143   : > { %9765 = vmatmul.msk.bf16.gmra.mxu3 %vm15990_vm8, %v3551_v38  ;;  %vm15991_vm3 = vnez %v15657_v28  ;;  %v2374_v19 = vsel %vm2342_vm9, 65537, %v15832_v1  ;;  %v12139_v43 = vadd.f32 %v2174_v56, %v11870_v45  ;;  %v3558_v18 = vrot.slane %v3556_v48, 4  ;;  %vm15992_vm14 = vmmov %vm15990_vm8  ;;  %v2243_v45 = vld [vmem:[#allocation2 + $0x5c] sm:$0xf] }
 0x144   : > { %v3381_v21 = vsel %vm15991_vm3, %v3348_v3, 0  ;;  %9852 = vmatmul.msk.bf16.gmra.mxu0 %vm15992_vm14, %v10407_v55  ;;  %v4278_v57 = vor.u32 %v4276_v37, %v4274_v52  ;;  %vm12146_vm8 = vmpackc.low %vm12114_vm1, %vm12109_vm2  ;;  %v15993_v61 = vmov 0  ;;  %vm15996_vm3 = vnez %v15665_v44  ;;  %v2212_v3 = vpop.f32.mrf.mxu3 }
 0x145   : > { %v15994_v61 = vsel %vm12146_vm8, 4294967295, %v15993_v61  ;;  %v3382_v11 = vsel %vm15996_vm3, %v3349_v59, 0  ;;  %v12152_v38 = vrot.slane %v3095_v30, 1  ;;  %vm12158_vm14 = vmpackc.low %vm12130_vm11, %vm12125_vm6  ;;  %v15997_v52 = vmov 0 }
 0x146   : > { %15995 = vst [vmem:[#allocation72_spill] sm:$0xff] %v15994_v61  ;;  %v15998_v52 = vsel %vm12158_vm14, 4294967295, %v15997_v52  ;;  %v2582_v48 = vrot.slane %v12068_v6, 4  ;;  %v2593_v55 = vshrl.u32 %v2374_v19, 16  ;;  %v2596_v37 = vshll.u32 %v2374_v19, 16 }
 0x147   : > { %15999 = vst [vmem:[#allocation73_spill] sm:$0xff] %v15998_v52  ;;  %v12163_v13 = vrot.slane %v4280_v29, 1  ;;  %v3449_v17 = vunpack.c.l.b16 %v3381_v21  ;;  %v4116_v30 = vsel %vm12031_vm13, %v4083_v22, 0  ;;  %v4117_v59 = vsel %vm12042_vm12, %v4084_v31, 0  ;;  %v12179_v21 = vpop.f32.mrf.mxu0 }
 0x148   : > { %v12170_v32 = vadd.f32 %v2212_v3, %v11940_v20  ;;  %v3450_v42 = vunpack.c.l.b16 %v3382_v11  ;;  %v12172_v56 = vrot.slane %v2593_v55, 7  ;;  %v317_v6 = vadd.s32 200, %v10616_v5  ;;  %v2177_v3 = vpop.f32.mrf.mxu1 }
 0x149   : > { %v2924_v19 = vsel %vm12146_vm8, %v2242_v0, 0  ;;  %v2925_v29 = vsel %vm12158_vm14, %v2243_v45, 0  ;;  %v4184_v22 = vunpack.c.l.b16 %v4116_v30  ;;  %v4185_v44 = vunpack.c.l.b16 %v4117_v59 }
 0x14a   : > { %16000 = vst [vmem:[#allocation74_spill] sm:$0xff] %v12170_v32  ;;  %v2590_v20 = vsel %vm11305_vm4, %v2582_v48, %v11282_v39  ;;  %v2598_v31 = vor.u32 %v2596_v37, %v12172_v56  ;;  %vm16001_vm11 = vsmask.f32 7424  ;;  %v12187_v55 = vor.u32 %v3558_v18, %v3555_v36  ;;  %v3218_v48 = vpop.f32.mrf.mxu2 }
 0x14b   : > { %v3098_v11 = vsel %vm16001_vm11, %v3093_v33, %v12152_v38  ;;  %vm16002_vm2 = vmmov %vm16001_vm11  ;;  %v3473_v45 = vpack.c.b16 %v3450_v42, %v3449_v17  ;;  %v503_v59 = vand.u32 15, %v317_v6  ;;  %v12195_v28 = vadd.f32 %v2177_v3, %v11904_v34  ;;  %v3351_v17 = vld [vmem:[#allocation2 + $0x60] sm:$0xf] }
 0x14c   : > { %v4283_v0 = vsel %vm16002_vm2, %v4278_v57, %v12163_v13  ;;  %v2599_v30 = vsel %vm11305_vm4, %v11287_v40, %v2598_v31  ;;  %v2992_v37 = vunpack.c.l.b16 %v2924_v19  ;;  %v2993_v32 = vunpack.c.l.b16 %v2925_v29  ;;  %v3350_v57 = vld [vmem:[#allocation2 + $0x5c] sm:$0xf]  ;;  %v2214_v42 = vpop.f32.mrf.mxu3  ;;  %v10408_v31 = vld [vmem:[#allocation2 + $0x60] sm:$0xff] }
 0x14d   : > { %v2827_v10 = vunpack.c.l.b16 %v2590_v20  ;;  %v12198_v18 = vadd.f32 %v3218_v48, %v11460_v62  ;;  %v12200_v36 = vpack.c.b16 %v4185_v44, %v4184_v22  ;;  %v2828_v33 = vunpack.c.h.b16 %v2590_v20 }
 0x14e   : > { %vm765_vm1 = vcmp.le.s32.totalorder %v503_v59, 14  ;;  %vm16003_vm9 = vsmask.f32 4352  ;;  %vm16004_vm6 = vcmask 130048   ;;  %v2834_v34 = vunpack.c.l.b16 %v2599_v30 }
 0x14f   : > { %v3560_v6 = vsel %vm16003_vm9, %v12076_v63, %v12187_v55  ;;  %9870 = vmatmul.msk.bf16.gmra.mxu1 %vm16004_vm6, %v4283_v0  ;;  %v2835_v19 = vunpack.c.h.b16 %v2599_v30  ;;  %vm2344_vm11 = vmpackc.low %vm765_vm1, %vm765_vm1  ;;  %v12207_v29 = vadd.f32 %v2214_v42, %v11997_v46  ;;  %v3562_v44 = vshrl.u32 %v3473_v45, 16  ;;  %v12217_v30 = vpop.f32.mrf.mxu0 }
 0x150   : > { %vm16006_vm2 = vmmov %vm16004_vm6  ;;  %v3565_v62 = vshll.u32 %v3473_v45, 16  ;;  %v2376_v22 = vsel %vm2344_vm11, 65537, %v15832_v1  ;;  %v12211_v20 = vpack.c.b16 %v2993_v32, %v2992_v37  ;;  %vm16007_vm3 = vnez %v15682_v16  ;;  %v16017_v37 = vld [vmem:[#allocation35_spill] sm:$0xff] }
 0x151   : > { %16005 = vst [vmem:[#allocation75_spill] sm:$0xff] %v12207_v29  ;;  %9747 = vmatmul.msk.bf16.gmra.mxu2 %vm16006_vm2, %v3098_v11  ;;  %v3383_v63 = vsel %vm16007_vm3, %v3350_v57, 0  ;;  %vm16008_vm9 = vnez %v15689_v47  ;;  %v2611_v0 = vshrl.u32 %v2376_v22, 16  ;;  %v4284_v46 = vshrl.u32 %v12093_v14, 16  ;;  %v4085_v47 = vld [vmem:[#allocation2 + $0x60] sm:$0xf] }
 0x152   : > { %v3384_v3 = vsel %vm16008_vm9, %v3351_v17, 0  ;;  %v4288_v11 = vshll.u32 %v12200_v36, 16  ;;  %vm12222_vm1 = vcmp.ne.s32.totalorder %v2827_v10, %v10643_v15  ;;  %vm12227_vm6 = vcmp.ne.s32.totalorder %v2828_v33, %v10651_v23  ;;  %v2179_v33 = vpop.f32.mrf.mxu1 }
 0x153   : > { %vm12232_vm11 = vcmp.ne.s32.totalorder %v2834_v34, %v10643_v15  ;;  %vm12237_vm2 = vcmp.ne.s32.totalorder %v2835_v19, %v10651_v23  ;;  %v12241_v48 = vrot.slane %v2611_v0, 7  ;;  %v2614_v10 = vshll.u32 %v2376_v22, 16  ;;  %v10453_v34 = vld [vmem:[%s15290_s4 + $0x8] sm:$0xff]  ;;  %v4086_v19 = vld [vmem:[#allocation2 + $0x64] sm:$0xf]  ;;  %v3220_v0 = vpop.f32.mrf.mxu2 }
 0x154   : > { %v2145_v57 = vadd.f32 %v11539_v54, %v16017_v37  ;;  %vm16018_vm9 = vcmask 130048   ;;  %v3451_v17 = vunpack.c.l.b16 %v3383_v63  ;;  %v3452_v42 = vunpack.c.l.b16 %v3384_v3  ;;  %6095 = vmatpush.bf16.msra.mxu1 %v10453_v34  ;;  %v2217_v45 = vpop.f32.mrf.mxu3 }
 0x155   : > { %9766 = vmatmul.msk.bf16.gmra.mxu3 %vm16018_vm9, %v3560_v6  ;;  %v12250_v16 = vadd.f32 %v2179_v33, %v11982_v8  ;;  %v3099_v22 = vshrl.u32 %v12090_v27, 16  ;;  %v3103_v29 = vshll.u32 %v12211_v20, 16  ;;  %v3564_v54 = vrot.slane %v3562_v44, 3  ;;  %vm16020_vm3 = vmmov %vm16018_vm9  ;;  %v2244_v6 = vld [vmem:[#allocation2 + $0x60] sm:$0xf] }
 0x156   : > { %9853 = vmatmul.msk.bf16.gmra.mxu0 %vm16020_vm3, %v10408_v31  ;;  %vm12259_vm9 = vmpackc.low %vm12227_vm6, %vm12222_vm1  ;;  %v16021_v63 = vmov 0  ;;  %v12263_v3 = vadd.f32 %v3220_v0, %v2145_v57  ;;  %v3567_v8 = vrot.slane %v3565_v62, 4  ;;  %v4286_v37 = vor.u32 %v4284_v46, %v12163_v13  ;;  %v2245_v27 = vld [vmem:[#allocation2 + $0x64] sm:$0xf] }
 0x157   : > { %16019 = vst [vmem:[#allocation35_spill] sm:$0xff] %v12250_v16  ;;  %v16022_v63 = vsel %vm12259_vm9, 4294967295, %v16021_v63  ;;  %vm12270_vm3 = vmpackc.low %vm12237_vm2, %vm12232_vm11  ;;  %v16024_v44 = vmov 0  ;;  %v2600_v31 = vrot.slane %v12172_v56, 4  ;;  %v12275_v32 = vrot.slane %v4288_v11, 1  ;;  %v12290_v34 = vpop.f32.mrf.mxu0 }
 0x158   : > { %16023 = vst [vmem:[#allocation76_spill] sm:$0xff] %v16022_v63  ;;  %v16025_v44 = vsel %vm12270_vm3, 4294967295, %v16024_v44  ;;  %v4118_v62 = vsel %vm12146_vm8, %v4085_v47, 0  ;;  %v4119_v13 = vsel %vm12158_vm14, %v4086_v19, 0  ;;  %v2616_v46 = vor.u32 %v2614_v10, %v12241_v48 }
 0x159   : > { %16026 = vst [vmem:[#allocation77_spill] sm:$0xff] %v16025_v44  ;;  %v12283_v59 = vadd.f32 %v2217_v45, %v12066_v4  ;;  %v2926_v14 = vsel %vm12259_vm9, %v2244_v6, 0  ;;  %v3474_v57 = vpack.c.b16 %v3452_v42, %v3451_v17  ;;  %v3101_v56 = vor.u32 %v3099_v22, %v12152_v38 }
 0x15a   : > { %v3105_v33 = vrot.slane %v3103_v29, 1  ;;  %v2927_v11 = vsel %vm12270_vm3, %v2245_v27, 0  ;;  %v4186_v47 = vunpack.c.l.b16 %v4118_v62  ;;  %v4187_v0 = vunpack.c.l.b16 %v4119_v13  ;;  %v12302_v29 = vpop.f32.mrf.mxu1 }
 0x15b   : > { %16027 = vst [vmem:[#allocation78_spill] sm:$0xff] %v12283_v59  ;;  %v2608_v10 = vsel %vm11305_vm4, %v2600_v31, %v11282_v39  ;;  %v12295_v4 = vor.u32 %v3567_v8, %v3564_v54  ;;  %vm16028_vm1 = vsmask.f32 7424  ;;  %v2994_v17 = vunpack.c.l.b16 %v2926_v14 }
 0x15c   : > { %v4291_v19 = vsel %vm16028_vm1, %v4286_v37, %v12275_v32  ;;  %v2617_v38 = vsel %vm11305_vm4, %v11287_v40, %v2616_v46  ;;  %v2995_v42 = vunpack.c.l.b16 %v2927_v11  ;;  %v3571_v22 = vshrl.u32 %v3474_v57, 16  ;;  %vm16029_vm6 = vmmov %vm16028_vm1  ;;  %v2219_v14 = vpop.f32.mrf.mxu3 }
 0x15d   : > { %v3574_v6 = vshll.u32 %v3474_v57, 16  ;;  %v319_v27 = vadd.s32 216, %v10616_v5  ;;  %v3106_v45 = vsel %vm16029_vm6, %v3101_v56, %v3105_v33  ;;  %v2841_v31 = vunpack.c.l.b16 %v2608_v10 }
 0x15e   : > { %v2842_v54 = vunpack.c.h.b16 %v2608_v10  ;;  %v12306_v8 = vpack.c.b16 %v4187_v0, %v4186_v47  ;;  %v2848_v62 = vunpack.c.l.b16 %v2617_v38  ;;  %v2849_v37 = vunpack.c.h.b16 %v2617_v38  ;;  %v3352_v10 = vld [vmem:[#allocation2 + $0x64] sm:$0xf]  ;;  %v3223_v38 = vpop.f32.mrf.mxu2 }
 0x15f   : > { %v517_v13 = vand.u32 15, %v319_v27  ;;  %vm16030_vm11 = vsmask.f32 4352  ;;  %vm16031_vm2 = vcmask 130048   ;;  %v3107_v57 = vshrl.u32 %v12211_v20, 16  ;;  %v10409_v27 = vld [vmem:[#allocation2 + $0x68] sm:$0xff] }
 0x160   : > { %v3569_v46 = vsel %vm16030_vm11, %v12187_v55, %v12295_v4  ;;  %9871 = vmatmul.msk.bf16.gmra.mxu1 %vm16031_vm2, %v4291_v19  ;;  %v12314_v11 = vadd.f32 %v2219_v14, %v12121_v49  ;;  %vm16033_vm1 = vmmov %vm16031_vm2  ;;  %v12317_v56 = vpack.c.b16 %v2995_v42, %v2994_v17  ;;  %v3573_v47 = vrot.slane %v3571_v22, 3  ;;  %v3353_v20 = vld [vmem:[#allocation2 + $0x68] sm:$0xf]  ;;  %v16038_v19 = vld [vmem:[#allocation47_spill] sm:$0xff]  ;;  %v12333_v42 = vpop.f32.mrf.mxu0 }
 0x161   : > { %9748 = vmatmul.msk.bf16.gmra.mxu2 %vm16033_vm1, %v3106_v45  ;;  %v3576_v0 = vrot.slane %v3574_v6, 4  ;;  %v4292_v59 = vshrl.u32 %v12200_v36, 16  ;;  %vm12321_vm6 = vcmp.ne.s32.totalorder %v2841_v31, %v10643_v15  ;;  %vm12326_vm11 = vcmp.ne.s32.totalorder %v2842_v54, %v10651_v23  ;;  %v2246_v36 = vld [vmem:[#allocation2 + $0x68] sm:$0xf]  ;;  %v2247_v54 = vld [vmem:[#allocation2 + $0x6c] sm:$0xf] }
 0x162   : > { %16032 = vst [vmem:[#allocation79_spill] sm:$0xff] %v12314_v11  ;;  %vm767_vm2 = vcmp.le.s32.totalorder %v517_v13, 14  ;;  %v12331_v17 = vadd.f32 %v3223_v38, %v16038_v19  ;;  %v4296_v22 = vshll.u32 %v12306_v8, 16  ;;  %vm2852_vm1 = vcmp.ne.s32.totalorder %v2848_v62, %v10643_v15  ;;  %v12341_v31 = vpop.f32.mrf.mxu1  ;;  %vm12347_vm13 = vmpackc.low %vm12326_vm11, %vm12321_vm6  ;;  %v16043_v62 = vld [vmem:[#allocation17_spill] sm:$0xff]  ;;  %v16045_v14 = vld [vmem:[#allocation18_spill] sm:$0xff] }
 0x163   : > { %vm2853_vm14 = vcmp.ne.s32.totalorder %v2849_v37, %v10651_v23  ;;  %vm2346_vm8 = vmpackc.low %vm767_vm2, %vm767_vm2  ;;  %vm16039_vm12 = vcmask 130048   ;;  %v3111_v45 = vshll.u32 %v12317_v56, 16  ;;  %v16040_v13 = vmov 0  ;;  %v4087_v55 = vld [vmem:[#allocation2 + $0x68] sm:$0xf] }
 0x164   : > { %v2378_v6 = vsel %vm2346_vm8, 65537, %v15832_v1  ;;  %v16041_v13 = vsel %vm12347_vm13, 4294967295, %v16040_v13  ;;  %vm16044_vm2 = vnez %v16043_v62  ;;  %vm16046_vm8 = vnez %v16045_v14  ;;  %vm12357_vm10 = vmpackc.low %vm2853_vm14, %vm2852_vm1  ;;  %v4088_v49 = vld [vmem:[#allocation2 + $0x6c] sm:$0xf] }
 0x165   : > { %9767 = vmatmul.msk.bf16.gmra.mxu3 %vm16039_vm12, %v3569_v46  ;;  %16042 = vst [vmem:[#allocation47_spill] sm:$0xff] %v16041_v13  ;;  %v3385_v37 = vsel %vm16044_vm2, %v3352_v10, 0  ;;  %v3386_v38 = vsel %vm16046_vm8, %v3353_v20, 0  ;;  %v2618_v46 = vrot.slane %v12241_v48, 4  ;;  %v16047_v19 = vmov 0  ;;  %v3696_v20 = vpop.f32.mrf.mxu3  ;;  %vm16055_vm1 = vmmov %vm16039_vm12 }
 0x166   : > { %9854 = vmatmul.msk.bf16.gmra.mxu0 %vm16039_vm12, %v10409_v27  ;;  %v16048_v19 = vsel %vm12357_vm10, 4294967295, %v16047_v19  ;;  %v2629_v11 = vshrl.u32 %v2378_v6, 16  ;;  %v2632_v52 = vshll.u32 %v2378_v6, 16  ;;  %v3109_v61 = vor.u32 %v3107_v57, %v3105_v33 }
 0x167   : > { %16049 = vst [vmem:[#allocation80_spill] sm:$0xff] %v16048_v19  ;;  %v12361_v35 = vor.u32 %v3576_v0, %v3573_v47  ;;  %v4294_v10 = vor.u32 %v4292_v59, %v12275_v32  ;;  %v12364_v62 = vrot.slane %v4296_v22, 1  ;;  %v2928_v48 = vsel %vm12347_vm13, %v2246_v36, 0  ;;  %v3225_v59 = vpop.f32.mrf.mxu2  ;;  %v16050_v22 = vld [vmem:[#allocation50_spill] sm:$0xff] }
 0x168   : > { %v3453_v27 = vunpack.c.l.b16 %v3385_v37  ;;  %v3454_v14 = vunpack.c.l.b16 %v3386_v38  ;;  %v12368_v25 = vrot.slane %v2629_v11, 7  ;;  %v3776_v16 = vadd.f32 %v3696_v20, %v12198_v18  ;;  %v12388_v37 = vpop.f32.mrf.mxu0 }
 0x169   : > { %v2929_v6 = vsel %vm12357_vm10, %v2247_v54, 0  ;;  %v4120_v33 = vsel %vm12259_vm9, %v4087_v55, 0  ;;  %v4121_v32 = vsel %vm12270_vm3, %v4088_v49, 0  ;;  %v3113_v57 = vrot.slane %v3111_v45, 1 }
 0x16a   : > { %v2626_v47 = vsel %vm11305_vm4, %v2618_v46, %v11282_v39  ;;  %v2634_v11 = vor.u32 %v2632_v52, %v12368_v25  ;;  %v321_v0 = vadd.s32 232, %v10616_v5  ;;  %v4033_v18 = vadd.f32 %v12022_v12, %v3776_v16  ;;  %v12396_v16 = vpop.f32.mrf.mxu1 }
 0x16b   : > { %v12384_v36 = vadd.f32 %v3225_v59, %v16050_v22  ;;  %vm16051_vm14 = vsmask.f32 7424  ;;  %v2996_v38 = vunpack.c.l.b16 %v2928_v48  ;;  %v2997_v45 = vunpack.c.l.b16 %v2929_v6 }
 0x16c   : > { %v4299_v54 = vsel %vm16051_vm14, %v4294_v10, %v12364_v62  ;;  %v4188_v55 = vunpack.c.l.b16 %v4120_v33  ;;  %v4189_v49 = vunpack.c.l.b16 %v4121_v32  ;;  %v2635_v52 = vsel %vm11305_vm4, %v11287_v40, %v2634_v11  ;;  %vm16053_vm6 = vmmov %vm16051_vm14 }
 0x16d   : > { %v12394_v46 = vadd.f32 %v12302_v29, %v4033_v18  ;;  %v3475_v12 = vpack.c.b16 %v3454_v14, %v3453_v27  ;;  %v2855_v20 = vunpack.c.l.b16 %v2626_v47  ;;  %v2856_v59 = vunpack.c.h.b16 %v2626_v47  ;;  %v3698_v33 = vpop.f32.mrf.mxu3  ;;  %vm16056_vm14 = vmmov %vm16055_vm1  ;;  %v10410_v27 = vld [vmem:[#allocation2 + $0x70] sm:$0xff] }
 0x16e   : > { %v3114_v10 = vsel %vm16053_vm6, %v3109_v61, %v3113_v57  ;;  %v2862_v22 = vunpack.c.l.b16 %v2635_v52  ;;  %v2863_v44 = vunpack.c.h.b16 %v2635_v52  ;;  %v531_v48 = vand.u32 15, %v321_v0  ;;  %v3355_v52 = vld [vmem:[#allocation2 + $0x70] sm:$0xf] }
 0x16f   : > { %16052 = vst [vmem:[#allocation50_spill] sm:$0xff] %v12394_v46  ;;  %vm16054_vm11 = vsmask.f32 4352  ;;  %v12403_v32 = vpack.c.b16 %v2997_v45, %v2996_v38  ;;  %v3115_v29 = vshrl.u32 %v12317_v56, 16  ;;  %v12406_v11 = vpack.c.b16 %v4189_v49, %v4188_v55  ;;  %v3228_v38 = vpop.f32.mrf.mxu2 }
 0x170   : > { %v3578_v6 = vsel %vm16054_vm11, %v12295_v4, %v12361_v35  ;;  %9872 = vmatmul.msk.bf16.gmra.mxu1 %vm16055_vm1, %v4299_v54  ;;  %vm769_vm12 = vcmp.le.s32.totalorder %v531_v48, 14  ;;  %v3777_v14 = vadd.f32 %v3698_v33, %v12263_v3  ;;  %v3580_v61 = vshrl.u32 %v3475_v12, 16  ;;  %v12424_v18 = vpop.f32.mrf.mxu0  ;;  %v4090_v33 = vld [vmem:[#allocation2 + $0x74] sm:$0xf] }
 0x171   : > { %9749 = vmatmul.msk.bf16.gmra.mxu2 %vm16056_vm14, %v3114_v10  ;;  %vm2859_vm6 = vcmp.ne.s32.totalorder %v2855_v20, %v10643_v15  ;;  %vm2860_vm8 = vcmp.ne.s32.totalorder %v2856_v59, %v10651_v23  ;;  %vm2348_vm11 = vmpackc.low %vm769_vm12, %vm769_vm12  ;;  %v3583_v4 = vshll.u32 %v3475_v12, 16  ;;  %vm12413_vm1 = vcmp.ne.s32.totalorder %v2862_v22, %v10643_v15  ;;  %v2248_v10 = vld [vmem:[#allocation2 + $0x70] sm:$0xf]  ;;  %v2249_v22 = vld [vmem:[#allocation2 + $0x74] sm:$0xf] }
 0x172   : > { %vm12418_vm2 = vcmp.ne.s32.totalorder %v2863_v44, %v10651_v23  ;;  %v2380_v3 = vsel %vm2348_vm11, 65537, %v15832_v1  ;;  %v4034_v0 = vadd.f32 %v12070_v50, %v3777_v14  ;;  %v4300_v45 = vshrl.u32 %v12306_v8, 16  ;;  %vm12428_vm12 = vmpackc.low %vm2860_vm8, %vm2859_vm6  ;;  %v3354_v44 = vld [vmem:[#allocation2 + $0x6c] sm:$0xf]  ;;  %v12440_v59 = vpop.f32.mrf.mxu1 }
 0x173   : > { %v2647_v54 = vshrl.u32 %v2380_v3, 16  ;;  %v4304_v55 = vshll.u32 %v12406_v11, 16  ;;  %v16061_v49 = vmov 0  ;;  %v12437_v50 = vadd.f32 %v3228_v38, %v11688_v58  ;;  %vm12446_vm8 = vmpackc.low %vm12418_vm2, %vm12413_vm1  ;;  %v4089_v58 = vld [vmem:[#allocation2 + $0x70] sm:$0xf]  ;;  %v16071_v38 = vld [vmem:[#allocation22_spill] sm:$0xff] }
 0x174   : > { %v16062_v49 = vsel %vm12428_vm12, 4294967295, %v16061_v49  ;;  %v12433_v12 = vadd.f32 %v12341_v31, %v4034_v0  ;;  %v3119_v20 = vshll.u32 %v12403_v32, 16  ;;  %v3582_v8 = vrot.slane %v3580_v61, 3  ;;  %vm16068_vm6 = vmmov %vm16056_vm14  ;;  %v16069_v0 = vld [vmem:[#allocation20_spill] sm:$0xff] }
 0x175   : > { %16063 = vst [vmem:[#allocation81_spill] sm:$0xff] %v16062_v49  ;;  %9768 = vmatmul.msk.bf16.gmra.mxu3 %vm16056_vm14, %v3578_v6  ;;  %v16065_v48 = vmov 0  ;;  %v3117_v31 = vor.u32 %v3115_v29, %v3113_v57  ;;  %v3585_v6 = vrot.slane %v3583_v4, 4  ;;  %v2650_v14 = vshll.u32 %v2380_v3, 16  ;;  %v3701_v46 = vpop.f32.mrf.mxu3 }
 0x176   : > { %16064 = vst [vmem:[#allocation82_spill] sm:$0xff] %v12433_v12  ;;  %v16066_v48 = vsel %vm12446_vm8, 4294967295, %v16065_v48  ;;  %9855 = vmatmul.msk.bf16.gmra.mxu0 %vm16068_vm6, %v10410_v27  ;;  %vm16070_vm11 = vnez %v16069_v0  ;;  %vm16072_vm14 = vnez %v16071_v38  ;;  %v12455_v47 = vrot.slane %v2647_v54, 7 }
 0x177   : > { %16067 = vst [vmem:[#allocation83_spill] sm:$0xff] %v16066_v48  ;;  %v3387_v61 = vsel %vm16070_vm11, %v3354_v44, 0  ;;  %v3388_v12 = vsel %vm16072_vm14, %v3355_v52, 0  ;;  %v323_v56 = vadd.s32 248, %v10616_v5  ;;  %v4302_v63 = vor.u32 %v4300_v45, %v12364_v62  ;;  %v3230_v38 = vpop.f32.mrf.mxu2 }
 0x178   : > { %v12459_v57 = vrot.slane %v4304_v55, 1  ;;  %v2930_v29 = vsel %vm12428_vm12, %v2248_v10, 0  ;;  %v2931_v4 = vsel %vm12446_vm8, %v2249_v22, 0  ;;  %v3778_v27 = vadd.f32 %v3701_v46, %v12331_v17  ;;  %v12475_v10 = vpop.f32.mrf.mxu0 }
 0x179   : > { %v4122_v3 = vsel %vm12347_vm13, %v4089_v58, 0  ;;  %v4123_v54 = vsel %vm12357_vm10, %v4090_v33, 0  ;;  %v2636_v5 = vrot.slane %v12368_v25, 4  ;;  %v12471_v44 = vrot.slane %v3119_v20, 1  ;;  %v16073_v25 = vld [vmem:[#allocation55_spill] sm:$0xff] }
 0x17a   : > { %v3455_v62 = vunpack.c.l.b16 %v3387_v61  ;;  %v3456_v45 = vunpack.c.l.b16 %v3388_v12  ;;  %v2652_v55 = vor.u32 %v2650_v14, %v12455_v47  ;;  %v4035_v52 = vadd.f32 %v12106_v60, %v3778_v27  ;;  %v12483_v61 = vpop.f32.mrf.mxu1 }
 0x17b   : > { %v2998_v22 = vunpack.c.l.b16 %v2930_v29  ;;  %v2999_v17 = vunpack.c.l.b16 %v2931_v4  ;;  %v545_v46 = vand.u32 15, %v323_v56  ;;  %v4190_v58 = vunpack.c.l.b16 %v4122_v3  ;;  %v4092_v4 = vld [vmem:[#allocation2 + $0x7c] sm:$0xf] }
 0x17c   : > { %v4191_v0 = vunpack.c.l.b16 %v4123_v54  ;;  %v12478_v33 = vadd.f32 %v12396_v16, %v4035_v52  ;;  %v12481_v20 = vadd.f32 %v3230_v38, %v16073_v25  ;;  %vm16074_vm2 = vsmask.f32 7424 }
 0x17d   : > { %v4307_v12 = vsel %vm16074_vm2, %v4302_v63, %v12459_v57  ;;  %v2644_v60 = vsel %vm11305_vm4, %v2636_v5, %v11282_v39  ;;  %vm16075_vm1 = vmmov %vm16074_vm2  ;;  %v12492_v56 = vor.u32 %v3585_v6, %v3582_v8  ;;  %v3476_v29 = vpack.c.b16 %v3456_v45, %v3455_v62  ;;  %v3703_v63 = vpop.f32.mrf.mxu3  ;;  %v10411_v45 = vld [vmem:[#allocation2 + $0x78] sm:$0xff] }
 0x17e   : > { %v3122_v14 = vsel %vm16075_vm1, %v3117_v31, %v12471_v44  ;;  %v2653_v16 = vsel %vm11305_vm4, %v11287_v40, %v2652_v55  ;;  %v12497_v38 = vpack.c.b16 %v2999_v17, %v2998_v22  ;;  %vm12499_vm6 = vcmp.le.s32.totalorder %v545_v46, 14 }
 0x17f   : > { %vm16078_vm2 = vcmask 130048   ;;  %v12504_v27 = vpack.c.b16 %v4191_v0, %v4190_v58  ;;  %v2869_v3 = vunpack.c.l.b16 %v2644_v60  ;;  %v2870_v31 = vunpack.c.h.b16 %v2644_v60  ;;  %vm2350_vm1 = vmpackc.low %vm12499_vm6, %vm12499_vm6 }
 0x180   : > { %9873 = vmatmul.msk.bf16.gmra.mxu1 %vm16078_vm2, %v4307_v12  ;;  %v3779_v8 = vadd.f32 %v3703_v63, %v12384_v36  ;;  %vm16079_vm14 = vmmov %vm16078_vm2  ;;  %v2876_v6 = vunpack.c.l.b16 %v2653_v16  ;;  %v2877_v54 = vunpack.c.h.b16 %v2653_v16  ;;  %vm16080_vm11 = vsmask.f32 4352  ;;  %v12518_v36 = vpop.f32.mrf.mxu0  ;;  %v4091_v16 = vld [vmem:[#allocation2 + $0x78] sm:$0xf] }
 0x181   : > { %9750 = vmatmul.msk.bf16.gmra.mxu2 %vm16079_vm14, %v3122_v14  ;;  %v3587_v5 = vsel %vm16080_vm11, %v12361_v35, %v12492_v56  ;;  %v3123_v62 = vshrl.u32 %v12403_v32, 16  ;;  %v3589_v0 = vshrl.u32 %v3476_v29, 16  ;;  %v2382_v55 = vsel %vm2350_vm1, 65537, %v15832_v1  ;;  %v3233_v58 = vpop.f32.mrf.mxu2  ;;  %vm16086_vm6 = vmmov %vm16078_vm2 }
 0x182   : > { %v4036_v52 = vadd.f32 %v12179_v21, %v3779_v8  ;;  %v3127_v22 = vshll.u32 %v12497_v38, 16  ;;  %v3592_v17 = vshll.u32 %v3476_v29, 16  ;;  %v4308_v46 = vshrl.u32 %v12406_v11, 16  ;;  %v12539_v12 = vpop.f32.mrf.mxu1  ;;  %v3356_v29 = vld [vmem:[#allocation2 + $0x74] sm:$0xf]  ;;  %vm16091_vm10 = vmmov %vm16086_vm6 }
 0x183   : > { %v4312_v25 = vshll.u32 %v12504_v27, 16  ;;  %vm12523_vm11 = vcmp.ne.s32.totalorder %v2869_v3, %v10643_v15  ;;  %vm12528_vm14 = vcmp.ne.s32.totalorder %v2870_v31, %v10651_v23  ;;  %v2665_v21 = vshrl.u32 %v2382_v55, 16  ;;  %v2250_v8 = vld [vmem:[#allocation2 + $0x78] sm:$0xf] }
 0x184   : > { %v12533_v32 = vadd.f32 %v12440_v59, %v4036_v52  ;;  %v12537_v11 = vadd.f32 %v3233_v58, %v11779_v9  ;;  %vm12542_vm2 = vcmp.ne.s32.totalorder %v2876_v6, %v10643_v15  ;;  %vm12547_vm1 = vcmp.ne.s32.totalorder %v2877_v54, %v10651_v23  ;;  %v3357_v59 = vld [vmem:[#allocation2 + $0x78] sm:$0xf]  ;;  %v2251_v52 = vld [vmem:[#allocation2 + $0x7c] sm:$0xf] }
 0x185   : > { %9769 = vmatmul.msk.bf16.gmra.mxu3 %vm16086_vm6, %v3587_v5  ;;  %v12552_v9 = vrot.slane %v2665_v21, 7  ;;  %v2668_v63 = vshll.u32 %v2382_v55, 16  ;;  %v3591_v3 = vrot.slane %v3589_v0, 3  ;;  %v3594_v31 = vrot.slane %v3592_v17, 4  ;;  %vm12558_vm6 = vmpackc.low %vm12528_vm14, %vm12523_vm11  ;;  %v3706_v54 = vpop.f32.mrf.mxu3  ;;  %v16098_v55 = vld [vmem:[#allocation25_spill] sm:$0xff]  ;;  %v16100_v58 = vld [vmem:[#allocation26_spill] sm:$0xff] }
 0x186   : > { %16085 = vst [vmem:[#allocation55_spill] sm:$0xff] %v12533_v32  ;;  %9856 = vmatmul.msk.bf16.gmra.mxu0 %vm16091_vm10, %v10411_v45  ;;  %v16092_v6 = vmov 0  ;;  %v4310_v5 = vor.u32 %v4308_v46, %v12459_v57  ;;  %v12563_v45 = vrot.slane %v4312_v25, 1  ;;  %vm12569_vm10 = vmpackc.low %vm12547_vm1, %vm12542_vm2  ;;  %v16095_v0 = vmov 0 }
 0x187   : > { %v16093_v6 = vsel %vm12558_vm6, 4294967295, %v16092_v6  ;;  %v16096_v0 = vsel %vm12569_vm10, 4294967295, %v16095_v0  ;;  %vm16099_vm13 = vnez %v16098_v55  ;;  %vm16101_vm11 = vnez %v16100_v58 }
 0x188   : > { %16094 = vst [vmem:[#allocation84_spill] sm:$0xff] %v16093_v6  ;;  %v3389_v17 = vsel %vm16099_vm13, %v3356_v29, 0  ;;  %v3390_v35 = vsel %vm16101_vm11, %v3357_v59, 0  ;;  %v3780_v1 = vadd.f32 %v3706_v54, %v12437_v50  ;;  %v4124_v57 = vsel %vm12428_vm12, %v4091_v16, 0  ;;  %v12588_v32 = vpop.f32.mrf.mxu0 }
 0x189   : > { %16097 = vst [vmem:[#allocation85_spill] sm:$0xff] %v16096_v0  ;;  %v4125_v46 = vsel %vm12446_vm8, %v4092_v4, 0  ;;  %v2654_v25 = vrot.slane %v12455_v47, 4  ;;  %v3125_v21 = vor.u32 %v3123_v62, %v12471_v44  ;;  %v3129_v60 = vrot.slane %v3127_v22, 1  ;;  %v3235_v47 = vpop.f32.mrf.mxu2 }
 0x18a   : > { %v2932_v14 = vsel %vm12558_vm6, %v2250_v8, 0  ;;  %v2670_v29 = vor.u32 %v2668_v63, %v12552_v9  ;;  %v4037_v59 = vadd.f32 %v12217_v30, %v3780_v1  ;;  %v2933_v50 = vsel %vm12569_vm10, %v2251_v52, 0  ;;  %v12600_v30 = vpop.f32.mrf.mxu1  ;;  %v803_v1 = vld [vmem:[%s10633_s12 + $0xf8] sm:$0xff] }
 0x18b   : > { %v3457_v16 = vunpack.c.l.b16 %v3389_v17  ;;  %v3458_v4 = vunpack.c.l.b16 %v3390_v35  ;;  %v12592_v54 = vor.u32 %v3594_v31, %v3591_v3  ;;  %v4192_v44 = vunpack.c.l.b16 %v4124_v57  ;;  %v802_v35 = vld [vmem:[%s10633_s12 + $0xf0] sm:$0xff] }
 0x18c   : > { %v4193_v62 = vunpack.c.l.b16 %v4125_v46  ;;  %v12595_v22 = vadd.f32 %v12483_v61, %v4037_v59  ;;  %v12598_v63 = vadd.f32 %v3235_v47, %v11826_v2  ;;  %vm16102_vm14 = vsmask.f32 7424 }
 0x18d   : > { %v4315_v8 = vsel %vm16102_vm14, %v4310_v5, %v12563_v45  ;;  %v2662_v52 = vsel %vm11305_vm4, %v2654_v25, %v11282_v39  ;;  %vm16103_vm2 = vmmov %vm16102_vm14  ;;  %v3000_v31 = vunpack.c.l.b16 %v2932_v14  ;;  %v3001_v17 = vunpack.c.l.b16 %v2933_v50  ;;  %v3708_v46 = vpop.f32.mrf.mxu3 }
 0x18e   : > { %v3130_v3 = vsel %vm16103_vm2, %v3125_v21, %v3129_v60  ;;  %v2671_v61 = vsel %vm11305_vm4, %v11287_v40, %v2670_v29  ;;  %v3477_v2 = vpack.c.b16 %v3458_v4, %v3457_v16  ;;  %v834_v57 = vpack.c.bf16 %v802_v35, %v802_v35  ;;  %v10412_v29 = vld [vmem:[#allocation2 + $0x80] sm:$0xff] }
 0x18f   : > { %vm16104_vm1 = vcmask 130048   ;;  %v12614_v5 = vpack.c.b16 %v4193_v62, %v4192_v44  ;;  %v2883_v59 = vunpack.c.l.b16 %v2662_v52  ;;  %v2884_v47 = vunpack.c.h.b16 %v2662_v52  ;;  %v4093_v35 = vld [vmem:[#allocation2 + $0x80] sm:$0xf] }
 0x190   : > { %9874 = vmatmul.msk.bf16.gmra.mxu1 %vm16104_vm1, %v4315_v8  ;;  %v835_v39 = vpack.c.bf16 %v803_v1, %v803_v1  ;;  %v3781_v25 = vadd.f32 %v3708_v46, %v12481_v20  ;;  %vm16105_vm14 = vmmov %vm16104_vm1  ;;  %v2890_v21 = vunpack.c.l.b16 %v2671_v61  ;;  %v2891_v14 = vunpack.c.h.b16 %v2671_v61  ;;  %v12627_v4 = vpop.f32.mrf.mxu0  ;;  %v4094_v1 = vld [vmem:[#allocation2 + $0x84] sm:$0xf] }
 0x191   : > { %9751 = vmatmul.msk.bf16.gmra.mxu2 %vm16105_vm14, %v3130_v3  ;;  %vm16106_vm2 = vcmask 125952   ;;  %vm16107_vm4 = vsmask.f32 4352  ;;  %v12622_v26 = vpack.c.b16 %v3001_v17, %v3000_v31  ;;  %v3131_v16 = vshrl.u32 %v12497_v38, 16  ;;  %v3238_v44 = vpop.f32.mrf.mxu2  ;;  %v3358_v31 = vld [vmem:[#allocation2 + $0x7c] sm:$0xf] }
 0x192   : > { %866 = vst.msk [vmem:[#allocation2 + $0x88] sm:$0xf] %vm16106_vm2, %v834_v57  ;;  %v3596_v40 = vsel %vm16107_vm4, %v12492_v56, %v12592_v54  ;;  %vm16108_vm1 = vmmov %vm16106_vm2  ;;  %v4038_v50 = vadd.f32 %v12290_v34, %v3781_v25  ;;  %v3598_v20 = vshrl.u32 %v3477_v2, 16  ;;  %v4316_v62 = vshrl.u32 %v12504_v27, 16  ;;  %v12648_v27 = vpop.f32.mrf.mxu1  ;;  %v3359_v17 = vld [vmem:[#allocation2 + $0x80] sm:$0xf] }
 0x193   : > { %867 = vst.msk [vmem:[#allocation2 + $0x8c] sm:$0xf] %vm16108_vm1, %v835_v39  ;;  %v4320_v8 = vshll.u32 %v12614_v5, 16  ;;  %vm12632_vm14 = vcmp.ne.s32.totalorder %v2883_v59, %v10643_v15  ;;  %vm12637_vm2 = vcmp.ne.s32.totalorder %v2884_v47, %v10651_v23  ;;  %vm16113_vm4 = vcmask 130048   ;;  %v2252_v57 = vld [vmem:[#allocation2 + $0x80] sm:$0xf] }
 0x194   : > { %v12642_v34 = vadd.f32 %v12539_v12, %v4038_v50  ;;  %v12646_v38 = vadd.f32 %v3238_v44, %v11884_v53  ;;  %vm12651_vm1 = vcmp.ne.s32.totalorder %v2890_v21, %v10643_v15  ;;  %vm2895_vm11 = vcmp.ne.s32.totalorder %v2891_v14, %v10651_v23  ;;  %vm16116_vm13 = vmmov %vm16113_vm4  ;;  %v2253_v39 = vld [vmem:[#allocation2 + $0x84] sm:$0xf]  ;;  %v16125_v21 = vld [vmem:[#allocation30_spill] sm:$0xff] }
 0x195   : > { %9770 = vmatmul.msk.bf16.gmra.mxu3 %vm16113_vm4, %v3596_v40  ;;  %v3135_v61 = vshll.u32 %v12622_v26, 16  ;;  %v3601_v12 = vshll.u32 %v3477_v2, 16  ;;  %v3133_v53 = vor.u32 %v3131_v16, %v3129_v60  ;;  %vm12662_vm4 = vmpackc.low %vm12637_vm2, %vm12632_vm14  ;;  %v16117_v46 = vmov 0  ;;  %v3711_v59 = vpop.f32.mrf.mxu3  ;;  %v16123_v60 = vld [vmem:[#allocation28_spill] sm:$0xff] }
 0x196   : > { %9857 = vmatmul.msk.bf16.gmra.mxu0 %vm16116_vm13, %v10412_v29  ;;  %v16118_v46 = vsel %vm12662_vm4, 4294967295, %v16117_v46  ;;  %v4318_v47 = vor.u32 %v4316_v62, %v12563_v45  ;;  %vm12669_vm8 = vmpackc.low %vm2895_vm11, %vm12651_vm1  ;;  %v16120_v2 = vmov 0  ;;  %vm16124_vm13 = vnez %v16123_v60 }
 0x197   : > { %16119 = vst [vmem:[#allocation86_spill] sm:$0xff] %v16118_v46  ;;  %v16121_v2 = vsel %vm12669_vm8, 4294967295, %v16120_v2  ;;  %v3391_v25 = vsel %vm16124_vm13, %v3358_v31, 0  ;;  %vm16126_vm12 = vnez %v16125_v21  ;;  %v2672_v40 = vrot.slane %v12552_v9, 4 }
 0x198   : > { %16122 = vst [vmem:[#allocation87_spill] sm:$0xff] %v16121_v2  ;;  %v3392_v14 = vsel %vm16126_vm12, %v3359_v17, 0  ;;  %v3782_v29 = vadd.f32 %v3711_v59, %v12537_v11  ;;  %v12679_v50 = vrot.slane %v4320_v8, 1  ;;  %v4126_v45 = vsel %vm12558_vm6, %v4093_v35, 0  ;;  %v12690_v9 = vpop.f32.mrf.mxu0 }
 0x199   : > { %v4127_v16 = vsel %vm12569_vm10, %v4094_v1, 0  ;;  %v12685_v44 = vrot.slane %v3135_v61, 1  ;;  %v3600_v62 = vrot.slane %v3598_v20, 3  ;;  %v3603_v56 = vrot.slane %v3601_v12, 4  ;;  %v3240_v17 = vpop.f32.mrf.mxu2 }
 0x19a   : > { %v2934_v52 = vsel %vm12662_vm4, %v2252_v57, 0  ;;  %v4039_v3 = vadd.f32 %v12333_v42, %v3782_v29  ;;  %v2935_v11 = vsel %vm12669_vm8, %v2253_v39, 0  ;;  %v3459_v8 = vunpack.c.l.b16 %v3391_v25 }
 0x19b   : > { %v3460_v31 = vunpack.c.l.b16 %v3392_v14  ;;  %v4194_v35 = vunpack.c.l.b16 %v4126_v45  ;;  %v4195_v59 = vunpack.c.l.b16 %v4127_v16  ;;  %v2897_v1 = vunpack.c.l.b16 %v2672_v40  ;;  %v12700_v57 = vpop.f32.mrf.mxu1  ;;  %v5258_v45 = vld [vmem:[#allocation2 + $0x18] sm:$0xf] }
 0x19c   : > { %v2898_v61 = vunpack.c.h.b16 %v2672_v40  ;;  %v12695_v20 = vadd.f32 %v12600_v30, %v4039_v3  ;;  %v12698_v12 = vadd.f32 %v3240_v17, %v11927_v51  ;;  %vm16128_vm11 = vsmask.f32 7424  ;;  %v5259_v40 = vld [vmem:[#allocation2 + $0x1c] sm:$0xf] }
 0x19d   : > { %v4323_v42 = vsel %vm16128_vm11, %v4318_v47, %v12679_v50  ;;  %vm16129_vm14 = vmmov %vm16128_vm11  ;;  %v12706_v25 = vor.u32 %v3603_v56, %v3600_v62  ;;  %v3002_v14 = vunpack.c.l.b16 %v2934_v52  ;;  %v3003_v29 = vunpack.c.l.b16 %v2935_v11  ;;  %v3713_v17 = vpop.f32.mrf.mxu3  ;;  %v5261_v56 = vld [vmem:[#allocation2 + $0x24] sm:$0xf] }
 0x19e   : > { %16127 = vst [vmem:[#allocation88_spill] sm:$0xff] %v12695_v20  ;;  %v3138_v39 = vsel %vm16129_vm14, %v3133_v53, %v12685_v44  ;;  %v5291_v30 = vsel %vm11341_vm7, %v5258_v45, 0  ;;  %v5292_v51 = vsel %vm11359_vm0, %v5259_v40, 0  ;;  %vm16132_vm2 = vcmask 130048   ;;  %v5260_v53 = vld [vmem:[#allocation2 + $0x20] sm:$0xf] }
 0x19f   : > { %v3478_v20 = vpack.c.b16 %v3460_v31, %v3459_v8  ;;  %v12713_v47 = vpack.c.b16 %v4195_v59, %v4194_v35  ;;  %vm2901_vm1 = vcmp.ne.s32.totalorder %v2897_v1, %v10643_v15  ;;  %vm2902_vm11 = vcmp.ne.s32.totalorder %v2898_v61, %v10651_v23  ;;  %vm16133_vm14 = vmmov %vm16132_vm2  ;;  %v10413_v35 = vld [vmem:[#allocation2 + $0x88] sm:$0xff]  ;;  %v3360_v15 = vld [vmem:[#allocation2 + $0x84] sm:$0xf] }
 0x1a0   : > { %9875 = vmatmul.msk.bf16.gmra.mxu1 %vm16132_vm2, %v4323_v42  ;;  %v3783_v62 = vadd.f32 %v3713_v17, %v12598_v63  ;;  %v5293_v11 = vsel %vm11365_vm5, %v5260_v53, 0  ;;  %v5359_v45 = vunpack.c.l.b16 %v5291_v30  ;;  %v5360_v40 = vunpack.c.l.b16 %v5292_v51  ;;  %v12729_v17 = vpop.f32.mrf.mxu0  ;;  %v3361_v23 = vld [vmem:[#allocation2 + $0x88] sm:$0xf] }
 0x1a1   : > { %9752 = vmatmul.msk.bf16.gmra.mxu2 %vm16133_vm14, %v3138_v39  ;;  %vm16135_vm2 = vsmask.f32 4352  ;;  %v12724_v31 = vpack.c.b16 %v3003_v29, %v3002_v14  ;;  %v5294_v42 = vsel %vm11373_vm15, %v5261_v56, 0  ;;  %v5361_v39 = vunpack.c.l.b16 %v5293_v11  ;;  %v2254_v14 = vld [vmem:[#allocation2 + $0x88] sm:$0x1]  ;;  %vm12738_vm14 = vmpackc.low %vm2902_vm11, %vm2901_vm1 }
 0x1a2   : > { %v3605_v8 = vsel %vm16135_vm2, %v12592_v54, %v12706_v25  ;;  %v4040_v63 = vadd.f32 %v12388_v37, %v3783_v62  ;;  %v5362_v3 = vunpack.c.l.b16 %v5294_v42  ;;  %v5392_v52 = vpack.c.b16 %v5360_v40, %v5359_v45  ;;  %v3243_v53 = vpop.f32.mrf.mxu2  ;;  %v4095_v11 = vld [vmem:[#allocation2 + $0x88] sm:$0xf]  ;;  %v4096_v45 = vld [vmem:[#allocation2 + $0x8c] sm:$0xf] }
 0x1a3   : > { %v3139_v30 = vshrl.u32 %v12622_v26, 16  ;;  %v3607_v51 = vshrl.u32 %v3478_v20, 16  ;;  %v4324_v16 = vshrl.u32 %v12614_v5, 16  ;;  %v4328_v54 = vshll.u32 %v12713_v47, 16  ;;  %v12749_v5 = vpop.f32.mrf.mxu1 }
 0x1a4   : > { %v16137_v37 = vmov 0  ;;  %v12743_v29 = vadd.f32 %v12648_v27, %v4040_v63  ;;  %vm16141_vm2 = vcmask 130048   ;;  %v12747_v26 = vadd.f32 %v3243_v53, %v11994_v24  ;;  %16142 = vst [vmem:[#allocation91_spill] sm:$0xff] %v12749_v5  ;;  %v16144_v53 = vld [vmem:[#allocation33_spill] sm:$0xff] }
 0x1a5   : > { %v16138_v37 = vsel %vm12738_vm14, 4294967295, %v16137_v37  ;;  %9771 = vmatmul.msk.bf16.gmra.mxu3 %vm16141_vm2, %v3605_v8  ;;  %v3610_v62 = vshll.u32 %v3478_v20, 16  ;;  %v3143_v56 = vshll.u32 %v12724_v31, 16  ;;  %vm16143_vm5 = vmmov %vm16141_vm2  ;;  %v2936_v1 = vsel %vm12738_vm14, %v2254_v14, 0  ;;  %v3716_v40 = vpop.f32.mrf.mxu3  ;;  %v16146_v14 = vld [vmem:[#allocation34_spill] sm:$0xff] }
 0x1a6   : > { %16139 = vst [vmem:[#allocation89_spill] sm:$0xff] %v16138_v37  ;;  %9858 = vmatmul.msk.bf16.gmra.mxu0 %vm16143_vm5, %v10413_v35  ;;  %v12755_v61 = vpack.c.b16 %v5362_v3, %v5361_v39  ;;  %v5412_v27 = vshll.u32 %v5392_v52, 16  ;;  %v3141_v24 = vor.u32 %v3139_v30, %v12685_v44  ;;  %v3609_v8 = vrot.slane %v3607_v51, 3 }
 0x1a7   : > { %16140 = vst [vmem:[#allocation90_spill] sm:$0xff] %v12743_v29  ;;  %v4326_v20 = vor.u32 %v4324_v16, %v12679_v50  ;;  %v12759_v42 = vrot.slane %v4328_v54, 1  ;;  %v3784_v35 = vadd.f32 %v3716_v40, %v12646_v38  ;;  %v3612_v63 = vrot.slane %v3610_v62, 4 }
 0x1a8   : > { %vm16145_vm5 = vnez %v16144_v53  ;;  %vm16147_vm1 = vnez %v16146_v14  ;;  %v3145_v39 = vrot.slane %v3143_v56, 1  ;;  %v3004_v5 = vunpack.c.l.b16 %v2936_v1  ;;  %v12771_v16 = vpop.f32.mrf.mxu0 }
 0x1a9   : > { %v3393_v59 = vsel %vm16145_vm5, %v3360_v15, 0  ;;  %v3394_v3 = vsel %vm16147_vm1, %v3361_v23, 0  ;;  %v4128_v29 = vsel %vm12662_vm4, %v4095_v11, 0  ;;  %v4129_v44 = vsel %vm12669_vm8, %v4096_v45, 0 }
 0x1aa   : > { %v4041_v50 = vadd.f32 %v12424_v18, %v3784_v35  ;;  %v5410_v38 = vshrl.u32 %v5392_v52, 16  ;;  %v5414_v30 = vrot.slane %v5412_v27, 1  ;;  %v5417_v51 = vshll.u32 %v12755_v61, 16  ;;  %v3245_v54 = vpop.f32.mrf.mxu2 }
 0x1ab   : > { %vm16148_vm11 = vsmask.f32 7424  ;;  %v3461_v56 = vunpack.c.l.b16 %v3393_v59  ;;  %v3462_v15 = vunpack.c.l.b16 %v3394_v3  ;;  %v12780_v1 = vadd.f32 %v3245_v54, %v12050_v41  ;;  %v12782_v11 = vpop.f32.mrf.mxu1 }
 0x1ac   : > { %v4331_v62 = vsel %vm16148_vm11, %v4326_v20, %v12759_v42  ;;  %v12777_v23 = vadd.f32 %v12700_v57, %v4041_v50  ;;  %v4196_v18 = vunpack.c.l.b16 %v4128_v29  ;;  %v4197_v45 = vunpack.c.l.b16 %v4129_v44  ;;  %vm16150_vm2 = vmmov %vm16148_vm11  ;;  %v5262_v20 = vld [vmem:[#allocation2 + $0x28] sm:$0xf]  ;;  %v4523_v29 = vld [vmem:[#allocation2 + $0x14] sm:$0x8] }
 0x1ad   : > { %v3146_v52 = vsel %vm16150_vm2, %v3141_v24, %v3145_v39  ;;  %v12785_v27 = vor.u32 %v3612_v63, %v3609_v8  ;;  %v3021_v40 = vpack.c.b16 %v3004_v5, %v3004_v5  ;;  %v5415_v35 = vor.u32 %v5414_v30, %v5410_v38  ;;  %v3718_v59 = vpop.f32.mrf.mxu3  ;;  %v5263_v44 = vld [vmem:[#allocation2 + $0x2c] sm:$0xf]  ;;  %v16153_v24 = vld [vmem:[#allocation41_spill] sm:$0xff]  ;;  %v4524_v50 = vld [vmem:[#allocation2 + $0x18] sm:$0xf] }
 0x1ae   : > { %16149 = vst [vmem:[#allocation92_spill] sm:$0xff] %v12777_v23  ;;  %v12787_v14 = vrot.slane %v5417_v51, 1  ;;  %vm16151_vm11 = vcmask 130048   ;;  %v3479_v57 = vpack.c.b16 %v3462_v15, %v3461_v56  ;;  %v3785_v41 = vadd.f32 %v3718_v59, %v12698_v12  ;;  %v16156_v38 = vld [vmem:[#allocation42_spill] sm:$0xff] }
 0x1af   : > { %vm16152_vm15 = vmmov %vm16151_vm11  ;;  %v12792_v3 = vpack.c.b16 %v4197_v45, %v4196_v18  ;;  %vm16154_vm2 = vnez %v16153_v24  ;;  %vm16155_vm0 = vsmask.f32 4352  ;;  %v3147_v63 = vshrl.u32 %v12724_v31, 16  ;;  %v4525_v45 = vld [vmem:[#allocation2 + $0x1c] sm:$0xf] }
 0x1b0   : > { %9876 = vmatmul.msk.bf16.gmra.mxu1 %vm16151_vm11, %v4331_v62  ;;  %v5295_v8 = vsel %vm16154_vm2, %v5262_v20, 0  ;;  %v3614_v5 = vsel %vm16155_vm0, %v12706_v25, %v12785_v27  ;;  %vm16157_vm11 = vnez %v16156_v38  ;;  %v12803_v12 = vadd.f32 %v12475_v10, %v3785_v41  ;;  %v12805_v54 = vpop.f32.mrf.mxu0  ;;  %v4526_v25 = vld [vmem:[#allocation2 + $0x20] sm:$0xf]  ;;  %v16164_v41 = vld [vmem:[#allocation5_spill] sm:$0xff]  ;;  %v3362_v24 = vld [vmem:[#allocation2 + $0x8c] sm:$0xf] }
 0x1b1   : > { %9753 = vmatmul.msk.bf16.gmra.mxu2 %vm16152_vm15, %v3146_v52  ;;  %v5296_v30 = vsel %vm16157_vm11, %v5263_v44, 0  ;;  %v3151_v51 = vshll.u32 %v3021_v40, 16  ;;  %vm16159_vm15 = vsmask.f32 7424  ;;  %v5363_v56 = vunpack.c.l.b16 %v5295_v8  ;;  %v16160_v52 = vld [vmem:[#allocation3_spill] sm:$0xff]  ;;  %v16169_v38 = vld [vmem:[#allocation6_spill] sm:$0xff] }
 0x1b2   : > { %16158 = vst [vmem:[#allocation93_spill] sm:$0xff] %v12803_v12  ;;  %v5420_v62 = vsel %vm16159_vm15, %v5415_v35, %v12787_v14  ;;  %v3248_v15 = vpop.f32.mrf.mxu2  ;;  %v3616_v18 = vshrl.u32 %v3479_v57, 16  ;;  %vm16161_vm0 = vnez %v16160_v52  ;;  %v5364_v59 = vunpack.c.l.b16 %v5296_v30  ;;  %v16167_v30 = vld [vmem:[#allocation4_spill] sm:$0xff] }
 0x1b3   : > { %v4556_v31 = vsel %vm16161_vm0, %v4523_v29, 0  ;;  %vm16162_vm2 = vcmask 130048   ;;  %v12813_v10 = vadd.f32 %v3248_v15, %v12084_v7  ;;  %v12815_v40 = vpop.f32.mrf.mxu1  ;;  %v4332_v20 = vshrl.u32 %v12713_v47, 16 }
 0x1b4   : > { %16163 = vst [vmem:[#allocation94_spill] sm:$0xff] %v12815_v40  ;;  %v4336_v35 = vshll.u32 %v12792_v3, 16  ;;  %vm16165_vm15 = vnez %v16164_v41  ;;  %v3619_v8 = vshll.u32 %v3479_v57, 16  ;;  %vm16166_vm11 = vmmov %vm16162_vm2  ;;  %v3149_v29 = vor.u32 %v3147_v63, %v3145_v39  ;;  %v4097_v40 = vld [vmem:[#allocation2 + $0x90] sm:$0x1]  ;;  %v16171_v39 = vld [vmem:[#allocation40_spill] sm:$0xff] }
 0x1b5   : > { %9772 = vmatmul.msk.bf16.gmra.mxu3 %vm16162_vm2, %v3614_v5  ;;  %v4557_v44 = vsel %vm16165_vm15, %v4524_v50, 0  ;;  %vm16168_vm7 = vnez %v16167_v30  ;;  %vm16170_vm2 = vnez %v16169_v38  ;;  %v12826_v15 = vpack.c.b16 %v5364_v59, %v5363_v56  ;;  %v3721_v47 = vpop.f32.mrf.mxu3 }
 0x1b6   : > { %9987 = vmatmul.msk.bf16.vlgmr.msra.gmra.mxu0 %vm16166_vm11, %v5420_v62  ;;  %v4558_v5 = vsel %vm16168_vm7, %v4525_v45, 0  ;;  %v4559_v7 = vsel %vm16170_vm2, %v4526_v25, 0  ;;  %v3153_v12 = vrot.slane %v3151_v51, 1  ;;  %v3618_v23 = vrot.slane %v3616_v18, 3 }
 0x1b7   : > { %v4624_v52 = vunpack.c.l.b16 %v4556_v31  ;;  %v4625_v41 = vunpack.c.l.b16 %v4557_v44  ;;  %v3786_v57 = vadd.f32 %v3721_v47, %v12747_v26  ;;  %v4334_v50 = vor.u32 %v4332_v20, %v12759_v42 }
 0x1b8   : > { %v12830_v62 = vrot.slane %v4336_v35, 1  ;;  %vm16172_vm11 = vnez %v16171_v39  ;;  %v3621_v45 = vrot.slane %v3619_v8, 4  ;;  %v4626_v30 = vunpack.c.l.b16 %v4558_v5  ;;  %v12837_v18 = vpop.f32.mrf.mxu0 }
 0x1b9   : > { %v3395_v63 = vsel %vm16172_vm11, %v3362_v24, 0  ;;  %v4627_v25 = vunpack.c.l.b16 %v4559_v7  ;;  %v4130_v56 = vsel %vm12738_vm14, %v4097_v40, 0  ;;  %v4043_v51 = vadd.f32 %v12518_v36, %v3786_v57  ;;  %v5264_v57 = vld [vmem:[#allocation2 + $0x30] sm:$0xf] }
 0x1ba   : > { %v5421_v31 = vshrl.u32 %v12755_v61, 16  ;;  %v5425_v26 = vshll.u32 %v12826_v15, 16  ;;  %v3250_v42 = vpop.f32.mrf.mxu2  ;;  %v4657_v59 = vpack.c.b16 %v4625_v41, %v4624_v52  ;;  %v3463_v20 = vunpack.c.l.b16 %v3395_v63  ;;  %v5265_v63 = vld [vmem:[#allocation2 + $0x34] sm:$0xf] }
 0x1bb   : > { %v12842_v35 = vadd.f32 %v12782_v11, %v4043_v51  ;;  %v12845_v24 = vadd.f32 %v3250_v42, %v12139_v43  ;;  %v4441_v44 = vpop.f32.mrf.mxu1  ;;  %vm16173_vm11 = vsmask.f32 7424  ;;  %v4198_v36 = vunpack.c.l.b16 %v4130_v56 }
 0x1bc   : > { %v4339_v40 = vsel %vm16173_vm11, %v4334_v50, %v12830_v62  ;;  %vm16174_vm7 = vmmov %vm16173_vm11  ;;  %v12850_v5 = vor.u32 %v3621_v45, %v3618_v23  ;;  %v4658_v61 = vpack.c.b16 %v4627_v25, %v4626_v30  ;;  %v5423_v7 = vor.u32 %v5421_v31, %v12787_v14 }
 0x1bd   : > { %v3154_v8 = vsel %vm16174_vm7, %v3149_v29, %v3153_v12  ;;  %v5427_v52 = vrot.slane %v5425_v26, 1  ;;  %v3723_v41 = vpop.f32.mrf.mxu3  ;;  %vm16175_vm2 = vcmask 130048   ;;  %v4675_v11 = vshrl.u32 %v4657_v59, 16  ;;  %v16177_v12 = vld [vmem:[#allocation43_spill] sm:$0xff]  ;;  %v16179_v29 = vld [vmem:[#allocation45_spill] sm:$0xff] }
 0x1be   : > { %v4678_v47 = vshll.u32 %v4657_v59, 16  ;;  %v3480_v43 = vpack.c.b16 %v3463_v20, %v3463_v20  ;;  %v3787_v51 = vadd.f32 %v3723_v41, %v12780_v1  ;;  %vm16176_vm11 = vmmov %vm16175_vm2  ;;  %v4215_v50 = vpack.c.b16 %v4198_v36, %v4198_v36  ;;  %v4527_v36 = vld [vmem:[#allocation2 + $0x24] sm:$0xf] }
 0x1bf   : > { %vm16178_vm7 = vnez %v16177_v12  ;;  %vm16180_vm15 = vnez %v16179_v29  ;;  %vm16181_vm0 = vsmask.f32 4352  ;;  %v4683_v45 = vshrl.u32 %v4658_v61, 16 }
 0x1c0   : > { %9877 = vmatmul.msk.bf16.gmra.mxu1 %vm16175_vm2, %v4339_v40  ;;  %v5297_v23 = vsel %vm16178_vm7, %v5264_v57, 0  ;;  %v5298_v14 = vsel %vm16180_vm15, %v5265_v63, 0  ;;  %v3623_v30 = vsel %vm16181_vm0, %v12785_v27, %v12850_v5  ;;  %v4686_v25 = vshll.u32 %v4658_v61, 16  ;;  %vm16184_vm0 = vmmov %vm16176_vm11 }
 0x1c1   : > { %9754 = vmatmul.msk.bf16.gmra.mxu2 %vm16176_vm11, %v3154_v8  ;;  %v12864_v56 = vadd.f32 %v12588_v32, %v3787_v51  ;;  %v12866_v31 = vpop.f32.mrf.mxu0  ;;  %vm16182_vm2 = vsmask.f32 7424  ;;  %v5365_v26 = vunpack.c.l.b16 %v5297_v23  ;;  %v5366_v42 = vunpack.c.l.b16 %v5298_v14  ;;  %v4528_v8 = vld [vmem:[#allocation2 + $0x28] sm:$0xf] }
 0x1c2   : > { %v5428_v1 = vsel %vm16182_vm2, %v5423_v7, %v5427_v52  ;;  %v3253_v59 = vpop.f32.mrf.mxu2  ;;  %v4677_v20 = vrot.slane %v4675_v11, 3  ;;  %v4680_v40 = vrot.slane %v4678_v47, 4  ;;  %v3625_v32 = vshrl.u32 %v3480_v43, 16  ;;  %v16185_v11 = vld [vmem:[#allocation11_spill] sm:$0xff]  ;;  %v16187_v23 = vld [vmem:[#allocation12_spill] sm:$0xff] }
 0x1c3   : > { %v12871_v27 = vadd.f32 %v3253_v59, %v12195_v28  ;;  %v12873_v61 = vpop.f32.mrf.mxu1  ;;  %v4340_v41 = vshrl.u32 %v12792_v3, 16  ;;  %v4344_v57 = vshll.u32 %v4215_v50, 16  ;;  %v4685_v63 = vrot.slane %v4683_v45, 3 }
 0x1c4   : > { %16183 = vst [vmem:[#allocation95_spill] sm:$0xff] %v12873_v61  ;;  %v4688_v7 = vrot.slane %v4686_v25, 4  ;;  %v3628_v51 = vshll.u32 %v3480_v43, 16  ;;  %vm16186_vm2 = vnez %v16185_v11  ;;  %vm16188_vm7 = vnez %v16187_v23 }
 0x1c5   : > { %9773 = vmatmul.msk.bf16.gmra.mxu3 %vm16176_vm11, %v3623_v30  ;;  %v4560_v47 = vsel %vm16186_vm2, %v4527_v36, 0  ;;  %v4561_v14 = vsel %vm16188_vm7, %v4528_v8, 0  ;;  %v12881_v30 = vpack.c.b16 %v5366_v42, %v5365_v26  ;;  %v4681_v59 = vor.u32 %v4680_v40, %v4677_v20 }
 0x1c6   : > { %9988 = vmatmul.msk.bf16.gmra.mxu0 %vm16184_vm0, %v5428_v1  ;;  %v3726_v28 = vpop.f32.mrf.mxu3  ;;  %v3627_v29 = vrot.slane %v3625_v32, 3  ;;  %v4342_v3 = vor.u32 %v4340_v41, %v12830_v62  ;;  %v4346_v50 = vrot.slane %v4344_v57, 1  ;;  %v4689_v45 = vor.u32 %v4688_v7, %v4685_v63 }
 0x1c7   : > { %v3788_v12 = vadd.f32 %v3726_v28, %v12813_v10  ;;  %v3630_v43 = vrot.slane %v3628_v51, 4  ;;  %v4628_v25 = vunpack.c.l.b16 %v4560_v47  ;;  %v4629_v1 = vunpack.c.l.b16 %v4561_v14  ;;  %v16189_v10 = vld [vmem:[#allocation35_spill] sm:$0xff]  ;;  %v5267_v51 = vld [vmem:[#allocation2 + $0x3c] sm:$0xf]  ;;  %v16196_v14 = vld [vmem:[#allocation49_spill] sm:$0xff] }
 0x1c8   : > { %v5429_v8 = vshrl.u32 %v12826_v15, 16  ;;  %v5433_v26 = vshll.u32 %v12881_v30, 16  ;;  %vm16190_vm11 = vsmask.f32 7424  ;;  %vm16191_vm0 = vsmask.f32 4352 }
 0x1c9   : > { %v4045_v61 = vadd.f32 %v12627_v4, %v3788_v12  ;;  %v12886_v36 = vpop.f32.mrf.mxu0  ;;  %v4347_v62 = vsel %vm16190_vm11, %v4342_v3, %v4346_v50  ;;  %v4690_v41 = vsel %vm16191_vm0, %v4681_v59, %v4689_v45  ;;  %v3631_v57 = vor.u32 %v3630_v43, %v3627_v29  ;;  %v5266_v15 = vld [vmem:[#allocation2 + $0x38] sm:$0xf] }
 0x1ca   : > { %v3255_v42 = vpop.f32.mrf.mxu2  ;;  %v4659_v63 = vpack.c.b16 %v4629_v1, %v4628_v25  ;;  %v5431_v7 = vor.u32 %v5429_v8, %v5427_v52  ;;  %v5435_v4 = vrot.slane %v5433_v26, 1  ;;  %vm16192_vm15 = vcmask 130048   ;;  %v4529_v8 = vld [vmem:[#allocation2 + $0x2c] sm:$0xf]  ;;  %v4530_v26 = vld [vmem:[#allocation2 + $0x30] sm:$0xf] }
 0x1cb   : > { %v12890_v20 = vadd.f32 %v4441_v44, %v4045_v61  ;;  %v3313_v40 = vadd.f32 %v3255_v42, %v16189_v10  ;;  %vm16193_vm2 = vmmov %vm16192_vm15  ;;  %v16194_v44 = vld [vmem:[#allocation48_spill] sm:$0xff]  ;;  %vm16197_vm11 = vnez %v16196_v14  ;;  %v3632_v29 = vsel %vm16191_vm0, %v12850_v5, %v3631_v57 }
 0x1cc   : > { %v4446_v32 = vpop.f32.mrf.mxu1  ;;  %vm16195_vm7 = vnez %v16194_v44  ;;  %v5300_v28 = vsel %vm16197_vm11, %v5267_v51, 0  ;;  %v4692_v52 = vshrl.u32 %v4659_v63, 16  ;;  %v4695_v59 = vshll.u32 %v4659_v63, 16  ;;  %v16199_v42 = vld [vmem:[#allocation44_spill] sm:$0xff]  ;;  %vm16201_vm0 = vmmov %vm16193_vm2 }
 0x1cd   : > { %v5299_v61 = vsel %vm16195_vm7, %v5266_v15, 0  ;;  %v5368_v25 = vunpack.c.l.b16 %v5300_v28  ;;  %v16204_v63 = vld [vmem:[#allocation16_spill] sm:$0xff] }
 0x1ce   : > { %v3728_v12 = vpop.f32.mrf.mxu3  ;;  %v5367_v43 = vunpack.c.l.b16 %v5299_v61  ;;  %v4694_v5 = vrot.slane %v4692_v52, 3  ;;  %v5437_v52 = vshrl.u32 %v12881_v30, 16  ;;  %v16209_v30 = vld [vmem:[#allocation52_spill] sm:$0xff] }
 0x1cf   : > { %v3789_v47 = vadd.f32 %v3728_v12, %v12845_v24  ;;  %vm16210_vm11 = vnez %v16209_v30 }
 0x1d0   : > { %9878 = vmatmul.msk.bf16.gmra.mxu1 %vm16192_vm15, %v4347_v62  ;;  %vm16198_vm15 = vsmask.f32 7424  ;;  %v5396_v12 = vpack.c.b16 %v5368_v25, %v5367_v43 }
 0x1d1   : > { %9883 = vmatmul.msk.bf16.vlgmr.msra.gmra.mxu2 %vm16193_vm2, %v4690_v41  ;;  %v12905_v3 = vadd.f32 %v12690_v9, %v3789_v47  ;;  %v5436_v24 = vsel %vm16198_vm15, %v5431_v7, %v5435_v4  ;;  %v4697_v41 = vrot.slane %v4695_v59, 4  ;;  %v16202_v9 = vld [vmem:[#allocation14_spill] sm:$0xff]  ;;  %vm16205_vm15 = vnez %v16204_v63 }
 0x1d2   : > { %vm16203_vm7 = vnez %v16202_v9  ;;  %v4563_v7 = vsel %vm16205_vm15, %v4530_v26, 0  ;;  %v5441_v59 = vshll.u32 %v5396_v12, 16 }
 0x1d3   : > { %v12907_v50 = vpop.f32.mrf.mxu0  ;;  %v4562_v57 = vsel %vm16203_vm7, %v4529_v8, 0  ;;  %v4698_v47 = vor.u32 %v4697_v41, %v4694_v5  ;;  %v4631_v28 = vunpack.c.l.b16 %v4563_v7  ;;  %v16207_v8 = vld [vmem:[#allocation46_spill] sm:$0xff]  ;;  %v5269_v7 = vld [vmem:[#allocation2 + $0x44] sm:$0xf] }
 0x1d4   : > { %v3258_v1 = vpop.f32.mrf.mxu2  ;;  %v12912_v62 = vpop.f32.mrf.mxu1  ;;  %v4630_v61 = vunpack.c.l.b16 %v4562_v57  ;;  %v5443_v5 = vrot.slane %v5441_v59, 1  ;;  %v5268_v57 = vld [vmem:[#allocation2 + $0x40] sm:$0xf]  ;;  %v4531_v59 = vld [vmem:[#allocation2 + $0x34] sm:$0xf] }
 0x1d5   : > { %9774 = vmatmul.msk.bf16.gmra.mxu3 %vm16193_vm2, %v3632_v29  ;;  %v3314_v10 = vadd.f32 %v3258_v1, %v16199_v42  ;;  %16200 = vst [vmem:[#allocation35_spill] sm:$0xff] %v12912_v62  ;;  %vm16208_vm2 = vsmask.f32 4352 }
 0x1d6   : > { %9989 = vmatmul.msk.bf16.gmra.mxu0 %vm16201_vm0, %v5436_v24  ;;  %v4699_v43 = vsel %vm16208_vm2, %v4689_v45, %v4698_v47  ;;  %v4660_v25 = vpack.c.b16 %v4631_v28, %v4630_v61  ;;  %vm16214_vm2 = vsmask.f32 7424 }
 0x1d8   : > { %v3731_v15 = vpop.f32.mrf.mxu3 }
 0x1d9   : > { %v3790_v51 = vadd.f32 %v3731_v15, %v12871_v27  ;;  %v5439_v27 = vor.u32 %v5437_v52, %v5435_v4  ;;  %v10417_v15 = vld [vmem:[#allocation2 + $0x18] sm:$0xff] }
 0x1db   : > { %v4047_v29 = vadd.f32 %v12729_v17, %v3790_v51  ;;  %v12921_v1 = vpop.f32.mrf.mxu0  ;;  %v5301_v51 = vsel %vm16210_vm11, %v5268_v57, 0  ;;  %v5444_v61 = vsel %vm16214_vm2, %v5439_v27, %v5443_v5  ;;  %vm16217_vm11 = vmmov %vm16201_vm0 }
 0x1dc   : > { %v3260_v24 = vpop.f32.mrf.mxu2  ;;  %v5369_v28 = vunpack.c.l.b16 %v5301_v51 }
 0x1dd   : > { %v12924_v42 = vadd.f32 %v4446_v32, %v4047_v29  ;;  %v3315_v44 = vadd.f32 %v3260_v24, %v16207_v8  ;;  %v4451_v26 = vpop.f32.mrf.mxu1  ;;  %v16211_v32 = vld [vmem:[#allocation54_spill] sm:$0xff]  ;;  %v4701_v24 = vshrl.u32 %v4660_v25, 16  ;;  %v4704_v8 = vshll.u32 %v4660_v25, 16 }
 0x1de   : > { %vm16212_vm7 = vnez %v16211_v32  ;;  %v16220_v32 = vld [vmem:[#allocation21_spill] sm:$0xff] }
 0x1df   : > { %16206 = vst [vmem:[#allocation44_spill] sm:$0xff] %v12924_v42  ;;  %v5302_v29 = vsel %vm16212_vm7, %v5269_v7, 0  ;;  %v4703_v7 = vrot.slane %v4701_v24, 3  ;;  %v4706_v25 = vrot.slane %v4704_v8, 4  ;;  %vm16221_vm2 = vnez %v16220_v32  ;;  %v16223_v42 = vld [vmem:[#allocation53_spill] sm:$0xff] }
 0x1e0   : > { %v3733_v41 = vpop.f32.mrf.mxu3  ;;  %v5445_v24 = vshrl.u32 %v5396_v12, 16 }
 0x1e1   : > { %v3791_v17 = vadd.f32 %v3733_v41, %v3313_v40  ;;  %9884 = vmatmul.msk.bf16.gmra.mxu2 %vm16201_vm0, %v4699_v43  ;;  %v5370_v40 = vunpack.c.l.b16 %v5302_v29  ;;  %v4532_v43 = vld [vmem:[#allocation2 + $0x38] sm:$0xf]  ;;  %v16215_v41 = vld [vmem:[#allocation51_spill] sm:$0xff]  ;;  %v4707_v62 = vor.u32 %v4706_v25, %v4703_v7  ;;  %v5270_v25 = vld [vmem:[#allocation2 + $0x48] sm:$0xf] }
 0x1e2   : > { %v4565_v27 = vsel %vm16221_vm2, %v4532_v43, 0 }
 0x1e3   : > { %v12934_v45 = vadd.f32 %v12771_v16, %v3791_v17  ;;  %v12936_v4 = vpop.f32.mrf.mxu0  ;;  %v16218_v16 = vld [vmem:[#allocation19_spill] sm:$0xff]  ;;  %v5397_v51 = vpack.c.b16 %v5370_v40, %v5369_v28  ;;  %v5447_v40 = vor.u32 %v5445_v24, %v5443_v5  ;;  %v4533_v24 = vld [vmem:[#allocation2 + $0x3c] sm:$0xf] }
 0x1e4   : > { %v3263_v52 = vpop.f32.mrf.mxu2  ;;  %vm16219_vm7 = vnez %v16218_v16 }
 0x1e5   : > { %16213 = vst [vmem:[#allocation46_spill] sm:$0xff] %v12934_v45  ;;  %9967 = vmatmul.msk.bf16.vlgmr.msra.gmra.mxu3 %vm16201_vm0, %v10417_v15  ;;  %v3316_v57 = vadd.f32 %v3263_v52, %v16215_v41  ;;  %v12941_v30 = vpop.f32.mrf.mxu1  ;;  %v4564_v17 = vsel %vm16219_vm7, %v4531_v59, 0  ;;  %v4633_v15 = vunpack.c.l.b16 %v4565_v27  ;;  %v5449_v8 = vshll.u32 %v5397_v51, 16 }
 0x1e6   : > { %16216 = vst [vmem:[#allocation51_spill] sm:$0xff] %v12941_v30  ;;  %9990 = vmatmul.msk.bf16.gmra.mxu0 %vm16217_vm11, %v5444_v61  ;;  %v4632_v45 = vunpack.c.l.b16 %v4564_v17  ;;  %vm16224_vm11 = vsmask.f32 4352  ;;  %v5271_v17 = vld [vmem:[#allocation2 + $0x4c] sm:$0xf] }
 0x1e7   : > { %v4708_v43 = vsel %vm16224_vm11, %v4698_v47, %v4707_v62  ;;  %vm16230_vm11 = vsmask.f32 7424 }
 0x1e8   : > { %v3736_v29 = vpop.f32.mrf.mxu3  ;;  %v4661_v28 = vpack.c.b16 %v4633_v15, %v4632_v45 }
 0x1e9   : > { %v3792_v14 = vadd.f32 %v3736_v29, %v3314_v10  ;;  %v5451_v10 = vrot.slane %v5449_v8, 1  ;;  %v4534_v8 = vld [vmem:[#allocation2 + $0x40] sm:$0xf] }
 0x1eb   : > { %v4049_v52 = vadd.f32 %v12805_v54, %v3792_v14  ;;  %v12949_v41 = vpop.f32.mrf.mxu0  ;;  %v10418_v54 = vld [vmem:[#allocation2 + $0x20] sm:$0xff]  ;;  %v16225_v14 = vld [vmem:[#allocation56_spill] sm:$0xff]  ;;  %v5452_v45 = vsel %vm16230_vm11, %v5447_v40, %v5451_v10 }
 0x1ec   : > { %v3265_v30 = vpop.f32.mrf.mxu2  ;;  %vm16226_vm7 = vnez %v16225_v14  ;;  %v16236_v14 = vld [vmem:[#allocation24_spill] sm:$0xff] }
 0x1ed   : > { %v12951_v61 = vadd.f32 %v4451_v26, %v4049_v52  ;;  %v3317_v59 = vadd.f32 %v3265_v30, %v16223_v42  ;;  %v4456_v16 = vpop.f32.mrf.mxu1  ;;  %v5303_v12 = vsel %vm16226_vm7, %v5270_v25, 0  ;;  %v16227_v26 = vld [vmem:[#allocation58_spill] sm:$0xff]  ;;  %v4710_v42 = vshrl.u32 %v4661_v28, 16  ;;  %vm16233_vm7 = vmmov %vm16201_vm0 }
 0x1ee   : > { %vm16228_vm2 = vnez %v16227_v26  ;;  %v4713_v30 = vshll.u32 %v4661_v28, 16  ;;  %v5371_v15 = vunpack.c.l.b16 %v5303_v12  ;;  %vm16237_vm11 = vnez %v16236_v14 }
 0x1ef   : > { %16222 = vst [vmem:[#allocation96_spill] sm:$0xff] %v12951_v61  ;;  %v5304_v29 = vsel %vm16228_vm2, %v5271_v17, 0  ;;  %v4712_v17 = vrot.slane %v4710_v42, 3  ;;  %v4567_v40 = vsel %vm16237_vm11, %v4534_v8, 0  ;;  %v5453_v42 = vshrl.u32 %v5397_v51, 16  ;;  %v16241_v51 = vld [vmem:[#allocation61_spill] sm:$0xff] }
 0x1f0   : > { %v3738_v7 = vpop.f32.mrf.mxu3  ;;  %v4715_v28 = vrot.slane %v4713_v30, 4 }
 0x1f1   : > { %v3793_v27 = vadd.f32 %v3738_v7, %v3315_v44  ;;  %9885 = vmatmul.msk.bf16.gmra.mxu2 %vm16201_vm0, %v4708_v43  ;;  %v5372_v44 = vunpack.c.l.b16 %v5304_v29  ;;  %v16231_v43 = vld [vmem:[#allocation57_spill] sm:$0xff] }
 0x1f3   : > { %v12961_v47 = vadd.f32 %v12837_v18, %v3793_v27  ;;  %v12963_v5 = vpop.f32.mrf.mxu0  ;;  %v16234_v18 = vld [vmem:[#allocation23_spill] sm:$0xff]  ;;  %v5398_v12 = vpack.c.b16 %v5372_v44, %v5371_v15  ;;  %v5455_v44 = vor.u32 %v5453_v42, %v5451_v10 }
 0x1f4   : > { %v3268_v52 = vpop.f32.mrf.mxu2  ;;  %vm16235_vm2 = vnez %v16234_v18  ;;  %v16239_v18 = vld [vmem:[#allocation59_spill] sm:$0xff] }
 0x1f5   : > { %16229 = vst [vmem:[#allocation53_spill] sm:$0xff] %v12961_v47  ;;  %9968 = vmatmul.msk.bf16.gmra.mxu3 %vm16201_vm0, %v10418_v54  ;;  %v3318_v7 = vadd.f32 %v3268_v52, %v16231_v43  ;;  %v12968_v25 = vpop.f32.mrf.mxu1  ;;  %v4566_v27 = vsel %vm16235_vm2, %v4533_v24, 0  ;;  %v4716_v47 = vor.u32 %v4715_v28, %v4712_v17  ;;  %v4635_v54 = vunpack.c.l.b16 %v4567_v40  ;;  %v5272_v28 = vld [vmem:[#allocation2 + $0x50] sm:$0xf]  ;;  %v4535_v42 = vld [vmem:[#allocation2 + $0x44] sm:$0xf] }
 0x1f6   : > { %16232 = vst [vmem:[#allocation57_spill] sm:$0xff] %v12968_v25  ;;  %9991 = vmatmul.msk.bf16.gmra.mxu0 %vm16233_vm7, %v5452_v45  ;;  %v4634_v61 = vunpack.c.l.b16 %v4566_v27  ;;  %v5457_v30 = vshll.u32 %v5398_v12, 16  ;;  %vm16240_vm7 = vsmask.f32 4352  ;;  %v5273_v27 = vld [vmem:[#allocation2 + $0x54] sm:$0xf]  ;;  %vm16242_vm2 = vnez %v16241_v51 }
 0x1f7   : > { %v4717_v8 = vsel %vm16240_vm7, %v4707_v62, %v4716_v47  ;;  %vm16246_vm7 = vsmask.f32 7424  ;;  %v16252_v51 = vld [vmem:[#allocation29_spill] sm:$0xff] }
 0x1f8   : > { %v3741_v29 = vpop.f32.mrf.mxu3  ;;  %v4662_v15 = vpack.c.b16 %v4635_v54, %v4634_v61 }
 0x1f9   : > { %v3794_v26 = vadd.f32 %v3741_v29, %v3316_v57  ;;  %v5459_v57 = vrot.slane %v5457_v30, 1  ;;  %v4536_v30 = vld [vmem:[#allocation2 + $0x48] sm:$0xf] }
 0x1fb   : > { %v4051_v52 = vadd.f32 %v12866_v31, %v3794_v26  ;;  %v12976_v43 = vpop.f32.mrf.mxu0  ;;  %v10419_v31 = vld [vmem:[#allocation2 + $0x28] sm:$0xff]  ;;  %v5305_v26 = vsel %vm16242_vm2, %v5272_v28, 0  ;;  %v5460_v10 = vsel %vm16246_vm7, %v5455_v44, %v5459_v57  ;;  %vm16249_vm2 = vmmov %vm16201_vm0  ;;  %vm16253_vm7 = vnez %v16252_v51 }
 0x1fc   : > { %v3270_v25 = vpop.f32.mrf.mxu2  ;;  %v5373_v54 = vunpack.c.l.b16 %v5305_v26  ;;  %v4569_v44 = vsel %vm16253_vm7, %v4536_v30, 0 }
 0x1fd   : > { %v12978_v45 = vadd.f32 %v4456_v16, %v4051_v52  ;;  %v3319_v24 = vadd.f32 %v3270_v25, %v16239_v18  ;;  %v4461_v32 = vpop.f32.mrf.mxu1  ;;  %v16243_v16 = vld [vmem:[#allocation62_spill] sm:$0xff]  ;;  %v4719_v25 = vshrl.u32 %v4662_v15, 16  ;;  %v4722_v18 = vshll.u32 %v4662_v15, 16 }
 0x1fe   : > { %vm16244_vm11 = vnez %v16243_v16 }
 0x1ff   : > { %16238 = vst [vmem:[#allocation97_spill] sm:$0xff] %v12978_v45  ;;  %v5306_v29 = vsel %vm16244_vm11, %v5273_v27, 0  ;;  %v4721_v27 = vrot.slane %v4719_v25, 3  ;;  %v4724_v15 = vrot.slane %v4722_v18, 4  ;;  %v5461_v25 = vshrl.u32 %v5398_v12, 16  ;;  %v16257_v12 = vld [vmem:[#allocation65_spill] sm:$0xff] }
 0x200   : > { %v3743_v17 = vpop.f32.mrf.mxu3 }
 0x201   : > { %v3795_v40 = vadd.f32 %v3743_v17, %v3317_v59  ;;  %9886 = vmatmul.msk.bf16.gmra.mxu2 %vm16201_vm0, %v4717_v8  ;;  %v5374_v59 = vunpack.c.l.b16 %v5306_v29  ;;  %v16247_v8 = vld [vmem:[#allocation60_spill] sm:$0xff] }
 0x203   : > { %v12988_v62 = vadd.f32 %v12886_v36, %v3795_v40  ;;  %v12990_v61 = vpop.f32.mrf.mxu0  ;;  %v16250_v36 = vld [vmem:[#allocation27_spill] sm:$0xff]  ;;  %v5399_v26 = vpack.c.b16 %v5374_v59, %v5373_v54  ;;  %v5463_v59 = vor.u32 %v5461_v25, %v5459_v57  ;;  %v4537_v25 = vld [vmem:[#allocation2 + $0x4c] sm:$0xf] }
 0x204   : > { %v3273_v52 = vpop.f32.mrf.mxu2  ;;  %vm16251_vm11 = vnez %v16250_v36  ;;  %v16255_v36 = vld [vmem:[#allocation63_spill] sm:$0xff] }
 0x205   : > { %16245 = vst [vmem:[#allocation59_spill] sm:$0xff] %v12988_v62  ;;  %9969 = vmatmul.msk.bf16.gmra.mxu3 %vm16201_vm0, %v10419_v31  ;;  %v3320_v17 = vadd.f32 %v3273_v52, %v16247_v8  ;;  %v12995_v28 = vpop.f32.mrf.mxu1  ;;  %v4568_v40 = vsel %vm16251_vm11, %v4535_v42, 0  ;;  %v4725_v62 = vor.u32 %v4724_v15, %v4721_v27  ;;  %v4637_v31 = vunpack.c.l.b16 %v4569_v44  ;;  %v5274_v15 = vld [vmem:[#allocation2 + $0x58] sm:$0xf] }
 0x206   : > { %16248 = vst [vmem:[#allocation60_spill] sm:$0xff] %v12995_v28  ;;  %9992 = vmatmul.msk.bf16.gmra.mxu0 %vm16249_vm2, %v5460_v10  ;;  %v4636_v45 = vunpack.c.l.b16 %v4568_v40  ;;  %v5465_v18 = vshll.u32 %v5399_v26, 16  ;;  %vm16256_vm2 = vsmask.f32 4352  ;;  %v5275_v40 = vld [vmem:[#allocation2 + $0x5c] sm:$0xf]  ;;  %vm16258_vm11 = vnez %v16257_v12 }
 0x207   : > { %v4726_v30 = vsel %vm16256_vm2, %v4716_v47, %v4725_v62  ;;  %vm16262_vm2 = vsmask.f32 7424  ;;  %v16268_v12 = vld [vmem:[#allocation32_spill] sm:$0xff] }
 0x208   : > { %v3746_v29 = vpop.f32.mrf.mxu3  ;;  %v4663_v54 = vpack.c.b16 %v4637_v31, %v4636_v45 }
 0x209   : > { %v3796_v16 = vadd.f32 %v3746_v29, %v3318_v7  ;;  %v5467_v7 = vrot.slane %v5465_v18, 1  ;;  %v4538_v18 = vld [vmem:[#allocation2 + $0x50] sm:$0xf] }
 0x20b   : > { %v4053_v52 = vadd.f32 %v12907_v50, %v3796_v16  ;;  %v13003_v8 = vpop.f32.mrf.mxu0  ;;  %v10420_v50 = vld [vmem:[#allocation2 + $0x30] sm:$0xff]  ;;  %v5307_v16 = vsel %vm16258_vm11, %v5274_v15, 0  ;;  %v5468_v57 = vsel %vm16262_vm2, %v5463_v59, %v5467_v7  ;;  %vm16265_vm11 = vmmov %vm16201_vm0  ;;  %vm16269_vm2 = vnez %v16268_v12 }
 0x20c   : > { %v3275_v28 = vpop.f32.mrf.mxu2  ;;  %v5375_v31 = vunpack.c.l.b16 %v5307_v16  ;;  %v4571_v59 = vsel %vm16269_vm2, %v4538_v18, 0 }
 0x20d   : > { %v13005_v10 = vadd.f32 %v4461_v32, %v4053_v52  ;;  %v3321_v42 = vadd.f32 %v3275_v28, %v16255_v36  ;;  %v4466_v14 = vpop.f32.mrf.mxu1  ;;  %v16259_v32 = vld [vmem:[#allocation66_spill] sm:$0xff]  ;;  %v4728_v28 = vshrl.u32 %v4663_v54, 16  ;;  %v4731_v36 = vshll.u32 %v4663_v54, 16 }
 0x20e   : > { %vm16260_vm7 = vnez %v16259_v32 }
 0x20f   : > { %16254 = vst [vmem:[#allocation98_spill] sm:$0xff] %v13005_v10  ;;  %v5308_v29 = vsel %vm16260_vm7, %v5275_v40, 0  ;;  %v4730_v40 = vrot.slane %v4728_v28, 3  ;;  %v4733_v54 = vrot.slane %v4731_v36, 4  ;;  %v5469_v28 = vshrl.u32 %v5399_v26, 16  ;;  %v16273_v26 = vld [vmem:[#allocation68_spill] sm:$0xff] }
 0x210   : > { %v3748_v27 = vpop.f32.mrf.mxu3 }
 0x211   : > { %v3797_v44 = vadd.f32 %v3748_v27, %v3319_v24  ;;  %9887 = vmatmul.msk.bf16.gmra.mxu2 %vm16201_vm0, %v4726_v30  ;;  %v5376_v24 = vunpack.c.l.b16 %v5308_v29  ;;  %v16263_v30 = vld [vmem:[#allocation64_spill] sm:$0xff] }
 0x213   : > { %v13015_v47 = vadd.f32 %v12921_v1, %v3797_v44  ;;  %v13017_v45 = vpop.f32.mrf.mxu0  ;;  %v16266_v1 = vld [vmem:[#allocation31_spill] sm:$0xff]  ;;  %v5400_v16 = vpack.c.b16 %v5376_v24, %v5375_v31  ;;  %v5471_v24 = vor.u32 %v5469_v28, %v5467_v7  ;;  %v4540_v28 = vld [vmem:[#allocation2 + $0x58] sm:$0xf] }
 0x214   : > { %v3278_v52 = vpop.f32.mrf.mxu2  ;;  %vm16267_vm7 = vnez %v16266_v1  ;;  %v16271_v1 = vld [vmem:[#allocation67_spill] sm:$0xff] }
 0x215   : > { %16261 = vst [vmem:[#allocation63_spill] sm:$0xff] %v13015_v47  ;;  %9970 = vmatmul.msk.bf16.gmra.mxu3 %vm16201_vm0, %v10420_v50  ;;  %v3322_v27 = vadd.f32 %v3278_v52, %v16263_v30  ;;  %v13022_v15 = vpop.f32.mrf.mxu1  ;;  %v4570_v44 = vsel %vm16267_vm7, %v4537_v25, 0  ;;  %v4734_v47 = vor.u32 %v4733_v54, %v4730_v40  ;;  %v4639_v50 = vunpack.c.l.b16 %v4571_v59  ;;  %v5276_v54 = vld [vmem:[#allocation2 + $0x60] sm:$0xf] }
 0x216   : > { %16264 = vst [vmem:[#allocation64_spill] sm:$0xff] %v13022_v15  ;;  %9993 = vmatmul.msk.bf16.gmra.mxu0 %vm16265_vm11, %v5468_v57  ;;  %v4638_v10 = vunpack.c.l.b16 %v4570_v44  ;;  %v5473_v36 = vshll.u32 %v5400_v16, 16  ;;  %vm16272_vm11 = vsmask.f32 4352  ;;  %v5277_v44 = vld [vmem:[#allocation2 + $0x64] sm:$0xf]  ;;  %vm16274_vm7 = vnez %v16273_v26 }
 0x217   : > { %v4735_v12 = vsel %vm16272_vm11, %v4725_v62, %v4734_v47  ;;  %vm16278_vm11 = vsmask.f32 7424 }
 0x218   : > { %v3751_v29 = vpop.f32.mrf.mxu3  ;;  %v4664_v31 = vpack.c.b16 %v4639_v50, %v4638_v10 }
 0x219   : > { %v3798_v32 = vadd.f32 %v3751_v29, %v3320_v17  ;;  %v5475_v17 = vrot.slane %v5473_v36, 1  ;;  %v16279_v36 = vld [vmem:[#allocation70_spill] sm:$0xff] }
 0x21b   : > { %v4055_v52 = vadd.f32 %v12936_v4, %v3798_v32  ;;  %v13030_v30 = vpop.f32.mrf.mxu0  ;;  %v10421_v4 = vld [vmem:[#allocation2 + $0x38] sm:$0xff]  ;;  %v5309_v32 = vsel %vm16274_vm7, %v5276_v54, 0  ;;  %v5476_v7 = vsel %vm16278_vm11, %v5471_v24, %v5475_v17  ;;  %vm16280_vm7 = vmmov %vm16201_vm0 }
 0x21c   : > { %v3280_v15 = vpop.f32.mrf.mxu2  ;;  %v5377_v50 = vunpack.c.l.b16 %v5309_v32  ;;  %vm16289_vm11 = vmmov %vm16201_vm0 }
 0x21d   : > { %v13032_v57 = vadd.f32 %v4466_v14, %v4055_v52  ;;  %v3323_v25 = vadd.f32 %v3280_v15, %v16271_v1  ;;  %v4471_v18 = vpop.f32.mrf.mxu1  ;;  %v16275_v14 = vld [vmem:[#allocation69_spill] sm:$0xff]  ;;  %v4737_v15 = vshrl.u32 %v4664_v31, 16  ;;  %v4740_v1 = vshll.u32 %v4664_v31, 16  ;;  %v16281_v31 = vld [vmem:[#allocation7_spill] sm:$0xff] }
 0x21e   : > { %vm16276_vm2 = vnez %v16275_v14 }
 0x21f   : > { %16270 = vst [vmem:[#allocation99_spill] sm:$0xff] %v13032_v57  ;;  %v5310_v29 = vsel %vm16276_vm2, %v5277_v44, 0  ;;  %v4739_v54 = vrot.slane %v4737_v15, 3  ;;  %v4742_v44 = vrot.slane %v4740_v1, 4  ;;  %vm16282_vm2 = vnez %v16281_v31 }
 0x220   : > { %v3753_v40 = vpop.f32.mrf.mxu3  ;;  %v5477_v1 = vshrl.u32 %v5400_v16, 16 }
 0x221   : > { %v3799_v59 = vadd.f32 %v3753_v40, %v3321_v42  ;;  %9888 = vmatmul.msk.bf16.gmra.mxu2 %vm16201_vm0, %v4735_v12  ;;  %v5378_v42 = vunpack.c.l.b16 %v5310_v29  ;;  %v4539_v12 = vld [vmem:[#allocation2 + $0x54] sm:$0xf] }
 0x223   : > { %v13042_v62 = vadd.f32 %v12949_v41, %v3799_v59  ;;  %v13044_v10 = vpop.f32.mrf.mxu0  ;;  %v4572_v41 = vsel %vm16282_vm2, %v4539_v12, 0  ;;  %v16283_v59 = vld [vmem:[#allocation9_spill] sm:$0xff]  ;;  %v5401_v24 = vpack.c.b16 %v5378_v42, %v5377_v50  ;;  %v16287_v12 = vld [vmem:[#allocation71_spill] sm:$0xff] }
 0x224   : > { %v3283_v52 = vpop.f32.mrf.mxu2  ;;  %vm16284_vm15 = vnez %v16283_v59  ;;  %v4640_v57 = vunpack.c.l.b16 %v4572_v41  ;;  %v16292_v41 = vld [vmem:[#allocation73_spill] sm:$0xff] }
 0x225   : > { %16277 = vst [vmem:[#allocation67_spill] sm:$0xff] %v13042_v62  ;;  %9971 = vmatmul.msk.bf16.gmra.mxu3 %vm16201_vm0, %v10421_v4  ;;  %v3324_v40 = vadd.f32 %v3283_v52, %v16279_v36  ;;  %v4573_v26 = vsel %vm16284_vm15, %v4540_v28, 0  ;;  %v13054_v29 = vpop.f32.mrf.mxu1  ;;  %v4743_v62 = vor.u32 %v4742_v44, %v4739_v54  ;;  %v5479_v28 = vor.u32 %v5477_v1, %v5475_v17  ;;  %v5278_v54 = vld [vmem:[#allocation2 + $0x68] sm:$0xf]  ;;  %v5279_v44 = vld [vmem:[#allocation2 + $0x6c] sm:$0xf] }
 0x226   : > { %9994 = vmatmul.msk.bf16.gmra.mxu0 %vm16280_vm7, %v5476_v7  ;;  %16285 = vst [vmem:[#allocation70_spill] sm:$0xff] %v13054_v29  ;;  %v4641_v4 = vunpack.c.l.b16 %v4573_v26  ;;  %v5481_v7 = vshll.u32 %v5401_v24, 16  ;;  %vm16288_vm7 = vsmask.f32 4352  ;;  %vm16293_vm2 = vnez %v16292_v41 }
 0x227   : > { %v4744_v50 = vsel %vm16288_vm7, %v4734_v47, %v4743_v62  ;;  %vm16295_vm7 = vsmask.f32 7424 }
 0x228   : > { %v3756_v32 = vpop.f32.mrf.mxu3  ;;  %v4665_v42 = vpack.c.b16 %v4641_v4, %v4640_v57  ;;  %v5483_v29 = vrot.slane %v5481_v7, 1  ;;  %v4541_v7 = vld [vmem:[#allocation2 + $0x5c] sm:$0xf] }
 0x229   : > { %v3800_v14 = vadd.f32 %v3756_v32, %v3322_v27 }
 0x22a   : > { %v5484_v17 = vsel %vm16295_vm7, %v5479_v28, %v5483_v29  ;;  %vm16306_vm7 = vmmov %vm16289_vm11 }
 0x22b   : > { %v4057_v52 = vadd.f32 %v12963_v5, %v3800_v14  ;;  %v13057_v15 = vpop.f32.mrf.mxu0  ;;  %v10422_v5 = vld [vmem:[#allocation2 + $0x40] sm:$0xff]  ;;  %v16290_v14 = vld [vmem:[#allocation72_spill] sm:$0xff] }
 0x22c   : > { %v3285_v36 = vpop.f32.mrf.mxu2  ;;  %vm16291_vm0 = vnez %v16290_v14 }
 0x22d   : > { %v13059_v31 = vadd.f32 %v4471_v18, %v4057_v52  ;;  %v3325_v59 = vadd.f32 %v3285_v36, %v16287_v12  ;;  %v5311_v16 = vsel %vm16291_vm0, %v5278_v54, 0  ;;  %v5312_v18 = vsel %vm16293_vm2, %v5279_v44, 0  ;;  %v4476_v32 = vpop.f32.mrf.mxu1  ;;  %v4542_v12 = vld [vmem:[#allocation2 + $0x60] sm:$0xf]  ;;  %vm16297_vm0 = vmmov %vm16289_vm11 }
 0x22e   : > { %v4746_v52 = vshrl.u32 %v4665_v42, 16  ;;  %v4749_v36 = vshll.u32 %v4665_v42, 16  ;;  %v5380_v4 = vunpack.c.l.b16 %v5312_v18  ;;  %v16298_v42 = vld [vmem:[#allocation8_spill] sm:$0xff] }
 0x22f   : > { %16286 = vst [vmem:[#allocation100_spill] sm:$0xff] %v13059_v31  ;;  %vm16299_vm2 = vnez %v16298_v42 }
 0x230   : > { %v3758_v27 = vpop.f32.mrf.mxu3  ;;  %v4748_v54 = vrot.slane %v4746_v52, 3  ;;  %v4751_v44 = vrot.slane %v4749_v36, 4  ;;  %v5485_v52 = vshrl.u32 %v5401_v24, 16  ;;  %v10423_v24 = vld [vmem:[#allocation2 + $0x48] sm:$0xff] }
 0x231   : > { %v3801_v26 = vadd.f32 %v3758_v27, %v3323_v25  ;;  %9889 = vmatmul.msk.bf16.gmra.mxu2 %vm16289_vm11, %v4744_v50  ;;  %v5379_v25 = vunpack.c.l.b16 %v5311_v16  ;;  %v16296_v50 = vld [vmem:[#allocation74_spill] sm:$0xff] }
 0x232   : > { %v4752_v41 = vor.u32 %v4751_v44, %v4748_v54  ;;  %v5281_v44 = vld [vmem:[#allocation2 + $0x74] sm:$0xf] }
 0x233   : > { %v13069_v47 = vadd.f32 %v12976_v43, %v3801_v26  ;;  %v13071_v57 = vpop.f32.mrf.mxu0  ;;  %v4574_v43 = vsel %vm16299_vm2, %v4541_v7, 0  ;;  %v16300_v26 = vld [vmem:[#allocation10_spill] sm:$0xff]  ;;  %v5402_v28 = vpack.c.b16 %v5380_v4, %v5379_v25  ;;  %v16304_v7 = vld [vmem:[#allocation75_spill] sm:$0xff] }
 0x234   : > { %v3288_v1 = vpop.f32.mrf.mxu2  ;;  %vm16301_vm15 = vnez %v16300_v26 }
 0x235   : > { %16294 = vst [vmem:[#allocation71_spill] sm:$0xff] %v13069_v47  ;;  %9972 = vmatmul.msk.bf16.gmra.mxu3 %vm16289_vm11, %v10422_v5  ;;  %v3326_v27 = vadd.f32 %v3288_v1, %v16296_v50  ;;  %v4575_v14 = vsel %vm16301_vm15, %v4542_v12, 0  ;;  %v4642_v47 = vunpack.c.l.b16 %v4574_v43  ;;  %v5489_v36 = vshll.u32 %v5402_v28, 16 }
 0x236   : > { %9995 = vmatmul.msk.bf16.gmra.mxu0 %vm16297_vm0, %v5484_v17  ;;  %v4643_v31 = vunpack.c.l.b16 %v4575_v14  ;;  %v13084_v17 = vpop.f32.mrf.mxu1  ;;  %vm16305_vm0 = vsmask.f32 4352  ;;  %v5280_v14 = vld [vmem:[#allocation2 + $0x70] sm:$0xf]  ;;  %vm16310_vm11 = vsmask.f32 7424 }
 0x237   : > { %16302 = vst [vmem:[#allocation74_spill] sm:$0xff] %v13084_v17  ;;  %v4753_v25 = vsel %vm16305_vm0, %v4743_v62, %v4752_v41  ;;  %v5491_v12 = vrot.slane %v5489_v36, 1  ;;  %v4543_v36 = vld [vmem:[#allocation2 + $0x64] sm:$0xf]  ;;  %vm16311_vm0 = vmmov %vm16306_vm7 }
 0x238   : > { %v3761_v16 = vpop.f32.mrf.mxu3  ;;  %v4666_v4 = vpack.c.b16 %v4643_v31, %v4642_v47 }
 0x239   : > { %v3802_v18 = vadd.f32 %v3761_v16, %v3324_v40  ;;  %v5487_v40 = vor.u32 %v5485_v52, %v5483_v29  ;;  %v5313_v16 = vsel %vm12259_vm9, %v5280_v14, 0 }
 0x23a   : > { %v5381_v47 = vunpack.c.l.b16 %v5313_v16 }
 0x23b   : > { %v4059_v5 = vadd.f32 %v12990_v61, %v3802_v18  ;;  %v13082_v51 = vpop.f32.mrf.mxu0  ;;  %v5492_v29 = vsel %vm16310_vm11, %v5487_v40, %v5491_v12  ;;  %vm16319_vm11 = vsmask.f32 4352 }
 0x23c   : > { %v3290_v1 = vpop.f32.mrf.mxu2 }
 0x23d   : > { %v13086_v50 = vadd.f32 %v4476_v32, %v4059_v5  ;;  %v3327_v42 = vadd.f32 %v3290_v1, %v16304_v7  ;;  %v5314_v32 = vsel %vm12270_vm3, %v5281_v44, 0  ;;  %v4755_v5 = vshrl.u32 %v4666_v4, 16  ;;  %v4544_v7 = vld [vmem:[#allocation2 + $0x68] sm:$0xf] }
 0x23e   : > { %v4758_v1 = vshll.u32 %v4666_v4, 16  ;;  %v4481_v14 = vpop.f32.mrf.mxu1 }
 0x23f   : > { %16303 = vst [vmem:[#allocation101_spill] sm:$0xff] %v13086_v50  ;;  %v4757_v44 = vrot.slane %v4755_v5, 3  ;;  %v5493_v5 = vshrl.u32 %v5402_v28, 16  ;;  %v10436_v50 = vld [vmem:[#allocation2 + $0x8] sm:$0xff]  ;;  %v5283_v28 = vld [vmem:[#allocation2 + $0x7c] sm:$0xf] }
 0x240   : > { %v3763_v54 = vpop.f32.mrf.mxu3  ;;  %v4760_v43 = vrot.slane %v4758_v1, 4  ;;  %10071 = vmatmul.msk.bf16.vlgmr.msra.gmra.mxu1 %vm16311_vm0, %v10436_v50 }
 0x241   : > { %v3803_v61 = vadd.f32 %v3763_v54, %v3325_v59  ;;  %9890 = vmatmul.msk.bf16.gmra.mxu2 %vm16306_vm7, %v4753_v25  ;;  %v5382_v59 = vunpack.c.l.b16 %v5314_v32  ;;  %v16312_v25 = vld [vmem:[#allocation78_spill] sm:$0xff]  ;;  %vm16313_vm7 = vmmov %vm16311_vm0 }
 0x242   : > { %v4761_v17 = vor.u32 %v4760_v43, %v4757_v44 }
 0x243   : > { %v13096_v62 = vadd.f32 %v13003_v8, %v3803_v61  ;;  %v13098_v31 = vpop.f32.mrf.mxu0  ;;  %v16314_v8 = vld [vmem:[#allocation13_spill] sm:$0xff]  ;;  %v16316_v61 = vld [vmem:[#allocation15_spill] sm:$0xff]  ;;  %v13108_v16 = vpack.c.b16 %v5382_v59, %v5381_v47 }
 0x244   : > { %v3293_v52 = vpop.f32.mrf.mxu2  ;;  %vm16315_vm9 = vnez %v16314_v8  ;;  %vm16317_vm3 = vnez %v16316_v61  ;;  %v16318_v8 = vld [vmem:[#allocation79_spill] sm:$0xff]  ;;  %v4762_v47 = vsel %vm16319_vm11, %v4752_v41, %v4761_v17  ;;  %vm16325_vm11 = vsmask.f32 7424 }
 0x245   : > { %16309 = vst [vmem:[#allocation75_spill] sm:$0xff] %v13096_v62  ;;  %9973 = vmatmul.msk.bf16.gmra.mxu3 %vm16311_vm0, %v10423_v24  ;;  %v3328_v54 = vadd.f32 %v3293_v52, %v16312_v25  ;;  %v4576_v4 = vsel %vm16315_vm9, %v4543_v36, 0  ;;  %v4577_v40 = vsel %vm16317_vm3, %v4544_v7, 0  ;;  %v5497_v1 = vshll.u32 %v13108_v16, 16 }
 0x246   : > { %9996 = vmatmul.msk.bf16.gmra.mxu0 %vm16313_vm7, %v5492_v29  ;;  %v4644_v62 = vunpack.c.l.b16 %v4576_v4  ;;  %v4645_v24 = vunpack.c.l.b16 %v4577_v40  ;;  %vm16321_vm7 = vmmov %vm16311_vm0  ;;  %v10424_v40 = vld [vmem:[#allocation2 + $0x50] sm:$0xff]  ;;  %vm16322_vm9 = vnez %v16041_v13  ;;  %vm16323_vm3 = vnez %v16048_v19 }
 0x247   : > { %v5499_v43 = vrot.slane %v5497_v1, 1  ;;  %v5316_v41 = vsel %vm16323_vm3, %v5283_v28, 0  ;;  %v4546_v1 = vld [vmem:[#allocation2 + $0x70] sm:$0xf]  ;;  %vm16333_vm3 = vnez %v16062_v49 }
 0x248   : > { %v3766_v32 = vpop.f32.mrf.mxu3  ;;  %v4667_v59 = vpack.c.b16 %v4645_v24, %v4644_v62 }
 0x249   : > { %v3804_v18 = vadd.f32 %v3766_v32, %v3326_v27  ;;  %v5495_v27 = vor.u32 %v5493_v5, %v5491_v12  ;;  %v4545_v5 = vld [vmem:[#allocation2 + $0x6c] sm:$0xf] }
 0x24a   : > { %v4764_v62 = vshrl.u32 %v4667_v59, 16 }
 0x24b   : > { %v4061_v52 = vadd.f32 %v13017_v45, %v3804_v18  ;;  %v13111_v25 = vpop.f32.mrf.mxu0  ;;  %v13119_v45 = vpop.f32.mrf.mxu1  ;;  %v5282_v18 = vld [vmem:[#allocation2 + $0x78] sm:$0xf]  ;;  %v5500_v32 = vsel %vm16325_vm11, %v5495_v27, %v5499_v43  ;;  %v16327_v27 = vld [vmem:[#allocation17_spill] sm:$0xff] }
 0x24c   : > { %v3295_v29 = vpop.f32.mrf.mxu2  ;;  %16320 = vst [vmem:[#allocation78_spill] sm:$0xff] %v13119_v45  ;;  %vm16328_vm11 = vnez %v16327_v27 }
 0x24d   : > { %v13114_v36 = vadd.f32 %v4481_v14, %v4061_v52  ;;  %v3329_v7 = vadd.f32 %v3295_v29, %v16318_v8  ;;  %v5315_v14 = vsel %vm16322_vm9, %v5282_v18, 0  ;;  %v4767_v8 = vshll.u32 %v4667_v59, 16  ;;  %v10452_v29 = vld [vmem:[%s15290_s4] sm:$0xff]  ;;  %v16329_v18 = vld [vmem:[#allocation18_spill] sm:$0xff] }
 0x24e   : > { %v5383_v24 = vunpack.c.l.b16 %v5315_v14  ;;  %6473 = vmatpush.bf16.msrb.mxu2 %v10452_v29  ;;  %vm16330_vm9 = vnez %v16329_v18 }
 0x24f   : > { %v4769_v59 = vrot.slane %v4767_v8, 4  ;;  %v4579_v28 = vsel %vm16330_vm9, %v4546_v1, 0 }
 0x250   : > { %v3768_v44 = vpop.f32.mrf.mxu3  ;;  %v4647_v45 = vunpack.c.l.b16 %v4579_v28 }
 0x251   : > { %v3805_v4 = vadd.f32 %v3768_v44, %v3327_v42  ;;  %9891 = vmatmul.msk.bf16.gmra.mxu2 %vm16321_vm7, %v4762_v47  ;;  %v5384_v42 = vunpack.c.l.b16 %v5316_v41  ;;  %v4766_v47 = vrot.slane %v4764_v62, 3  ;;  %vm16326_vm7 = vmmov %vm16311_vm0  ;;  %v4578_v44 = vsel %vm16328_vm11, %v4545_v5, 0 }
 0x252   : > { %v4646_v19 = vunpack.c.l.b16 %v4578_v44  ;;  %v5285_v44 = vld [vmem:[#allocation2 + $0x84] sm:$0xf]  ;;  %vm16334_vm11 = vnez %v16066_v48  ;;  %vm16341_vm9 = vmmov %vm16326_vm7 }
 0x253   : > { %v13127_v50 = vadd.f32 %v13030_v30, %v3805_v4  ;;  %v13129_v12 = vpop.f32.mrf.mxu0  ;;  %v10454_v30 = vld [vmem:[%s15290_s4 + $0x10] sm:$0xff]  ;;  %v13144_v4 = vpack.c.b16 %v5384_v42, %v5383_v24  ;;  %v4486_v41 = vpop.f32.mrf.mxu1  ;;  %v4770_v13 = vor.u32 %v4769_v59, %v4766_v47  ;;  %v10471_v24 = vld [vmem:[%s15290_s4 + $0x18] sm:$0xff]  ;;  %v5284_v59 = vld [vmem:[#allocation2 + $0x80] sm:$0xf] }
 0x254   : > { %v4889_v52 = vpop.f32.mrf.mxu2  ;;  %6899 = vmatpush.bf16.msrb.mxu3 %v10454_v30  ;;  %7377 = vmatpush.bf16.msrb.mxu0 %v10471_v24 }
 0x255   : > { %16324 = vst [vmem:[#allocation79_spill] sm:$0xff] %v13127_v50  ;;  %9974 = vmatmul.msk.bf16.gmra.mxu3 %vm16311_vm0, %v10424_v40  ;;  %v5505_v29 = vshll.u32 %v13144_v4, 16  ;;  %vm16332_vm0 = vsmask.f32 4352 }
 0x256   : > { %9997 = vmatmul.msk.bf16.gmra.mxu0 %vm16326_vm7, %v5500_v32  ;;  %v5501_v32 = vshrl.u32 %v13108_v16, 16  ;;  %v4771_v42 = vsel %vm16332_vm0, %v4761_v17, %v4770_v13  ;;  %vm16336_vm0 = vsmask.f32 7424 }
 0x257   : > { %v5507_v16 = vrot.slane %v5505_v29, 1 }
 0x258   : > { %v3771_v40 = vpop.f32.mrf.mxu3  ;;  %v5503_v1 = vor.u32 %v5501_v32, %v5499_v43 }
 0x259   : > { %v3806_v14 = vadd.f32 %v3771_v40, %v3328_v54  ;;  %v10472_v54 = vld [vmem:[%s15290_s4 + $0x20] sm:$0xff]  ;;  %v10425_v40 = vld [vmem:[#allocation2 + $0x58] sm:$0xff] }
 0x25a   : > { %7634 = vmatpush.bf16.msrb.mxu1 %v10472_v54 }
 0x25b   : > { %v4063_v62 = vadd.f32 %v13044_v10, %v3806_v14  ;;  %v13147_v8 = vpop.f32.mrf.mxu0  ;;  %v4668_v10 = vpack.c.b16 %v4647_v45, %v4646_v19  ;;  %v5317_v14 = vsel %vm16333_vm3, %v5284_v59, 0  ;;  %v4547_v19 = vld [vmem:[#allocation2 + $0x74] sm:$0xf]  ;;  %v4548_v45 = vld [vmem:[#allocation2 + $0x78] sm:$0xf] }
 0x25c   : > { %v4891_v5 = vpop.f32.mrf.mxu2  ;;  %v5385_v29 = vunpack.c.l.b16 %v5317_v14  ;;  %v16339_v59 = vld [vmem:[#allocation22_spill] sm:$0xff] }
 0x25d   : > { %v13151_v30 = vadd.f32 %v4486_v41, %v4063_v62  ;;  %v5318_v41 = vsel %vm16334_vm11, %v5285_v44, 0  ;;  %v4773_v62 = vshrl.u32 %v4668_v10, 16  ;;  %v4776_v17 = vshll.u32 %v4668_v10, 16 }
 0x25e   : > { %v5386_v24 = vunpack.c.l.b16 %v5318_v41  ;;  %vm16340_vm11 = vnez %v16339_v59  ;;  %v5287_v59 = vld [vmem:[#allocation2 + $0x8c] sm:$0xf] }
 0x25f   : > { %16331 = vst [vmem:[#allocation102_spill] sm:$0xff] %v13151_v30  ;;  %v4581_v10 = vsel %vm16340_vm11, %v4548_v45, 0  ;;  %v4775_v44 = vrot.slane %v4773_v62, 3  ;;  %v4778_v49 = vrot.slane %v4776_v17, 4  ;;  %v13189_v62 = vld [vmem:[%s15289_s3] ss:$0 sm:$0xff] }
 0x260   : > { %v3773_v47 = vpop.f32.mrf.mxu3  ;;  %v13178_v48 = vpack.c.b16 %v5386_v24, %v5385_v29  ;;  %v4649_v41 = vunpack.c.l.b16 %v4581_v10  ;;  %v5509_v17 = vshrl.u32 %v13144_v4, 16 }
 0x261   : > { %v3807_v28 = vadd.f32 %v3773_v47, %v3329_v7  ;;  %9892 = vmatmul.msk.bf16.gmra.mxu2 %vm16326_vm7, %v4771_v42  ;;  %v5508_v7 = vsel %vm16336_vm0, %v5503_v1, %v5507_v16  ;;  %v16337_v42 = vld [vmem:[#allocation20_spill] sm:$0xff]  ;;  %vm16345_vm0 = vmmov %vm16326_vm7 }
 0x262   : > { %vm16338_vm3 = vnez %v16337_v42  ;;  %v5286_v42 = vld [vmem:[#allocation2 + $0x88] sm:$0xf] }
 0x263   : > { %v13166_v43 = vadd.f32 %v13057_v15, %v3807_v28  ;;  %v13168_v32 = vpop.f32.mrf.mxu0  ;;  %v4580_v47 = vsel %vm16338_vm3, %v4547_v19, 0  ;;  %v16342_v15 = vld [vmem:[#allocation50_spill] sm:$0xff]  ;;  %v4779_v19 = vor.u32 %v4778_v49, %v4775_v44 }
 0x264   : > { %v4894_v54 = vpop.f32.mrf.mxu2  ;;  %v4969_v28 = vadd.f32 %v4889_v52, %v16342_v15  ;;  %v4648_v14 = vunpack.c.l.b16 %v4580_v47  ;;  %v16344_v49 = vld [vmem:[#allocation82_spill] sm:$0xff] }
 0x265   : > { %16335 = vst [vmem:[#allocation103_spill] sm:$0xff] %v13166_v43  ;;  %9975 = vmatmul.msk.bf16.gmra.mxu3 %vm16326_vm7, %v10425_v40  ;;  %v13183_v40 = vld [vmem:[%s15288_s2] ss:$0 sm:$0xff]  ;;  %v4970_v44 = vadd.f32 %v4891_v5, %v16344_v49  ;;  %vm16346_vm7 = vsmask.f32 7424 }
 0x266   : > { %9998 = vmatmul.msk.bf16.gmra.mxu0 %vm16341_vm9, %v5508_v7  ;;  %v5513_v7 = vshll.u32 %v13178_v48, 16  ;;  %v4669_v24 = vpack.c.b16 %v4649_v41, %v4648_v14  ;;  %vm16343_vm9 = vsmask.f32 4352  ;;  %v10426_v14 = vld [vmem:[#allocation2 + $0x60] sm:$0xff]  ;;  %v5319_v41 = vsel %vm12558_vm6, %v5286_v42, 0  ;;  %vm16348_vm6 = vmmov %vm16345_vm0 }
 0x267   : > { %v4780_v10 = vsel %vm16343_vm9, %v4770_v13, %v4779_v19  ;;  %v5320_v13 = vsel %vm12569_vm10, %v5287_v59, 0  ;;  %v5387_v5 = vunpack.c.l.b16 %v5319_v41  ;;  %v4549_v49 = vld [vmem:[#allocation2 + $0x7c] sm:$0xf]  ;;  %vm16347_vm9 = vcmask 125952  }
 0x268   : > { %v5146_v1 = vpop.f32.mrf.mxu3  ;;  %v5515_v15 = vrot.slane %v5513_v7, 1  ;;  %v4785_v30 = vshll.u32 %v4669_v24, 16  ;;  %vm16350_vm10 = vnez %v16100_v58 }
 0x269   : > { %v5226_v43 = vadd.f32 %v5146_v1, %v4969_v28  ;;  %v4782_v1 = vshrl.u32 %v4669_v24, 16 }
 0x26a   : > { %v4787_v59 = vrot.slane %v4785_v30, 4 }
 0x26b   : > { %v5684_v45 = vadd.f32 %v13071_v57, %v5226_v43  ;;  %v13191_v52 = vpop.f32.mrf.mxu0  ;;  %v5511_v43 = vor.u32 %v5509_v17, %v5507_v16  ;;  %v4784_v42 = vrot.slane %v4782_v1, 3 }
 0x26c   : > { %v4896_v29 = vpop.f32.mrf.mxu2 }
 0x26d   : > { %v5720_v47 = vmul.f32 %v13183_v40, %v5684_v45  ;;  %v5388_v45 = vunpack.c.l.b16 %v5320_v13  ;;  %v5516_v24 = vsel %vm16346_vm7, %v5511_v43, %v5515_v15  ;;  %vm16349_vm7 = vnez %v16098_v55 }
 0x26e   : > { %v4582_v43 = vsel %vm16349_vm7, %v4549_v49, 0 }
 0x26f   : > { %v5756_v57 = vadd.f32 %v13189_v62, %v5720_v47  ;;  %v4650_v30 = vunpack.c.l.b16 %v4582_v43  ;;  %v5288_v43 = vld [vmem:[#allocation2 + $0x90] sm:$0xf] }
 0x270   : > { %v5148_v28 = vpop.f32.mrf.mxu3 }
 0x271   : > { %v5788_v4 = vmax.f32 %v5756_v57, 0.0  ;;  %v5227_v50 = vadd.f32 %v5148_v28, %v4970_v44  ;;  %9893 = vmatmul.msk.bf16.gmra.mxu2 %vm16345_vm0, %v4780_v10  ;;  %v4550_v44 = vld [vmem:[#allocation2 + $0x80] sm:$0xf]  ;;  %v13212_v57 = vpack.c.b16 %v5388_v45, %v5387_v5  ;;  %v5517_v5 = vshrl.u32 %v13178_v48, 16 }
 0x272   : > { %v4583_v28 = vsel %vm16350_vm10, %v4550_v44, 0 }
 0x273   : > { %v5820_v16 = vpack.c.bf16 %v5788_v4, %v5788_v4  ;;  %v5685_v17 = vadd.f32 %v13082_v51, %v5227_v50  ;;  %v13205_v7 = vpop.f32.mrf.mxu0  ;;  %v4971_v51 = vadd.f32 %v4894_v54, %v12478_v33  ;;  %v4651_v1 = vunpack.c.l.b16 %v4583_v28 }
 0x274   : > { %v4899_v47 = vpop.f32.mrf.mxu2  ;;  %v5521_v45 = vshll.u32 %v13212_v57, 16 }
 0x275   : > { %5852 = vst.msk [vmem:[#allocation2 + $0x10] sm:$0xf] %vm16347_vm9, %v5820_v16  ;;  %v5721_v10 = vmul.f32 %v13183_v40, %v5685_v17  ;;  %9976 = vmatmul.msk.bf16.gmra.mxu3 %vm16345_vm0, %v10426_v14  ;;  %v13220_v14 = vor.u32 %v4787_v59, %v4784_v42  ;;  %v4670_v44 = vpack.c.b16 %v4651_v1, %v4650_v30  ;;  %v16353_v59 = vld [vmem:[#allocation55_spill] sm:$0xff] }
 0x276   : > { %9999 = vmatmul.msk.bf16.gmra.mxu0 %vm16348_vm6, %v5516_v24  ;;  %vm16351_vm6 = vmmov %vm16347_vm9  ;;  %vm16352_vm9 = vsmask.f32 4352  ;;  %v5523_v42 = vrot.slane %v5521_v45, 1  ;;  %v4972_v48 = vadd.f32 %v4896_v29, %v16353_v59  ;;  %v4551_v59 = vld [vmem:[#allocation2 + $0x84] sm:$0xf] }
 0x277   : > { %v5757_v50 = vadd.f32 %v13189_v62, %v5721_v10  ;;  %v4789_v49 = vsel %vm16352_vm9, %v4779_v19, %v13220_v14  ;;  %v5519_v10 = vor.u32 %v5517_v5, %v5515_v15  ;;  %v4791_v15 = vshrl.u32 %v4670_v44, 16 }
 0x278   : > { %v5151_v4 = vpop.f32.mrf.mxu3  ;;  %v4794_v30 = vshll.u32 %v4670_v44, 16  ;;  %vm16355_vm9 = vcmask 125952   ;;  %v4973_v44 = vadd.f32 %v4899_v47, %v12595_v22 }
 0x279   : > { %v5789_v41 = vmax.f32 %v5757_v50, 0.0  ;;  %v5228_v13 = vadd.f32 %v5151_v4, %v4971_v51 }
 0x27b   : > { %v5821_v33 = vpack.c.bf16 %v5789_v41, %v5789_v41  ;;  %v5686_v54 = vadd.f32 %v13098_v31, %v5228_v13  ;;  %v13225_v16 = vpop.f32.mrf.mxu0  ;;  %v5289_v31 = vld [vmem:[#allocation2 + $0x94] sm:$0xf]  ;;  %v10427_v41 = vld [vmem:[#allocation2 + $0x68] sm:$0xff]  ;;  %v5321_v13 = vsel %vm12662_vm4, %v5288_v43, 0  ;;  %vm16357_vm4 = vmmov %vm16345_vm0  ;;  %v4584_v43 = vsel %vm16124_vm13, %v4551_v59, 0 }
 0x27c   : > { %v4901_v17 = vpop.f32.mrf.mxu2  ;;  %v5322_v19 = vsel %vm12669_vm8, %v5289_v31, 0  ;;  %v4652_v47 = vunpack.c.l.b16 %v4584_v43  ;;  %v10428_v43 = vld [vmem:[#allocation2 + $0x70] sm:$0xff]  ;;  %vm16376_vm8 = vsmask.f32 7424 }
 0x27d   : > { %5853 = vst.msk [vmem:[#allocation2 + $0x14] sm:$0xf] %vm16351_vm6, %v5821_v33  ;;  %v5722_v24 = vmul.f32 %v13183_v40, %v5686_v54  ;;  %vm16354_vm6 = vsmask.f32 7424  ;;  %v5389_v33 = vunpack.c.l.b16 %v5321_v13  ;;  %v5390_v54 = vunpack.c.l.b16 %v5322_v19 }
 0x27e   : > { %v5524_v29 = vsel %vm16354_vm6, %v5519_v10, %v5523_v42  ;;  %vm16356_vm6 = vmmov %vm16345_vm0  ;;  %v4793_v10 = vrot.slane %v4791_v15, 3 }
 0x27f   : > { %v5758_v51 = vadd.f32 %v13189_v62, %v5722_v24 }
 0x280   : > { %v5153_v50 = vpop.f32.mrf.mxu3 }
 0x281   : > { %v5790_v28 = vmax.f32 %v5758_v51, 0.0  ;;  %v5229_v4 = vadd.f32 %v5153_v50, %v4972_v48  ;;  %9894 = vmatmul.msk.bf16.gmra.mxu2 %vm16345_vm0, %v4789_v49  ;;  %v4552_v48 = vld [vmem:[#allocation2 + $0x88] sm:$0xf] }
 0x282   : > { %v4585_v31 = vsel %vm16126_vm12, %v4552_v48, 0  ;;  %v4974_v48 = vadd.f32 %v4901_v17, %v12642_v34 }
 0x283   : > { %v5822_v1 = vpack.c.bf16 %v5790_v28, %v5790_v28  ;;  %v5687_v5 = vadd.f32 %v13111_v25, %v5229_v4  ;;  %v13240_v45 = vpop.f32.mrf.mxu0  ;;  %v4796_v25 = vrot.slane %v4794_v30, 4  ;;  %v13253_v28 = vpack.c.b16 %v5390_v54, %v5389_v33 }
 0x284   : > { %v4904_v24 = vpop.f32.mrf.mxu2  ;;  %v10437_v49 = vld [vmem:[#allocation2 + $0x10] sm:$0xff]  ;;  %v4653_v19 = vunpack.c.l.b16 %v4585_v31 }
 0x285   : > { %5854 = vst.msk [vmem:[#allocation2 + $0x18] sm:$0xf] %vm16355_vm9, %v5822_v1  ;;  %v5723_v51 = vmul.f32 %v13183_v40, %v5687_v5  ;;  %9977 = vmatmul.msk.bf16.gmra.mxu3 %vm16345_vm0, %v10427_v41  ;;  %10072 = vmatmul.msk.bf16.gmra.mxu1 %vm16356_vm6, %v10437_v49  ;;  %v13255_v22 = vor.u32 %v4796_v25, %v4793_v10  ;;  %v5525_v1 = vshrl.u32 %v13212_v57, 16  ;;  %v5529_v5 = vshll.u32 %v13253_v28, 16  ;;  %v5290_v57 = vld [vmem:[#allocation2 + $0x98] sm:$0x1] }
 0x286   : > { %10000 = vmatmul.msk.bf16.gmra.mxu0 %vm16357_vm4, %v5524_v29  ;;  %vm16358_vm4 = vmmov %vm16355_vm9  ;;  %vm16359_vm9 = vsmask.f32 4352  ;;  %v4671_v59 = vpack.c.b16 %v4653_v19, %v4652_v47  ;;  %v5323_v31 = vsel %vm12738_vm14, %v5290_v57, 0  ;;  %vm16360_vm6 = vsmask.f32 7424 }
 0x287   : > { %v5759_v50 = vadd.f32 %v13189_v62, %v5723_v51  ;;  %v4798_v54 = vsel %vm16359_vm9, %v13220_v14, %v13255_v22  ;;  %v5527_v51 = vor.u32 %v5525_v1, %v5523_v42  ;;  %v5391_v42 = vunpack.c.l.b16 %v5323_v31  ;;  %vm16361_vm9 = vmmov %vm16345_vm0 }
 0x288   : > { %v5156_v4 = vpop.f32.mrf.mxu3  ;;  %vm16363_vm14 = vmmov %vm16345_vm0 }
 0x289   : > { %v5791_v41 = vmax.f32 %v5759_v50, 0.0  ;;  %v5230_v13 = vadd.f32 %v5156_v4, %v4973_v44  ;;  %v5531_v44 = vrot.slane %v5529_v5, 1  ;;  %v4800_v4 = vshrl.u32 %v4671_v59, 16  ;;  %v16362_v5 = vld [vmem:[#allocation88_spill] sm:$0xff] }
 0x28b   : > { %v5823_v15 = vpack.c.bf16 %v5791_v41, %v5791_v41  ;;  %v5688_v30 = vadd.f32 %v13129_v12, %v5230_v13  ;;  %v13258_v29 = vpop.f32.mrf.mxu0  ;;  %v4803_v41 = vshll.u32 %v4671_v59, 16  ;;  %v5532_v17 = vsel %vm16360_vm6, %v5527_v51, %v5531_v44 }
 0x28c   : > { %v4906_v49 = vpop.f32.mrf.mxu2 }
 0x28d   : > { %5855 = vst.msk [vmem:[#allocation2 + $0x1c] sm:$0xf] %vm16358_vm4, %v5823_v15  ;;  %v5724_v33 = vmul.f32 %v13183_v40, %v5688_v30  ;;  %v4553_v15 = vld [vmem:[#allocation2 + $0x8c] sm:$0xf]  ;;  %v4554_v30 = vld [vmem:[#allocation2 + $0x90] sm:$0xf] }
 0x28e   : > { %v4587_v51 = vsel %vm16147_vm1, %v4554_v30, 0 }
 0x28f   : > { %v5760_v12 = vadd.f32 %v13189_v62, %v5724_v33  ;;  %v4975_v33 = vadd.f32 %v4904_v24, %v16362_v5  ;;  %v4655_v31 = vunpack.c.l.b16 %v4587_v51  ;;  %v7015_v5 = vld [vmem:[#allocation2 + $0x14] sm:$0xf]  ;;  %v16372_v51 = vld [vmem:[#allocation90_spill] sm:$0xff] }
 0x290   : > { %v5158_v10 = vpop.f32.mrf.mxu3 }
 0x291   : > { %v5792_v25 = vmax.f32 %v5760_v12, 0.0  ;;  %v5231_v50 = vadd.f32 %v5158_v10, %v4974_v48  ;;  %9895 = vmatmul.msk.bf16.gmra.mxu2 %vm16345_vm0, %v4798_v54  ;;  %v4805_v54 = vrot.slane %v4803_v41, 4  ;;  %v4586_v48 = vsel %vm16145_vm5, %v4553_v15, 0  ;;  %v16364_v12 = vld [vmem:[#allocation34_spill] sm:$0xff]  ;;  %v7014_v15 = vld [vmem:[#allocation2 + $0x10] sm:$0xf] }
 0x292   : > { %v5408_v10 = vpack.c.b16 %v5391_v42, %v5391_v42  ;;  %v4654_v24 = vunpack.c.l.b16 %v4586_v48  ;;  %vm16377_vm5 = vcmask 125952  }
 0x293   : > { %v5824_v14 = vpack.c.bf16 %v5792_v25, %v5792_v25  ;;  %v5689_v13 = vadd.f32 %v13147_v8, %v5231_v50  ;;  %v13273_v34 = vpop.f32.mrf.mxu0  ;;  %v4802_v8 = vrot.slane %v4800_v4, 3  ;;  %v7013_v4 = vld [vmem:[#allocation2 + $0xc] sm:$0x8] }
 0x294   : > { %v13276_v47 = vpop.f32.mrf.mxu2  ;;  %v10438_v19 = vld [vmem:[#allocation2 + $0x18] sm:$0xff] }
 0x295   : > { %5856 = vst.msk [vmem:[#allocation2 + $0x20] sm:$0xf] %vm16358_vm4, %v5824_v14  ;;  %v5725_v1 = vmul.f32 %v13183_v40, %v5689_v13  ;;  %9978 = vmatmul.msk.bf16.gmra.mxu3 %vm16361_vm9, %v10428_v43  ;;  %10073 = vmatmul.msk.bf16.gmra.mxu1 %vm16345_vm0, %v10438_v19  ;;  %v13289_v43 = vor.u32 %v4805_v54, %v4802_v8  ;;  %v5537_v19 = vshll.u32 %v5408_v10, 16  ;;  %vm16371_vm0 = vnez %v16169_v38  ;;  %v16469_v38 = vld [vmem:[#allocation31_spill] sm:$0xff] }
 0x296   : > { %10001 = vmatmul.msk.bf16.gmra.mxu0 %vm16363_vm14, %v5532_v17  ;;  %v5533_v17 = vshrl.u32 %v13253_v28, 16  ;;  %vm16365_vm14 = vmmov %vm16358_vm4  ;;  %vm16368_vm4 = vsmask.f32 4352  ;;  %v4672_v54 = vpack.c.b16 %v4655_v31, %v4654_v24  ;;  %v4976_v10 = vadd.f32 %v4906_v49, %v16372_v51  ;;  %v4555_v51 = vld [vmem:[#allocation2 + $0x94] sm:$0xf] }
 0x297   : > { %v5761_v59 = vadd.f32 %v13189_v62, %v5725_v1  ;;  %v7016_v1 = vld [vmem:[#allocation2 + $0x18] sm:$0xf] }
 0x298   : > { %v5161_v57 = vpop.f32.mrf.mxu3  ;;  %v7049_v48 = vsel %vm16371_vm0, %v7016_v1, 0  ;;  %v4809_v31 = vshrl.u32 %v4672_v54, 16 }
 0x299   : > { %v5793_v25 = vmax.f32 %v5761_v59, 0.0  ;;  %v5232_v50 = vadd.f32 %v5161_v57, %v4975_v33  ;;  %v16366_v33 = vld [vmem:[#allocation3_spill] sm:$0xff]  ;;  %v16369_v59 = vld [vmem:[#allocation5_spill] sm:$0xff]  ;;  %v7117_v24 = vunpack.c.l.b16 %v7049_v48 }
 0x29a   : > { %vm16367_vm6 = vnez %v16366_v33  ;;  %vm16370_vm9 = vnez %v16369_v59  ;;  %v6559_v33 = vld [vmem:[#allocation2 + $0x18] sm:$0xf]  ;;  %v16453_v59 = vld [vmem:[#allocation43_spill] sm:$0xff] }
 0x29b   : > { %v5825_v41 = vpack.c.bf16 %v5793_v25, %v5793_v25  ;;  %v5690_v14 = vadd.f32 %v13168_v32, %v5232_v50  ;;  %v13292_v13 = vpop.f32.mrf.mxu0  ;;  %v7046_v8 = vsel %vm16367_vm6, %v7013_v4, 0  ;;  %v4807_v32 = vsel %vm16368_vm4, %v13255_v22, %v13289_v43  ;;  %v10429_v22 = vld [vmem:[#allocation2 + $0x78] sm:$0xff] }
 0x29c   : > { %v13295_v30 = vpop.f32.mrf.mxu2  ;;  %v7047_v28 = vsel %vm16370_vm9, %v7014_v15, 0  ;;  %v5535_v25 = vor.u32 %v5533_v17, %v5531_v44  ;;  %v5539_v50 = vrot.slane %v5537_v19, 1  ;;  %vm16375_vm4 = vcmask 130048  }
 0x29d   : > { %5857 = vst.msk [vmem:[#allocation2 + $0x24] sm:$0xf] %vm16365_vm14, %v5825_v41  ;;  %v5726_v42 = vmul.f32 %v13183_v40, %v5690_v14  ;;  %v16373_v14 = vld [vmem:[#allocation4_spill] sm:$0xff]  ;;  %v4812_v15 = vshll.u32 %v4672_v54, 16  ;;  %v7114_v2 = vunpack.c.l.b16 %v7046_v8  ;;  %v7115_v1 = vunpack.c.l.b16 %v7047_v28  ;;  %vm16378_vm1 = vmmov %vm16375_vm4 }
 0x29e   : > { %vm16374_vm14 = vnez %v16373_v14  ;;  %v5540_v44 = vsel %vm16376_vm8, %v5535_v25, %v5539_v50  ;;  %vm16379_vm13 = vmmov %vm16378_vm1  ;;  %vm16381_vm8 = vnez %v16171_v39 }
 0x29f   : > { %v5762_v57 = vadd.f32 %v13189_v62, %v5726_v42  ;;  %v7048_v4 = vsel %vm16374_vm14, %v7015_v5, 0  ;;  %v4588_v48 = vsel %vm16381_vm8, %v4555_v51, 0  ;;  %vm16390_vm8 = vsmask.f32 4352 }
 0x2a0   : > { %v5163_v41 = vpop.f32.mrf.mxu3  ;;  %v7116_v17 = vunpack.c.l.b16 %v7048_v4 }
 0x2a1   : > { %v5794_v37 = vmax.f32 %v5762_v57, 0.0  ;;  %v5233_v46 = vadd.f32 %v5163_v41, %v4976_v10  ;;  %9896 = vmatmul.msk.bf16.gmra.mxu2 %vm16375_vm4, %v4807_v32 }
 0x2a2   : > { %v7148_v8 = vpack.c.b16 %v7117_v24, %v7116_v17 }
 0x2a3   : > { %v5826_v6 = vpack.c.bf16 %v5794_v37, %v5794_v37  ;;  %v5691_v49 = vadd.f32 %v13191_v52, %v5233_v46  ;;  %v13314_v42 = vpop.f32.mrf.mxu0  ;;  %v4811_v37 = vrot.slane %v4809_v31, 3  ;;  %v4814_v46 = vrot.slane %v4812_v15, 4  ;;  %v16380_v52 = vld [vmem:[#allocation92_spill] sm:$0xff] }
 0x2a4   : > { %v13317_v19 = vpop.f32.mrf.mxu2  ;;  %v10439_v5 = vld [vmem:[#allocation2 + $0x20] sm:$0xff]  ;;  %v4977_v54 = vadd.f32 %v13276_v47, %v16380_v52  ;;  %v7173_v50 = vshrl.u32 %v7148_v8, 16  ;;  %v7176_v41 = vshll.u32 %v7148_v8, 16 }
 0x2a5   : > { %5858 = vst.msk [vmem:[#allocation2 + $0x28] sm:$0xf] %vm16377_vm5, %v5826_v6  ;;  %v5727_v32 = vmul.f32 %v13183_v40, %v5691_v49  ;;  %9979 = vmatmul.msk.bf16.gmra.mxu3 %vm16375_vm4, %v10429_v22  ;;  %10074 = vmatmul.msk.bf16.gmra.mxu1 %vm16378_vm1, %v10439_v5  ;;  %v7147_v6 = vpack.c.b16 %v7115_v1, %v7114_v2  ;;  %v4656_v22 = vunpack.c.l.b16 %v4588_v48  ;;  %v16382_v5 = vld [vmem:[#allocation93_spill] sm:$0xff]  ;;  %v16383_v2 = vld [vmem:[#allocation91_spill] sm:$0xff]  ;;  %vm16386_vm1 = vnez %v16187_v23 }
 0x2a6   : > { %10002 = vmatmul.msk.bf16.gmra.mxu0 %vm16379_vm13, %v5540_v44  ;;  %v13329_v4 = vor.u32 %v4814_v46, %v4811_v37  ;;  %v7018_v44 = vld [vmem:[#allocation2 + $0x20] sm:$0xf]  ;;  %v4500_v1 = vadd.f32 %v16383_v2, %v16382_v5  ;;  %vm16384_vm13 = vmmov %vm16377_vm5  ;;  %v7178_v8 = vrot.slane %v7176_v41, 4  ;;  %v7017_v37 = vld [vmem:[#allocation2 + $0x1c] sm:$0xf]  ;;  %vm16387_vm4 = vnez %v16185_v11 }
 0x2a7   : > { %v5763_v28 = vadd.f32 %v13189_v62, %v5727_v32  ;;  %v7165_v47 = vshrl.u32 %v7147_v6, 16  ;;  %v7168_v49 = vshll.u32 %v7147_v6, 16  ;;  %v7175_v32 = vrot.slane %v7173_v50, 3  ;;  %v10430_v41 = vld [vmem:[#allocation2 + $0x80] sm:$0xff] }
 0x2a8   : > { %v5166_v10 = vpop.f32.mrf.mxu3  ;;  %vm16385_vm5 = vsmask.f32 4352  ;;  %v4673_v46 = vpack.c.b16 %v4656_v22, %v4656_v22  ;;  %v7051_v52 = vsel %vm16386_vm1, %v7018_v44, 0 }
 0x2a9   : > { %v5795_v57 = vmax.f32 %v5763_v28, 0.0  ;;  %v5234_v25 = vadd.f32 %v5166_v10, %v4977_v54  ;;  %v4978_v54 = vadd.f32 %v13295_v30, %v4500_v1  ;;  %v7167_v48 = vrot.slane %v7165_v47, 3 }
 0x2aa   : > { %v7170_v6 = vrot.slane %v7168_v49, 4  ;;  %v7119_v22 = vunpack.c.l.b16 %v7051_v52 }
 0x2ab   : > { %v5827_v24 = vpack.c.bf16 %v5795_v57, %v5795_v57  ;;  %v5692_v31 = vadd.f32 %v13205_v7, %v5234_v25  ;;  %v13332_v15 = vpop.f32.mrf.mxu0  ;;  %v4816_v7 = vsel %vm16385_vm5, %v13289_v43, %v13329_v4  ;;  %v7050_v57 = vsel %vm16387_vm4, %v7017_v37, 0  ;;  %v5885_v37 = vld [vmem:[#allocation2 + $0x8] sm:$0xf] }
 0x2ac   : > { %v13334_v17 = vpop.f32.mrf.mxu2  ;;  %v13350_v43 = vor.u32 %v7178_v8, %v7175_v32  ;;  %v7171_v47 = vor.u32 %v7170_v6, %v7167_v48  ;;  %v7118_v49 = vunpack.c.l.b16 %v7050_v57  ;;  %vm16389_vm5 = vcmask 125952  }
 0x2ad   : > { %5859 = vst.msk [vmem:[#allocation2 + $0x2c] sm:$0xf] %vm16384_vm13, %v5827_v24  ;;  %v5728_v51 = vmul.f32 %v13183_v40, %v5692_v31  ;;  %vm16388_vm13 = vcmask 130048   ;;  %v4818_v24 = vshrl.u32 %v4673_v46, 16  ;;  %v4821_v31 = vshll.u32 %v4673_v46, 16 }
 0x2ae   : > { %v7180_v8 = vsel %vm16390_vm8, %v7171_v47, %v13350_v43  ;;  %v7149_v46 = vpack.c.b16 %v7119_v22, %v7118_v49  ;;  %vm16391_vm12 = vmmov %vm16388_vm13  ;;  %v5918_v57 = vsel %vm16370_vm9, %v5885_v37, 0 }
 0x2af   : > { %v5764_v28 = vadd.f32 %v13189_v62, %v5728_v51  ;;  %v5884_v51 = vld [vmem:[#allocation2 + $0x4] sm:$0x8]  ;;  %v4820_v52 = vrot.slane %v4818_v24, 3  ;;  %vm16392_vm7 = vmmov %vm16391_vm12  ;;  %v6211_v49 = vunpack.c.l.b16 %v5918_v57 }
 0x2b0   : > { %v5168_v10 = vpop.f32.mrf.mxu3  ;;  %v7182_v24 = vshrl.u32 %v7149_v46, 16 }
 0x2b1   : > { %v5796_v25 = vmax.f32 %v5764_v28, 0.0  ;;  %v5235_v50 = vadd.f32 %v5168_v10, %v4978_v54  ;;  %9897 = vmatmul.msk.bf16.gmra.mxu2 %vm16388_vm13, %v4816_v7  ;;  %v5886_v7 = vld [vmem:[#allocation2 + $0xc] sm:$0xf]  ;;  %v4823_v54 = vrot.slane %v4821_v31, 4  ;;  %v4979_v28 = vadd.f32 %v13317_v19, %v12842_v35 }
 0x2b2   : > { %v5917_v10 = vsel %vm16367_vm6, %v5884_v51, 0  ;;  %v7185_v31 = vshll.u32 %v7149_v46, 16  ;;  %v7184_v46 = vrot.slane %v7182_v24, 3 }
 0x2b3   : > { %v5828_v44 = vpack.c.bf16 %v5796_v25, %v5796_v25  ;;  %v5693_v30 = vadd.f32 %v13225_v16, %v5235_v50  ;;  %v13353_v5 = vpop.f32.mrf.mxu0  ;;  %v5887_v16 = vld [vmem:[#allocation2 + $0x10] sm:$0xf]  ;;  %v5919_v25 = vsel %vm16374_vm14, %v5886_v7, 0  ;;  %v4824_v35 = vor.u32 %v4823_v54, %v4820_v52  ;;  %v7019_v54 = vld [vmem:[#allocation2 + $0x24] sm:$0xf] }
 0x2b4   : > { %v13355_v2 = vpop.f32.mrf.mxu2  ;;  %v10440_v1 = vld [vmem:[#allocation2 + $0x28] sm:$0xff]  ;;  %v5920_v50 = vsel %vm16371_vm0, %v5887_v16, 0  ;;  %v6210_v47 = vunpack.c.l.b16 %v5917_v10  ;;  %v6212_v37 = vunpack.c.l.b16 %v5919_v25  ;;  %v7187_v52 = vrot.slane %v7185_v31, 4 }
 0x2b5   : > { %5860 = vst.msk [vmem:[#allocation2 + $0x30] sm:$0xf] %vm16389_vm5, %v5828_v44  ;;  %v5729_v32 = vmul.f32 %v13183_v40, %v5693_v30  ;;  %9980 = vmatmul.msk.bf16.gmra.mxu3 %vm16388_vm13, %v10430_v41  ;;  %10075 = vmatmul.msk.bf16.gmra.mxu1 %vm16391_vm12, %v10440_v1  ;;  %v7020_v1 = vld [vmem:[#allocation2 + $0x28] sm:$0xf]  ;;  %vm16394_vm12 = vmmov %vm16389_vm5  ;;  %vm16397_vm5 = vnez %v16202_v9  ;;  %vm16418_vm0 = vsmask.f32 4352 }
 0x2b6   : > { %10131 = vmatmul.msk.bf16.vlgmr.msrb.gmra.mxu0 %vm16392_vm7, %v7180_v8  ;;  %v16393_v8 = vld [vmem:[#allocation94_spill] sm:$0xff]  ;;  %vm16395_vm7 = vmmov %vm16390_vm8  ;;  %vm16396_vm8 = vnez %v16204_v63  ;;  %v6243_v10 = vpack.c.b16 %v6211_v49, %v6210_v47  ;;  %v7052_v25 = vsel %vm16397_vm5, %v7019_v54, 0  ;;  %v13393_v24 = vor.u32 %v7187_v52, %v7184_v46  ;;  %v16425_v9 = vld [vmem:[#allocation24_spill] sm:$0xff] }
 0x2b7   : > { %v5765_v48 = vadd.f32 %v13189_v62, %v5729_v32  ;;  %v6213_v32 = vunpack.c.l.b16 %v5920_v50  ;;  %v4502_v7 = vadd.f32 %v16393_v8, %v12864_v56  ;;  %v4981_v46 = vadd.f32 %v13355_v2, %v12890_v20 }
 0x2b8   : > { %v5171_v6 = vpop.f32.mrf.mxu3 }
 0x2b9   : > { %v5797_v41 = vmax.f32 %v5765_v48, 0.0  ;;  %v5236_v22 = vadd.f32 %v5171_v6, %v4979_v28  ;;  %v7053_v28 = vsel %vm16396_vm8, %v7020_v1, 0  ;;  %v4980_v48 = vadd.f32 %v13334_v17, %v4502_v7  ;;  %v5889_v7 = vld [vmem:[#allocation2 + $0x18] sm:$0xf] }
 0x2ba   : > { %v6244_v56 = vpack.c.b16 %v6213_v32, %v6212_v37  ;;  %v6261_v17 = vshrl.u32 %v6243_v10, 16  ;;  %v6264_v1 = vshll.u32 %v6243_v10, 16 }
 0x2bb   : > { %v5829_v19 = vpack.c.bf16 %v5797_v41, %v5797_v41  ;;  %v5694_v44 = vadd.f32 %v13240_v45, %v5236_v22  ;;  %v13376_v30 = vpop.f32.mrf.mxu0  ;;  %v4825_v45 = vsel %vm16395_vm7, %v13329_v4, %v4824_v35  ;;  %v10431_v22 = vld [vmem:[#allocation2 + $0x88] sm:$0xff]  ;;  %v7121_v4 = vunpack.c.l.b16 %v7053_v28  ;;  %vm16398_vm7 = vmmov %vm16388_vm13 }
 0x2bc   : > { %v13378_v51 = vpop.f32.mrf.mxu2  ;;  %v6269_v37 = vshrl.u32 %v6244_v56, 16  ;;  %v6272_v32 = vshll.u32 %v6244_v56, 16  ;;  %vm16400_vm6 = vmmov %vm16398_vm7  ;;  %v6263_v54 = vrot.slane %v6261_v17, 3  ;;  %v6556_v28 = vld [vmem:[#allocation2 + $0xc] sm:$0xf] }
 0x2bd   : > { %5861 = vst.msk [vmem:[#allocation2 + $0x34] sm:$0xf] %vm16394_vm12, %v5829_v19  ;;  %v5730_v16 = vmul.f32 %v13183_v40, %v5694_v44  ;;  %v7120_v44 = vunpack.c.l.b16 %v7052_v25  ;;  %vm16401_vm14 = vmmov %vm16400_vm6  ;;  %v5888_v56 = vld [vmem:[#allocation2 + $0x14] sm:$0xf] }
 0x2be   : > { %v6271_v10 = vrot.slane %v6269_v37, 3  ;;  %v5921_v17 = vsel %vm16387_vm4, %v5888_v56, 0 }
 0x2bf   : > { %v5766_v6 = vadd.f32 %v13189_v62, %v5730_v16  ;;  %v7150_v16 = vpack.c.b16 %v7121_v4, %v7120_v44  ;;  %v16402_v4 = vld [vmem:[#allocation36_spill] sm:$0xff]  ;;  %v16404_v44 = vld [vmem:[#allocation37_spill] sm:$0xff]  ;;  %v6214_v56 = vunpack.c.l.b16 %v5921_v17 }
 0x2c0   : > { %v5173_v57 = vpop.f32.mrf.mxu3 }
 0x2c1   : > { %v5798_v50 = vmax.f32 %v5766_v6, 0.0  ;;  %v5237_v41 = vadd.f32 %v5173_v57, %v4980_v48  ;;  %9898 = vmatmul.msk.bf16.gmra.mxu2 %vm16388_vm13, %v4825_v45  ;;  %vm16399_vm13 = vsmask.f32 4352  ;;  %v6555_v45 = vld [vmem:[#allocation2 + $0x8] sm:$0xf]  ;;  %v6266_v6 = vrot.slane %v6264_v1, 4 }
 0x2c2   : > { %v6274_v57 = vrot.slane %v6272_v32, 4  ;;  %v7022_v1 = vld [vmem:[#allocation2 + $0x30] sm:$0xf] }
 0x2c3   : > { %v5830_v31 = vpack.c.bf16 %v5798_v50, %v5798_v50  ;;  %v5695_v35 = vadd.f32 %v13258_v29, %v5237_v41  ;;  %v13396_v19 = vpop.f32.mrf.mxu0  ;;  %v7189_v29 = vsel %vm16399_vm13, %v13350_v43, %v13393_v24  ;;  %v5922_v43 = vsel %vm16386_vm1, %v5889_v7, 0  ;;  %v6558_v7 = vld [vmem:[#allocation2 + $0x14] sm:$0xf] }
 0x2c4   : > { %v13398_v47 = vpop.f32.mrf.mxu2  ;;  %v10441_v49 = vld [vmem:[#allocation2 + $0x30] sm:$0xff]  ;;  %v7191_v41 = vshrl.u32 %v7150_v16, 16  ;;  %v6267_v32 = vor.u32 %v6266_v6, %v6263_v54  ;;  %vm16413_vm1 = vcmask 130048  }
 0x2c5   : > { %5862 = vst.msk [vmem:[#allocation2 + $0x38] sm:$0xf] %vm16394_vm12, %v5830_v31  ;;  %v5731_v8 = vmul.f32 %v13183_v40, %v5695_v35  ;;  %9981 = vmatmul.msk.bf16.gmra.mxu3 %vm16398_vm7, %v10431_v22  ;;  %10076 = vmatmul.msk.bf16.gmra.mxu1 %vm16400_vm6, %v10441_v49  ;;  %v7194_v22 = vshll.u32 %v7150_v16, 16  ;;  %vm16403_vm6 = vnez %v16402_v4  ;;  %v16406_v16 = vld [vmem:[#allocation95_spill] sm:$0xff] }
 0x2c6   : > { %10132 = vmatmul.msk.bf16.gmra.mxu0 %vm16401_vm14, %v7189_v29  ;;  %v6588_v20 = vsel %vm16403_vm6, %v6555_v45, 0  ;;  %vm16405_vm14 = vnez %v16404_v44  ;;  %v6215_v29 = vunpack.c.l.b16 %v5922_v43 }
 0x2c7   : > { %v5767_v52 = vadd.f32 %v13189_v62, %v5731_v8  ;;  %v6589_v49 = vsel %vm16405_vm14, %v6556_v28, 0  ;;  %v13424_v8 = vor.u32 %v6274_v57, %v6271_v10  ;;  %v7196_v45 = vrot.slane %v7194_v22, 4  ;;  %v6557_v57 = vld [vmem:[#allocation2 + $0x10] sm:$0xf]  ;;  %v16411_v22 = vld [vmem:[#allocation19_spill] sm:$0xff] }
 0x2c8   : > { %v5176_v48 = vpop.f32.mrf.mxu3  ;;  %v6656_v28 = vunpack.c.l.b16 %v6588_v20  ;;  %vm16412_vm4 = vnez %v16411_v22  ;;  %v16445_v22 = vld [vmem:[#allocation29_spill] sm:$0xff] }
 0x2c9   : > { %v5799_v25 = vmax.f32 %v5767_v52, 0.0  ;;  %v5238_v50 = vadd.f32 %v5176_v48, %v4981_v46  ;;  %v4504_v46 = vadd.f32 %v16406_v16, %v12905_v3  ;;  %v7193_v52 = vrot.slane %v7191_v41, 3  ;;  %v7021_v48 = vld [vmem:[#allocation2 + $0x2c] sm:$0xf] }
 0x2ca   : > { %v6276_v3 = vsel %vm16399_vm13, %v6267_v32, %v13424_v8  ;;  %v7054_v20 = vsel %vm16412_vm4, %v7021_v48, 0  ;;  %vm16417_vm13 = vcmask 130048  }
 0x2cb   : > { %v5831_v2 = vpack.c.bf16 %v5799_v25, %v5799_v25  ;;  %v5696_v31 = vadd.f32 %v13273_v34, %v5238_v50  ;;  %v13416_v35 = vpop.f32.mrf.mxu0  ;;  %v6657_v25 = vunpack.c.l.b16 %v6589_v49  ;;  %v16407_v50 = vld [vmem:[#allocation21_spill] sm:$0xff]  ;;  %v4982_v6 = vadd.f32 %v13378_v51, %v4504_v46  ;;  %v16414_v46 = vld [vmem:[#allocation38_spill] sm:$0xff] }
 0x2cc   : > { %v13422_v37 = vpop.f32.mrf.mxu2  ;;  %vm16408_vm7 = vnez %v16407_v50  ;;  %v13441_v51 = vor.u32 %v7196_v45, %v7193_v52  ;;  %vm16415_vm9 = vnez %v16414_v46  ;;  %v7122_v23 = vunpack.c.l.b16 %v7054_v20 }
 0x2cd   : > { %5863 = vst.msk [vmem:[#allocation2 + $0x3c] sm:$0xf] %vm16394_vm12, %v5831_v2  ;;  %v5732_v34 = vmul.f32 %v13183_v40, %v5696_v31  ;;  %v7055_v54 = vsel %vm16408_vm7, %v7022_v1, 0  ;;  %v6245_v2 = vpack.c.b16 %v6215_v29, %v6214_v56  ;;  %v16409_v31 = vld [vmem:[#allocation39_spill] sm:$0xff]  ;;  %v10432_v1 = vld [vmem:[#allocation2 + $0x90] sm:$0xff]  ;;  %v6689_v11 = vpack.c.b16 %v6657_v25, %v6656_v28 }
 0x2ce   : > { %vm16410_vm12 = vnez %v16409_v31  ;;  %v7123_v16 = vunpack.c.l.b16 %v7055_v54  ;;  %v5891_v28 = vld [vmem:[#allocation2 + $0x20] sm:$0xf]  ;;  %v16491_v31 = vld [vmem:[#allocation52_spill] sm:$0xff] }
 0x2cf   : > { %v5768_v10 = vadd.f32 %v13189_v62, %v5732_v34  ;;  %v6591_v41 = vsel %vm16410_vm12, %v6558_v7, 0  ;;  %v6590_v34 = vsel %vm16415_vm9, %v6557_v57, 0  ;;  %vm16419_vm9 = vmmov %vm16417_vm13  ;;  %v6709_v54 = vshll.u32 %v6689_v11, 16  ;;  %v16421_v57 = vld [vmem:[#allocation44_spill] sm:$0xff] }
 0x2d0   : > { %v5178_v43 = vpop.f32.mrf.mxu3  ;;  %v6659_v56 = vunpack.c.l.b16 %v6591_v41  ;;  %v6658_v45 = vunpack.c.l.b16 %v6590_v34  ;;  %v7151_v25 = vpack.c.b16 %v7123_v16, %v7122_v23  ;;  %vm16420_vm12 = vmmov %vm16419_vm9 }
 0x2d1   : > { %v5800_v17 = vmax.f32 %v5768_v10, 0.0  ;;  %v5239_v49 = vadd.f32 %v5178_v43, %v4982_v6  ;;  %10091 = vmatmul.msk.bf16.vlgmr.msrb.gmra.mxu2 %vm16413_vm1, %v6276_v3  ;;  %v6278_v10 = vshrl.u32 %v6245_v2, 16  ;;  %v6281_v43 = vshll.u32 %v6245_v2, 16 }
 0x2d2   : > { %vm16416_vm1 = vcmask 125952   ;;  %v4983_v3 = vadd.f32 %v13398_v47, %v16421_v57  ;;  %v13461_v41 = vpack.c.b16 %v6659_v56, %v6658_v45  ;;  %v7200_v34 = vshrl.u32 %v7151_v25, 16 }
 0x2d3   : > { %v5832_v32 = vpack.c.bf16 %v5800_v17, %v5800_v17  ;;  %v5697_v29 = vadd.f32 %v13292_v13, %v5239_v49  ;;  %v13446_v7 = vpop.f32.mrf.mxu0  ;;  %v7198_v13 = vsel %vm16418_vm0, %v13393_v24, %v13441_v51  ;;  %v6280_v17 = vrot.slane %v6278_v10, 3 }
 0x2d4   : > { %v13448_v48 = vpop.f32.mrf.mxu2  ;;  %v10442_v6 = vld [vmem:[#allocation2 + $0x38] sm:$0xff]  ;;  %v6283_v49 = vrot.slane %v6281_v43, 4  ;;  %v5924_v24 = vsel %vm16396_vm8, %v5891_v28, 0  ;;  %vm16426_vm0 = vnez %v16425_v9  ;;  %vm16437_vm8 = vcmask 130048  }
 0x2d5   : > { %5864 = vst.msk [vmem:[#allocation2 + $0x40] sm:$0xf] %vm16416_vm1, %v5832_v32  ;;  %v5733_v52 = vmul.f32 %v13183_v40, %v5697_v29  ;;  %9982 = vmatmul.msk.bf16.gmra.mxu3 %vm16417_vm13, %v10432_v1  ;;  %10077 = vmatmul.msk.bf16.gmra.mxu1 %vm16419_vm9, %v10442_v6  ;;  %v5890_v1 = vld [vmem:[#allocation2 + $0x1c] sm:$0xf]  ;;  %v7203_v32 = vshll.u32 %v7151_v25, 16  ;;  %v6707_v29 = vshrl.u32 %v6689_v11, 16  ;;  %v6217_v57 = vunpack.c.l.b16 %v5924_v24  ;;  %vm16424_vm9 = vmmov %vm16416_vm1 }
 0x2d6   : > { %10133 = vmatmul.msk.bf16.gmra.mxu0 %vm16420_vm12, %v7198_v13  ;;  %v6711_v6 = vrot.slane %v6709_v54, 1  ;;  %v5923_v10 = vsel %vm16397_vm5, %v5890_v1, 0  ;;  %v7024_v43 = vld [vmem:[#allocation2 + $0x38] sm:$0xf]  ;;  %v13473_v28 = vor.u32 %v6283_v49, %v6280_v17  ;;  %v16423_v11 = vld [vmem:[#allocation35_spill] sm:$0xff] }
 0x2d7   : > { %v5769_v2 = vadd.f32 %v13189_v62, %v5733_v52  ;;  %v6714_v52 = vshll.u32 %v13461_v41, 16  ;;  %v16422_v25 = vld [vmem:[#allocation46_spill] sm:$0xff]  ;;  %v7057_v1 = vsel %vm16426_vm0, %v7024_v43, 0  ;;  %vm16427_vm12 = vsmask.f32 4352 }
 0x2d8   : > { %v5181_v20 = vpop.f32.mrf.mxu3  ;;  %v4506_v54 = vadd.f32 %v16423_v11, %v16422_v25  ;;  %v6712_v49 = vor.u32 %v6711_v6, %v6707_v29  ;;  %v7125_v6 = vunpack.c.l.b16 %v7057_v1  ;;  %v5893_v1 = vld [vmem:[#allocation2 + $0x28] sm:$0xf] }
 0x2d9   : > { %v5801_v23 = vmax.f32 %v5769_v2, 0.0  ;;  %v5240_v16 = vadd.f32 %v5181_v20, %v4983_v3  ;;  %v6560_v3 = vld [vmem:[#allocation2 + $0x1c] sm:$0xf]  ;;  %v7202_v2 = vrot.slane %v7200_v34, 3  ;;  %v7205_v20 = vrot.slane %v7203_v32, 4 }
 0x2da   : > { %v4984_v63 = vadd.f32 %v13422_v37, %v4506_v54  ;;  %v13483_v24 = vrot.slane %v6714_v52, 1  ;;  %v16428_v32 = vld [vmem:[#allocation42_spill] sm:$0xff]  ;;  %v16433_v52 = vld [vmem:[#allocation41_spill] sm:$0xff] }
 0x2db   : > { %v5833_v13 = vpack.c.bf16 %v5801_v23, %v5801_v23  ;;  %v5698_v47 = vadd.f32 %v13314_v42, %v5240_v16  ;;  %v13467_v56 = vpop.f32.mrf.mxu0  ;;  %v7023_v23 = vld [vmem:[#allocation2 + $0x34] sm:$0xf]  ;;  %v6216_v16 = vunpack.c.l.b16 %v5923_v10  ;;  %vm16429_vm1 = vnez %v16428_v32  ;;  %v16430_v10 = vld [vmem:[#allocation23_spill] sm:$0xff]  ;;  %v16472_v32 = vld [vmem:[#allocation48_spill] sm:$0xff] }
 0x2dc   : > { %v13471_v45 = vpop.f32.mrf.mxu2  ;;  %vm16431_vm13 = vnez %v16430_v10  ;;  %v13493_v29 = vor.u32 %v7205_v20, %v7202_v2  ;;  %vm16434_vm5 = vnez %v16433_v52 }
 0x2dd   : > { %5865 = vst.msk [vmem:[#allocation2 + $0x44] sm:$0xf] %vm16424_vm9, %v5833_v13  ;;  %v5734_v42 = vmul.f32 %v13183_v40, %v5698_v47  ;;  %v6285_v13 = vsel %vm16427_vm12, %v13424_v8, %v13473_v28  ;;  %v6246_v34 = vpack.c.b16 %v6217_v57, %v6216_v16  ;;  %v6593_v47 = vsel %vm16429_vm1, %v6560_v3, 0  ;;  %vm16440_vm1 = vmmov %vm16437_vm8 }
 0x2de   : > { %v7056_v43 = vsel %vm16431_vm13, %v7023_v23, 0  ;;  %vm16432_vm9 = vcmask 130048   ;;  %v6592_v54 = vsel %vm16434_vm5, %v6559_v33, 0  ;;  %v6661_v57 = vunpack.c.l.b16 %v6593_v47 }
 0x2df   : > { %v5770_v17 = vadd.f32 %v13189_v62, %v5734_v42  ;;  %v7124_v16 = vunpack.c.l.b16 %v7056_v43  ;;  %vm16435_vm12 = vsmask.f32 7424  ;;  %v6660_v33 = vunpack.c.l.b16 %v6592_v54  ;;  %v5892_v54 = vld [vmem:[#allocation2 + $0x24] sm:$0xf] }
 0x2e0   : > { %v5183_v25 = vpop.f32.mrf.mxu3  ;;  %v6717_v3 = vsel %vm16435_vm12, %v6712_v49, %v13483_v24  ;;  %vm16438_vm5 = vsmask.f32 4352  ;;  %vm16439_vm12 = vmmov %vm16437_vm8 }
 0x2e1   : > { %v5802_v11 = vmax.f32 %v5770_v17, 0.0  ;;  %v5241_v37 = vadd.f32 %v5183_v25, %v4984_v63  ;;  %10092 = vmatmul.msk.bf16.gmra.mxu2 %vm16432_vm9, %v6285_v13  ;;  %v6287_v63 = vshrl.u32 %v6246_v34, 16  ;;  %v6290_v17 = vshll.u32 %v6246_v34, 16  ;;  %v16441_v25 = vld [vmem:[#allocation96_spill] sm:$0xff] }
 0x2e2   : > { %vm16436_vm9 = vcmask 125952   ;;  %v7152_v49 = vpack.c.b16 %v7125_v6, %v7124_v16  ;;  %v4985_v13 = vadd.f32 %v13448_v48, %v16441_v25  ;;  %v13515_v47 = vpack.c.b16 %v6661_v57, %v6660_v33  ;;  %v16442_v25 = vld [vmem:[#allocation53_spill] sm:$0xff] }
 0x2e3   : > { %v5834_v42 = vpack.c.bf16 %v5802_v11, %v5802_v11  ;;  %v5699_v8 = vadd.f32 %v13332_v15, %v5241_v37  ;;  %v13505_v20 = vpop.f32.mrf.mxu0  ;;  %v7207_v15 = vsel %vm16438_vm5, %v13441_v51, %v13493_v29  ;;  %v6289_v11 = vrot.slane %v6287_v63, 3  ;;  %v7026_v63 = vld [vmem:[#allocation2 + $0x40] sm:$0xf] }
 0x2e4   : > { %v13500_v14 = vpop.f32.mrf.mxu2  ;;  %v10443_v23 = vld [vmem:[#allocation2 + $0x40] sm:$0xff]  ;;  %v6292_v37 = vrot.slane %v6290_v17, 4  ;;  %v5926_v51 = vsel %vm16408_vm7, %v5893_v1, 0  ;;  %v7209_v16 = vshrl.u32 %v7152_v49, 16  ;;  %v5925_v57 = vsel %vm16412_vm4, %v5892_v54, 0 }
 0x2e5   : > { %5866 = vst.msk [vmem:[#allocation2 + $0x48] sm:$0xf] %vm16436_vm9, %v5834_v42  ;;  %v5735_v2 = vmul.f32 %v13183_v40, %v5699_v8  ;;  %10111 = vmatmul.msk.bf16.vlgmr.msrb.gmra.mxu3 %vm16437_vm8, %v6717_v3  ;;  %10078 = vmatmul.msk.bf16.gmra.mxu1 %vm16439_vm12, %v10443_v23  ;;  %v13519_v42 = vpop.f32.mrf.mxu1  ;;  %v7212_v3 = vshll.u32 %v7152_v49, 16  ;;  %v6562_v1 = vld [vmem:[#allocation2 + $0x24] sm:$0xf]  ;;  %vm16444_vm8 = vmmov %vm16436_vm9  ;;  %v6218_v54 = vunpack.c.l.b16 %v5925_v57  ;;  %vm16446_vm5 = vnez %v16445_v22 }
 0x2e6   : > { %10134 = vmatmul.msk.bf16.gmra.mxu0 %vm16440_vm1, %v7207_v15  ;;  %v13527_v33 = vor.u32 %v6292_v37, %v6289_v11  ;;  %v6219_v15 = vunpack.c.l.b16 %v5926_v51  ;;  %v7059_v50 = vsel %vm16446_vm5, %v7026_v63, 0  ;;  %v6718_v51 = vshrl.u32 %v13461_v41, 16  ;;  %v16450_v57 = vld [vmem:[#allocation27_spill] sm:$0xff] }
 0x2e7   : > { %v5771_v34 = vadd.f32 %v13189_v62, %v5735_v2  ;;  %v6722_v2 = vshll.u32 %v13515_v47, 16  ;;  %vm16447_vm1 = vsmask.f32 4352  ;;  %vm16451_vm12 = vnez %v16450_v57  ;;  %v7027_v10 = vld [vmem:[#allocation2 + $0x44] sm:$0xf]  ;;  %v16484_v57 = vld [vmem:[#allocation9_spill] sm:$0xff] }
 0x2e8   : > { %v5186_v43 = vpop.f32.mrf.mxu3  ;;  %vm16455_vm4 = vsmask.f32 7424  ;;  %vm16457_vm7 = vcmask 130048  }
 0x2e9   : > { %v5803_v6 = vmax.f32 %v5771_v34, 0.0  ;;  %v5242_v8 = vadd.f32 %v5186_v43, %v4985_v13  ;;  %v16443_v34 = vld [vmem:[#allocation51_spill] sm:$0xff]  ;;  %v7211_v43 = vrot.slane %v7209_v16, 3  ;;  %v6247_v16 = vpack.c.b16 %v6219_v15, %v6218_v54 }
 0x2ea   : > { %v4508_v13 = vadd.f32 %v16443_v34, %v16442_v25  ;;  %v13540_v25 = vrot.slane %v6722_v2, 1  ;;  %v7127_v2 = vunpack.c.l.b16 %v7059_v50  ;;  %v13566_v50 = vld [vmem:[%s15288_s2] ss:$0 sm:$0xff] }
 0x2eb   : > { %v5835_v23 = vpack.c.bf16 %v5803_v6, %v5803_v6  ;;  %v5700_v48 = vadd.f32 %v13353_v5, %v5242_v8  ;;  %v13533_v5 = vpop.f32.mrf.mxu0  ;;  %v7214_v6 = vrot.slane %v7212_v3, 4  ;;  %v7025_v8 = vld [vmem:[#allocation2 + $0x3c] sm:$0xf]  ;;  %v16448_v3 = vld [vmem:[#allocation45_spill] sm:$0xff] }
 0x2ec   : > { %v13525_v17 = vpop.f32.mrf.mxu2  ;;  %v4986_v11 = vadd.f32 %v13471_v45, %v4508_v13  ;;  %vm16449_vm9 = vnez %v16448_v3  ;;  %v7058_v63 = vsel %vm16451_vm12, %v7025_v8, 0 }
 0x2ed   : > { %5867 = vst.msk [vmem:[#allocation2 + $0x4c] sm:$0xf] %vm16444_vm8, %v5835_v23  ;;  %v5736_v49 = vmul.f32 %v13183_v40, %v5700_v48  ;;  %v6561_v23 = vld [vmem:[#allocation2 + $0x20] sm:$0xf]  ;;  %v6294_v40 = vsel %vm16447_vm1, %v13473_v28, %v13527_v33  ;;  %v6595_v48 = vsel %vm16449_vm9, %v6562_v1, 0  ;;  %v13549_v13 = vpop.f32.mrf.mxu1  ;;  %vm16452_vm8 = vcmask 130048  }
 0x2ee   : > { %v13552_v41 = vor.u32 %v7214_v6, %v7211_v43  ;;  %vm16454_vm1 = vnez %v16453_v59  ;;  %v6663_v54 = vunpack.c.l.b16 %v6595_v48  ;;  %v7126_v3 = vunpack.c.l.b16 %v7058_v63  ;;  %v13582_v63 = vld [vmem:[%s15289_s3] ss:$0 sm:$0xff]  ;;  %v16465_v59 = vld [vmem:[#allocation32_spill] sm:$0xff] }
 0x2ef   : > { %v5772_v37 = vadd.f32 %v13189_v62, %v5736_v49  ;;  %v6720_v49 = vor.u32 %v6718_v51, %v13483_v24  ;;  %v6594_v28 = vsel %vm16454_vm1, %v6561_v23, 0  ;;  %v6299_v43 = vshll.u32 %v6247_v16, 16  ;;  %v5895_v23 = vld [vmem:[#allocation2 + $0x30] sm:$0xf]  ;;  %vm16459_vm1 = vmmov %vm16457_vm7 }
 0x2f0   : > { %v5188_v34 = vpop.f32.mrf.mxu3 }
 0x2f1   : > { %v5804_v45 = vmax.f32 %v5772_v37, 0.0  ;;  %v5243_v62 = vadd.f32 %v5188_v34, %v4986_v11  ;;  %10093 = vmatmul.msk.bf16.gmra.mxu2 %vm16452_vm8, %v6294_v40  ;;  %v6725_v8 = vsel %vm16455_vm4, %v6720_v49, %v13540_v25  ;;  %v6296_v34 = vshrl.u32 %v6247_v16, 16  ;;  %v16461_v16 = vld [vmem:[#allocation97_spill] sm:$0xff] }
 0x2f2   : > { %vm16456_vm8 = vcmask 125952   ;;  %vm16458_vm4 = vsmask.f32 4352  ;;  %v7153_v40 = vpack.c.b16 %v7127_v2, %v7126_v3  ;;  %v4987_v48 = vadd.f32 %v13500_v14, %v16461_v16  ;;  %v5894_v3 = vld [vmem:[#allocation2 + $0x2c] sm:$0xf] }
 0x2f3   : > { %v5836_v15 = vpack.c.bf16 %v5804_v45, %v5804_v45  ;;  %v5701_v1 = vadd.f32 %v13376_v30, %v5243_v62  ;;  %v6662_v30 = vunpack.c.l.b16 %v6594_v28  ;;  %v13570_v6 = vpop.f32.mrf.mxu0  ;;  %v7216_v51 = vsel %vm16458_vm4, %v13493_v29, %v13552_v41 }
 0x2f4   : > { %v13560_v37 = vpop.f32.mrf.mxu2  ;;  %v10444_v11 = vld [vmem:[#allocation2 + $0x48] sm:$0xff]  ;;  %v6298_v29 = vrot.slane %v6296_v34, 3  ;;  %v6301_v28 = vrot.slane %v6299_v43, 4  ;;  %v5928_v2 = vsel %vm16426_vm0, %v5895_v23, 0  ;;  %v7221_v14 = vshll.u32 %v7153_v40, 16 }
 0x2f5   : > { %5868 = vst.msk [vmem:[#allocation2 + $0x50] sm:$0xf] %vm16456_vm8, %v5836_v15  ;;  %v5737_v24 = vmul.f32 %v13566_v50, %v5701_v1  ;;  %10112 = vmatmul.msk.bf16.gmra.mxu3 %vm16457_vm7, %v6725_v8  ;;  %10079 = vmatmul.msk.bf16.gmra.mxu1 %vm16459_vm1, %v10444_v11  ;;  %vm16460_vm8 = vmmov %vm16459_vm1  ;;  %v13585_v62 = vpack.c.b16 %v6663_v54, %v6662_v30  ;;  %v7218_v8 = vshrl.u32 %v7153_v40, 16  ;;  %v5927_v54 = vsel %vm16431_vm13, %v5894_v3, 0  ;;  %v7028_v34 = vld [vmem:[#allocation2 + $0x48] sm:$0xf] }
 0x2f6   : > { %10135 = vmatmul.msk.bf16.gmra.mxu0 %vm16460_vm8, %v7216_v51  ;;  %v13589_v51 = vpop.f32.mrf.mxu1  ;;  %v13597_v30 = vor.u32 %v6301_v28, %v6298_v29  ;;  %v6221_v23 = vunpack.c.l.b16 %v5928_v2  ;;  %vm16464_vm7 = vcmask 125952   ;;  %v7223_v9 = vrot.slane %v7221_v14, 4 }
 0x2f7   : > { %v5773_v45 = vadd.f32 %v13582_v63, %v5737_v24  ;;  %v6730_v24 = vshll.u32 %v13585_v62, 16  ;;  %v6220_v3 = vunpack.c.l.b16 %v5927_v54  ;;  %vm16466_vm1 = vnez %v16465_v59  ;;  %v6571_v59 = vld [vmem:[#allocation2 + $0x48] sm:$0xf] }
 0x2f8   : > { %v5191_v49 = vpop.f32.mrf.mxu3  ;;  %v7061_v52 = vsel %vm16466_vm1, %v7028_v34, 0  ;;  %v6726_v2 = vshrl.u32 %v13515_v47, 16  ;;  %vm16471_vm13 = vcmask 130048   ;;  %vm16473_vm0 = vnez %v16472_v32  ;;  %v16488_v32 = vld [vmem:[#allocation7_spill] sm:$0xff] }
 0x2f9   : > { %v5805_v15 = vmax.f32 %v5773_v45, 0.0  ;;  %v5244_v1 = vadd.f32 %v5191_v49, %v4987_v48  ;;  %v6564_v45 = vld [vmem:[#allocation2 + $0x2c] sm:$0xf]  ;;  %v16462_v48 = vld [vmem:[#allocation59_spill] sm:$0xff]  ;;  %v16463_v49 = vld [vmem:[#allocation57_spill] sm:$0xff]  ;;  %v6248_v14 = vpack.c.b16 %v6221_v23, %v6220_v3 }
 0x2fa   : > { %v4510_v40 = vadd.f32 %v16463_v49, %v16462_v48  ;;  %v13610_v48 = vrot.slane %v6730_v24, 1  ;;  %v7129_v24 = vunpack.c.l.b16 %v7061_v52 }
 0x2fb   : > { %v5837_v11 = vpack.c.bf16 %v5805_v15, %v5805_v15  ;;  %v5702_v16 = vadd.f32 %v13396_v19, %v5244_v1  ;;  %v13603_v19 = vpop.f32.mrf.mxu0  ;;  %v7220_v1 = vrot.slane %v7218_v8, 3  ;;  %v6303_v8 = vsel %vm16458_vm4, %v13527_v33, %v13597_v30 }
 0x2fc   : > { %v13595_v43 = vpop.f32.mrf.mxu2  ;;  %v4988_v29 = vadd.f32 %v13525_v17, %v4510_v40  ;;  %vm16474_vm4 = vsmask.f32 7424  ;;  %v6308_v52 = vshll.u32 %v6248_v14, 16 }
 0x2fd   : > { %5869 = vst.msk [vmem:[#allocation2 + $0x54] sm:$0xf] %vm16464_vm7, %v5837_v11  ;;  %v5738_v15 = vmul.f32 %v13566_v50, %v5702_v16  ;;  %v6563_v11 = vld [vmem:[#allocation2 + $0x28] sm:$0xf]  ;;  %v16467_v16 = vld [vmem:[#allocation49_spill] sm:$0xff]  ;;  %vm16470_vm7 = vnez %v16469_v38  ;;  %v13620_v47 = vor.u32 %v7223_v9, %v7220_v1  ;;  %v6305_v1 = vshrl.u32 %v6248_v14, 16 }
 0x2fe   : > { %vm16468_vm8 = vnez %v16467_v16  ;;  %v7060_v34 = vsel %vm16470_vm7, %v7027_v10, 0  ;;  %v6596_v46 = vsel %vm16473_vm0, %v6563_v11, 0  ;;  %vm16476_vm0 = vcmask 130048   ;;  %v5897_v11 = vld [vmem:[#allocation2 + $0x38] sm:$0xf] }
 0x2ff   : > { %v5774_v28 = vadd.f32 %v13582_v63, %v5738_v15  ;;  %v6597_v54 = vsel %vm16468_vm8, %v6564_v45, 0  ;;  %v6728_v15 = vor.u32 %v6726_v2, %v13540_v25  ;;  %v7128_v16 = vunpack.c.l.b16 %v7060_v34  ;;  %vm16479_vm9 = vmmov %vm16476_vm0 }
 0x300   : > { %v5193_v49 = vpop.f32.mrf.mxu3  ;;  %v6665_v45 = vunpack.c.l.b16 %v6597_v54  ;;  %vm16477_vm8 = vsmask.f32 4352 }
 0x301   : > { %v5806_v17 = vmax.f32 %v5774_v28, 0.0  ;;  %v5245_v40 = vadd.f32 %v5193_v49, %v4988_v29  ;;  %10094 = vmatmul.msk.bf16.gmra.mxu2 %vm16471_vm13, %v6303_v8  ;;  %v6733_v10 = vsel %vm16474_vm4, %v6728_v15, %v13610_v48  ;;  %vm16475_vm13 = vcmask 125952   ;;  %vm16478_vm4 = vmmov %vm16476_vm0  ;;  %v16480_v8 = vld [vmem:[#allocation98_spill] sm:$0xff]  ;;  %v5896_v15 = vld [vmem:[#allocation2 + $0x34] sm:$0xf] }
 0x302   : > { %v13626_v3 = vpop.f32.mrf.mxu1  ;;  %v6664_v28 = vunpack.c.l.b16 %v6596_v46  ;;  %v7225_v2 = vsel %vm16477_vm8, %v13552_v41, %v13620_v47  ;;  %v7154_v49 = vpack.c.b16 %v7129_v24, %v7128_v16  ;;  %v4989_v14 = vadd.f32 %v13560_v37, %v16480_v8  ;;  %v16481_v8 = vld [vmem:[#allocation63_spill] sm:$0xff] }
 0x303   : > { %v5838_v33 = vpack.c.bf16 %v5806_v17, %v5806_v17  ;;  %v5703_v23 = vadd.f32 %v13416_v35, %v5245_v40  ;;  %v13635_v35 = vpop.f32.mrf.mxu0  ;;  %v6307_v17 = vrot.slane %v6305_v1, 3  ;;  %v6310_v40 = vrot.slane %v6308_v52, 4  ;;  %v7030_v1 = vld [vmem:[#allocation2 + $0x50] sm:$0xf] }
 0x304   : > { %v13630_v29 = vpop.f32.mrf.mxu2  ;;  %v10445_v9 = vld [vmem:[#allocation2 + $0x50] sm:$0xff]  ;;  %v13645_v34 = vpack.c.b16 %v6665_v45, %v6664_v28  ;;  %v5930_v41 = vsel %vm16446_vm5, %v5897_v11, 0  ;;  %v7227_v24 = vshrl.u32 %v7154_v49, 16  ;;  %v5929_v45 = vsel %vm16451_vm12, %v5896_v15, 0 }
 0x305   : > { %5870 = vst.msk [vmem:[#allocation2 + $0x58] sm:$0xf] %vm16475_vm13, %v5838_v33  ;;  %v5739_v25 = vmul.f32 %v13566_v50, %v5703_v23  ;;  %10113 = vmatmul.msk.bf16.gmra.mxu3 %vm16476_vm0, %v6733_v10  ;;  %10080 = vmatmul.msk.bf16.gmra.mxu1 %vm16478_vm4, %v10445_v9  ;;  %v7230_v23 = vshll.u32 %v7154_v49, 16  ;;  %v6223_v28 = vunpack.c.l.b16 %v5930_v41  ;;  %v6566_v11 = vld [vmem:[#allocation2 + $0x34] sm:$0xf]  ;;  %vm16483_vm0 = vmmov %vm16475_vm13  ;;  %v6222_v15 = vunpack.c.l.b16 %v5929_v45 }
 0x306   : > { %10136 = vmatmul.msk.bf16.gmra.mxu0 %vm16479_vm9, %v7225_v2  ;;  %v6738_v37 = vshll.u32 %v13645_v34, 16  ;;  %vm16485_vm9 = vnez %v16484_v57  ;;  %v6734_v41 = vshrl.u32 %v13585_v62, 16  ;;  %vm16489_vm4 = vnez %v16488_v32  ;;  %v16522_v57 = vld [vmem:[#allocation13_spill] sm:$0xff] }
 0x307   : > { %v5775_v54 = vadd.f32 %v13582_v63, %v5739_v25  ;;  %v13657_v25 = vor.u32 %v6310_v40, %v6307_v17  ;;  %v7063_v22 = vsel %vm16485_vm9, %v7030_v1, 0  ;;  %vm16492_vm12 = vnez %v16491_v31  ;;  %v16507_v31 = vld [vmem:[#allocation56_spill] sm:$0xff] }
 0x308   : > { %v5196_v46 = vpop.f32.mrf.mxu3  ;;  %vm16495_vm5 = vcmask 130048  }
 0x309   : > { %v5807_v33 = vmax.f32 %v5775_v54, 0.0  ;;  %v5246_v16 = vadd.f32 %v5196_v46, %v4989_v14  ;;  %v16482_v14 = vld [vmem:[#allocation60_spill] sm:$0xff]  ;;  %v7229_v46 = vrot.slane %v7227_v24, 3  ;;  %v6312_v24 = vsel %vm16477_vm8, %v13597_v30, %v13657_v25 }
 0x30a   : > { %v13650_v2 = vpop.f32.mrf.mxu1  ;;  %v4512_v49 = vadd.f32 %v16482_v14, %v16481_v8  ;;  %v13670_v8 = vrot.slane %v6738_v37, 1  ;;  %v7131_v37 = vunpack.c.l.b16 %v7063_v22  ;;  %vm16493_vm8 = vsmask.f32 7424 }
 0x30b   : > { %v5839_v10 = vpack.c.bf16 %v5807_v33, %v5807_v33  ;;  %v5704_v9 = vadd.f32 %v13446_v7, %v5246_v16  ;;  %v13663_v54 = vpop.f32.mrf.mxu0  ;;  %v7232_v33 = vrot.slane %v7230_v23, 4  ;;  %v7029_v16 = vld [vmem:[#allocation2 + $0x4c] sm:$0xf]  ;;  %v6249_v23 = vpack.c.b16 %v6223_v28, %v6222_v15 }
 0x30c   : > { %v13655_v52 = vpop.f32.mrf.mxu2  ;;  %v4990_v17 = vadd.f32 %v13595_v43, %v4512_v49  ;;  %v7062_v1 = vsel %vm16489_vm4, %v7029_v16, 0 }
 0x30d   : > { %5871 = vst.msk [vmem:[#allocation2 + $0x5c] sm:$0xf] %vm16483_vm0, %v5839_v10  ;;  %v5740_v7 = vmul.f32 %v13566_v50, %v5704_v9  ;;  %v6565_v10 = vld [vmem:[#allocation2 + $0x30] sm:$0xf]  ;;  %v16486_v9 = vld [vmem:[#allocation54_spill] sm:$0xff]  ;;  %vm16490_vm0 = vcmask 130048   ;;  %v13680_v62 = vor.u32 %v7232_v33, %v7229_v46 }
 0x30e   : > { %vm16487_vm13 = vnez %v16486_v9  ;;  %v6598_v4 = vsel %vm16492_vm12, %v6565_v10, 0  ;;  %v7130_v9 = vunpack.c.l.b16 %v7062_v1  ;;  %v6314_v33 = vshrl.u32 %v6249_v23, 16  ;;  %v5899_v10 = vld [vmem:[#allocation2 + $0x40] sm:$0xf] }
 0x30f   : > { %v5776_v40 = vadd.f32 %v13582_v63, %v5740_v7  ;;  %v6599_v45 = vsel %vm16487_vm13, %v6566_v11, 0  ;;  %v6736_v7 = vor.u32 %v6734_v41, %v13610_v48  ;;  %v6317_v22 = vshll.u32 %v6249_v23, 16  ;;  %vm16498_vm13 = vmmov %vm16495_vm5 }
 0x310   : > { %v5198_v14 = vpop.f32.mrf.mxu3  ;;  %v6667_v11 = vunpack.c.l.b16 %v6599_v45  ;;  %vm16496_vm12 = vsmask.f32 4352 }
 0x311   : > { %v5808_v43 = vmax.f32 %v5776_v40, 0.0  ;;  %v5247_v49 = vadd.f32 %v5198_v14, %v4990_v17  ;;  %10095 = vmatmul.msk.bf16.gmra.mxu2 %vm16490_vm0, %v6312_v24  ;;  %v6741_v16 = vsel %vm16493_vm8, %v6736_v7, %v13670_v8  ;;  %vm16494_vm0 = vcmask 125952   ;;  %vm16497_vm8 = vmmov %vm16495_vm5  ;;  %v16499_v24 = vld [vmem:[#allocation99_spill] sm:$0xff]  ;;  %v5898_v7 = vld [vmem:[#allocation2 + $0x3c] sm:$0xf] }
 0x312   : > { %v13686_v15 = vpop.f32.mrf.mxu1  ;;  %v6666_v40 = vunpack.c.l.b16 %v6598_v4  ;;  %v7234_v41 = vsel %vm16496_vm12, %v13620_v47, %v13680_v62  ;;  %v7155_v14 = vpack.c.b16 %v7131_v37, %v7130_v9  ;;  %v4991_v23 = vadd.f32 %v13630_v29, %v16499_v24  ;;  %v16500_v24 = vld [vmem:[#allocation67_spill] sm:$0xff] }
 0x313   : > { %v5840_v30 = vpack.c.bf16 %v5808_v43, %v5808_v43  ;;  %v5705_v28 = vadd.f32 %v13467_v56, %v5247_v49  ;;  %v13695_v56 = vpop.f32.mrf.mxu0  ;;  %v6316_v43 = vrot.slane %v6314_v33, 3  ;;  %v6319_v49 = vrot.slane %v6317_v22, 4  ;;  %v7032_v33 = vld [vmem:[#allocation2 + $0x58] sm:$0xf] }
 0x314   : > { %v13690_v17 = vpop.f32.mrf.mxu2  ;;  %v10446_v46 = vld [vmem:[#allocation2 + $0x58] sm:$0xff]  ;;  %v13705_v1 = vpack.c.b16 %v6667_v11, %v6666_v40  ;;  %v5932_v47 = vsel %vm16466_vm1, %v5899_v10, 0  ;;  %v7236_v37 = vshrl.u32 %v7155_v14, 16  ;;  %v5931_v11 = vsel %vm16470_vm7, %v5898_v7, 0 }
 0x315   : > { %5872 = vst.msk [vmem:[#allocation2 + $0x60] sm:$0xf] %vm16494_vm0, %v5840_v30  ;;  %v5741_v48 = vmul.f32 %v13566_v50, %v5705_v28  ;;  %10114 = vmatmul.msk.bf16.gmra.mxu3 %vm16495_vm5, %v6741_v16  ;;  %10081 = vmatmul.msk.bf16.gmra.mxu1 %vm16497_vm8, %v10446_v46  ;;  %v7239_v28 = vshll.u32 %v7155_v14, 16  ;;  %v6225_v40 = vunpack.c.l.b16 %v5932_v47  ;;  %v6568_v10 = vld [vmem:[#allocation2 + $0x3c] sm:$0xf]  ;;  %vm16502_vm5 = vmmov %vm16494_vm0  ;;  %v6224_v7 = vunpack.c.l.b16 %v5931_v11 }
 0x316   : > { %10137 = vmatmul.msk.bf16.gmra.mxu0 %vm16498_vm13, %v7234_v41  ;;  %v6746_v29 = vshll.u32 %v13705_v1, 16  ;;  %v7065_v38 = vsel %vm16301_vm15, %v7032_v33, 0  ;;  %v6742_v47 = vshrl.u32 %v13645_v34, 16  ;;  %vm16506_vm0 = vmmov %vm16497_vm8  ;;  %vm16508_vm8 = vnez %v16507_v31  ;;  %v16525_v31 = vld [vmem:[#allocation61_spill] sm:$0xff] }
 0x317   : > { %v5777_v45 = vadd.f32 %v13582_v63, %v5741_v48  ;;  %v13717_v48 = vor.u32 %v6319_v49, %v6316_v43  ;;  %vm16511_vm7 = vsmask.f32 4352  ;;  %vm16513_vm1 = vmmov %vm16506_vm0 }
 0x318   : > { %v5201_v4 = vpop.f32.mrf.mxu3 }
 0x319   : > { %v5809_v30 = vmax.f32 %v5777_v45, 0.0  ;;  %v5248_v9 = vadd.f32 %v5201_v4, %v4991_v23  ;;  %v16501_v23 = vld [vmem:[#allocation64_spill] sm:$0xff]  ;;  %v7238_v4 = vrot.slane %v7236_v37, 3  ;;  %v6321_v37 = vsel %vm16496_vm12, %v13657_v25, %v13717_v48 }
 0x31a   : > { %v13710_v41 = vpop.f32.mrf.mxu1  ;;  %v4514_v14 = vadd.f32 %v16501_v23, %v16500_v24  ;;  %v13730_v24 = vrot.slane %v6746_v29, 1  ;;  %v7133_v29 = vunpack.c.l.b16 %v7065_v38  ;;  %vm16510_vm12 = vcmask 125952  }
 0x31b   : > { %v5841_v16 = vpack.c.bf16 %v5809_v30, %v5809_v30  ;;  %v5706_v46 = vadd.f32 %v13505_v20, %v5248_v9  ;;  %v13723_v45 = vpop.f32.mrf.mxu0  ;;  %v7241_v30 = vrot.slane %v7239_v28, 4  ;;  %v7031_v9 = vld [vmem:[#allocation2 + $0x54] sm:$0xf]  ;;  %v6250_v28 = vpack.c.b16 %v6225_v40, %v6224_v7 }
 0x31c   : > { %v13715_v22 = vpop.f32.mrf.mxu2  ;;  %v4992_v43 = vadd.f32 %v13655_v52, %v4514_v14  ;;  %v7064_v33 = vsel %vm16299_vm2, %v7031_v9, 0 }
 0x31d   : > { %5873 = vst.msk [vmem:[#allocation2 + $0x64] sm:$0xf] %vm16502_vm5, %v5841_v16  ;;  %v5742_v20 = vmul.f32 %v13566_v50, %v5706_v46  ;;  %v6567_v16 = vld [vmem:[#allocation2 + $0x38] sm:$0xf]  ;;  %v13740_v34 = vor.u32 %v7241_v30, %v7238_v4  ;;  %vm16509_vm5 = vsmask.f32 7424 }
 0x31e   : > { %v16503_v46 = vld [vmem:[#allocation58_spill] sm:$0xff]  ;;  %v6600_v44 = vsel %vm16508_vm8, %v6567_v16, 0  ;;  %v6323_v30 = vshrl.u32 %v6250_v28, 16  ;;  %v6326_v38 = vshll.u32 %v6250_v28, 16  ;;  %v5901_v16 = vld [vmem:[#allocation2 + $0x48] sm:$0xf] }
 0x31f   : > { %v5778_v49 = vadd.f32 %v13582_v63, %v5742_v20  ;;  %vm16504_vm13 = vnez %v16503_v46  ;;  %v6744_v20 = vor.u32 %v6742_v47, %v13670_v8  ;;  %v7132_v46 = vunpack.c.l.b16 %v7064_v33 }
 0x320   : > { %v5203_v23 = vpop.f32.mrf.mxu3  ;;  %v6601_v11 = vsel %vm16504_vm13, %v6568_v10, 0  ;;  %v7243_v47 = vsel %vm16511_vm7, %v13680_v62, %v13740_v34  ;;  %v5934_v62 = vsel %vm16485_vm9, %v5901_v16, 0  ;;  %v6570_v16 = vld [vmem:[#allocation2 + $0x44] sm:$0xf]  ;;  %vm16518_vm7 = vnez %v16316_v61  ;;  %v16556_v61 = vld [vmem:[#allocation69_spill] sm:$0xff] }
 0x321   : > { %v5810_v52 = vmax.f32 %v5778_v49, 0.0  ;;  %v5249_v14 = vadd.f32 %v5203_v23, %v4992_v43  ;;  %10096 = vmatmul.msk.bf16.gmra.mxu2 %vm16506_vm0, %v6321_v37  ;;  %v6669_v10 = vunpack.c.l.b16 %v6601_v11  ;;  %v6749_v9 = vsel %vm16509_vm5, %v6744_v20, %v13730_v24  ;;  %vm16512_vm5 = vmmov %vm16506_vm0  ;;  %v16514_v37 = vld [vmem:[#allocation100_spill] sm:$0xff]  ;;  %v5900_v20 = vld [vmem:[#allocation2 + $0x44] sm:$0xf] }
 0x322   : > { %v13746_v7 = vpop.f32.mrf.mxu1  ;;  %v6668_v49 = vunpack.c.l.b16 %v6600_v44  ;;  %v7156_v23 = vpack.c.b16 %v7133_v29, %v7132_v46  ;;  %v4993_v28 = vadd.f32 %v13690_v17, %v16514_v37  ;;  %v16515_v37 = vld [vmem:[#allocation71_spill] sm:$0xff]  ;;  %vm16529_vm9 = vcmask 130048  }
 0x323   : > { %v5842_v25 = vpack.c.bf16 %v5810_v52, %v5810_v52  ;;  %v5707_v40 = vadd.f32 %v13533_v5, %v5249_v14  ;;  %v13755_v5 = vpop.f32.mrf.mxu0  ;;  %v6325_v52 = vrot.slane %v6323_v30, 3  ;;  %v6328_v14 = vrot.slane %v6326_v38, 4  ;;  %v7034_v30 = vld [vmem:[#allocation2 + $0x60] sm:$0xf] }
 0x324   : > { %v13750_v43 = vpop.f32.mrf.mxu2  ;;  %v10447_v4 = vld [vmem:[#allocation2 + $0x60] sm:$0xff]  ;;  %v13765_v33 = vpack.c.b16 %v6669_v10, %v6668_v49  ;;  %v7245_v29 = vshrl.u32 %v7156_v23, 16  ;;  %v5933_v10 = vsel %vm16489_vm4, %v5900_v20, 0  ;;  %v6227_v49 = vunpack.c.l.b16 %v5934_v62 }
 0x325   : > { %5874 = vst.msk [vmem:[#allocation2 + $0x68] sm:$0xf] %vm16510_vm12, %v5842_v25  ;;  %v5743_v8 = vmul.f32 %v13566_v50, %v5707_v40  ;;  %10115 = vmatmul.msk.bf16.gmra.mxu3 %vm16506_vm0, %v6749_v9  ;;  %10082 = vmatmul.msk.bf16.gmra.mxu1 %vm16512_vm5, %v10447_v4  ;;  %v7248_v40 = vshll.u32 %v7156_v23, 16  ;;  %v6226_v20 = vunpack.c.l.b16 %v5933_v10  ;;  %v7067_v32 = vsel %vm16518_vm7, %v7034_v30, 0 }
 0x326   : > { %10138 = vmatmul.msk.bf16.gmra.mxu0 %vm16513_vm1, %v7243_v47  ;;  %v6754_v17 = vshll.u32 %v13765_v33, 16  ;;  %vm16517_vm1 = vmmov %vm16510_vm12  ;;  %v6750_v62 = vshrl.u32 %v13705_v1, 16  ;;  %vm16519_vm12 = vsmask.f32 4352  ;;  %vm16523_vm5 = vnez %v16522_v57 }
 0x327   : > { %v5779_v11 = vadd.f32 %v13582_v63, %v5743_v8  ;;  %v13777_v8 = vor.u32 %v6328_v14, %v6325_v52  ;;  %vm16526_vm4 = vnez %v16525_v31 }
 0x328   : > { %v5206_v44 = vpop.f32.mrf.mxu3 }
 0x329   : > { %v5811_v25 = vmax.f32 %v5779_v11, 0.0  ;;  %v5250_v46 = vadd.f32 %v5206_v44, %v4993_v28  ;;  %v16516_v28 = vld [vmem:[#allocation70_spill] sm:$0xff]  ;;  %v7247_v44 = vrot.slane %v7245_v29, 3  ;;  %v6330_v29 = vsel %vm16519_vm12, %v13717_v48, %v13777_v8 }
 0x32a   : > { %v13770_v47 = vpop.f32.mrf.mxu1  ;;  %v4516_v23 = vadd.f32 %v16516_v28, %v16515_v37  ;;  %v13790_v37 = vrot.slane %v6754_v17, 1  ;;  %v7135_v17 = vunpack.c.l.b16 %v7067_v32  ;;  %vm16527_vm12 = vsmask.f32 7424 }
 0x32b   : > { %v5843_v9 = vpack.c.bf16 %v5811_v25, %v5811_v25  ;;  %v5708_v4 = vadd.f32 %v13570_v6, %v5250_v46  ;;  %v13783_v11 = vpop.f32.mrf.mxu0  ;;  %v7250_v25 = vrot.slane %v7248_v40, 4  ;;  %v7033_v46 = vld [vmem:[#allocation2 + $0x5c] sm:$0xf]  ;;  %v6251_v40 = vpack.c.b16 %v6227_v49, %v6226_v20 }
 0x32c   : > { %v13775_v38 = vpop.f32.mrf.mxu2  ;;  %v4994_v52 = vadd.f32 %v13715_v22, %v4516_v23  ;;  %v7066_v30 = vsel %vm16523_vm5, %v7033_v46, 0 }
 0x32d   : > { %5875 = vst.msk [vmem:[#allocation2 + $0x6c] sm:$0xf] %vm16517_vm1, %v5843_v9  ;;  %v5744_v6 = vmul.f32 %v13566_v50, %v5708_v4  ;;  %v6569_v9 = vld [vmem:[#allocation2 + $0x40] sm:$0xf]  ;;  %v16520_v4 = vld [vmem:[#allocation62_spill] sm:$0xff]  ;;  %vm16524_vm1 = vcmask 130048   ;;  %v13800_v1 = vor.u32 %v7250_v25, %v7247_v44 }
 0x32e   : > { %vm16521_vm0 = vnez %v16520_v4  ;;  %v6602_v0 = vsel %vm16526_vm4, %v6569_v9, 0  ;;  %v7134_v4 = vunpack.c.l.b16 %v7066_v30  ;;  %v6332_v25 = vshrl.u32 %v6251_v40, 16  ;;  %v5903_v9 = vld [vmem:[#allocation2 + $0x50] sm:$0xf] }
 0x32f   : > { %v5780_v14 = vadd.f32 %v13582_v63, %v5744_v6  ;;  %v6603_v10 = vsel %vm16521_vm0, %v6570_v16, 0  ;;  %v6752_v6 = vor.u32 %v6750_v62, %v13730_v24  ;;  %v6335_v32 = vshll.u32 %v6251_v40, 16  ;;  %vm16532_vm0 = vmmov %vm16529_vm9 }
 0x330   : > { %v5208_v28 = vpop.f32.mrf.mxu3  ;;  %v6671_v16 = vunpack.c.l.b16 %v6603_v10  ;;  %vm16530_vm4 = vsmask.f32 4352 }
 0x331   : > { %v5812_v22 = vmax.f32 %v5780_v14, 0.0  ;;  %v5251_v23 = vadd.f32 %v5208_v28, %v4994_v52  ;;  %10097 = vmatmul.msk.bf16.gmra.mxu2 %vm16524_vm1, %v6330_v29  ;;  %v6757_v46 = vsel %vm16527_vm12, %v6752_v6, %v13790_v37  ;;  %vm16528_vm1 = vcmask 125952   ;;  %vm16531_vm12 = vmmov %vm16529_vm9  ;;  %v16533_v29 = vld [vmem:[#allocation101_spill] sm:$0xff]  ;;  %v5902_v6 = vld [vmem:[#allocation2 + $0x4c] sm:$0xf] }
 0x332   : > { %v13806_v20 = vpop.f32.mrf.mxu1  ;;  %v6670_v14 = vunpack.c.l.b16 %v6602_v0  ;;  %v7252_v62 = vsel %vm16530_vm4, %v13740_v34, %v13800_v1  ;;  %v7157_v28 = vpack.c.b16 %v7135_v17, %v7134_v4  ;;  %v4995_v40 = vadd.f32 %v13750_v43, %v16533_v29 }
 0x333   : > { %v5844_v48 = vpack.c.bf16 %v5812_v22, %v5812_v22  ;;  %v5709_v49 = vadd.f32 %v13603_v19, %v5251_v23  ;;  %v13815_v19 = vpop.f32.mrf.mxu0  ;;  %v6334_v22 = vrot.slane %v6332_v25, 3  ;;  %v6337_v23 = vrot.slane %v6335_v32, 4  ;;  %v16534_v32 = vld [vmem:[#allocation75_spill] sm:$0xff] }
 0x334   : > { %v13810_v52 = vpop.f32.mrf.mxu2  ;;  %v10448_v44 = vld [vmem:[#allocation2 + $0x68] sm:$0xff]  ;;  %v13825_v30 = vpack.c.b16 %v6671_v16, %v6670_v14  ;;  %v5936_v34 = vsel %vm16301_vm15, %v5903_v9, 0  ;;  %v7254_v17 = vshrl.u32 %v7157_v28, 16  ;;  %v5935_v25 = vsel %vm16299_vm2, %v5902_v6, 0 }
 0x335   : > { %5876 = vst.msk [vmem:[#allocation2 + $0x70] sm:$0xf] %vm16528_vm1, %v5844_v48  ;;  %v5745_v24 = vmul.f32 %v13566_v50, %v5709_v49  ;;  %10116 = vmatmul.msk.bf16.gmra.mxu3 %vm16529_vm9, %v6757_v46  ;;  %10083 = vmatmul.msk.bf16.gmra.mxu1 %vm16531_vm12, %v10448_v44  ;;  %v7257_v49 = vshll.u32 %v7157_v28, 16  ;;  %v7036_v46 = vld [vmem:[#allocation2 + $0x68] sm:$0xf]  ;;  %v13839_v9 = vor.u32 %v6337_v23, %v6334_v22  ;;  %vm16536_vm9 = vmmov %vm16528_vm1  ;;  %vm16538_vm4 = vnez %v16329_v18 }
 0x336   : > { %10139 = vmatmul.msk.bf16.gmra.mxu0 %vm16532_vm0, %v7252_v62  ;;  %v6762_v16 = vshll.u32 %v13825_v30, 16  ;;  %v6572_v28 = vld [vmem:[#allocation2 + $0x4c] sm:$0xf]  ;;  %v7069_v6 = vsel %vm16538_vm4, %v7036_v46, 0  ;;  %vm16539_vm0 = vnez %v16327_v27  ;;  %vm16540_vm1 = vsmask.f32 4352 }
 0x337   : > { %v5781_v10 = vadd.f32 %v13582_v63, %v5745_v24  ;;  %v16535_v24 = vld [vmem:[#allocation74_spill] sm:$0xff]  ;;  %vm16548_vm15 = vcmask 130048  }
 0x338   : > { %v5211_v0 = vpop.f32.mrf.mxu3  ;;  %v4518_v14 = vadd.f32 %v16535_v24, %v16534_v32  ;;  %v6758_v32 = vshrl.u32 %v13765_v33, 16  ;;  %v6228_v24 = vunpack.c.l.b16 %v5935_v25  ;;  %v16541_v46 = vld [vmem:[#allocation66_spill] sm:$0xff]  ;;  %v7137_v25 = vunpack.c.l.b16 %v7069_v6 }
 0x339   : > { %v5813_v48 = vmax.f32 %v5781_v10, 0.0  ;;  %v5252_v4 = vadd.f32 %v5211_v0, %v4995_v40  ;;  %v6229_v40 = vunpack.c.l.b16 %v5936_v34  ;;  %v7035_v10 = vld [vmem:[#allocation2 + $0x64] sm:$0xf]  ;;  %v13850_v34 = vrot.slane %v6762_v16, 1 }
 0x33a   : > { %v13830_v43 = vpop.f32.mrf.mxu1  ;;  %v4996_v22 = vadd.f32 %v13775_v38, %v4518_v14  ;;  %vm16542_vm12 = vnez %v16541_v46  ;;  %v6760_v14 = vor.u32 %v6758_v32, %v13790_v37  ;;  %v5905_v32 = vld [vmem:[#allocation2 + $0x58] sm:$0xf] }
 0x33b   : > { %v5845_v44 = vpack.c.bf16 %v5813_v48, %v5813_v48  ;;  %v5710_v62 = vadd.f32 %v13635_v35, %v5252_v4  ;;  %v13843_v0 = vpop.f32.mrf.mxu0  ;;  %v7256_v48 = vrot.slane %v7254_v17, 3  ;;  %v7259_v4 = vrot.slane %v7257_v49, 4 }
 0x33c   : > { %v13837_v29 = vpop.f32.mrf.mxu2  ;;  %16537 = vst [vmem:[#allocation50_spill] sm:$0xff] %v13843_v0  ;;  %v6339_v17 = vsel %vm16540_vm1, %v13777_v8, %v13839_v9  ;;  %v6252_v49 = vpack.c.b16 %v6229_v40, %v6228_v24  ;;  %v6605_v33 = vsel %vm16542_vm12, %v6572_v28, 0  ;;  %vm16546_vm1 = vsmask.f32 7424 }
 0x33d   : > { %5877 = vst.msk [vmem:[#allocation2 + $0x74] sm:$0xf] %vm16536_vm9, %v5845_v44  ;;  %v5746_v35 = vmul.f32 %v13566_v50, %v5710_v62  ;;  %v7068_v44 = vsel %vm16539_vm0, %v7035_v10, 0  ;;  %vm16543_vm9 = vcmask 130048   ;;  %v13860_v16 = vor.u32 %v7259_v4, %v7256_v48 }
 0x33e   : > { %v7136_v31 = vunpack.c.l.b16 %v7068_v44  ;;  %v6673_v24 = vunpack.c.l.b16 %v6605_v33  ;;  %v6765_v28 = vsel %vm16546_vm1, %v6760_v14, %v13850_v34  ;;  %v6341_v48 = vshrl.u32 %v6252_v49, 16  ;;  %vm16550_vm1 = vmmov %vm16548_vm15  ;;  %v5904_v33 = vld [vmem:[#allocation2 + $0x54] sm:$0xf] }
 0x33f   : > { %v5782_v23 = vadd.f32 %v13582_v63, %v5746_v35  ;;  %v16544_v35 = vld [vmem:[#allocation65_spill] sm:$0xff]  ;;  %v6344_v4 = vshll.u32 %v6252_v49, 16  ;;  %vm16551_vm12 = vmmov %vm16550_vm1 }
 0x340   : > { %v5213_v62 = vpop.f32.mrf.mxu3  ;;  %vm16545_vm2 = vnez %v16544_v35 }
 0x341   : > { %v5814_v26 = vmax.f32 %v5782_v23, 0.0  ;;  %v5253_v38 = vadd.f32 %v5213_v62, %v4996_v22  ;;  %10098 = vmatmul.msk.bf16.gmra.mxu2 %vm16543_vm9, %v6339_v17  ;;  %v6604_v10 = vsel %vm16545_vm2, %v6571_v59, 0  ;;  %v7158_v23 = vpack.c.b16 %v7137_v25, %v7136_v31 }
 0x342   : > { %v13866_v40 = vpop.f32.mrf.mxu1  ;;  %vm16547_vm9 = vcmask 125952   ;;  %vm16549_vm2 = vsmask.f32 4352  ;;  %v4997_v31 = vadd.f32 %v13810_v52, %v13114_v36  ;;  %v6343_v17 = vrot.slane %v6341_v48, 3 }
 0x343   : > { %v5846_v0 = vpack.c.bf16 %v5814_v26, %v5814_v26  ;;  %v5711_v8 = vadd.f32 %v13663_v54, %v5253_v38  ;;  %v6672_v26 = vunpack.c.l.b16 %v6604_v10  ;;  %v13875_v54 = vpop.f32.mrf.mxu0  ;;  %v7261_v37 = vsel %vm16549_vm2, %v13800_v1, %v13860_v16 }
 0x344   : > { %v13870_v6 = vpop.f32.mrf.mxu2  ;;  %v10449_v22 = vld [vmem:[#allocation2 + $0x70] sm:$0xff]  ;;  %v6346_v49 = vrot.slane %v6344_v4, 4  ;;  %v7263_v25 = vshrl.u32 %v7158_v23, 16  ;;  %v7266_v38 = vshll.u32 %v7158_v23, 16  ;;  %v5938_v10 = vsel %vm16518_vm7, %v5905_v32, 0  ;;  %v16552_v32 = vld [vmem:[#allocation79_spill] sm:$0xff] }
 0x345   : > { %5878 = vst.msk [vmem:[#allocation2 + $0x78] sm:$0xf] %vm16547_vm9, %v5846_v0  ;;  %v5747_v59 = vmul.f32 %v13566_v50, %v5711_v8  ;;  %10117 = vmatmul.msk.bf16.gmra.mxu3 %vm16548_vm15, %v6765_v28  ;;  %10084 = vmatmul.msk.bf16.gmra.mxu1 %vm16550_vm1, %v10449_v22  ;;  %v13885_v44 = vpack.c.b16 %v6673_v24, %v6672_v26  ;;  %v5937_v52 = vsel %vm16523_vm5, %v5904_v33, 0  ;;  %v7038_v24 = vld [vmem:[#allocation2 + $0x70] sm:$0xf]  ;;  %v6231_v23 = vunpack.c.l.b16 %v5938_v10  ;;  %vm16554_vm15 = vmmov %vm16547_vm9  ;;  %v10473_v33 = vld [vmem:[%s15290_s4 + $0x28] sm:$0xff] }
 0x346   : > { %10140 = vmatmul.msk.bf16.gmra.mxu0 %vm16551_vm12, %v7261_v37  ;;  %v13897_v4 = vor.u32 %v6346_v49, %v6343_v17  ;;  %v7265_v26 = vrot.slane %v7263_v25, 3  ;;  %v7268_v37 = vrot.slane %v7266_v38, 4  ;;  %v10490_v17 = vld [vmem:[%s15290_s4 + $0x30] sm:$0xff]  ;;  %v7037_v49 = vld [vmem:[#allocation2 + $0x6c] sm:$0xf]  ;;  %v6230_v25 = vunpack.c.l.b16 %v5937_v52  ;;  %8092 = vmatpush.bf16.msra.mxu2 %v10473_v33  ;;  %vm16559_vm9 = vmmov %vm16550_vm1 }
 0x347   : > { %v5783_v0 = vadd.f32 %v13582_v63, %v5747_v59  ;;  %v6770_v36 = vshll.u32 %v13885_v44, 16  ;;  %v6574_v59 = vld [vmem:[#allocation2 + $0x54] sm:$0xf]  ;;  %8570 = vmatpush.bf16.msra.mxu3 %v10490_v17  ;;  %vm16557_vm12 = vnez %v16556_v61  ;;  %v16560_v17 = vld [vmem:[#allocation68_spill] sm:$0xff]  ;;  %vm16564_vm5 = vsmask.f32 4352 }
 0x348   : > { %v5216_v62 = vpop.f32.mrf.mxu3  ;;  %v6348_v57 = vsel %vm16549_vm2, %v13839_v9, %v13897_v4  ;;  %v6253_v52 = vpack.c.b16 %v6231_v23, %v6230_v25  ;;  %vm16561_vm1 = vnez %v16560_v17  ;;  %vm16563_vm2 = vcmask 125952  }
 0x349   : > { %v5815_v14 = vmax.f32 %v5783_v0, 0.0  ;;  %v5254_v1 = vadd.f32 %v5216_v62, %v4997_v31  ;;  %v16553_v31 = vld [vmem:[#allocation78_spill] sm:$0xff]  ;;  %vm16580_vm7 = vsmask.f32 4352 }
 0x34a   : > { %v13890_v22 = vpop.f32.mrf.mxu1  ;;  %v4520_v0 = vadd.f32 %v16553_v31, %v16552_v32  ;;  %v6573_v32 = vld [vmem:[#allocation2 + $0x50] sm:$0xf] }
 0x34b   : > { %v5847_v8 = vpack.c.bf16 %v5815_v14, %v5815_v14  ;;  %v5712_v28 = vadd.f32 %v13695_v56, %v5254_v1  ;;  %v13903_v62 = vpop.f32.mrf.mxu0  ;;  %v7071_v14 = vsel %vm16340_vm11, %v7038_v24, 0  ;;  %v6607_v24 = vsel %vm16557_vm12, %v6574_v59, 0 }
 0x34c   : > { %v13895_v48 = vpop.f32.mrf.mxu2  ;;  %v4998_v1 = vadd.f32 %v13837_v29, %v4520_v0  ;;  %v7070_v29 = vsel %vm16338_vm3, %v7037_v49, 0  ;;  %v6606_v46 = vsel %vm16561_vm1, %v6573_v32, 0  ;;  %v6675_v59 = vunpack.c.l.b16 %v6607_v24  ;;  %v10491_v32 = vld [vmem:[%s15290_s4 + $0x38] sm:$0xff] }
 0x34d   : > { %5879 = vst.msk [vmem:[#allocation2 + $0x7c] sm:$0xf] %vm16554_vm15, %v5847_v8  ;;  %v5748_v56 = vmul.f32 %v13566_v50, %v5712_v28  ;;  %v6766_v8 = vshrl.u32 %v13825_v30, 16  ;;  %v13916_v28 = vrot.slane %v6770_v36, 1  ;;  %v13926_v30 = vor.u32 %v7268_v37, %v7265_v26  ;;  %8827 = vmatpush.bf16.msra.mxu0 %v10491_v32  ;;  %v6576_v32 = vld [vmem:[#allocation2 + $0x5c] sm:$0xf] }
 0x34e   : > { %v7139_v36 = vunpack.c.l.b16 %v7071_v14  ;;  %v7138_v61 = vunpack.c.l.b16 %v7070_v29  ;;  %vm16562_vm15 = vsmask.f32 7424  ;;  %v6350_v26 = vshrl.u32 %v6253_v52, 16 }
 0x34f   : > { %v5784_v10 = vadd.f32 %v13582_v63, %v5748_v56  ;;  %v6768_v33 = vor.u32 %v6766_v8, %v13850_v34  ;;  %v6353_v37 = vshll.u32 %v6253_v52, 16  ;;  %v6674_v14 = vunpack.c.l.b16 %v6606_v46  ;;  %v5907_v8 = vld [vmem:[#allocation2 + $0x60] sm:$0xf]  ;;  %v16567_v52 = vld [vmem:[#allocation102_spill] sm:$0xff] }
 0x350   : > { %v5218_v31 = vpop.f32.mrf.mxu3  ;;  %v10492_v46 = vld [vmem:[%s15290_s4 + $0x40] sm:$0xff]  ;;  %v4999_v24 = vadd.f32 %v13870_v6, %v16567_v52 }
 0x351   : > { %v5816_v0 = vmax.f32 %v5784_v10, 0.0  ;;  %v5255_v56 = vadd.f32 %v5218_v31, %v4998_v1  ;;  %10099 = vmatmul.msk.bf16.gmra.mxu2 %vm16559_vm9, %v6348_v57  ;;  %v6773_v49 = vsel %vm16562_vm15, %v6768_v33, %v13916_v28  ;;  %v7270_v10 = vsel %vm16564_vm5, %v13860_v16, %v13926_v30  ;;  %vm16565_vm15 = vmmov %vm16559_vm9  ;;  %9285 = vmatpush.bf16.msra.mxu1 %v10492_v46  ;;  %v16568_v46 = vld [vmem:[#allocation103_spill] sm:$0xff] }
 0x352   : > { %v13932_v25 = vpop.f32.mrf.mxu1  ;;  %v7159_v31 = vpack.c.b16 %v7139_v36, %v7138_v61  ;;  %v13957_v16 = vpack.c.b16 %v6675_v59, %v6674_v14  ;;  %v6355_v33 = vrot.slane %v6353_v37, 4  ;;  %v5906_v61 = vld [vmem:[#allocation2 + $0x5c] sm:$0xf]  ;;  %v5940_v36 = vsel %vm16538_vm4, %v5907_v8, 0  ;;  %v7040_v37 = vld [vmem:[#allocation2 + $0x78] sm:$0xf] }
 0x353   : > { %v5848_v9 = vpack.c.bf16 %v5816_v0, %v5816_v0  ;;  %v5713_v23 = vadd.f32 %v13723_v45, %v5255_v56  ;;  %v13941_v45 = vpop.f32.mrf.mxu0  ;;  %v6352_v56 = vrot.slane %v6350_v26, 3  ;;  %v5939_v26 = vsel %vm16539_vm0, %v5906_v61, 0 }
 0x354   : > { %v10450_v1 = vld [vmem:[#allocation2 + $0x78] sm:$0xff]  ;;  %v13936_v57 = vpop.f32.mrf.mxu2  ;;  %v6778_v59 = vshll.u32 %v13957_v16, 16  ;;  %v6233_v8 = vunpack.c.l.b16 %v5940_v36  ;;  %vm16569_vm5 = vcmask 125952   ;;  %v6232_v61 = vunpack.c.l.b16 %v5939_v26 }
 0x355   : > { %5880 = vst.msk [vmem:[#allocation2 + $0x80] sm:$0xf] %vm16563_vm2, %v5848_v9  ;;  %v5749_v34 = vmul.f32 %v13566_v50, %v5713_v23  ;;  %10118 = vmatmul.msk.bf16.gmra.mxu3 %vm16559_vm9, %v6773_v49  ;;  %10085 = vmatmul.msk.bf16.gmra.mxu1 %vm16565_vm15, %v10450_v1  ;;  %vm16566_vm2 = vmmov %vm16559_vm9  ;;  %v7272_v49 = vshrl.u32 %v7159_v31, 16  ;;  %v7275_v1 = vshll.u32 %v7159_v31, 16  ;;  %v13969_v14 = vor.u32 %v6355_v33, %v6352_v56 }
 0x356   : > { %10141 = vmatmul.msk.bf16.gmra.mxu0 %vm16566_vm2, %v7270_v10  ;;  %v4522_v31 = vadd.f32 %v13519_v42, %v16568_v46  ;;  %v6774_v36 = vshrl.u32 %v13885_v44, 16  ;;  %v13982_v42 = vrot.slane %v6778_v59, 1  ;;  %vm16570_vm9 = vsmask.f32 4352  ;;  %v16571_v46 = vld [vmem:[#allocation73_spill] sm:$0xff] }
 0x357   : > { %v5785_v29 = vadd.f32 %v13582_v63, %v5749_v34  ;;  %vm16572_vm15 = vnez %v16571_v46  ;;  %vm16573_vm2 = vnez %v16098_v55  ;;  %vm16577_vm0 = vsmask.f32 7424  ;;  %v6583_v46 = vld [vmem:[#allocation2 + $0x78] sm:$0xf] }
 0x358   : > { %v5221_v0 = vpop.f32.mrf.mxu3  ;;  %v5000_v56 = vadd.f32 %v13895_v48, %v4522_v31  ;;  %v6609_v26 = vsel %vm16572_vm15, %v6576_v32, 0  ;;  %vm16579_vm4 = vcmask 130048  }
 0x359   : > { %v5817_v9 = vmax.f32 %v5785_v29, 0.0  ;;  %v5256_v23 = vadd.f32 %v5221_v0, %v4999_v24  ;;  %v7274_v29 = vrot.slane %v7272_v49, 3  ;;  %v7277_v0 = vrot.slane %v7275_v1, 4  ;;  %v6575_v1 = vld [vmem:[#allocation2 + $0x58] sm:$0xf] }
 0x35a   : > { %v13962_v52 = vpop.f32.mrf.mxu1  ;;  %v6254_v49 = vpack.c.b16 %v6233_v8, %v6232_v61  ;;  %v16575_v61 = vld [vmem:[#allocation72_spill] sm:$0xff] }
 0x35b   : > { %v5849_v10 = vpack.c.bf16 %v5817_v9, %v5817_v9  ;;  %v5714_v6 = vadd.f32 %v13755_v5, %v5256_v23  ;;  %v13975_v24 = vpop.f32.mrf.mxu0  ;;  %v7039_v9 = vld [vmem:[#allocation2 + $0x74] sm:$0xf]  ;;  %v7073_v23 = vsel %vm16350_vm10, %v7040_v37, 0  ;;  %v13992_v44 = vor.u32 %v7277_v0, %v7274_v29 }
 0x35c   : > { %v13967_v34 = vpop.f32.mrf.mxu2  ;;  %v7072_v37 = vsel %vm16573_vm2, %v7039_v9, 0  ;;  %v7141_v59 = vunpack.c.l.b16 %v7073_v23  ;;  %v6359_v29 = vshrl.u32 %v6254_v49, 16  ;;  %v6362_v0 = vshll.u32 %v6254_v49, 16 }
 0x35d   : > { %5881 = vst.msk [vmem:[#allocation2 + $0x84] sm:$0xf] %vm16569_vm5, %v5849_v10  ;;  %v5750_v5 = vmul.f32 %v13566_v50, %v5714_v6  ;;  %v6357_v6 = vsel %vm16570_vm9, %v13897_v4, %v13969_v14  ;;  %vm16574_vm5 = vcmask 130048   ;;  %vm16576_vm9 = vnez %v16575_v61 }
 0x35e   : > { %v6608_v32 = vsel %vm16576_vm9, %v6575_v1, 0  ;;  %v7140_v18 = vunpack.c.l.b16 %v7072_v37  ;;  %v6677_v23 = vunpack.c.l.b16 %v6609_v26  ;;  %v6361_v26 = vrot.slane %v6359_v29, 3 }
 0x35f   : > { %v5786_v33 = vadd.f32 %v13582_v63, %v5750_v5  ;;  %v6776_v5 = vor.u32 %v6774_v36, %v13916_v28  ;;  %v7279_v36 = vsel %vm16580_vm7, %v13926_v30, %v13992_v44  ;;  %v6676_v1 = vunpack.c.l.b16 %v6608_v32 }
 0x360   : > { %v5223_v10 = vpop.f32.mrf.mxu3  ;;  %v6364_v37 = vrot.slane %v6362_v0, 4 }
 0x361   : > { %v5818_v48 = vmax.f32 %v5786_v33, 0.0  ;;  %v5257_v31 = vadd.f32 %v5223_v10, %v5000_v56  ;;  %10100 = vmatmul.msk.bf16.gmra.mxu2 %vm16574_vm5, %v6357_v6  ;;  %v6781_v9 = vsel %vm16577_vm0, %v6776_v5, %v13982_v42  ;;  %vm16578_vm5 = vcmask 125952   ;;  %v5909_v10 = vld [vmem:[#allocation2 + $0x68] sm:$0xf]  ;;  %vm16581_vm0 = vmmov %vm16579_vm4 }
 0x362   : > { %v13996_v8 = vpop.f32.mrf.mxu1  ;;  %v7160_v6 = vpack.c.b16 %v7141_v59, %v7140_v18  ;;  %vm16582_vm9 = vmmov %vm16581_vm0  ;;  %v5942_v30 = vsel %vm16340_vm11, %v5909_v10, 0  ;;  %v7041_v10 = vld [vmem:[#allocation2 + $0x7c] sm:$0xf]  ;;  %vm16592_vm11 = vsmask.f32 4352 }
 0x363   : > { %v5850_v27 = vpack.c.bf16 %v5818_v48, %v5818_v48  ;;  %v5715_v4 = vadd.f32 %v13783_v11, %v5257_v31  ;;  %v14007_v11 = vpop.f32.mrf.mxu0  ;;  %v14017_v48 = vpack.c.b16 %v6677_v23, %v6676_v1  ;;  %v5908_v31 = vld [vmem:[#allocation2 + $0x64] sm:$0xf]  ;;  %v6235_v0 = vunpack.c.l.b16 %v5942_v30  ;;  %vm16583_vm7 = vmmov %vm16578_vm5 }
 0x364   : > { %v10451_v56 = vld [vmem:[#allocation2 + $0x80] sm:$0xff]  ;;  %v14002_v33 = vpop.f32.mrf.mxu2  ;;  %v7281_v5 = vshrl.u32 %v7160_v6, 16 }
 0x365   : > { %5882 = vst.msk [vmem:[#allocation2 + $0x88] sm:$0xf] %vm16578_vm5, %v5850_v27  ;;  %v5751_v28 = vmul.f32 %v13566_v50, %v5715_v4  ;;  %10119 = vmatmul.msk.bf16.gmra.mxu3 %vm16579_vm4, %v6781_v9  ;;  %10086 = vmatmul.msk.bf16.gmra.mxu1 %vm16581_vm0, %v10451_v56  ;;  %v6476_v27 = vadd.f32 %v13936_v57, %v13549_v13  ;;  %v7284_v4 = vshll.u32 %v7160_v6, 16  ;;  %v5941_v13 = vsel %vm16338_vm3, %v5908_v31, 0  ;;  %v6578_v1 = vld [vmem:[#allocation2 + $0x64] sm:$0xf] }
 0x366   : > { %10142 = vmatmul.msk.bf16.gmra.mxu0 %vm16582_vm9, %v7279_v36  ;;  %v14029_v56 = vor.u32 %v6364_v37, %v6361_v26  ;;  %v6786_v29 = vshll.u32 %v14017_v48, 16  ;;  %v6234_v6 = vunpack.c.l.b16 %v5941_v13  ;;  %vm16584_vm4 = vnez %v16125_v21 }
 0x367   : > { %v5787_v50 = vadd.f32 %v13582_v63, %v5751_v28  ;;  %v7042_v63 = vld [vmem:[#allocation2 + $0x80] sm:$0xf]  ;;  %v7283_v28 = vrot.slane %v7281_v5, 3  ;;  %v7286_v36 = vrot.slane %v7284_v4, 4  ;;  %vm16585_vm9 = vsmask.f32 4352 }
 0x368   : > { %v6901_v49 = vpop.f32.mrf.mxu3  ;;  %v6366_v37 = vsel %vm16585_vm9, %v13969_v14, %v14029_v56  ;;  %v14043_v31 = vrot.slane %v6786_v29, 1  ;;  %v6255_v30 = vpack.c.b16 %v6235_v0, %v6234_v6  ;;  %vm16586_vm5 = vnez %v16123_v60 }
 0x369   : > { %v5819_v18 = vmax.f32 %v5787_v50, 0.0  ;;  %v14021_v59 = vadd.f32 %v6901_v49, %v6476_v27  ;;  %v7075_v27 = vsel %vm16584_vm4, %v7042_v63, 0  ;;  %v6478_v50 = vadd.f32 %v13967_v34, %v13589_v51  ;;  %v16589_v63 = vld [vmem:[#allocation76_spill] sm:$0xff] }
 0x36a   : > { %v14023_v9 = vpop.f32.mrf.mxu1  ;;  %v6782_v49 = vshrl.u32 %v13957_v16, 16  ;;  %v7074_v5 = vsel %vm16586_vm5, %v7041_v10, 0  ;;  %v14052_v16 = vor.u32 %v7286_v36, %v7283_v28  ;;  %v7143_v34 = vunpack.c.l.b16 %v7075_v27 }
 0x36b   : > { %v5851_v32 = vpack.c.bf16 %v5819_v18, %v5819_v18  ;;  %v14033_v23 = vpop.f32.mrf.mxu0  ;;  %v6577_v18 = vld [vmem:[#allocation2 + $0x60] sm:$0xf]  ;;  %vm16590_vm9 = vnez %v16589_v63  ;;  %v7142_v0 = vunpack.c.l.b16 %v7074_v5  ;;  %vm16591_vm3 = vsmask.f32 7424 }
 0x36c   : > { %v14027_v57 = vpop.f32.mrf.mxu2  ;;  %v6784_v13 = vor.u32 %v6782_v49, %v13982_v42  ;;  %v6610_v29 = vsel %vm16590_vm9, %v6577_v18, 0  ;;  %v7288_v42 = vsel %vm16592_vm11, %v13992_v44, %v14052_v16  ;;  %vm16593_vm9 = vmmov %vm16581_vm0  ;;  %v5911_v49 = vld [vmem:[#allocation2 + $0x70] sm:$0xf]  ;;  %v6481_v18 = vadd.f32 %v14002_v33, %v13626_v3 }
 0x36d   : > { %5883 = vst.msk [vmem:[#allocation2 + $0x8c] sm:$0xf] %vm16583_vm7, %v5851_v32  ;;  %v16587_v32 = vld [vmem:[#allocation77_spill] sm:$0xff]  ;;  %v7161_v36 = vpack.c.b16 %v7143_v34, %v7142_v0  ;;  %v6678_v27 = vunpack.c.l.b16 %v6610_v29  ;;  %v5944_v44 = vsel %vm16350_vm10, %v5911_v49, 0  ;;  %v6790_v55 = vshrl.u32 %v14017_v48, 16 }
 0x36e   : > { %vm16588_vm7 = vnez %v16587_v32  ;;  %v6789_v10 = vsel %vm16591_vm3, %v6784_v13, %v14043_v31  ;;  %vm16595_vm3 = vnez %v16364_v12  ;;  %vm16603_vm10 = vsmask.f32 4352 }
 0x36f   : > { %v6611_v51 = vsel %vm16588_vm7, %v6578_v1, 0  ;;  %vm16594_vm7 = vmmov %vm16581_vm0  ;;  %v7290_v34 = vshrl.u32 %v7161_v36, 16  ;;  %v7293_v0 = vshll.u32 %v7161_v36, 16  ;;  %v6580_v36 = vld [vmem:[#allocation2 + $0x6c] sm:$0xf]  ;;  %v6792_v63 = vor.u32 %v6790_v55, %v14043_v31 }
 0x370   : > { %v6903_v26 = vpop.f32.mrf.mxu3  ;;  %v6679_v1 = vunpack.c.l.b16 %v6611_v51 }
 0x371   : > { %v14047_v4 = vadd.f32 %v6903_v26, %v6478_v50  ;;  %10101 = vmatmul.msk.bf16.gmra.mxu2 %vm16581_vm0, %v6366_v37  ;;  %v10455_v50 = vld [vmem:[#allocation2 + $0x10] sm:$0xff]  ;;  %v6368_v26 = vshrl.u32 %v6255_v30, 16  ;;  %v6371_v37 = vshll.u32 %v6255_v30, 16 }
 0x372   : > { %v14055_v14 = vpop.f32.mrf.mxu1  ;;  %v14073_v13 = vpack.c.b16 %v6679_v1, %v6678_v27  ;;  %v7292_v1 = vrot.slane %v7290_v34, 3  ;;  %v7295_v27 = vrot.slane %v7293_v0, 4  ;;  %v6579_v0 = vld [vmem:[#allocation2 + $0x68] sm:$0xf] }
 0x373   : > { %v14064_v28 = vpop.f32.mrf.mxu0  ;;  %v6370_v5 = vrot.slane %v6368_v26, 3  ;;  %v6373_v51 = vrot.slane %v6371_v37, 4  ;;  %v6237_v37 = vunpack.c.l.b16 %v5944_v44 }
 0x374   : > { %v14061_v6 = vpop.f32.mrf.mxu2  ;;  %v6794_v26 = vshll.u32 %v14073_v13, 16  ;;  %v6798_v60 = vshrl.u32 %v14073_v13, 16 }
 0x375   : > { %10120 = vmatmul.msk.bf16.gmra.mxu3 %vm16581_vm0, %v6789_v10  ;;  %10215 = vmatmul.msk.bf16.vlgmr.msrb.gmra.mxu1 %vm16593_vm9, %v10455_v50  ;;  %v5910_v10 = vld [vmem:[#allocation2 + $0x6c] sm:$0xf]  ;;  %v14085_v33 = vor.u32 %v6373_v51, %v6370_v5  ;;  %vm16597_vm9 = vmmov %vm16581_vm0 }
 0x376   : > { %10143 = vmatmul.msk.bf16.gmra.mxu0 %vm16594_vm7, %v7288_v42  ;;  %v5943_v50 = vsel %vm16573_vm2, %v5910_v10, 0  ;;  %v7044_v42 = vld [vmem:[#allocation2 + $0x88] sm:$0xf]  ;;  %v6483_v10 = vadd.f32 %v14027_v57, %v13650_v2  ;;  %v6796_v44 = vrot.slane %v6794_v26, 1  ;;  %vm16596_vm7 = vnez %v16144_v53 }
 0x377   : > { %v6236_v49 = vunpack.c.l.b16 %v5943_v50  ;;  %v7077_v58 = vsel %vm16595_vm3, %v7044_v42, 0  ;;  %v6375_v51 = vsel %vm16592_vm11, %v14029_v56, %v14085_v33  ;;  %v16598_v42 = vld [vmem:[#allocation80_spill] sm:$0xff]  ;;  %v14105_v57 = vor.u32 %v7295_v27, %v7292_v1  ;;  %v16600_v56 = vld [vmem:[#allocation47_spill] sm:$0xff]  ;;  %v5913_v1 = vld [vmem:[#allocation2 + $0x78] sm:$0xf] }
 0x378   : > { %v6906_v30 = vpop.f32.mrf.mxu3  ;;  %vm16599_vm0 = vnez %v16598_v42  ;;  %v7145_v48 = vunpack.c.l.b16 %v7077_v58  ;;  %vm16601_vm11 = vnez %v16600_v56  ;;  %vm16602_vm2 = vsmask.f32 7424  ;;  %v6581_v56 = vld [vmem:[#allocation2 + $0x70] sm:$0xf] }
 0x379   : > { %v14075_v35 = vadd.f32 %v6906_v30, %v6481_v18  ;;  %v7043_v18 = vld [vmem:[#allocation2 + $0x84] sm:$0xf]  ;;  %v6256_v34 = vpack.c.b16 %v6237_v37, %v6236_v49  ;;  %v6613_v2 = vsel %vm16599_vm0, %v6580_v36, 0  ;;  %v6612_v26 = vsel %vm16601_vm11, %v6579_v0, 0  ;;  %vm16604_vm0 = vmmov %vm16597_vm9 }
 0x37a   : > { %v14079_v29 = vpop.f32.mrf.mxu1  ;;  %v7076_v50 = vsel %vm16596_vm7, %v7043_v18, 0  ;;  %v6797_v18 = vsel %vm16602_vm2, %v6792_v63, %v6796_v44  ;;  %v6681_v42 = vunpack.c.l.b16 %v6613_v2  ;;  %v7297_v55 = vsel %vm16603_vm10, %v14052_v16, %v14105_v57  ;;  %vm16605_vm11 = vmmov %vm16604_vm0  ;;  %v5912_v2 = vld [vmem:[#allocation2 + $0x74] sm:$0xf] }
 0x37b   : > { %v14088_v30 = vpop.f32.mrf.mxu0  ;;  %v7144_v37 = vunpack.c.l.b16 %v7076_v50  ;;  %v6680_v31 = vunpack.c.l.b16 %v6612_v26  ;;  %v6486_v63 = vadd.f32 %v14061_v6, %v13686_v15  ;;  %v5946_v16 = vsel %vm16584_vm4, %v5913_v1, 0  ;;  %v7045_v6 = vld [vmem:[#allocation2 + $0x8c] sm:$0xf]  ;;  %vm16616_vm4 = vmmov %vm16604_vm0 }
 0x37c   : > { %v14083_v3 = vpop.f32.mrf.mxu2  ;;  %v5945_v15 = vsel %vm16586_vm5, %v5912_v2, 0  ;;  %vm16607_vm10 = vnez %v16171_v39  ;;  %vm16608_vm2 = vsmask.f32 4352  ;;  %v6800_v61 = vor.u32 %v6798_v60, %v6796_v44 }
 0x37d   : > { %v7162_v58 = vpack.c.b16 %v7145_v48, %v7144_v37  ;;  %v14123_v0 = vpack.c.b16 %v6681_v42, %v6680_v31  ;;  %v7078_v1 = vsel %vm16607_vm10, %v7045_v6, 0  ;;  %vm16615_vm5 = vsmask.f32 4352 }
 0x37e   : > { %v7146_v6 = vunpack.c.l.b16 %v7078_v1 }
 0x37f   : > { %v7299_v48 = vshrl.u32 %v7162_v58, 16  ;;  %v7302_v26 = vshll.u32 %v7162_v58, 16  ;;  %v6802_v42 = vshll.u32 %v14123_v0, 16  ;;  %v6488_v58 = vadd.f32 %v14083_v3, %v13710_v41 }
 0x380   : > { %v6908_v5 = vpop.f32.mrf.mxu3  ;;  %v7163_v60 = vpack.c.b16 %v7146_v6, %v7146_v6 }
 0x381   : > { %v14100_v38 = vadd.f32 %v6908_v5, %v6483_v10  ;;  %10102 = vmatmul.msk.bf16.gmra.mxu2 %vm16597_vm9, %v6375_v51  ;;  %v10456_v10 = vld [vmem:[#allocation2 + $0x18] sm:$0xff]  ;;  %v6377_v5 = vshrl.u32 %v6256_v34, 16  ;;  %v6380_v51 = vshll.u32 %v6256_v34, 16  ;;  %v7304_v31 = vrot.slane %v7302_v26, 4 }
 0x382   : > { %v14108_v32 = vpop.f32.mrf.mxu1  ;;  %v7308_v6 = vshrl.u32 %v7163_v60, 16 }
 0x383   : > { %v6379_v36 = vrot.slane %v6377_v5, 3  ;;  %v6382_v34 = vrot.slane %v6380_v51, 4  ;;  %v14125_v50 = vpop.f32.mrf.mxu0  ;;  %v6239_v51 = vunpack.c.l.b16 %v5946_v16 }
 0x384   : > { %v14113_v49 = vpop.f32.mrf.mxu2  ;;  %16606 = vst [vmem:[#allocation82_spill] sm:$0xff] %v14125_v50 }
 0x385   : > { %10121 = vmatmul.msk.bf16.gmra.mxu3 %vm16597_vm9, %v6797_v18  ;;  %10216 = vmatmul.msk.bf16.gmra.mxu1 %vm16604_vm0, %v10456_v10  ;;  %v6383_v5 = vor.u32 %v6382_v34, %v6379_v36  ;;  %v6804_v36 = vrot.slane %v6802_v42, 1 }
 0x386   : > { %10144 = vmatmul.msk.bf16.gmra.mxu0 %vm16605_vm11, %v7297_v55  ;;  %v7301_v55 = vrot.slane %v7299_v48, 3  ;;  %v16609_v48 = vld [vmem:[#allocation83_spill] sm:$0xff] }
 0x387   : > { %v6384_v2 = vsel %vm16608_vm2, %v14085_v33, %v6383_v5  ;;  %vm16610_vm11 = vnez %v16609_v48  ;;  %v16612_v33 = vld [vmem:[#allocation81_spill] sm:$0xff]  ;;  %vm16614_vm2 = vsmask.f32 7424  ;;  %v6806_v48 = vshrl.u32 %v14123_v0, 16 }
 0x388   : > { %v6911_v27 = vpop.f32.mrf.mxu3  ;;  %vm16613_vm9 = vnez %v16612_v33  ;;  %v6805_v42 = vsel %vm16614_vm2, %v6800_v61, %v6804_v36  ;;  %v6491_v61 = vadd.f32 %v14113_v49, %v13746_v7 }
 0x389   : > { %v14127_v18 = vadd.f32 %v6911_v27, %v6486_v63  ;;  %v6238_v63 = vunpack.c.l.b16 %v5945_v15  ;;  %v6582_v27 = vld [vmem:[#allocation2 + $0x74] sm:$0xf]  ;;  %v7305_v15 = vor.u32 %v7304_v31, %v7301_v55  ;;  %v6614_v13 = vsel %vm16613_vm9, %v6581_v56, 0  ;;  %v5915_v31 = vld [vmem:[#allocation2 + $0x80] sm:$0xf] }
 0x38a   : > { %v14131_v37 = vpop.f32.mrf.mxu1  ;;  %v6615_v26 = vsel %vm16610_vm11, %v6582_v27, 0  ;;  %v6682_v44 = vunpack.c.l.b16 %v6614_v13  ;;  %vm16617_vm11 = vmmov %vm16604_vm0  ;;  %vm16691_vm9 = vsmask.f32 7424 }
 0x38b   : > { %v6257_v34 = vpack.c.b16 %v6239_v51, %v6238_v63  ;;  %v14148_v41 = vpop.f32.mrf.mxu0  ;;  %v7306_v55 = vsel %vm16615_vm5, %v14105_v57, %v7305_v15  ;;  %v5948_v57 = vsel %vm16595_vm3, %v5915_v31, 0 }
 0x38c   : > { %v6492_v10 = vpop.f32.mrf.mxu2  ;;  %16611 = vst [vmem:[#allocation55_spill] sm:$0xff] %v14148_v41 }
 0x38d   : > { %v6386_v63 = vshrl.u32 %v6257_v34, 16  ;;  %v6493_v31 = vadd.f32 %v6492_v10, %v13770_v47  ;;  %v16623_v47 = vld [vmem:[#allocation84_spill] sm:$0xff] }
 0x38e   : > { %vm16624_vm2 = vnez %v16623_v47 }
 0x38f   : > { %v6388_v27 = vrot.slane %v6386_v63, 3  ;;  %v6616_v10 = vsel %vm16624_vm2, %v6583_v46, 0 }
 0x390   : > { %v6913_v21 = vpop.f32.mrf.mxu3 }
 0x391   : > { %v14143_v16 = vadd.f32 %v6913_v21, %v6488_v58  ;;  %10103 = vmatmul.msk.bf16.gmra.mxu2 %vm16604_vm0, %v6384_v2  ;;  %v10457_v21 = vld [vmem:[#allocation2 + $0x20] sm:$0xff]  ;;  %v6389_v58 = vshll.u32 %v6257_v34, 16  ;;  %v6683_v2 = vunpack.c.l.b16 %v6615_v26  ;;  %v5914_v26 = vld [vmem:[#allocation2 + $0x7c] sm:$0xf] }
 0x392   : > { %v14150_v3 = vpop.f32.mrf.mxu1 }
 0x393   : > { %v6391_v1 = vrot.slane %v6389_v58, 4  ;;  %v14162_v34 = vpack.c.b16 %v6683_v2, %v6682_v44  ;;  %v14173_v63 = vpop.f32.mrf.mxu0  ;;  %v6241_v58 = vunpack.c.l.b16 %v5948_v57  ;;  %v7310_v2 = vrot.slane %v7308_v6, 3 }
 0x394   : > { %v6495_v51 = vpop.f32.mrf.mxu2  ;;  %16618 = vst [vmem:[#allocation88_spill] sm:$0xff] %v14173_v63 }
 0x395   : > { %10122 = vmatmul.msk.bf16.gmra.mxu3 %vm16604_vm0, %v6805_v42  ;;  %10217 = vmatmul.msk.bf16.gmra.mxu1 %vm16616_vm4, %v10457_v21  ;;  %v7311_v21 = vshll.u32 %v7163_v60, 16  ;;  %v6392_v7 = vor.u32 %v6391_v1, %v6388_v27  ;;  %v6810_v49 = vshll.u32 %v14162_v34, 16  ;;  %vm16619_vm4 = vmmov %vm16615_vm5  ;;  %v16621_v1 = vld [vmem:[#allocation85_spill] sm:$0xff]  ;;  %v6496_v46 = vadd.f32 %v6495_v51, %v13806_v20 }
 0x396   : > { %10145 = vmatmul.msk.bf16.gmra.mxu0 %vm16617_vm11, %v7306_v55  ;;  %v5947_v55 = vsel %vm16596_vm7, %v5914_v26, 0  ;;  %vm16620_vm5 = vmmov %vm16604_vm0  ;;  %vm16622_vm11 = vnez %v16621_v1  ;;  %vm16625_vm0 = vsmask.f32 7424 }
 0x397   : > { %v7313_v44 = vrot.slane %v7311_v21, 4  ;;  %v6393_v60 = vsel %vm16619_vm4, %v6383_v5, %v6392_v7  ;;  %v6812_v53 = vrot.slane %v6810_v49, 1  ;;  %v6808_v21 = vor.u32 %v6806_v48, %v6804_v36  ;;  %v10458_v49 = vld [vmem:[#allocation2 + $0x28] sm:$0xff]  ;;  %vm16626_vm4 = vmmov %vm16620_vm5  ;;  %v5916_v48 = vld [vmem:[#allocation2 + $0x84] sm:$0xf] }
 0x398   : > { %v6916_v56 = vpop.f32.mrf.mxu3  ;;  %vm16628_vm3 = vmmov %vm16626_vm4  ;;  %v6684_v36 = vunpack.c.l.b16 %v6616_v10 }
 0x399   : > { %v14164_v42 = vadd.f32 %v6916_v56, %v6491_v61  ;;  %v6240_v61 = vunpack.c.l.b16 %v5947_v55  ;;  %v6584_v56 = vld [vmem:[#allocation2 + $0x7c] sm:$0xf]  ;;  %v7314_v6 = vor.u32 %v7313_v44, %v7310_v2  ;;  %v6813_v5 = vsel %vm16625_vm0, %v6808_v21, %v6812_v53  ;;  %vm16630_vm7 = vmmov %vm16628_vm3 }
 0x39a   : > { %v14168_v13 = vpop.f32.mrf.mxu1  ;;  %v6617_v57 = vsel %vm16622_vm11, %v6584_v56, 0 }
 0x39b   : > { %v6258_v26 = vpack.c.b16 %v6241_v58, %v6240_v61  ;;  %v14191_v2 = vpop.f32.mrf.mxu0 }
 0x39c   : > { %v6497_v33 = vpop.f32.mrf.mxu2  ;;  %16629 = vst [vmem:[#allocation90_spill] sm:$0xff] %v14191_v2 }
 0x39d   : > { %v6395_v58 = vshrl.u32 %v6258_v26, 16  ;;  %v6398_v61 = vshll.u32 %v6258_v26, 16  ;;  %v6498_v20 = vadd.f32 %v6497_v33, %v13830_v43  ;;  %v16636_v43 = vld [vmem:[#allocation86_spill] sm:$0xff] }
 0x39f   : > { %v6397_v56 = vrot.slane %v6395_v58, 3 }
 0x3a0   : > { %v6918_v12 = vpop.f32.mrf.mxu3 }
 0x3a1   : > { %v14178_v27 = vadd.f32 %v6918_v12, %v6493_v31  ;;  %10104 = vmatmul.msk.bf16.gmra.mxu2 %vm16620_vm5, %v6393_v60  ;;  %v6685_v12 = vunpack.c.l.b16 %v6617_v57  ;;  %vm16627_vm5 = vsmask.f32 4352  ;;  %v6400_v60 = vrot.slane %v6398_v61, 4 }
 0x3a2   : > { %v14183_v55 = vpop.f32.mrf.mxu1  ;;  %v7315_v31 = vsel %vm16627_vm5, %v7305_v15, %v7314_v6  ;;  %v5949_v15 = vsel %vm16607_vm10, %v5916_v48, 0  ;;  %v6814_v61 = vshrl.u32 %v14162_v34, 16  ;;  %v6585_v48 = vld [vmem:[#allocation2 + $0x80] sm:$0xf] }
 0x3a3   : > { %v14195_v21 = vpack.c.b16 %v6685_v12, %v6684_v36  ;;  %v14207_v36 = vpop.f32.mrf.mxu0 }
 0x3a4   : > { %v6500_v0 = vpop.f32.mrf.mxu2  ;;  %16632 = vst [vmem:[#allocation92_spill] sm:$0xff] %v14207_v36 }
 0x3a5   : > { %10123 = vmatmul.msk.bf16.gmra.mxu3 %vm16626_vm4, %v6813_v5  ;;  %10218 = vmatmul.msk.bf16.gmra.mxu1 %vm16628_vm3, %v10458_v49  ;;  %v6401_v5 = vor.u32 %v6400_v60, %v6397_v56  ;;  %v6818_v10 = vshll.u32 %v14195_v21, 16  ;;  %v6242_v49 = vunpack.c.l.b16 %v5949_v15  ;;  %vm16631_vm3 = vmmov %vm16627_vm5  ;;  %v16634_v56 = vld [vmem:[#allocation87_spill] sm:$0xff]  ;;  %v6816_v15 = vor.u32 %v6814_v61, %v6812_v53 }
 0x3a6   : > { %10146 = vmatmul.msk.bf16.gmra.mxu0 %vm16630_vm7, %v7315_v31  ;;  %v6586_v31 = vld [vmem:[#allocation2 + $0x84] sm:$0xf]  ;;  %vm16633_vm7 = vmmov %vm16626_vm4  ;;  %vm16635_vm0 = vnez %v16634_v56  ;;  %vm16637_vm4 = vnez %v16636_v43  ;;  %vm16638_vm5 = vsmask.f32 7424  ;;  %v6501_v53 = vadd.f32 %v6500_v0, %v13866_v40  ;;  %v7751_v56 = vld [vmem:[#allocation2 + $0x1c] sm:$0xf] }
 0x3a7   : > { %v6402_v58 = vsel %vm16631_vm3, %v6392_v7, %v6401_v5  ;;  %v6820_v12 = vrot.slane %v6818_v10, 1  ;;  %v6619_v60 = vsel %vm16635_vm0, %v6586_v31, 0  ;;  %v6618_v33 = vsel %vm16637_vm4, %v6585_v48, 0  ;;  %v10459_v10 = vld [vmem:[#allocation2 + $0x30] sm:$0xff]  ;;  %vm16639_vm3 = vmmov %vm16633_vm7  ;;  %v16646_v40 = vld [vmem:[#allocation39_spill] sm:$0xff] }
 0x3a8   : > { %v6921_v44 = vpop.f32.mrf.mxu3  ;;  %v6687_v1 = vunpack.c.l.b16 %v6619_v60  ;;  %v6686_v31 = vunpack.c.l.b16 %v6618_v33  ;;  %vm16641_vm10 = vmmov %vm16639_vm3  ;;  %vm16654_vm0 = vsmask.f32 7424 }
 0x3a9   : > { %v14197_v26 = vadd.f32 %v6921_v44, %v6496_v46  ;;  %v6259_v46 = vpack.c.b16 %v6242_v49, %v6242_v49  ;;  %v6821_v34 = vsel %vm16638_vm5, %v6816_v15, %v6820_v12 }
 0x3aa   : > { %v14201_v57 = vpop.f32.mrf.mxu1  ;;  %v14223_v43 = vpack.c.b16 %v6687_v1, %v6686_v31 }
 0x3ab   : > { %v6404_v47 = vshrl.u32 %v6259_v46, 16  ;;  %v6407_v49 = vshll.u32 %v6259_v46, 16  ;;  %v16648_v46 = vld [vmem:[#allocation38_spill] sm:$0xff] }
 0x3ac   : > { %v6502_v6 = vpop.f32.mrf.mxu2  ;;  %v6826_v31 = vshll.u32 %v14223_v43, 16  ;;  %vm16649_vm5 = vnez %v16648_v46  ;;  %v16660_v46 = vld [vmem:[#allocation42_spill] sm:$0xff] }
 0x3ad   : > { %v6406_v48 = vrot.slane %v6404_v47, 3  ;;  %v6409_v15 = vrot.slane %v6407_v49, 4  ;;  %v6503_v63 = vadd.f32 %v6502_v6, %v13890_v22 }
 0x3af   : > { %v6410_v49 = vor.u32 %v6409_v15, %v6406_v48  ;;  %v16652_v48 = vld [vmem:[#allocation89_spill] sm:$0xff] }
 0x3b0   : > { %v6923_v51 = vpop.f32.mrf.mxu3  ;;  %vm16653_vm4 = vnez %v16652_v48 }
 0x3b1   : > { %v14209_v44 = vadd.f32 %v6923_v51, %v6498_v20  ;;  %10105 = vmatmul.msk.bf16.gmra.mxu2 %vm16633_vm7, %v6402_v58  ;;  %v10474_v20 = vld [vmem:[#allocation2 + $0x18] sm:$0xff]  ;;  %v7749_v51 = vld [vmem:[#allocation2 + $0x14] sm:$0xf]  ;;  %vm16640_vm7 = vmmov %vm16639_vm3 }
 0x3b2   : > { %v14214_v39 = vpop.f32.mrf.mxu1  ;;  %v7748_v58 = vld [vmem:[#allocation2 + $0x10] sm:$0xf]  ;;  %v7782_v60 = vsel %vm16405_vm14, %v7749_v51, 0 }
 0x3b3   : > { %v7850_v0 = vunpack.c.l.b16 %v7782_v60 }
 0x3b4   : > { %v6505_v7 = vpop.f32.mrf.mxu2 }
 0x3b5   : > { %10124 = vmatmul.msk.bf16.gmra.mxu3 %vm16639_vm3, %v6821_v34  ;;  %10219 = vmatmul.msk.bf16.gmra.mxu1 %vm16640_vm7, %v10459_v10  ;;  %v14229_v34 = vpop.f32.mrf.mxu0  ;;  %v7750_v10 = vld [vmem:[#allocation2 + $0x18] sm:$0xf]  ;;  %vm16650_vm3 = vsmask.f32 4352 }
 0x3b6   : > { %10339 = vmatmul.msk.bf16.vlgmr.msra.gmra.mxu0 %vm16641_vm10, %v10474_v20  ;;  %16644 = vst [vmem:[#allocation91_spill] sm:$0xff] %v14229_v34  ;;  %v7781_v20 = vsel %vm16403_vm6, %v7748_v58, 0  ;;  %vm16647_vm10 = vnez %v16646_v40  ;;  %v7783_v51 = vsel %vm16649_vm5, %v7750_v10, 0  ;;  %v6587_v34 = vld [vmem:[#allocation2 + $0x88] sm:$0x1]  ;;  %v6411_v41 = vsel %vm16650_vm3, %v6401_v5, %v6410_v49  ;;  %v10460_v5 = vld [vmem:[#allocation2 + $0x38] sm:$0xff]  ;;  %vm16656_vm3 = vmmov %vm16640_vm7 }
 0x3b7   : > { %v7784_v47 = vsel %vm16647_vm10, %v7751_v56, 0  ;;  %v6822_v40 = vshrl.u32 %v14195_v21, 16  ;;  %v6828_v56 = vrot.slane %v6826_v31, 1  ;;  %v7851_v60 = vunpack.c.l.b16 %v7783_v51 }
 0x3b8   : > { %v6926_v61 = vpop.f32.mrf.mxu3  ;;  %v6620_v15 = vsel %vm16653_vm4, %v6587_v34, 0  ;;  %vm16658_vm4 = vmmov %vm16656_vm3 }
 0x3b9   : > { %v14227_v36 = vadd.f32 %v6926_v61, %v6501_v53  ;;  %v7849_v53 = vunpack.c.l.b16 %v7781_v20  ;;  %v7852_v61 = vunpack.c.l.b16 %v7784_v47  ;;  %v6824_v10 = vor.u32 %v6822_v40, %v6820_v12 }
 0x3ba   : > { %v14233_v2 = vpop.f32.mrf.mxu1  ;;  %v6688_v49 = vunpack.c.l.b16 %v6620_v15  ;;  %v6506_v12 = vadd.f32 %v6505_v7, %v13932_v25  ;;  %v16662_v7 = vld [vmem:[#allocation6_spill] sm:$0xff] }
 0x3bb   : > { %16643 = vst [vmem:[#allocation93_spill] sm:$0xff] %v14227_v36  ;;  %v7882_v33 = vpack.c.b16 %v7850_v0, %v7849_v53  ;;  %v14248_v20 = vpack.c.b16 %v7852_v61, %v7851_v60  ;;  %v6829_v22 = vsel %vm16654_vm0, %v6824_v10, %v6828_v56  ;;  %v8209_v60 = vld [vmem:[#allocation2 + $0x20] sm:$0xf]  ;;  %v8207_v10 = vld [vmem:[#allocation2 + $0x18] sm:$0xf]  ;;  %vm16661_vm0 = vnez %v16660_v46 }
 0x3bc   : > { %v6507_v1 = vpop.f32.mrf.mxu2  ;;  %v6705_v31 = vpack.c.b16 %v6688_v49, %v6688_v49 }
 0x3bd   : > { %v14253_v0 = vpop.f32.mrf.mxu0  ;;  %v7902_v21 = vshll.u32 %v7882_v33, 16  ;;  %v7900_v53 = vshrl.u32 %v7882_v33, 16 }
 0x3be   : > { %16655 = vst [vmem:[#allocation95_spill] sm:$0xff] %v14253_v0  ;;  %v6834_v48 = vshll.u32 %v6705_v31, 16  ;;  %v7752_v0 = vld [vmem:[#allocation2 + $0x20] sm:$0xf]  ;;  %v16668_v31 = vld [vmem:[#allocation5_spill] sm:$0xff] }
 0x3bf   : > { %v7904_v40 = vrot.slane %v7902_v21, 1  ;;  %vm16669_vm2 = vnez %v16668_v31 }
 0x3c0   : > { %v6928_v58 = vpop.f32.mrf.mxu3 }
 0x3c1   : > { %v14243_v50 = vadd.f32 %v6928_v58, %v6503_v63  ;;  %10106 = vmatmul.msk.bf16.gmra.mxu2 %vm16640_vm7, %v6411_v41  ;;  %v10475_v63 = vld [vmem:[#allocation2 + $0x20] sm:$0xff]  ;;  %vm16657_vm7 = vmmov %vm16656_vm3  ;;  %v7907_v41 = vshll.u32 %v14248_v20, 16 }
 0x3c2   : > { %v14250_v47 = vpop.f32.mrf.mxu1  ;;  %v7753_v58 = vld [vmem:[#allocation2 + $0x24] sm:$0xf] }
 0x3c3   : > { %16651 = vst [vmem:[#allocation94_spill] sm:$0xff] %v14243_v50  ;;  %v14262_v61 = vrot.slane %v7907_v41, 1  ;;  %v7786_v25 = vsel %vm16661_vm0, %v7753_v58, 0  ;;  %v8206_v41 = vld [vmem:[#allocation2 + $0x14] sm:$0x8] }
 0x3c4   : > { %v6510_v6 = vpop.f32.mrf.mxu2 }
 0x3c5   : > { %10125 = vmatmul.msk.bf16.gmra.mxu3 %vm16656_vm3, %v6829_v22  ;;  %10220 = vmatmul.msk.bf16.gmra.mxu1 %vm16657_vm7, %v10460_v5  ;;  %v7905_v5 = vor.u32 %v7904_v40, %v7900_v53  ;;  %v14270_v49 = vpop.f32.mrf.mxu0  ;;  %vm16665_vm3 = vsmask.f32 7424  ;;  %v8240_v53 = vsel %vm16669_vm2, %v8207_v10, 0 }
 0x3c6   : > { %10340 = vmatmul.msk.bf16.gmra.mxu0 %vm16658_vm4, %v10475_v63  ;;  %v8208_v63 = vld [vmem:[#allocation2 + $0x1c] sm:$0xf]  ;;  %vm16663_vm4 = vnez %v16662_v7  ;;  %16664 = vst [vmem:[#allocation46_spill] sm:$0xff] %v14270_v49  ;;  %v6836_v7 = vrot.slane %v6834_v48, 1  ;;  %v7854_v49 = vunpack.c.l.b16 %v7786_v25  ;;  %v8308_v31 = vunpack.c.l.b16 %v8240_v53 }
 0x3c7   : > { %v8242_v21 = vsel %vm16663_vm4, %v8209_v60, 0  ;;  %v7910_v33 = vsel %vm16665_vm3, %v7905_v5, %v14262_v61  ;;  %v6830_v60 = vshrl.u32 %v14223_v43, 16  ;;  %vm16673_vm4 = vcmask 130048   ;;  %v10461_v43 = vld [vmem:[#allocation2 + $0x40] sm:$0xff] }
 0x3c8   : > { %v6931_v34 = vpop.f32.mrf.mxu3  ;;  %v8310_v50 = vunpack.c.l.b16 %v8242_v21  ;;  %v10476_v21 = vld [vmem:[#allocation2 + $0x28] sm:$0xff]  ;;  %vm16677_vm2 = vmmov %vm16673_vm4 }
 0x3c9   : > { %v14260_v51 = vadd.f32 %v6931_v34, %v6506_v12  ;;  %v6508_v12 = vadd.f32 %v6507_v1, %v13962_v52  ;;  %v16666_v34 = vld [vmem:[#allocation41_spill] sm:$0xff]  ;;  %v16674_v52 = vld [vmem:[#allocation3_spill] sm:$0xff] }
 0x3ca   : > { %v14264_v15 = vpop.f32.mrf.mxu1  ;;  %vm16667_vm7 = vnez %v16666_v34  ;;  %vm16675_vm3 = vnez %v16674_v52  ;;  %v8211_v52 = vld [vmem:[#allocation2 + $0x28] sm:$0xf] }
 0x3cb   : > { %16659 = vst [vmem:[#allocation44_spill] sm:$0xff] %v14260_v51  ;;  %v7785_v40 = vsel %vm16667_vm7, %v7752_v0, 0  ;;  %v16670_v51 = vld [vmem:[#allocation4_spill] sm:$0xff]  ;;  %v8239_v1 = vsel %vm16675_vm3, %v8206_v41, 0  ;;  %v6832_v0 = vor.u32 %v6830_v60, %v6828_v56  ;;  %vm16679_vm3 = vmmov %vm16677_vm2  ;;  %v6511_v56 = vadd.f32 %v6510_v6, %v13996_v8 }
 0x3cc   : > { %v6512_v22 = vpop.f32.mrf.mxu2  ;;  %vm16671_vm11 = vnez %v16670_v51  ;;  %v7853_v5 = vunpack.c.l.b16 %v7785_v40  ;;  %v8307_v25 = vunpack.c.l.b16 %v8239_v1 }
 0x3cd   : > { %v8241_v58 = vsel %vm16671_vm11, %v8208_v63, 0  ;;  %vm16676_vm11 = vsmask.f32 7424 }
 0x3ce   : > { %v8309_v10 = vunpack.c.l.b16 %v8241_v58  ;;  %v6837_v51 = vsel %vm16676_vm11, %v6832_v0, %v6836_v7  ;;  %v14290_v48 = vpack.c.b16 %v7854_v49, %v7853_v5  ;;  %v7755_v7 = vld [vmem:[#allocation2 + $0x2c] sm:$0xf]  ;;  %v8210_v0 = vld [vmem:[#allocation2 + $0x24] sm:$0xf] }
 0x3d0   : > { %v6933_v46 = vpop.f32.mrf.mxu3  ;;  %v7915_v40 = vshll.u32 %v14290_v48, 16 }
 0x3d1   : > { %v14282_v36 = vadd.f32 %v6933_v46, %v6508_v12  ;;  %10235 = vmatmul.msk.bf16.vlgmr.msra.gmra.mxu2 %vm16673_vm4, %v7910_v33  ;;  %v8341_v46 = vpack.c.b16 %v8310_v50, %v8309_v10  ;;  %vm16678_vm4 = vmmov %vm16677_vm2  ;;  %v8340_v33 = vpack.c.b16 %v8308_v31, %v8307_v25  ;;  %v14296_v12 = vpop.f32.mrf.mxu0  ;;  %v7911_v31 = vshrl.u32 %v14248_v20, 16  ;;  %v16689_v20 = vld [vmem:[#allocation11_spill] sm:$0xff] }
 0x3d2   : > { %v14287_v34 = vpop.f32.mrf.mxu1  ;;  %16680 = vst [vmem:[#allocation96_spill] sm:$0xff] %v14296_v12  ;;  %v7917_v8 = vrot.slane %v7915_v40, 1  ;;  %v6513_v12 = vadd.f32 %v6512_v22, %v14023_v9 }
 0x3d3   : > { %16672 = vst [vmem:[#allocation35_spill] sm:$0xff] %v14282_v36  ;;  %v8366_v53 = vshrl.u32 %v8341_v46, 16  ;;  %v8369_v49 = vshll.u32 %v8341_v46, 16  ;;  %v8358_v50 = vshrl.u32 %v8340_v33, 16  ;;  %v8361_v60 = vshll.u32 %v8340_v33, 16  ;;  %v16685_v46 = vld [vmem:[#allocation12_spill] sm:$0xff] }
 0x3d4   : > { %v6515_v63 = vpop.f32.mrf.mxu2  ;;  %v7913_v33 = vor.u32 %v7911_v31, %v14262_v61  ;;  %v10462_v31 = vld [vmem:[#allocation2 + $0x48] sm:$0xff] }
 0x3d5   : > { %10126 = vmatmul.msk.bf16.gmra.mxu3 %vm16677_vm2, %v6837_v51  ;;  %10221 = vmatmul.msk.bf16.gmra.mxu1 %vm16678_vm4, %v10461_v43  ;;  %v8368_v6 = vrot.slane %v8366_v53, 3  ;;  %v8371_v10 = vrot.slane %v8369_v49, 4  ;;  %v7754_v51 = vld [vmem:[#allocation2 + $0x28] sm:$0xf]  ;;  %v16683_v43 = vld [vmem:[#allocation45_spill] sm:$0xff]  ;;  %vm16686_vm2 = vnez %v16685_v46 }
 0x3d6   : > { %10341 = vmatmul.msk.bf16.gmra.mxu0 %vm16679_vm3, %v10476_v21  ;;  %vm16684_vm11 = vnez %v16683_v43  ;;  %v8244_v21 = vsel %vm16686_vm2, %v8211_v52, 0  ;;  %vm16690_vm3 = vnez %v16689_v20  ;;  %v7918_v49 = vsel %vm16691_vm9, %v7913_v33, %v7917_v8  ;;  %v8213_v20 = vld [vmem:[#allocation2 + $0x30] sm:$0xf] }
 0x3d7   : > { %v7788_v25 = vsel %vm16684_vm11, %v7755_v7, 0  ;;  %v8243_v40 = vsel %vm16690_vm3, %v8210_v0, 0  ;;  %v8372_v43 = vor.u32 %v8371_v10, %v8368_v6  ;;  %vm16692_vm2 = vcmask 130048   ;;  %v10477_v10 = vld [vmem:[#allocation2 + $0x30] sm:$0xff] }
 0x3d8   : > { %v6936_v41 = vpop.f32.mrf.mxu3  ;;  %v7856_v7 = vunpack.c.l.b16 %v7788_v25  ;;  %v8311_v22 = vunpack.c.l.b16 %v8243_v40  ;;  %vm16695_vm9 = vmmov %vm16692_vm2  ;;  %vm16706_vm11 = vsmask.f32 7424 }
 0x3d9   : > { %v14299_v58 = vadd.f32 %v6936_v41, %v6511_v56  ;;  %v8360_v56 = vrot.slane %v8358_v50, 3  ;;  %v8363_v41 = vrot.slane %v8361_v60, 4  ;;  %v14318_v61 = vpop.f32.mrf.mxu0  ;;  %vm16696_vm3 = vmmov %vm16692_vm2 }
 0x3da   : > { %v14301_v1 = vpop.f32.mrf.mxu1  ;;  %16693 = vst [vmem:[#allocation97_spill] sm:$0xff] %v14318_v61 }
 0x3db   : > { %16681 = vst [vmem:[#allocation53_spill] sm:$0xff] %v14299_v58  ;;  %v16687_v58 = vld [vmem:[#allocation43_spill] sm:$0xff]  ;;  %v8364_v50 = vor.u32 %v8363_v41, %v8360_v56  ;;  %v7757_v41 = vld [vmem:[#allocation2 + $0x34] sm:$0xf] }
 0x3dc   : > { %16682 = vst [vmem:[#allocation51_spill] sm:$0xff] %v14301_v1  ;;  %v6517_v5 = vpop.f32.mrf.mxu2  ;;  %vm16688_vm4 = vnez %v16687_v58  ;;  %v8312_v1 = vunpack.c.l.b16 %v8244_v21  ;;  %v16704_v58 = vld [vmem:[#allocation14_spill] sm:$0xff] }
 0x3dd   : > { %v7787_v36 = vsel %vm16688_vm4, %v7754_v51, 0  ;;  %vm16694_vm4 = vsmask.f32 4352 }
 0x3de   : > { %v7855_v9 = vunpack.c.l.b16 %v7787_v36  ;;  %v8373_v52 = vsel %vm16694_vm4, %v8364_v50, %v8372_v43  ;;  %v8342_v6 = vpack.c.b16 %v8312_v1, %v8311_v22  ;;  %v7919_v1 = vshrl.u32 %v14290_v48, 16 }
 0x3df   : > { %v6518_v48 = vadd.f32 %v6517_v5, %v14079_v29 }
 0x3e0   : > { %v6938_v53 = vpop.f32.mrf.mxu3  ;;  %v14323_v51 = vpack.c.b16 %v7856_v7, %v7855_v9  ;;  %v8375_v21 = vshrl.u32 %v8342_v6, 16  ;;  %v8378_v33 = vshll.u32 %v8342_v6, 16 }
 0x3e1   : > { %v14315_v46 = vadd.f32 %v6938_v53, %v6513_v12  ;;  %10236 = vmatmul.msk.bf16.gmra.mxu2 %vm16692_vm2, %v7918_v49  ;;  %v6516_v12 = vadd.f32 %v6515_v63, %v14055_v14  ;;  %v7756_v53 = vld [vmem:[#allocation2 + $0x30] sm:$0xf]  ;;  %v14335_v49 = vpop.f32.mrf.mxu0 }
 0x3e2   : > { %v14320_v60 = vpop.f32.mrf.mxu1  ;;  %v7923_v25 = vshll.u32 %v14323_v51, 16  ;;  %16697 = vst [vmem:[#allocation59_spill] sm:$0xff] %v14335_v49  ;;  %v8377_v9 = vrot.slane %v8375_v21, 3  ;;  %v8380_v14 = vrot.slane %v8378_v33, 4  ;;  %v16698_v63 = vld [vmem:[#allocation49_spill] sm:$0xff] }
 0x3e3   : > { %vm16699_vm4 = vnez %v16698_v63 }
 0x3e4   : > { %v6520_v0 = vpop.f32.mrf.mxu2  ;;  %v7925_v50 = vrot.slane %v7923_v25, 1  ;;  %v7790_v22 = vsel %vm16699_vm4, %v7757_v41, 0  ;;  %v8381_v33 = vor.u32 %v8380_v14, %v8377_v9  ;;  %vm16707_vm4 = vcmask 130048   ;;  %v10478_v14 = vld [vmem:[#allocation2 + $0x38] sm:$0xff] }
 0x3e5   : > { %10255 = vmatmul.msk.bf16.vlgmr.msra.gmra.mxu3 %vm16695_vm9, %v8373_v52  ;;  %10222 = vmatmul.msk.bf16.gmra.mxu1 %vm16696_vm3, %v10462_v31  ;;  %v8212_v52 = vld [vmem:[#allocation2 + $0x2c] sm:$0xf]  ;;  %v7858_v61 = vunpack.c.l.b16 %v7790_v22 }
 0x3e6   : > { %10342 = vmatmul.msk.bf16.gmra.mxu0 %vm16692_vm2, %v10477_v10  ;;  %v16700_v31 = vld [vmem:[#allocation16_spill] sm:$0xff]  ;;  %v7921_v10 = vor.u32 %v7919_v1, %v7917_v8  ;;  %vm16705_vm2 = vnez %v16704_v58  ;;  %v7459_v8 = vadd.f32 %v13815_v19, %v14021_v59  ;;  %v6521_v19 = vadd.f32 %v6520_v0, %v14108_v32 }
 0x3e7   : > { %vm16701_vm9 = vnez %v16700_v31  ;;  %v8245_v49 = vsel %vm16705_vm2, %v8212_v52, 0  ;;  %v10463_v52 = vld [vmem:[#allocation2 + $0x50] sm:$0xff]  ;;  %vm16711_vm2 = vmmov %vm16707_vm4 }
 0x3e8   : > { %v6941_v36 = vpop.f32.mrf.mxu3  ;;  %v8246_v6 = vsel %vm16701_vm9, %v8213_v20, 0  ;;  %v7926_v21 = vsel %vm16706_vm11, %v7921_v10, %v7925_v50  ;;  %v8313_v1 = vunpack.c.l.b16 %v8245_v49  ;;  %vm16708_vm9 = vsmask.f32 4352  ;;  %vm16709_vm11 = vmmov %vm16707_vm4  ;;  %v7759_v10 = vld [vmem:[#allocation2 + $0x3c] sm:$0xf] }
 0x3e9   : > { %v14330_v56 = vadd.f32 %v6941_v36, %v6516_v12  ;;  %v16702_v12 = vld [vmem:[#allocation48_spill] sm:$0xff]  ;;  %v8314_v63 = vunpack.c.l.b16 %v8246_v6  ;;  %v8382_v58 = vsel %vm16708_vm9, %v8372_v43, %v8381_v33  ;;  %v14358_v31 = vpop.f32.mrf.mxu0 }
 0x3ea   : > { %v14332_v40 = vpop.f32.mrf.mxu1  ;;  %vm16703_vm3 = vnez %v16702_v12  ;;  %16710 = vst [vmem:[#allocation57_spill] sm:$0xff] %v14358_v31  ;;  %v16719_v31 = vld [vmem:[#allocation19_spill] sm:$0xff] }
 0x3eb   : > { %v7789_v36 = vsel %vm16703_vm3, %v7756_v53, 0  ;;  %v8343_v9 = vpack.c.b16 %v8314_v63, %v8313_v1  ;;  %v16712_v63 = vld [vmem:[#allocation50_spill] sm:$0xff]  ;;  %vm16721_vm3 = vsmask.f32 7424 }
 0x3ec   : > { %v6522_v7 = vpop.f32.mrf.mxu2  ;;  %v7857_v20 = vunpack.c.l.b16 %v7789_v36  ;;  %v7460_v36 = vadd.f32 %v16712_v63, %v14047_v4  ;;  %v16717_v4 = vld [vmem:[#allocation52_spill] sm:$0xff] }
 0x3ed   : > { %v8384_v49 = vshrl.u32 %v8343_v9, 16  ;;  %v8387_v6 = vshll.u32 %v8343_v9, 16  ;;  %v8214_v9 = vld [vmem:[#allocation2 + $0x34] sm:$0xf] }
 0x3ee   : > { %v14352_v29 = vpack.c.b16 %v7858_v61, %v7857_v20 }
 0x3ef   : > { %v8386_v0 = vrot.slane %v8384_v49, 3 }
 0x3f0   : > { %v6943_v25 = vpop.f32.mrf.mxu3  ;;  %v7931_v59 = vshll.u32 %v14352_v29, 16 }
 0x3f1   : > { %v14347_v41 = vadd.f32 %v6943_v25, %v6518_v48  ;;  %10237 = vmatmul.msk.bf16.gmra.mxu2 %vm16707_vm4, %v7926_v21  ;;  %v8215_v48 = vld [vmem:[#allocation2 + $0x38] sm:$0xf]  ;;  %v7927_v21 = vshrl.u32 %v14323_v51, 16  ;;  %v6523_v51 = vadd.f32 %v6522_v7, %v14131_v37 }
 0x3f2   : > { %v7636_v53 = vpop.f32.mrf.mxu1  ;;  %v7933_v20 = vrot.slane %v7931_v59, 1 }
 0x3f3   : > { %v14354_v5 = vadd.f32 %v7636_v53, %v7459_v8  ;;  %v7758_v8 = vld [vmem:[#allocation2 + $0x38] sm:$0xf]  ;;  %v8389_v53 = vrot.slane %v8387_v6, 4 }
 0x3f4   : > { %v6525_v22 = vpop.f32.mrf.mxu2 }
 0x3f5   : > { %10256 = vmatmul.msk.bf16.gmra.mxu3 %vm16709_vm11, %v8382_v58  ;;  %10223 = vmatmul.msk.bf16.gmra.mxu1 %vm16707_vm4, %v10463_v52  ;;  %v16713_v58 = vld [vmem:[#allocation54_spill] sm:$0xff]  ;;  %vm16718_vm4 = vnez %v16717_v4 }
 0x3f6   : > { %10343 = vmatmul.msk.bf16.gmra.mxu0 %vm16711_vm2, %v10478_v14  ;;  %vm16714_vm9 = vnez %v16713_v58  ;;  %v16715_v14 = vld [vmem:[#allocation21_spill] sm:$0xff]  ;;  %v7791_v63 = vsel %vm16718_vm4, %v7758_v8, 0  ;;  %vm16720_vm2 = vnez %v16719_v31 }
 0x3f7   : > { %v7792_v52 = vsel %vm16714_vm9, %v7759_v10, 0  ;;  %vm16716_vm11 = vnez %v16715_v14  ;;  %v8390_v10 = vor.u32 %v8389_v53, %v8386_v0  ;;  %v10479_v53 = vld [vmem:[#allocation2 + $0x40] sm:$0xff] }
 0x3f8   : > { %v6946_v61 = vpop.f32.mrf.mxu3  ;;  %v7860_v59 = vunpack.c.l.b16 %v7792_v52 }
 0x3f9   : > { %v14364_v43 = vadd.f32 %v6946_v61, %v6521_v19  ;;  %v8248_v19 = vsel %vm16716_vm11, %v8215_v48, 0  ;;  %v7929_v61 = vor.u32 %v7927_v21, %v7925_v50  ;;  %vm16722_vm11 = vcmask 130048  }
 0x3fa   : > { %v7638_v25 = vpop.f32.mrf.mxu1  ;;  %v8316_v58 = vunpack.c.l.b16 %v8248_v19  ;;  %v7859_v50 = vunpack.c.l.b16 %v7791_v63  ;;  %v7461_v48 = vadd.f32 %v13875_v54, %v14075_v35  ;;  %v6526_v35 = vadd.f32 %v6525_v22, %v14150_v3 }
 0x3fb   : > { %v14369_v1 = vadd.f32 %v7638_v25, %v7460_v36  ;;  %v8247_v36 = vsel %vm16720_vm2, %v8214_v9, 0  ;;  %v14380_v25 = vpop.f32.mrf.mxu0  ;;  %v7934_v6 = vsel %vm16721_vm3, %v7929_v61, %v7933_v20  ;;  %vm16723_vm2 = vsmask.f32 4352  ;;  %v10464_v9 = vld [vmem:[#allocation2 + $0x58] sm:$0xff]  ;;  %vm16724_vm3 = vmmov %vm16722_vm11 }
 0x3fc   : > { %v6527_v32 = vpop.f32.mrf.mxu2  ;;  %v8315_v37 = vunpack.c.l.b16 %v8247_v36  ;;  %v14388_v21 = vpack.c.b16 %v7860_v59, %v7859_v50  ;;  %v8391_v8 = vsel %vm16723_vm2, %v8381_v33, %v8390_v10  ;;  %vm16725_vm4 = vmmov %vm16724_vm3  ;;  %v7761_v33 = vld [vmem:[#allocation2 + $0x44] sm:$0xf]  ;;  %v8217_v59 = vld [vmem:[#allocation2 + $0x40] sm:$0xf] }
 0x3fd   : > { %v7760_v50 = vld [vmem:[#allocation2 + $0x40] sm:$0xf] }
 0x3fe   : > { %v8344_v0 = vpack.c.b16 %v8316_v58, %v8315_v37  ;;  %v7939_v54 = vshll.u32 %v14388_v21, 16  ;;  %v7462_v58 = vadd.f32 %v13903_v62, %v14100_v38  ;;  %v7793_v38 = vsel %vm16508_vm8, %v7760_v50, 0 }
 0x3ff   : > { %vm16746_vm8 = vsmask.f32 7424 }
 0x400   : > { %v6948_v49 = vpop.f32.mrf.mxu3  ;;  %v8393_v19 = vshrl.u32 %v8344_v0, 16  ;;  %v8396_v61 = vshll.u32 %v8344_v0, 16  ;;  %v16728_v0 = vld [vmem:[#allocation24_spill] sm:$0xff] }
 0x401   : > { %v14383_v12 = vadd.f32 %v6948_v49, %v6523_v51  ;;  %10238 = vmatmul.msk.bf16.gmra.mxu2 %vm16722_vm11, %v7934_v6  ;;  %vm16726_vm11 = vmmov %vm16724_vm3  ;;  %v7935_v49 = vshrl.u32 %v14352_v29, 16  ;;  %v7941_v6 = vrot.slane %v7939_v54, 1  ;;  %v6528_v29 = vadd.f32 %v6527_v32, %v14168_v13 }
 0x402   : > { %v7641_v7 = vpop.f32.mrf.mxu1  ;;  %v8398_v37 = vrot.slane %v8396_v61, 4 }
 0x403   : > { %v14390_v31 = vadd.f32 %v7641_v7, %v7461_v48  ;;  %v14400_v51 = vpop.f32.mrf.mxu0  ;;  %v8395_v48 = vrot.slane %v8393_v19, 3 }
 0x404   : > { %v6530_v52 = vpop.f32.mrf.mxu2 }
 0x405   : > { %10257 = vmatmul.msk.bf16.gmra.mxu3 %vm16724_vm3, %v8391_v8  ;;  %10224 = vmatmul.msk.bf16.gmra.mxu1 %vm16725_vm4, %v10464_v9  ;;  %v7794_v8 = vsel %vm16504_vm13, %v7761_v33, 0  ;;  %v8216_v9 = vld [vmem:[#allocation2 + $0x3c] sm:$0xf]  ;;  %vm16729_vm4 = vnez %v16728_v0  ;;  %vm16733_vm3 = vsmask.f32 7424  ;;  %v8399_v61 = vor.u32 %v8398_v37, %v8395_v48  ;;  %v10465_v37 = vld [vmem:[#allocation2 + $0x60] sm:$0xff] }
 0x406   : > { %10344 = vmatmul.msk.bf16.gmra.mxu0 %vm16726_vm11, %v10479_v53  ;;  %v8250_v53 = vsel %vm16729_vm4, %v8217_v59, 0  ;;  %v7862_v54 = vunpack.c.l.b16 %v7794_v8  ;;  %v7861_v59 = vunpack.c.l.b16 %v7793_v38  ;;  %vm16734_vm4 = vsmask.f32 4352 }
 0x407   : > { %v8318_v7 = vunpack.c.l.b16 %v8250_v53  ;;  %v10480_v53 = vld [vmem:[#allocation2 + $0x48] sm:$0xff] }
 0x408   : > { %v6951_v14 = vpop.f32.mrf.mxu3  ;;  %v14422_v13 = vpack.c.b16 %v7862_v54, %v7861_v59  ;;  %v7762_v59 = vld [vmem:[#allocation2 + $0x48] sm:$0xf] }
 0x409   : > { %v14398_v63 = vadd.f32 %v6951_v14, %v6526_v35  ;;  %v7937_v35 = vor.u32 %v7935_v49, %v7933_v20  ;;  %v16731_v14 = vld [vmem:[#allocation23_spill] sm:$0xff]  ;;  %v7463_v20 = vadd.f32 %v13941_v45, %v14127_v18  ;;  %v6531_v45 = vadd.f32 %v6530_v52, %v14183_v55 }
 0x40a   : > { %v7643_v36 = vpop.f32.mrf.mxu1  ;;  %vm16732_vm2 = vnez %v16731_v14  ;;  %v7947_v18 = vshll.u32 %v14422_v13, 16  ;;  %v8219_v14 = vld [vmem:[#allocation2 + $0x48] sm:$0xf] }
 0x40b   : > { %v14405_v3 = vadd.f32 %v7643_v36, %v7462_v58  ;;  %v8249_v58 = vsel %vm16732_vm2, %v8216_v9, 0  ;;  %v7942_v19 = vsel %vm16733_vm3, %v7937_v35, %v7941_v6  ;;  %v14424_v32 = vpop.f32.mrf.mxu0  ;;  %v8400_v9 = vsel %vm16734_vm4, %v8390_v10, %v8399_v61  ;;  %vm16735_vm2 = vmmov %vm16726_vm11  ;;  %v7763_v10 = vld [vmem:[#allocation2 + $0x4c] sm:$0xf] }
 0x40c   : > { %v6532_v22 = vpop.f32.mrf.mxu2  ;;  %v8317_v49 = vunpack.c.l.b16 %v8249_v58  ;;  %vm16736_vm3 = vmmov %vm16735_vm2 }
 0x40e   : > { %v8345_v0 = vpack.c.b16 %v8318_v7, %v8317_v49  ;;  %v7464_v7 = vadd.f32 %v13975_v24, %v14143_v16  ;;  %v16742_v16 = vld [vmem:[#allocation61_spill] sm:$0xff] }
 0x410   : > { %v6953_v36 = vpop.f32.mrf.mxu3  ;;  %v8402_v38 = vshrl.u32 %v8345_v0, 16 }
 0x411   : > { %v14417_v33 = vadd.f32 %v6953_v36, %v6528_v29  ;;  %10239 = vmatmul.msk.bf16.gmra.mxu2 %vm16726_vm11, %v7942_v19  ;;  %vm16737_vm11 = vmmov %vm16735_vm2  ;;  %v8405_v29 = vshll.u32 %v8345_v0, 16  ;;  %v7943_v36 = vshrl.u32 %v14388_v21, 16  ;;  %v7949_v19 = vrot.slane %v7947_v18, 1  ;;  %v16740_v0 = vld [vmem:[#allocation29_spill] sm:$0xff] }
 0x412   : > { %v7646_v50 = vpop.f32.mrf.mxu1  ;;  %v8404_v52 = vrot.slane %v8402_v38, 3  ;;  %v6533_v18 = vadd.f32 %v6532_v22, %v14201_v57 }
 0x413   : > { %v14426_v8 = vadd.f32 %v7646_v50, %v7463_v20  ;;  %v8407_v49 = vrot.slane %v8405_v29, 4  ;;  %v16738_v50 = vld [vmem:[#allocation62_spill] sm:$0xff]  ;;  %v7945_v24 = vor.u32 %v7943_v36, %v7941_v6  ;;  %v7465_v6 = vadd.f32 %v14007_v11, %v14164_v42 }
 0x414   : > { %v6535_v48 = vpop.f32.mrf.mxu2  ;;  %vm16739_vm4 = vnez %v16738_v50 }
 0x415   : > { %10258 = vmatmul.msk.bf16.gmra.mxu3 %vm16735_vm2, %v8400_v9  ;;  %10225 = vmatmul.msk.bf16.gmra.mxu1 %vm16736_vm3, %v10465_v37  ;;  %v7796_v9 = vsel %vm16739_vm4, %v7763_v10, 0  ;;  %v8218_v37 = vld [vmem:[#allocation2 + $0x44] sm:$0xf]  ;;  %vm16741_vm2 = vnez %v16740_v0  ;;  %vm16743_vm3 = vnez %v16742_v16  ;;  %v8408_v10 = vor.u32 %v8407_v49, %v8404_v52  ;;  %v10466_v0 = vld [vmem:[#allocation2 + $0x68] sm:$0xff]  ;;  %v10481_v49 = vld [vmem:[#allocation2 + $0x50] sm:$0xff] }
 0x416   : > { %10345 = vmatmul.msk.bf16.gmra.mxu0 %vm16737_vm11, %v10480_v53  ;;  %v8252_v53 = vsel %vm16741_vm2, %v8219_v14, 0  ;;  %v7795_v21 = vsel %vm16743_vm3, %v7762_v59, 0  ;;  %vm16747_vm2 = vcmask 130048   ;;  %v6536_v11 = vadd.f32 %v6535_v48, %v14214_v39 }
 0x417   : > { %v8320_v50 = vunpack.c.l.b16 %v8252_v53  ;;  %v7863_v14 = vunpack.c.l.b16 %v7795_v21  ;;  %vm16750_vm3 = vmmov %vm16747_vm2  ;;  %vm16759_vm4 = vsmask.f32 7424 }
 0x418   : > { %v6956_v35 = vpop.f32.mrf.mxu3 }
 0x419   : > { %v14434_v54 = vadd.f32 %v6956_v35, %v6531_v45  ;;  %v14445_v45 = vpop.f32.mrf.mxu0  ;;  %v7864_v35 = vunpack.c.l.b16 %v7796_v9 }
 0x41a   : > { %v7648_v58 = vpop.f32.mrf.mxu1 }
 0x41b   : > { %v14439_v20 = vadd.f32 %v7648_v58, %v7464_v7  ;;  %v16744_v7 = vld [vmem:[#allocation27_spill] sm:$0xff]  ;;  %v7950_v58 = vsel %vm16746_vm8, %v7945_v24, %v7949_v19  ;;  %v14458_v57 = vpack.c.b16 %v7864_v35, %v7863_v14  ;;  %vm16749_vm8 = vmmov %vm16747_vm2  ;;  %v7765_v35 = vld [vmem:[#allocation2 + $0x54] sm:$0xf] }
 0x41c   : > { %v6537_v55 = vpop.f32.mrf.mxu2  ;;  %vm16745_vm11 = vnez %v16744_v7  ;;  %v8221_v7 = vld [vmem:[#allocation2 + $0x50] sm:$0xf] }
 0x41d   : > { %v8251_v38 = vsel %vm16745_vm11, %v8218_v37, 0  ;;  %vm16748_vm11 = vsmask.f32 4352  ;;  %v7955_v42 = vshll.u32 %v14458_v57, 16  ;;  %v7764_v14 = vld [vmem:[#allocation2 + $0x50] sm:$0xf] }
 0x41e   : > { %v8319_v36 = vunpack.c.l.b16 %v8251_v38  ;;  %v8409_v9 = vsel %vm16748_vm11, %v8399_v61, %v8408_v10 }
 0x420   : > { %v6958_v29 = vpop.f32.mrf.mxu3  ;;  %v8346_v52 = vpack.c.b16 %v8320_v50, %v8319_v36  ;;  %v7466_v50 = vadd.f32 %v14033_v23, %v14178_v27  ;;  %v16755_v23 = vld [vmem:[#allocation65_spill] sm:$0xff] }
 0x421   : > { %v14453_v62 = vadd.f32 %v6958_v29, %v6533_v18  ;;  %10240 = vmatmul.msk.bf16.gmra.mxu2 %vm16747_vm2, %v7950_v58  ;;  %v14468_v53 = vpop.f32.mrf.mxu0  ;;  %v7951_v29 = vshrl.u32 %v14422_v13, 16  ;;  %v7957_v58 = vrot.slane %v7955_v42, 1  ;;  %v6538_v13 = vadd.f32 %v6537_v55, %v14233_v2 }
 0x422   : > { %v7651_v59 = vpop.f32.mrf.mxu1  ;;  %v8411_v21 = vshrl.u32 %v8346_v52, 16  ;;  %v8414_v18 = vshll.u32 %v8346_v52, 16  ;;  %v16753_v52 = vld [vmem:[#allocation32_spill] sm:$0xff] }
 0x423   : > { %v14460_v22 = vadd.f32 %v7651_v59, %v7465_v6  ;;  %v16751_v59 = vld [vmem:[#allocation66_spill] sm:$0xff]  ;;  %vm16754_vm11 = vnez %v16753_v52 }
 0x424   : > { %v6540_v37 = vpop.f32.mrf.mxu2  ;;  %v8413_v6 = vrot.slane %v8411_v21, 3  ;;  %v8416_v36 = vrot.slane %v8414_v18, 4 }
 0x425   : > { %10259 = vmatmul.msk.bf16.gmra.mxu3 %vm16749_vm8, %v8409_v9  ;;  %10226 = vmatmul.msk.bf16.gmra.mxu1 %vm16750_vm3, %v10466_v0  ;;  %vm16752_vm3 = vnez %v16751_v59  ;;  %v8220_v0 = vld [vmem:[#allocation2 + $0x4c] sm:$0xf]  ;;  %vm16756_vm8 = vnez %v16755_v23 }
 0x426   : > { %10346 = vmatmul.msk.bf16.gmra.mxu0 %vm16747_vm2, %v10481_v49  ;;  %v7798_v9 = vsel %vm16752_vm3, %v7765_v35, 0  ;;  %v8254_v49 = vsel %vm16754_vm11, %v8221_v7, 0  ;;  %v7797_v27 = vsel %vm16756_vm8, %v7764_v14, 0  ;;  %v8417_v18 = vor.u32 %v8416_v36, %v8413_v6  ;;  %v10467_v36 = vld [vmem:[#allocation2 + $0x70] sm:$0xff] }
 0x427   : > { %v7866_v42 = vunpack.c.l.b16 %v7798_v9  ;;  %v8322_v59 = vunpack.c.l.b16 %v8254_v49  ;;  %vm16760_vm3 = vcmask 130048   ;;  %v7865_v7 = vunpack.c.l.b16 %v7797_v27  ;;  %v10482_v49 = vld [vmem:[#allocation2 + $0x58] sm:$0xff] }
 0x428   : > { %v6961_v24 = vpop.f32.mrf.mxu3  ;;  %vm16762_vm11 = vsmask.f32 4352 }
 0x429   : > { %v14470_v61 = vadd.f32 %v6961_v24, %v6536_v11  ;;  %v7953_v11 = vor.u32 %v7951_v29, %v7949_v19  ;;  %v16757_v24 = vld [vmem:[#allocation31_spill] sm:$0xff]  ;;  %v14490_v19 = vpop.f32.mrf.mxu0  ;;  %v7467_v29 = vadd.f32 %v14064_v28, %v14197_v26  ;;  %v14494_v14 = vpack.c.b16 %v7866_v42, %v7865_v7  ;;  %v7766_v7 = vld [vmem:[#allocation2 + $0x58] sm:$0xf] }
 0x42a   : > { %v7653_v38 = vpop.f32.mrf.mxu1  ;;  %vm16758_vm2 = vnez %v16757_v24  ;;  %v6541_v28 = vadd.f32 %v6540_v37, %v14250_v47  ;;  %v8223_v24 = vld [vmem:[#allocation2 + $0x58] sm:$0xf] }
 0x42b   : > { %v14475_v39 = vadd.f32 %v7653_v38, %v7466_v50  ;;  %v8253_v50 = vsel %vm16758_vm2, %v8220_v0, 0  ;;  %v7958_v21 = vsel %vm16759_vm4, %v7953_v11, %v7957_v58  ;;  %v8418_v0 = vsel %vm16762_vm11, %v8408_v10, %v8417_v18  ;;  %vm16763_vm4 = vmmov %vm16760_vm3  ;;  %v7767_v10 = vld [vmem:[#allocation2 + $0x5c] sm:$0xf] }
 0x42c   : > { %v6542_v48 = vpop.f32.mrf.mxu2  ;;  %v8321_v2 = vunpack.c.l.b16 %v8253_v50  ;;  %vm16764_vm2 = vmmov %vm16760_vm3  ;;  %v7963_v26 = vshll.u32 %v14494_v14, 16 }
 0x42e   : > { %v8347_v52 = vpack.c.b16 %v8322_v59, %v8321_v2  ;;  %v7468_v59 = vadd.f32 %v14088_v30, %v14209_v44 }
 0x430   : > { %v6963_v38 = vpop.f32.mrf.mxu3  ;;  %v8420_v27 = vshrl.u32 %v8347_v52, 16 }
 0x431   : > { %v14487_v35 = vadd.f32 %v6963_v38, %v6538_v13  ;;  %10241 = vmatmul.msk.bf16.gmra.mxu2 %vm16760_vm3, %v7958_v21  ;;  %v8423_v13 = vshll.u32 %v8347_v52, 16  ;;  %v7959_v38 = vshrl.u32 %v14458_v57, 16  ;;  %v7965_v21 = vrot.slane %v7963_v26, 1  ;;  %v8222_v52 = vld [vmem:[#allocation2 + $0x54] sm:$0xf] }
 0x432   : > { %v7656_v55 = vpop.f32.mrf.mxu1  ;;  %v8422_v2 = vrot.slane %v8420_v27, 3  ;;  %v7799_v57 = vsel %vm16561_vm1, %v7766_v7, 0 }
 0x433   : > { %v14496_v9 = vadd.f32 %v7656_v55, %v7467_v29  ;;  %v14509_v29 = vpop.f32.mrf.mxu0  ;;  %v8425_v55 = vrot.slane %v8423_v13, 4  ;;  %v7961_v44 = vor.u32 %v7959_v38, %v7957_v58  ;;  %v16772_v58 = vld [vmem:[#allocation93_spill] sm:$0xff]  ;;  %v16773_v38 = vld [vmem:[#allocation82_spill] sm:$0xff] }
 0x434   : > { %v6545_v6 = vpop.f32.mrf.mxu2 }
 0x435   : > { %16761 = vst [vmem:[#allocation98_spill] sm:$0xff] %v14496_v9  ;;  %10260 = vmatmul.msk.bf16.gmra.mxu3 %vm16763_vm4, %v8418_v0  ;;  %10227 = vmatmul.msk.bf16.gmra.mxu1 %vm16760_vm3, %v10467_v36  ;;  %v7800_v36 = vsel %vm16557_vm12, %v7767_v10, 0  ;;  %vm16771_vm3 = vsmask.f32 7424  ;;  %v8426_v13 = vor.u32 %v8425_v55, %v8422_v2  ;;  %v10483_v55 = vld [vmem:[#allocation2 + $0x60] sm:$0xff] }
 0x436   : > { %10347 = vmatmul.msk.bf16.gmra.mxu0 %vm16764_vm2, %v10482_v49  ;;  %v16767_v49 = vld [vmem:[#allocation9_spill] sm:$0xff]  ;;  %v7868_v26 = vunpack.c.l.b16 %v7800_v36  ;;  %v7966_v27 = vsel %vm16771_vm3, %v7961_v44, %v7965_v21  ;;  %v10468_v44 = vld [vmem:[#allocation2 + $0x78] sm:$0xff]  ;;  %vm16778_vm3 = vmmov %vm16764_vm2 }
 0x437   : > { %vm16768_vm11 = vnez %v16767_v49  ;;  %v7469_v49 = vadd.f32 %v16773_v38, %v16772_v58  ;;  %v7967_v38 = vshrl.u32 %v14494_v14, 16  ;;  %v16787_v0 = vld [vmem:[#allocation51_spill] sm:$0xff] }
 0x438   : > { %v6966_v11 = vpop.f32.mrf.mxu3  ;;  %v8256_v30 = vsel %vm16768_vm11, %v8223_v24, 0  ;;  %v7867_v24 = vunpack.c.l.b16 %v7799_v57  ;;  %vm16775_vm11 = vsmask.f32 4352  ;;  %v6546_v57 = vadd.f32 %v6545_v6, %v14287_v34 }
 0x439   : > { %v14504_v42 = vadd.f32 %v6966_v11, %v6541_v28  ;;  %v6543_v28 = vadd.f32 %v6542_v48, %v14264_v15  ;;  %v16769_v11 = vld [vmem:[#allocation7_spill] sm:$0xff]  ;;  %v8427_v36 = vsel %vm16775_vm11, %v8417_v18, %v8426_v13  ;;  %v7969_v17 = vor.u32 %v7967_v38, %v7965_v21  ;;  %v16793_v38 = vld [vmem:[#allocation88_spill] sm:$0xff] }
 0x43a   : > { %v7658_v50 = vpop.f32.mrf.mxu1  ;;  %vm16770_vm4 = vnez %v16769_v11  ;;  %v14528_v15 = vpack.c.b16 %v7868_v26, %v7867_v24  ;;  %v8225_v24 = vld [vmem:[#allocation2 + $0x60] sm:$0xf] }
 0x43b   : > { %v14511_v47 = vadd.f32 %v7658_v50, %v7468_v59  ;;  %v8255_v59 = vsel %vm16770_vm4, %v8222_v52, 0  ;;  %vm16776_vm4 = vmmov %vm16764_vm2 }
 0x43c   : > { %v6547_v37 = vpop.f32.mrf.mxu2  ;;  %v8323_v7 = vunpack.c.l.b16 %v8255_v59  ;;  %v7769_v59 = vld [vmem:[#allocation2 + $0x64] sm:$0xf] }
 0x43d   : > { %16765 = vst [vmem:[#allocation63_spill] sm:$0xff] %v14511_v47  ;;  %v8324_v47 = vunpack.c.l.b16 %v8256_v30  ;;  %v14534_v30 = vpop.f32.mrf.mxu0  ;;  %v6548_v14 = vadd.f32 %v6547_v37, %v16787_v0 }
 0x43e   : > { %16777 = vst [vmem:[#allocation99_spill] sm:$0xff] %v14534_v30  ;;  %v16788_v30 = vld [vmem:[#allocation8_spill] sm:$0xff] }
 0x43f   : > { %v8348_v2 = vpack.c.b16 %v8324_v47, %v8323_v7  ;;  %v16779_v47 = vld [vmem:[#allocation94_spill] sm:$0xff]  ;;  %v7768_v7 = vld [vmem:[#allocation2 + $0x60] sm:$0xf] }
 0x440   : > { %v6968_v50 = vpop.f32.mrf.mxu3 }
 0x441   : > { %v14523_v10 = vadd.f32 %v6968_v50, %v6543_v28  ;;  %10242 = vmatmul.msk.bf16.gmra.mxu2 %vm16764_vm2, %v7966_v27  ;;  %v7971_v28 = vshll.u32 %v14528_v15, 16  ;;  %v8429_v26 = vshrl.u32 %v8348_v2, 16  ;;  %v8432_v11 = vshll.u32 %v8348_v2, 16  ;;  %v16780_v50 = vld [vmem:[#allocation55_spill] sm:$0xff] }
 0x442   : > { %v7661_v9 = vpop.f32.mrf.mxu1  ;;  %v7470_v27 = vadd.f32 %v16780_v50, %v16779_v47  ;;  %v7802_v2 = vsel %vm16572_vm15, %v7769_v59, 0  ;;  %v16785_v47 = vld [vmem:[#allocation72_spill] sm:$0xff] }
 0x443   : > { %v14530_v48 = vadd.f32 %v7661_v9, %v7469_v49  ;;  %v7973_v49 = vrot.slane %v7971_v28, 1  ;;  %v8431_v6 = vrot.slane %v8429_v26, 3  ;;  %v7870_v28 = vunpack.c.l.b16 %v7802_v2 }
 0x444   : > { %v6550_v52 = vpop.f32.mrf.mxu2 }
 0x445   : > { %16774 = vst [vmem:[#allocation60_spill] sm:$0xff] %v14530_v48  ;;  %10261 = vmatmul.msk.bf16.gmra.mxu3 %vm16776_vm4, %v8427_v36  ;;  %10228 = vmatmul.msk.bf16.gmra.mxu1 %vm16778_vm3, %v10468_v44  ;;  %v8434_v44 = vrot.slane %v8432_v11, 4  ;;  %vm16786_vm4 = vnez %v16785_v47  ;;  %vm16789_vm3 = vnez %v16788_v30  ;;  %v8942_v47 = vld [vmem:[#allocation2 + $0x1c] sm:$0xf] }
 0x446   : > { %10348 = vmatmul.msk.bf16.gmra.mxu0 %vm16764_vm2, %v10483_v55  ;;  %v7801_v50 = vsel %vm16786_vm4, %v7768_v7, 0  ;;  %vm16790_vm2 = vsmask.f32 7424 }
 0x447   : > { %v7974_v11 = vsel %vm16790_vm2, %v7969_v17, %v7973_v49  ;;  %v14559_v59 = vor.u32 %v8434_v44, %v8431_v6  ;;  %v7869_v21 = vunpack.c.l.b16 %v7801_v50  ;;  %v10469_v6 = vld [vmem:[#allocation2 + $0x80] sm:$0xff] }
 0x448   : > { %v6971_v9 = vpop.f32.mrf.mxu3 }
 0x449   : > { %v14540_v18 = vadd.f32 %v6971_v9, %v6546_v57  ;;  %v8224_v57 = vld [vmem:[#allocation2 + $0x5c] sm:$0xf]  ;;  %v14566_v30 = vpack.c.b16 %v7870_v28, %v7869_v21 }
 0x44a   : > { %v7663_v58 = vpop.f32.mrf.mxu1  ;;  %v16783_v9 = vld [vmem:[#allocation10_spill] sm:$0xff] }
 0x44b   : > { %v14545_v36 = vadd.f32 %v7663_v58, %v7470_v27  ;;  %vm16784_vm11 = vnez %v16783_v9  ;;  %v8257_v27 = vsel %vm16789_vm3, %v8224_v57, 0  ;;  %v14556_v58 = vpop.f32.mrf.mxu0  ;;  %vm16795_vm3 = vsmask.f32 4352  ;;  %v10484_v57 = vld [vmem:[#allocation2 + $0x68] sm:$0xff] }
 0x44c   : > { %v6552_v34 = vpop.f32.mrf.mxu2  ;;  %v8258_v48 = vsel %vm16784_vm11, %v8225_v24, 0  ;;  %vm16791_vm11 = vcmask 130048   ;;  %v16792_v24 = vld [vmem:[#allocation44_spill] sm:$0xff]  ;;  %v8325_v0 = vunpack.c.l.b16 %v8257_v27  ;;  %v8436_v17 = vsel %vm16795_vm3, %v8426_v13, %v14559_v59 }
 0x44d   : > { %16781 = vst [vmem:[#allocation67_spill] sm:$0xff] %v14545_v36  ;;  %v8326_v36 = vunpack.c.l.b16 %v8258_v48  ;;  %v7471_v37 = vadd.f32 %v16793_v38, %v16792_v24  ;;  %vm16796_vm2 = vmmov %vm16791_vm11  ;;  %v7979_v28 = vshll.u32 %v14566_v30, 16  ;;  %v16800_v24 = vld [vmem:[#allocation35_spill] sm:$0xff]  ;;  %v16801_v38 = vld [vmem:[#allocation90_spill] sm:$0xff] }
 0x44e   : > { %vm16798_vm4 = vmmov %vm16796_vm2 }
 0x44f   : > { %v8349_v48 = vpack.c.b16 %v8326_v36, %v8325_v0  ;;  %v7771_v36 = vld [vmem:[#allocation2 + $0x6c] sm:$0xf] }
 0x450   : > { %v6973_v26 = vpop.f32.mrf.mxu3 }
 0x451   : > { %v14561_v9 = vadd.f32 %v6973_v26, %v6548_v14  ;;  %10243 = vmatmul.msk.bf16.gmra.mxu2 %vm16791_vm11, %v7974_v11  ;;  %vm16797_vm11 = vmmov %vm16796_vm2  ;;  %v6551_v14 = vadd.f32 %v6550_v52, %v14320_v60  ;;  %v8438_v26 = vshrl.u32 %v8349_v48, 16  ;;  %v8441_v13 = vshll.u32 %v8349_v48, 16  ;;  %v7770_v60 = vld [vmem:[#allocation2 + $0x68] sm:$0xf] }
 0x452   : > { %v7666_v7 = vpop.f32.mrf.mxu1 }
 0x453   : > { %v14568_v2 = vadd.f32 %v7666_v7, %v7471_v37  ;;  %v14582_v21 = vpop.f32.mrf.mxu0  ;;  %v8227_v37 = vld [vmem:[#allocation2 + $0x68] sm:$0xf]  ;;  %v7975_v7 = vshrl.u32 %v14528_v15, 16  ;;  %v8443_v48 = vrot.slane %v8441_v13, 4 }
 0x454   : > { %v8094_v44 = vpop.f32.mrf.mxu2  ;;  %16799 = vst [vmem:[#allocation100_spill] sm:$0xff] %v14582_v21 }
 0x455   : > { %16794 = vst [vmem:[#allocation64_spill] sm:$0xff] %v14568_v2  ;;  %10262 = vmatmul.msk.bf16.gmra.mxu3 %vm16796_vm2, %v8436_v17  ;;  %v14574_v50 = vadd.f32 %v8094_v44, %v14354_v5  ;;  %10229 = vmatmul.msk.bf16.gmra.mxu1 %vm16797_vm11, %v10469_v6  ;;  %v7472_v5 = vadd.f32 %v16801_v38, %v16800_v24  ;;  %v14587_v17 = vrot.slane %v7979_v28, 1  ;;  %v8440_v44 = vrot.slane %v8438_v26, 3  ;;  %v16805_v24 = vld [vmem:[#allocation15_spill] sm:$0xff]  ;;  %v16807_v28 = vld [vmem:[#allocation76_spill] sm:$0xff]  ;;  %v16809_v26 = vld [vmem:[#allocation13_spill] sm:$0xff] }
 0x456   : > { %10349 = vmatmul.msk.bf16.gmra.mxu0 %vm16798_vm4, %v10484_v57  ;;  %v16803_v57 = vld [vmem:[#allocation77_spill] sm:$0xff]  ;;  %vm16806_vm3 = vnez %v16805_v24  ;;  %v7977_v15 = vor.u32 %v7975_v7, %v7973_v49  ;;  %vm16808_vm2 = vnez %v16807_v28  ;;  %vm16810_vm11 = vnez %v16809_v26 }
 0x457   : > { %vm16804_vm4 = vnez %v16803_v57  ;;  %v8260_v38 = vsel %vm16806_vm3, %v8227_v37, 0  ;;  %v7803_v55 = vsel %vm16808_vm2, %v7770_v60, 0  ;;  %v8975_v49 = vsel %vm16405_vm14, %v8942_v47, 0  ;;  %v16814_v60 = vld [vmem:[#allocation53_spill] sm:$0xff] }
 0x458   : > { %v6976_v27 = vpop.f32.mrf.mxu3  ;;  %v8328_v37 = vunpack.c.l.b16 %v8260_v38  ;;  %vm16813_vm3 = vcmask 130048   ;;  %v9043_v47 = vunpack.c.l.b16 %v8975_v49  ;;  %vm16820_vm14 = vsmask.f32 4352 }
 0x459   : > { %v14580_v11 = vadd.f32 %v6976_v27, %v6551_v14  ;;  %v7804_v14 = vsel %vm16804_vm4, %v7771_v36, 0  ;;  %v8226_v27 = vld [vmem:[#allocation2 + $0x64] sm:$0xf]  ;;  %vm16811_vm4 = vsmask.f32 7424 }
 0x45a   : > { %v7668_v0 = vpop.f32.mrf.mxu1  ;;  %v8259_v13 = vsel %vm16810_vm11, %v8226_v27, 0  ;;  %v8944_v36 = vld [vmem:[#allocation2 + $0x24] sm:$0xf] }
 0x45b   : > { %v14589_v52 = vadd.f32 %v7668_v0, %v7472_v5  ;;  %v6553_v5 = vadd.f32 %v6552_v34, %v14332_v40  ;;  %v7872_v0 = vunpack.c.l.b16 %v7804_v14  ;;  %v7871_v40 = vunpack.c.l.b16 %v7803_v55  ;;  %v8943_v34 = vld [vmem:[#allocation2 + $0x20] sm:$0xf]  ;;  %v16815_v14 = vld [vmem:[#allocation92_spill] sm:$0xff] }
 0x45c   : > { %v8096_v6 = vpop.f32.mrf.mxu2  ;;  %v7473_v27 = vadd.f32 %v16815_v14, %v16814_v60  ;;  %v8327_v26 = vunpack.c.l.b16 %v8259_v13  ;;  %v10485_v60 = vld [vmem:[#allocation2 + $0x70] sm:$0xff] }
 0x45d   : > { %16802 = vst [vmem:[#allocation71_spill] sm:$0xff] %v14589_v52  ;;  %v14594_v2 = vadd.f32 %v8096_v6, %v14369_v1  ;;  %v8941_v52 = vld [vmem:[#allocation2 + $0x18] sm:$0xf]  ;;  %v7982_v1 = vsel %vm16811_vm4, %v7977_v15, %v14587_v17  ;;  %v14605_v6 = vor.u32 %v8443_v48, %v8440_v44  ;;  %v8977_v44 = vsel %vm16647_vm10, %v8944_v36, 0  ;;  %vm16823_vm10 = vmmov %vm16813_vm3 }
 0x45e   : > { %v8974_v21 = vsel %vm16403_vm6, %v8941_v52, 0  ;;  %v14618_v38 = vpack.c.b16 %v7872_v0, %v7871_v40  ;;  %v8350_v24 = vpack.c.b16 %v8328_v37, %v8327_v26  ;;  %v8976_v52 = vsel %vm16649_vm5, %v8943_v34, 0  ;;  %vm16822_vm6 = vmmov %vm16813_vm3 }
 0x45f   : > { %v8445_v55 = vsel %vm16820_vm14, %v14559_v59, %v14605_v6  ;;  %v9042_v36 = vunpack.c.l.b16 %v8974_v21  ;;  %v9045_v49 = vunpack.c.l.b16 %v8977_v44  ;;  %vm16824_vm4 = vmmov %vm16813_vm3  ;;  %v9044_v40 = vunpack.c.l.b16 %v8976_v52  ;;  %v16825_v21 = vld [vmem:[#allocation91_spill] sm:$0xff] }
 0x460   : > { %v6978_v57 = vpop.f32.mrf.mxu3  ;;  %v7987_v59 = vshll.u32 %v14618_v38, 16  ;;  %v8450_v26 = vshll.u32 %v8350_v24, 16  ;;  %v7474_v44 = vadd.f32 %v16825_v21, %v14315_v46  ;;  %v16829_v21 = vld [vmem:[#allocation80_spill] sm:$0xff] }
 0x461   : > { %v14609_v7 = vadd.f32 %v6978_v57, %v6553_v5  ;;  %10244 = vmatmul.msk.bf16.gmra.mxu2 %vm16813_vm3, %v7982_v1  ;;  %v14620_v57 = vpop.f32.mrf.mxu0  ;;  %v10470_v1 = vld [vmem:[#allocation2 + $0x88] sm:$0xff]  ;;  %v9075_v14 = vpack.c.b16 %v9043_v47, %v9042_v36  ;;  %v14639_v15 = vpack.c.b16 %v9045_v49, %v9044_v40  ;;  %v7772_v36 = vld [vmem:[#allocation2 + $0x70] sm:$0xf]  ;;  %v16827_v49 = vld [vmem:[#allocation18_spill] sm:$0xff]  ;;  %vm16830_vm11 = vnez %v16829_v21 }
 0x462   : > { %v7671_v48 = vpop.f32.mrf.mxu1  ;;  %16818 = vst [vmem:[#allocation70_spill] sm:$0xff] %v14620_v57  ;;  %v8228_v47 = vld [vmem:[#allocation2 + $0x6c] sm:$0xf]  ;;  %vm16828_vm5 = vnez %v16827_v49 }
 0x463   : > { %v14622_v5 = vadd.f32 %v7671_v48, %v7473_v27  ;;  %v8447_v27 = vshrl.u32 %v8350_v24, 16  ;;  %v7773_v48 = vld [vmem:[#allocation2 + $0x74] sm:$0xf]  ;;  %v9095_v28 = vshll.u32 %v9075_v14, 16  ;;  %v9100_v46 = vshll.u32 %v14639_v15, 16 }
 0x464   : > { %v8099_v13 = vpop.f32.mrf.mxu2 }
 0x465   : > { %16819 = vst [vmem:[#allocation101_spill] sm:$0xff] %v14622_v5  ;;  %10263 = vmatmul.msk.bf16.gmra.mxu3 %vm16822_vm6, %v8445_v55  ;;  %v14631_v0 = vadd.f32 %v8099_v13, %v14390_v31  ;;  %10230 = vmatmul.msk.bf16.gmra.mxu1 %vm16823_vm10, %v10470_v1  ;;  %v8229_v31 = vld [vmem:[#allocation2 + $0x70] sm:$0xf]  ;;  %v7983_v1 = vshrl.u32 %v14566_v30, 16  ;;  %v14644_v13 = vrot.slane %v7987_v59, 1  ;;  %v7806_v30 = vsel %vm16830_vm11, %v7773_v48, 0  ;;  %vm16837_vm10 = vmmov %vm16824_vm4 }
 0x466   : > { %10350 = vmatmul.msk.bf16.gmra.mxu0 %vm16824_vm4, %v10485_v60  ;;  %v8449_v60 = vrot.slane %v8447_v27, 3  ;;  %v8262_v40 = vsel %vm16828_vm5, %v8229_v31, 0  ;;  %v8946_v5 = vld [vmem:[#allocation2 + $0x2c] sm:$0xf]  ;;  %vm16836_vm6 = vsmask.f32 7424  ;;  %v7874_v48 = vunpack.c.l.b16 %v7806_v30  ;;  %vm16843_vm5 = vmmov %vm16837_vm10 }
 0x467   : > { %v8330_v31 = vunpack.c.l.b16 %v8262_v40  ;;  %vm16841_vm4 = vsmask.f32 4352 }
 0x468   : > { %v8572_v37 = vpop.f32.mrf.mxu3 }
 0x469   : > { %v14637_v34 = vadd.f32 %v8572_v37, %v14574_v50  ;;  %v8452_v50 = vrot.slane %v8450_v26, 4  ;;  %v14656_v59 = vpop.f32.mrf.mxu0  ;;  %v9097_v26 = vrot.slane %v9095_v28, 1 }
 0x46a   : > { %v7673_v55 = vpop.f32.mrf.mxu1  ;;  %16831 = vst [vmem:[#allocation74_spill] sm:$0xff] %v14656_v59 }
 0x46b   : > { %v14646_v52 = vadd.f32 %v7673_v55, %v7474_v44  ;;  %v7985_v44 = vor.u32 %v7983_v1, %v14587_v17  ;;  %v16832_v55 = vld [vmem:[#allocation17_spill] sm:$0xff]  ;;  %v14665_v57 = vor.u32 %v8452_v50, %v8449_v60  ;;  %v9093_v17 = vshrl.u32 %v9075_v14, 16 }
 0x46c   : > { %v8101_v24 = vpop.f32.mrf.mxu2  ;;  %vm16833_vm3 = vnez %v16832_v55  ;;  %v14671_v1 = vrot.slane %v9100_v46, 1 }
 0x46d   : > { %16826 = vst [vmem:[#allocation75_spill] sm:$0xff] %v14646_v52  ;;  %v14651_v37 = vadd.f32 %v8101_v24, %v14405_v3  ;;  %v8261_v27 = vsel %vm16833_vm3, %v8228_v47, 0  ;;  %v16834_v52 = vld [vmem:[#allocation47_spill] sm:$0xff]  ;;  %v7990_v24 = vsel %vm16836_vm6, %v7985_v44, %v14644_v13  ;;  %v8945_v47 = vld [vmem:[#allocation2 + $0x28] sm:$0xf]  ;;  %v8979_v44 = vsel %vm16661_vm0, %v8946_v5, 0  ;;  %vm16844_vm0 = vmmov %vm16836_vm6 }
 0x46e   : > { %vm16835_vm14 = vnez %v16834_v52  ;;  %v8329_v28 = vunpack.c.l.b16 %v8261_v27  ;;  %v9098_v50 = vor.u32 %v9097_v26, %v9093_v17  ;;  %v9047_v26 = vunpack.c.l.b16 %v8979_v44  ;;  %vm16845_vm3 = vmmov %vm16843_vm5 }
 0x46f   : > { %v7805_v49 = vsel %vm16835_vm14, %v7772_v36, 0  ;;  %v16838_v36 = vld [vmem:[#allocation95_spill] sm:$0xff]  ;;  %vm16846_vm6 = vmmov %vm16845_vm3 }
 0x470   : > { %v8574_v3 = vpop.f32.mrf.mxu3  ;;  %v7475_v40 = vadd.f32 %v16838_v36, %v14330_v56  ;;  %v7873_v55 = vunpack.c.l.b16 %v7805_v49  ;;  %v8351_v30 = vpack.c.b16 %v8330_v31, %v8329_v28  ;;  %v10486_v56 = vld [vmem:[#allocation2 + $0x78] sm:$0xff]  ;;  %v9103_v52 = vsel %vm16844_vm0, %v9098_v50, %v14671_v1 }
 0x471   : > { %v14668_v21 = vadd.f32 %v8574_v3, %v14594_v2  ;;  %10245 = vmatmul.msk.bf16.gmra.mxu2 %vm16837_vm10, %v7990_v24  ;;  %v8454_v2 = vsel %vm16841_vm4, %v14605_v6, %v14665_v57  ;;  %v8978_v3 = vsel %vm16667_vm7, %v8945_v47, 0  ;;  %v14694_v31 = vpop.f32.mrf.mxu0  ;;  %v8231_v47 = vld [vmem:[#allocation2 + $0x78] sm:$0xf] }
 0x472   : > { %v7676_v60 = vpop.f32.mrf.mxu1  ;;  %v14682_v46 = vpack.c.b16 %v7874_v48, %v7873_v55  ;;  %v8456_v6 = vshrl.u32 %v8351_v30, 16  ;;  %v9046_v49 = vunpack.c.l.b16 %v8978_v3  ;;  %v8459_v17 = vshll.u32 %v8351_v30, 16  ;;  %v16847_v36 = vld [vmem:[#allocation46_spill] sm:$0xff] }
 0x473   : > { %v14677_v59 = vadd.f32 %v7676_v60, %v7475_v40  ;;  %v7476_v40 = vadd.f32 %v16847_v36, %v14347_v41  ;;  %v7775_v55 = vld [vmem:[#allocation2 + $0x7c] sm:$0xf]  ;;  %v7991_v60 = vshrl.u32 %v14618_v38, 16 }
 0x474   : > { %v8104_v14 = vpop.f32.mrf.mxu2  ;;  %v7995_v48 = vshll.u32 %v14682_v46, 16  ;;  %v8458_v50 = vrot.slane %v8456_v6, 3  ;;  %v8461_v30 = vrot.slane %v8459_v17, 4 }
 0x475   : > { %16840 = vst [vmem:[#allocation79_spill] sm:$0xff] %v14677_v59  ;;  %10264 = vmatmul.msk.bf16.gmra.mxu3 %vm16843_vm5, %v8454_v2  ;;  %v14688_v5 = vadd.f32 %v8104_v14, %v14426_v8  ;;  %10359 = vmatmul.msk.bf16.vlgmr.msra.gmra.mxu1 %vm16845_vm3, %v9103_v52  ;;  %v14700_v8 = vpack.c.b16 %v9047_v26, %v9046_v49  ;;  %v8230_v2 = vld [vmem:[#allocation2 + $0x74] sm:$0xf]  ;;  %v16851_v49 = vld [vmem:[#allocation83_spill] sm:$0xff] }
 0x476   : > { %10351 = vmatmul.msk.bf16.gmra.mxu0 %vm16846_vm6, %v10486_v56  ;;  %v14707_v3 = vrot.slane %v7995_v48, 1  ;;  %v16849_v56 = vld [vmem:[#allocation22_spill] sm:$0xff]  ;;  %vm16852_vm10 = vnez %v16851_v49  ;;  %v7993_v6 = vor.u32 %v7991_v60, %v14644_v13  ;;  %v16855_v48 = vld [vmem:[#allocation81_spill] sm:$0xff]  ;;  %v9104_v13 = vshrl.u32 %v14639_v15, 16  ;;  %v16862_v59 = vld [vmem:[#allocation43_spill] sm:$0xff] }
 0x477   : > { %vm16850_vm7 = vnez %v16849_v56  ;;  %v9108_v41 = vshll.u32 %v14700_v8, 16  ;;  %v7808_v38 = vsel %vm16852_vm10, %v7775_v55, 0  ;;  %vm16856_vm5 = vnez %v16855_v48 }
 0x478   : > { %v8577_v24 = vpop.f32.mrf.mxu3  ;;  %v8264_v52 = vsel %vm16850_vm7, %v8231_v47, 0  ;;  %v14724_v47 = vor.u32 %v8461_v30, %v8458_v50  ;;  %v16858_v50 = vld [vmem:[#allocation45_spill] sm:$0xff]  ;;  %vm16861_vm7 = vsmask.f32 4352 }
 0x479   : > { %v14698_v28 = vadd.f32 %v8577_v24, %v14631_v0  ;;  %v7774_v0 = vld [vmem:[#allocation2 + $0x78] sm:$0xf]  ;;  %v16853_v24 = vld [vmem:[#allocation20_spill] sm:$0xff]  ;;  %v14731_v55 = vrot.slane %v9108_v41, 1  ;;  %vm16859_vm6 = vnez %v16858_v50  ;;  %v7777_v50 = vld [vmem:[#allocation2 + $0x84] sm:$0xf] }
 0x47a   : > { %v7678_v44 = vpop.f32.mrf.mxu1  ;;  %vm16854_vm4 = vnez %v16853_v24  ;;  %v7807_v17 = vsel %vm16856_vm5, %v7774_v0, 0  ;;  %v14733_v0 = vpop.f32.mrf.mxu0  ;;  %v8463_v15 = vsel %vm16861_vm7, %v14665_v57, %v14724_v47 }
 0x47b   : > { %v14705_v14 = vadd.f32 %v7678_v44, %v7476_v40  ;;  %v8263_v36 = vsel %vm16854_vm4, %v8230_v2, 0  ;;  %v8332_v40 = vunpack.c.l.b16 %v8264_v52  ;;  %v8948_v44 = vld [vmem:[#allocation2 + $0x34] sm:$0xf]  ;;  %v8947_v2 = vld [vmem:[#allocation2 + $0x30] sm:$0xf]  ;;  %v16857_v52 = vld [vmem:[#allocation96_spill] sm:$0xff]  ;;  %vm16863_vm4 = vnez %v16862_v59 }
 0x47c   : > { %v8106_v27 = vpop.f32.mrf.mxu2  ;;  %v8331_v60 = vunpack.c.l.b16 %v8263_v36  ;;  %v7477_v24 = vadd.f32 %v16857_v52, %v14364_v43  ;;  %v8981_v30 = vsel %vm16859_vm6, %v8948_v44, 0  ;;  %v8980_v43 = vsel %vm16863_vm4, %v8947_v2, 0 }
 0x47d   : > { %16848 = vst [vmem:[#allocation78_spill] sm:$0xff] %v14705_v14  ;;  %v14712_v26 = vadd.f32 %v8106_v27, %v14439_v20  ;;  %v7998_v20 = vsel %vm16844_vm0, %v7993_v6, %v14707_v3  ;;  %v7876_v27 = vunpack.c.l.b16 %v7808_v38  ;;  %v7875_v6 = vunpack.c.l.b16 %v7807_v17  ;;  %v10487_v17 = vld [vmem:[#allocation2 + $0x80] sm:$0xff]  ;;  %vm16864_vm0 = vmmov %vm16845_vm3 }
 0x47e   : > { %vm16866_vm6 = vmmov %vm16864_vm0 }
 0x47f   : > { %v14745_v36 = vpack.c.b16 %v7876_v27, %v7875_v6  ;;  %vm16867_vm5 = vmmov %vm16864_vm0  ;;  %v9048_v27 = vunpack.c.l.b16 %v8980_v43 }
 0x480   : > { %v8579_v56 = vpop.f32.mrf.mxu3 }
 0x481   : > { %v14727_v14 = vadd.f32 %v8579_v56, %v14651_v37  ;;  %10246 = vmatmul.msk.bf16.gmra.mxu2 %vm16845_vm3, %v7998_v20  ;;  %v9106_v37 = vor.u32 %v9104_v13, %v14671_v1  ;;  %v8352_v56 = vpack.c.b16 %v8332_v40, %v8331_v60  ;;  %vm16865_vm3 = vsmask.f32 7424 }
 0x482   : > { %v7681_v38 = vpop.f32.mrf.mxu1  ;;  %v9049_v40 = vunpack.c.l.b16 %v8981_v30  ;;  %v8003_v59 = vshll.u32 %v14745_v36, 16 }
 0x483   : > { %v14740_v20 = vadd.f32 %v7681_v38, %v7477_v24  ;;  %v9111_v1 = vsel %vm16865_vm3, %v9106_v37, %v14731_v55  ;;  %v8465_v57 = vshrl.u32 %v8352_v56, 16  ;;  %v8468_v60 = vshll.u32 %v8352_v56, 16  ;;  %v16868_v24 = vld [vmem:[#allocation97_spill] sm:$0xff] }
 0x484   : > { %v8109_v41 = vpop.f32.mrf.mxu2  ;;  %v14761_v52 = vpack.c.b16 %v9049_v40, %v9048_v27  ;;  %v7478_v6 = vadd.f32 %v16868_v24, %v14383_v12  ;;  %v7999_v38 = vshrl.u32 %v14682_v46, 16  ;;  %v16870_v40 = vld [vmem:[#allocation26_spill] sm:$0xff]  ;;  %v16872_v24 = vld [vmem:[#allocation85_spill] sm:$0xff] }
 0x485   : > { %16860 = vst [vmem:[#allocation102_spill] sm:$0xff] %v14740_v20  ;;  %10265 = vmatmul.msk.bf16.gmra.mxu3 %vm16864_vm0, %v8463_v15  ;;  %v14751_v44 = vadd.f32 %v8109_v41, %v14460_v22  ;;  %10360 = vmatmul.msk.bf16.gmra.mxu1 %vm16866_vm6, %v9111_v1  ;;  %v8233_v22 = vld [vmem:[#allocation2 + $0x80] sm:$0xf]  ;;  %v8467_v37 = vrot.slane %v8465_v57, 3  ;;  %v8232_v15 = vld [vmem:[#allocation2 + $0x7c] sm:$0xf]  ;;  %v14766_v41 = vpop.f32.mrf.mxu0  ;;  %vm16873_vm7 = vnez %v16872_v24 }
 0x486   : > { %10352 = vmatmul.msk.bf16.gmra.mxu0 %vm16867_vm5, %v10487_v17  ;;  %v8005_v17 = vrot.slane %v8003_v59, 1  ;;  %v7776_v1 = vld [vmem:[#allocation2 + $0x80] sm:$0xf]  ;;  %vm16871_vm5 = vnez %v16870_v40  ;;  %v9116_v12 = vshll.u32 %v14761_v52, 16  ;;  %v7810_v46 = vsel %vm16873_vm7, %v7777_v50, 0  ;;  %v16874_v20 = vld [vmem:[#allocation25_spill] sm:$0xff] }
 0x487   : > { %v8266_v27 = vsel %vm16871_vm5, %v8233_v22, 0  ;;  %v8001_v57 = vor.u32 %v7999_v38, %v14707_v3  ;;  %vm16875_vm4 = vnez %v16874_v20  ;;  %v9112_v3 = vshrl.u32 %v14700_v8, 16  ;;  %v8949_v38 = vld [vmem:[#allocation2 + $0x38] sm:$0xf] }
 0x488   : > { %v8582_v13 = vpop.f32.mrf.mxu3  ;;  %v9118_v20 = vrot.slane %v9116_v12, 1 }
 0x489   : > { %v14759_v2 = vadd.f32 %v8582_v13, %v14688_v5  ;;  %v8470_v5 = vrot.slane %v8468_v60, 4  ;;  %v8334_v60 = vunpack.c.l.b16 %v8266_v27  ;;  %v8006_v22 = vsel %vm16865_vm3, %v8001_v57, %v8005_v17 }
 0x48a   : > { %v7683_v30 = vpop.f32.mrf.mxu1 }
 0x48b   : > { %v14768_v43 = vadd.f32 %v7683_v30, %v7478_v6  ;;  %v8265_v6 = vsel %vm16875_vm4, %v8232_v15, 0  ;;  %v16876_v30 = vld [vmem:[#allocation84_spill] sm:$0xff]  ;;  %v16878_v15 = vld [vmem:[#allocation59_spill] sm:$0xff]  ;;  %vm16882_vm4 = vsmask.f32 4352 }
 0x48c   : > { %v8111_v56 = vpop.f32.mrf.mxu2  ;;  %vm16877_vm0 = vnez %v16876_v30  ;;  %v8333_v50 = vunpack.c.l.b16 %v8265_v6  ;;  %v16879_v30 = vld [vmem:[#allocation49_spill] sm:$0xff]  ;;  %v16883_v6 = vld [vmem:[#allocation48_spill] sm:$0xff] }
 0x48d   : > { %16869 = vst [vmem:[#allocation103_spill] sm:$0xff] %v14768_v43  ;;  %v14773_v13 = vadd.f32 %v8111_v56, %v14475_v39  ;;  %v7809_v59 = vsel %vm16877_vm0, %v7776_v1, 0  ;;  %v8950_v43 = vld [vmem:[#allocation2 + $0x3c] sm:$0xf]  ;;  %v14784_v39 = vor.u32 %v8470_v5, %v8467_v37  ;;  %v7878_v56 = vunpack.c.l.b16 %v7810_v46 }
 0x48e   : > { %v7479_v1 = vadd.f32 %v16878_v15, %v14398_v63  ;;  %v7877_v27 = vunpack.c.l.b16 %v7809_v59  ;;  %vm16880_vm5 = vnez %v16879_v30  ;;  %v9114_v5 = vor.u32 %v9112_v3, %v14731_v55  ;;  %v10488_v63 = vld [vmem:[#allocation2 + $0x88] sm:$0xff]  ;;  %v14807_v59 = vpop.f32.mrf.mxu0  ;;  %v16888_v15 = vld [vmem:[#allocation57_spill] sm:$0xff] }
 0x48f   : > { %v8983_v57 = vsel %vm16880_vm5, %v8950_v43, 0  ;;  %v8353_v46 = vpack.c.b16 %v8334_v60, %v8333_v50  ;;  %v8472_v8 = vsel %vm16882_vm4, %v14724_v47, %v14784_v39  ;;  %vm16884_vm3 = vnez %v16883_v6  ;;  %vm16886_vm5 = vmmov %vm16866_vm6 }
 0x490   : > { %v8584_v40 = vpop.f32.mrf.mxu3  ;;  %v14801_v12 = vpack.c.b16 %v7878_v56, %v7877_v27  ;;  %vm16885_vm0 = vsmask.f32 7424  ;;  %v9051_v30 = vunpack.c.l.b16 %v8983_v57  ;;  %vm16887_vm7 = vmmov %vm16886_vm5  ;;  %v7779_v27 = vld [vmem:[#allocation2 + $0x8c] sm:$0xf] }
 0x491   : > { %v14787_v48 = vadd.f32 %v8584_v40, %v14712_v26  ;;  %10247 = vmatmul.msk.bf16.gmra.mxu2 %vm16866_vm6, %v8006_v22  ;;  %v8982_v40 = vsel %vm16884_vm3, %v8949_v38, 0  ;;  %v9119_v43 = vsel %vm16885_vm0, %v9114_v5, %v9118_v20  ;;  %v8474_v55 = vshrl.u32 %v8353_v46, 16  ;;  %v8235_v38 = vld [vmem:[#allocation2 + $0x88] sm:$0xf] }
 0x492   : > { %v7686_v37 = vpop.f32.mrf.mxu1  ;;  %v9050_v60 = vunpack.c.l.b16 %v8982_v40  ;;  %v8011_v22 = vshll.u32 %v14801_v12, 16  ;;  %v8477_v56 = vshll.u32 %v8353_v46, 16  ;;  %v7778_v46 = vld [vmem:[#allocation2 + $0x88] sm:$0xf] }
 0x493   : > { %v14796_v26 = vadd.f32 %v7686_v37, %v7479_v1  ;;  %v7480_v1 = vadd.f32 %v16888_v15, %v14417_v33  ;;  %v8007_v37 = vshrl.u32 %v14745_v36, 16  ;;  %v8476_v5 = vrot.slane %v8474_v55, 3  ;;  %v16894_v15 = vld [vmem:[#allocation28_spill] sm:$0xff]  ;;  %v16896_v36 = vld [vmem:[#allocation86_spill] sm:$0xff] }
 0x494   : > { %v14815_v50 = vpack.c.b16 %v9051_v30, %v9050_v60  ;;  %v8013_v40 = vrot.slane %v8011_v22, 1  ;;  %v16892_v60 = vld [vmem:[#allocation87_spill] sm:$0xff]  ;;  %vm16895_vm4 = vnez %v16894_v15  ;;  %vm16897_vm3 = vnez %v16896_v36 }
 0x495   : > { %16881 = vst [vmem:[#allocation6_spill] sm:$0xff] %v14796_v26  ;;  %10266 = vmatmul.msk.bf16.gmra.mxu3 %vm16866_vm6, %v8472_v8  ;;  %10361 = vmatmul.msk.bf16.gmra.mxu1 %vm16886_vm5, %v9119_v43  ;;  %v8234_v8 = vld [vmem:[#allocation2 + $0x84] sm:$0xf]  ;;  %v16890_v43 = vld [vmem:[#allocation30_spill] sm:$0xff]  ;;  %vm16893_vm0 = vnez %v16892_v60  ;;  %v8009_v33 = vor.u32 %v8007_v37, %v8005_v17  ;;  %v7811_v55 = vsel %vm16897_vm3, %v7778_v46, 0  ;;  %v9120_v17 = vshrl.u32 %v14761_v52, 16 }
 0x496   : > { %10353 = vmatmul.msk.bf16.gmra.mxu0 %vm16887_vm7, %v10488_v63  ;;  %v8479_v63 = vrot.slane %v8477_v56, 4  ;;  %vm16891_vm7 = vnez %v16890_v43  ;;  %v9124_v30 = vshll.u32 %v14815_v50, 16  ;;  %v8267_v26 = vsel %vm16895_vm4, %v8234_v8, 0  ;;  %v8951_v8 = vld [vmem:[#allocation2 + $0x40] sm:$0xf] }
 0x497   : > { %vm16898_vm6 = vsmask.f32 7424  ;;  %v8335_v37 = vunpack.c.l.b16 %v8267_v26  ;;  %v7481_v46 = vadd.f32 %v14380_v25, %v14434_v54  ;;  %vm16901_vm4 = vnez %v16717_v4  ;;  %v7780_v4 = vld [vmem:[#allocation2 + $0x90] sm:$0x1] }
 0x498   : > { %v8587_v47 = vpop.f32.mrf.mxu3  ;;  %v8014_v56 = vsel %vm16898_vm6, %v8009_v33, %v8013_v40  ;;  %v8984_v52 = vsel %vm16901_vm4, %v8951_v8, 0  ;;  %vm16902_vm6 = vmmov %vm16886_vm5 }
 0x499   : > { %v14813_v3 = vadd.f32 %v8587_v47, %v14751_v44  ;;  %v8268_v44 = vsel %vm16891_vm7, %v8235_v38, 0  ;;  %v7812_v47 = vsel %vm16893_vm0, %v7779_v27, 0  ;;  %v9126_v27 = vrot.slane %v9124_v30, 1  ;;  %vm16904_vm0 = vmmov %vm16902_vm6 }
 0x49a   : > { %v7688_v57 = vpop.f32.mrf.mxu1  ;;  %v7880_v43 = vunpack.c.l.b16 %v7812_v47  ;;  %vm16900_vm7 = vsmask.f32 4352 }
 0x49b   : > { %v14820_v6 = vadd.f32 %v7688_v57, %v7480_v1  ;;  %v8336_v1 = vunpack.c.l.b16 %v8268_v44  ;;  %v8952_v57 = vld [vmem:[#allocation2 + $0x44] sm:$0xf]  ;;  %v7879_v44 = vunpack.c.l.b16 %v7811_v55 }
 0x49c   : > { %v8985_v60 = vsel %vm16714_vm9, %v8952_v57, 0  ;;  %v8236_v57 = vld [vmem:[#allocation2 + $0x8c] sm:$0xf] }
 0x49d   : > { %16889 = vst [vmem:[#allocation5_spill] sm:$0xff] %v14820_v6  ;;  %v8480_v6 = vor.u32 %v8479_v63, %v8476_v5  ;;  %v9122_v5 = vor.u32 %v9120_v17, %v9118_v20  ;;  %v8354_v63 = vpack.c.b16 %v8336_v1, %v8335_v37  ;;  %v9053_v54 = vunpack.c.l.b16 %v8985_v60 }
 0x49e   : > { %v9052_v20 = vunpack.c.l.b16 %v8984_v52  ;;  %v8015_v17 = vshrl.u32 %v14801_v12, 16  ;;  %v8954_v12 = vld [vmem:[#allocation2 + $0x4c] sm:$0xf] }
 0x49f   : > { %v8483_v26 = vshrl.u32 %v8354_v63, 16  ;;  %v8486_v30 = vshll.u32 %v8354_v63, 16 }
 0x4a0   : > { %v8589_v22 = vpop.f32.mrf.mxu3  ;;  %v14850_v1 = vpack.c.b16 %v9053_v54, %v9052_v20  ;;  %v9128_v20 = vshrl.u32 %v14815_v50, 16 }
 0x4a1   : > { %v14833_v38 = vadd.f32 %v8589_v22, %v14773_v13  ;;  %10248 = vmatmul.msk.bf16.gmra.mxu2 %vm16886_vm5, %v8014_v56  ;;  %v8481_v13 = vsel %vm16900_vm7, %v14784_v39, %v8480_v6  ;;  %v7897_v22 = vpack.c.b16 %v7880_v43, %v7879_v44  ;;  %vm16903_vm5 = vsmask.f32 7424  ;;  %v8237_v56 = vld [vmem:[#allocation2 + $0x90] sm:$0xf] }
 0x4a2   : > { %v7691_v33 = vpop.f32.mrf.mxu1  ;;  %v9127_v25 = vsel %vm16903_vm5, %v9122_v5, %v9126_v27  ;;  %v7482_v39 = vadd.f32 %v14400_v51, %v14453_v62  ;;  %v8485_v37 = vrot.slane %v8483_v26, 3  ;;  %v8488_v8 = vrot.slane %v8486_v30, 4  ;;  %v16905_v44 = vld [vmem:[#allocation33_spill] sm:$0xff]  ;;  %vm16911_vm4 = vmmov %vm16903_vm5 }
 0x4a3   : > { %v14841_v47 = vadd.f32 %v7691_v33, %v7481_v46  ;;  %v8019_v55 = vshll.u32 %v7897_v22, 16  ;;  %vm16906_vm9 = vnez %v16905_v44  ;;  %v16907_v33 = vld [vmem:[#allocation34_spill] sm:$0xff]  ;;  %v9132_v63 = vshll.u32 %v14850_v1, 16  ;;  %v14871_v44 = vpop.f32.mrf.mxu0 }
 0x4a4   : > { %v8269_v15 = vsel %vm16906_vm9, %v8236_v57, 0  ;;  %v8017_v62 = vor.u32 %v8015_v17, %v8013_v40  ;;  %v8489_v26 = vor.u32 %v8488_v8, %v8485_v37  ;;  %v8953_v57 = vld [vmem:[#allocation2 + $0x48] sm:$0xf]  ;;  %vm16913_vm5 = vsmask.f32 4352 }
 0x4a5   : > { %10267 = vmatmul.msk.bf16.gmra.mxu3 %vm16902_vm6, %v8481_v13  ;;  %10362 = vmatmul.msk.bf16.gmra.mxu1 %vm16904_vm0, %v9127_v25  ;;  %v8021_v46 = vrot.slane %v8019_v55, 1  ;;  %vm16908_vm0 = vnez %v16907_v33  ;;  %v16909_v13 = vld [vmem:[#allocation89_spill] sm:$0xff]  ;;  %v8337_v52 = vunpack.c.l.b16 %v8269_v15  ;;  %v9134_v55 = vrot.slane %v9132_v63, 1  ;;  %v16914_v33 = vld [vmem:[#allocation56_spill] sm:$0xff] }
 0x4a6   : > { %v8270_v5 = vsel %vm16908_vm0, %v8237_v56, 0  ;;  %vm16910_vm7 = vnez %v16909_v13  ;;  %v7483_v56 = vadd.f32 %v14424_v32, %v14470_v61  ;;  %v8490_v37 = vsel %vm16913_vm5, %v8480_v6, %v8489_v26  ;;  %vm16916_vm0 = vmmov %vm16902_vm6 }
 0x4a7   : > { %v7813_v51 = vsel %vm16910_vm7, %v7780_v4, 0  ;;  %v8338_v25 = vunpack.c.l.b16 %v8270_v5  ;;  %v8022_v54 = vsel %vm16911_vm4, %v8017_v62, %v8021_v46  ;;  %v8987_v4 = vsel %vm16504_vm13, %v8954_v12, 0  ;;  %vm16920_vm5 = vmmov %vm16916_vm0 }
 0x4a8   : > { %v7881_v30 = vunpack.c.l.b16 %v7813_v51  ;;  %vm16915_vm9 = vnez %v16914_v33  ;;  %v9055_v61 = vunpack.c.l.b16 %v8987_v4  ;;  %v8023_v6 = vshrl.u32 %v7897_v22, 16  ;;  %v8955_v33 = vld [vmem:[#allocation2 + $0x50] sm:$0xf] }
 0x4a9   : > { %v8355_v17 = vpack.c.b16 %v8338_v25, %v8337_v52  ;;  %v8986_v50 = vsel %vm16915_vm9, %v8953_v57, 0  ;;  %v7484_v52 = vadd.f32 %v14445_v45, %v14487_v35  ;;  %v8238_v25 = vld [vmem:[#allocation2 + $0x94] sm:$0xf]  ;;  %vm16921_vm9 = vmmov %vm16911_vm4 }
 0x4aa   : > { %v7693_v43 = vpop.f32.mrf.mxu1  ;;  %v7898_v8 = vpack.c.b16 %v7881_v30, %v7881_v30 }
 0x4ab   : > { %v14855_v60 = vadd.f32 %v7693_v43, %v7482_v39  ;;  %v9130_v43 = vor.u32 %v9128_v20, %v9126_v27  ;;  %v8492_v5 = vshrl.u32 %v8355_v17, 16  ;;  %v9054_v27 = vunpack.c.l.b16 %v8986_v50  ;;  %v10489_v39 = vld [vmem:[#allocation2 + $0x90] sm:$0xff] }
 0x4ac   : > { %v8027_v63 = vshll.u32 %v7898_v8, 16  ;;  %v8495_v51 = vshll.u32 %v8355_v17, 16  ;;  %v8025_v20 = vor.u32 %v8023_v6, %v8021_v46  ;;  %v8956_v17 = vld [vmem:[#allocation2 + $0x54] sm:$0xf]  ;;  %v9136_v46 = vshrl.u32 %v14850_v1, 16 }
 0x4ad   : > { %v9135_v32 = vsel %vm16911_vm4, %v9130_v43, %v9134_v55  ;;  %v9081_v62 = vpack.c.b16 %v9055_v61, %v9054_v27  ;;  %v7485_v50 = vadd.f32 %v14468_v53, %v14504_v42 }
 0x4ae   : > { %v8029_v57 = vrot.slane %v8027_v63, 1  ;;  %v9138_v27 = vor.u32 %v9136_v46, %v9134_v55  ;;  %v7486_v55 = vadd.f32 %v14490_v19, %v14523_v10 }
 0x4af   : > { %v9140_v4 = vshll.u32 %v9081_v62, 16 }
 0x4b0   : > { %v8030_v45 = vsel %vm16921_vm9, %v8025_v20, %v8029_v57 }
 0x4b1   : > { %10249 = vmatmul.msk.bf16.gmra.mxu2 %vm16902_vm6, %v8022_v54  ;;  %vm16917_vm6 = vmmov %vm16916_vm0  ;;  %v8494_v54 = vrot.slane %v8492_v5, 3  ;;  %v9142_v8 = vrot.slane %v9140_v4, 1 }
 0x4b2   : > { %v7696_v40 = vpop.f32.mrf.mxu1 }
 0x4b3   : > { %v14873_v15 = vadd.f32 %v7696_v40, %v7483_v56  ;;  %v8497_v56 = vrot.slane %v8495_v51, 4  ;;  %v16918_v40 = vld [vmem:[#allocation40_spill] sm:$0xff]  ;;  %v9143_v1 = vsel %vm16921_vm9, %v9138_v27, %v9142_v8 }
 0x4b4   : > { %vm16919_vm13 = vnez %v16918_v40  ;;  %v9144_v40 = vshrl.u32 %v9081_v62, 16 }
 0x4b5   : > { %10268 = vmatmul.msk.bf16.gmra.mxu3 %vm16916_vm0, %v8490_v37  ;;  %10363 = vmatmul.msk.bf16.gmra.mxu1 %vm16917_vm6, %v9135_v32  ;;  %v8271_v43 = vsel %vm16919_vm13, %v8238_v25, 0  ;;  %v14887_v37 = vpop.f32.mrf.mxu0  ;;  %v8498_v35 = vor.u32 %v8497_v56, %v8494_v54  ;;  %v16922_v32 = vld [vmem:[#allocation62_spill] sm:$0xff]  ;;  %vm16924_vm6 = vsmask.f32 4352  ;;  %vm16925_vm13 = vnez %v16742_v16 }
 0x4b6   : > { %10354 = vmatmul.msk.bf16.gmra.mxu0 %vm16920_vm5, %v10489_v39  ;;  %v8339_v22 = vunpack.c.l.b16 %v8271_v43  ;;  %vm16923_vm4 = vnez %v16922_v32  ;;  %v8988_v6 = vsel %vm16925_vm13, %v8955_v33, 0  ;;  %vm16926_vm5 = vmmov %vm16916_vm0  ;;  %v8958_v39 = vld [vmem:[#allocation2 + $0x5c] sm:$0xf] }
 0x4b7   : > { %v8989_v61 = vsel %vm16923_vm4, %v8956_v17, 0  ;;  %v8499_v51 = vsel %vm16924_vm6, %v8489_v26, %v8498_v35  ;;  %v9056_v53 = vunpack.c.l.b16 %v8988_v6  ;;  %v8957_v17 = vld [vmem:[#allocation2 + $0x58] sm:$0xf]  ;;  %vm16929_vm13 = vmmov %vm16916_vm0 }
 0x4b8   : > { %v9057_v25 = vunpack.c.l.b16 %v8989_v61  ;;  %v8990_v32 = vsel %vm16756_vm8, %v8957_v17, 0 }
 0x4ba   : > { %v7698_v12 = vpop.f32.mrf.mxu1  ;;  %v9082_v54 = vpack.c.b16 %v9057_v25, %v9056_v53  ;;  %v7489_v25 = vadd.f32 %v14556_v58, %v14580_v11  ;;  %v16943_v53 = vld [vmem:[#allocation74_spill] sm:$0xff] }
 0x4bb   : > { %v14883_v30 = vadd.f32 %v7698_v12, %v7484_v52  ;;  %v8356_v52 = vpack.c.b16 %v8339_v22, %v8339_v22  ;;  %v16927_v22 = vld [vmem:[#allocation66_spill] sm:$0xff] }
 0x4bc   : > { %v9148_v56 = vshll.u32 %v9082_v54, 16  ;;  %vm16928_vm4 = vnez %v16927_v22  ;;  %v9152_v6 = vshrl.u32 %v9082_v54, 16 }
 0x4bd   : > { %v8501_v42 = vshrl.u32 %v8356_v52, 16  ;;  %v8504_v12 = vshll.u32 %v8356_v52, 16  ;;  %v8991_v46 = vsel %vm16928_vm4, %v8958_v39, 0  ;;  %vm16942_vm4 = vmmov %vm16916_vm0 }
 0x4be   : > { %v9150_v43 = vrot.slane %v9148_v56, 1  ;;  %v9059_v61 = vunpack.c.l.b16 %v8991_v46  ;;  %v8961_v46 = vld [vmem:[#allocation2 + $0x68] sm:$0xf] }
 0x4bf   : > { %v8503_v57 = vrot.slane %v8501_v42, 3  ;;  %v8506_v16 = vrot.slane %v8504_v12, 4 }
 0x4c1   : > { %10250 = vmatmul.msk.bf16.gmra.mxu2 %vm16916_vm0, %v8030_v45  ;;  %v8507_v4 = vor.u32 %v8506_v16, %v8503_v57  ;;  %v7487_v45 = vadd.f32 %v14509_v29, %v14540_v18  ;;  %v9058_v29 = vunpack.c.l.b16 %v8990_v32  ;;  %v14982_v32 = vpop.f32.mrf.mxu0 }
 0x4c2   : > { %v7701_v5 = vpop.f32.mrf.mxu1 }
 0x4c3   : > { %v14897_v63 = vadd.f32 %v7701_v5, %v7485_v50  ;;  %v9146_v50 = vor.u32 %v9144_v40, %v9142_v8  ;;  %v8508_v10 = vsel %vm16924_vm6, %v8498_v35, %v8507_v4  ;;  %v9083_v18 = vpack.c.b16 %v9059_v61, %v9058_v29  ;;  %v16932_v5 = vld [vmem:[#allocation99_spill] sm:$0xff]  ;;  %v16936_v4 = vld [vmem:[#allocation100_spill] sm:$0xff] }
 0x4c4   : > { %v7488_v27 = vadd.f32 %v16932_v5, %v14561_v9  ;;  %v8960_v35 = vld [vmem:[#allocation2 + $0x64] sm:$0xf]  ;;  %v7490_v58 = vadd.f32 %v16936_v4, %v14609_v7  ;;  %v16939_v5 = vld [vmem:[#allocation72_spill] sm:$0xff] }
 0x4c5   : > { %10269 = vmatmul.msk.bf16.gmra.mxu3 %vm16926_vm5, %v8499_v51  ;;  %10364 = vmatmul.msk.bf16.gmra.mxu1 %vm16916_vm0, %v9143_v1  ;;  %vm16930_vm5 = vmmov %vm16921_vm9  ;;  %v9156_v52 = vshll.u32 %v9083_v18, 16  ;;  %v8959_v1 = vld [vmem:[#allocation2 + $0x60] sm:$0xf]  ;;  %v8993_v42 = vsel %vm16557_vm12, %v8960_v35, 0  ;;  %vm16940_vm12 = vnez %v16939_v5  ;;  %v16957_v5 = vld [vmem:[#allocation81_spill] sm:$0xff] }
 0x4c6   : > { %v9151_v62 = vsel %vm16930_vm5, %v9146_v50, %v9150_v43  ;;  %vm16931_vm9 = vmmov %vm16916_vm0  ;;  %v8992_v9 = vsel %vm16561_vm1, %v8959_v1, 0  ;;  %v9061_v56 = vunpack.c.l.b16 %v8993_v42  ;;  %v10511_v1 = vld [vmem:[%s10633_s12] sm:$0xff]  ;;  %v8910_v42 = vadd.f32 %v16943_v53, %v14668_v21  ;;  %v8964_v21 = vld [vmem:[#allocation2 + $0x74] sm:$0xf] }
 0x4c7   : > { %v9158_v23 = vrot.slane %v9156_v52, 1  ;;  %vm16935_vm8 = vmmov %vm16930_vm5  ;;  %v9060_v54 = vunpack.c.l.b16 %v8992_v9 }
 0x4c8   : > { %vm16941_vm1 = vmmov %vm16930_vm5 }
 0x4c9   : > { %v9084_v39 = vpack.c.b16 %v9061_v56, %v9060_v54  ;;  %vm16949_vm5 = vmmov %vm16916_vm0 }
 0x4ca   : > { %v7703_v20 = vpop.f32.mrf.mxu1 }
 0x4cb   : > { %v14907_v26 = vadd.f32 %v7703_v20, %v7486_v55  ;;  %v9154_v55 = vor.u32 %v9152_v6, %v9150_v43  ;;  %v9164_v17 = vshll.u32 %v9084_v39, 16  ;;  %v8962_v43 = vld [vmem:[#allocation2 + $0x6c] sm:$0xf] }
 0x4cc   : > { %v8995_v7 = vsel %vm16572_vm15, %v8962_v43, 0  ;;  %vm16944_vm15 = vmmov %vm16916_vm0  ;;  %v10512_v43 = vld [vmem:[%s10633_s12 + $0x8] sm:$0xff] }
 0x4cd   : > { %v9159_v16 = vsel %vm16935_vm8, %v9154_v55, %v9158_v23  ;;  %v9166_v22 = vrot.slane %v9164_v17, 1  ;;  %v8963_v17 = vld [vmem:[#allocation2 + $0x70] sm:$0xf]  ;;  %vm16954_vm8 = vmmov %vm16941_vm1 }
 0x4d2   : > { %v7706_v33 = vpop.f32.mrf.mxu1 }
 0x4d3   : > { %v14913_v19 = vadd.f32 %v7706_v33, %v7487_v45  ;;  %v9160_v45 = vshrl.u32 %v9083_v18, 16  ;;  %v16937_v33 = vld [vmem:[#allocation70_spill] sm:$0xff]  ;;  %v14951_v18 = vld [vmem:[%s15292_s6] ss:$0 sm:$0xff] }
 0x4d4   : > { %v8909_v50 = vadd.f32 %v16937_v33, %v14637_v34  ;;  %v8994_v34 = vsel %vm16940_vm12, %v8961_v46, 0  ;;  %v8911_v46 = vadd.f32 %v14694_v31, %v14698_v28  ;;  %v16945_v33 = vld [vmem:[#allocation77_spill] sm:$0xff]  ;;  %vm16955_vm12 = vmmov %vm16916_vm0 }
 0x4d5   : > { %10270 = vmatmul.msk.bf16.gmra.mxu3 %vm16929_vm13, %v8508_v10  ;;  %10365 = vmatmul.msk.bf16.gmra.mxu1 %vm16931_vm9, %v9151_v62  ;;  %v14944_v10 = vld [vmem:[%s15291_s5] ss:$0 sm:$0xff]  ;;  %v9162_v61 = vor.u32 %v9160_v45, %v9158_v23  ;;  %v9062_v35 = vunpack.c.l.b16 %v8994_v34  ;;  %vm16946_vm6 = vnez %v16945_v33  ;;  %vm16948_vm13 = vmmov %vm16941_vm1 }
 0x4d6   : > { %vm16950_vm9 = vmmov %vm16916_vm0 }
 0x4da   : > { %v7708_v8 = vpop.f32.mrf.mxu1 }
 0x4db   : > { %v14923_v51 = vadd.f32 %v7708_v8, %v7488_v27  ;;  %v9167_v27 = vsel %vm16941_vm1, %v9162_v61, %v9166_v22  ;;  %v9063_v8 = vunpack.c.l.b16 %v8995_v7 }
 0x4dd   : > { %v9085_v23 = vpack.c.b16 %v9063_v8, %v9062_v35 }
 0x4df   : > { %v9172_v56 = vshll.u32 %v9085_v23, 16 }
 0x4e2   : > { %v7711_v12 = vpop.f32.mrf.mxu1 }
 0x4e3   : > { %v14929_v20 = vadd.f32 %v7711_v12, %v7489_v25  ;;  %v14962_v12 = vpop.f32.mrf.mxu2 }
 0x4e5   : > { %10366 = vmatmul.msk.bf16.gmra.mxu1 %vm16916_vm0, %v9159_v16  ;;  %v14971_v16 = vpop.f32.mrf.mxu3 }
 0x4ea   : > { %v7713_v11 = vpop.f32.mrf.mxu1 }
 0x4eb   : > { %v14937_v40 = vadd.f32 %v7713_v11, %v7490_v58  ;;  %v9168_v58 = vshrl.u32 %v9084_v39, 16  ;;  %v9174_v11 = vrot.slane %v9172_v56, 1  ;;  %v8996_v39 = vsel %vm16808_vm2, %v8963_v17, 0  ;;  %v14986_v34 = vpop.f32.mrf.mxu2  ;;  %vm16951_vm2 = vmmov %vm16916_vm0 }
 0x4ec   : > { %v9176_v17 = vshrl.u32 %v9085_v23, 16 }
 0x4ed   : > { %v14993_v28 = vpop.f32.mrf.mxu3 }
 0x4f2   : > { %v9287_v62 = vpop.f32.mrf.mxu1 }
 0x4f3   : > { %v9367_v29 = vadd.f32 %v9287_v62, %v8909_v50  ;;  %v8997_v50 = vsel %vm16946_vm6, %v8964_v21, 0  ;;  %v9170_v62 = vor.u32 %v9168_v58, %v9166_v22  ;;  %v9064_v22 = vunpack.c.l.b16 %v8996_v39  ;;  %v8966_v21 = vld [vmem:[#allocation2 + $0x7c] sm:$0xf] }
 0x4f4   : > { %v9065_v8 = vunpack.c.l.b16 %v8997_v50  ;;  %v8999_v50 = vsel %vm16830_vm11, %v8966_v21, 0  ;;  %vm16956_vm11 = vmmov %vm16916_vm0  ;;  %v8968_v21 = vld [vmem:[#allocation2 + $0x84] sm:$0xf]  ;;  %vm16963_vm6 = vnez %v16872_v24 }
 0x4f5   : > { %v9403_v52 = vmul.f32 %v14944_v10, %v9367_v29  ;;  %10367 = vmatmul.msk.bf16.gmra.mxu1 %vm16942_vm4, %v9167_v27  ;;  %v9175_v27 = vsel %vm16948_vm13, %v9170_v62, %v9174_v11  ;;  %v15007_v58 = vpop.f32.mrf.mxu3  ;;  %v9178_v62 = vor.u32 %v9176_v17, %v9174_v11  ;;  %v9001_v33 = vsel %vm16852_vm10, %v8968_v21, 0  ;;  %vm16959_vm4 = vmmov %vm16916_vm0 }
 0x4f6   : > { %v9086_v35 = vpack.c.b16 %v9065_v8, %v9064_v22  ;;  %vm16960_vm10 = vmmov %vm16916_vm0 }
 0x4f7   : > { %v9439_v6 = vadd.f32 %v14951_v18, %v9403_v52 }
 0x4f9   : > { %v9471_v25 = vadd.f32 %v10511_v1, %v9439_v6  ;;  %v10513_v6 = vld [vmem:[%s10633_s12 + $0x10] sm:$0xff] }
 0x4fa   : > { %v9289_v55 = vpop.f32.mrf.mxu1 }
 0x4fb   : > { %v9503_v57 = vmax.f32 %v9471_v25, 0.0  ;;  %v9368_v9 = vadd.f32 %v9289_v55, %v8910_v42  ;;  %v8912_v25 = vadd.f32 %v14733_v0, %v14727_v14  ;;  %v8965_v0 = vld [vmem:[#allocation2 + $0x78] sm:$0xf] }
 0x4fc   : > { %v8998_v39 = vsel %vm16835_vm14, %v8965_v0, 0  ;;  %v9184_v0 = vshrl.u32 %v9086_v35, 16  ;;  %vm16958_vm14 = vnez %v16957_v5 }
 0x4fd   : > { %9535 = vst.msk [vmem:[%s14969_s19] sm:$0xff] %vm16944_vm15, %v9503_v57  ;;  %v9404_v54 = vmul.f32 %v14944_v10, %v9368_v9  ;;  %v14999_v57 = vpop.f32.mrf.mxu0  ;;  %v9180_v9 = vshll.u32 %v9086_v35, 16  ;;  %vm16962_vm15 = vmmov %vm16916_vm0 }
 0x4ff   : > { %v9440_v4 = vadd.f32 %v14951_v18, %v9404_v54  ;;  %v15004_v54 = vpop.f32.mrf.mxu2  ;;  %v9182_v14 = vrot.slane %v9180_v9, 1 }
 0x501   : > { %v9472_v45 = vadd.f32 %v10512_v43, %v9440_v4  ;;  %v10514_v43 = vld [vmem:[%s10633_s12 + $0x18] sm:$0xff]  ;;  %v9183_v23 = vsel %vm16954_vm8, %v9178_v62, %v9182_v14  ;;  %v9186_v62 = vor.u32 %v9184_v0, %v9182_v14  ;;  %vm16971_vm8 = vmmov %vm16916_vm0 }
 0x502   : > { %v9292_v7 = vpop.f32.mrf.mxu1 }
 0x503   : > { %v9504_v61 = vmax.f32 %v9472_v45, 0.0  ;;  %v9369_v29 = vadd.f32 %v9292_v7, %v8911_v46  ;;  %v8913_v46 = vadd.f32 %v14766_v41, %v14759_v2  ;;  %v9066_v41 = vunpack.c.l.b16 %v8998_v39 }
 0x505   : > { %9536 = vst.msk [vmem:[%s14969_s19 + $0x8] sm:$0xff] %vm16949_vm5, %v9504_v61  ;;  %v9405_v31 = vmul.f32 %v14944_v10, %v9369_v29  ;;  %10368 = vmatmul.msk.bf16.gmra.mxu1 %vm16950_vm9, %v9175_v27  ;;  %v9067_v27 = vunpack.c.l.b16 %v8999_v50  ;;  %v15021_v2 = vpop.f32.mrf.mxu0  ;;  %vm16967_vm5 = vmmov %vm16941_vm1 }
 0x506   : > { %vm16968_vm9 = vmmov %vm16916_vm0 }
 0x507   : > { %v9441_v52 = vadd.f32 %v14951_v18, %v9405_v31  ;;  %v15024_v31 = vpop.f32.mrf.mxu2  ;;  %v9087_v22 = vpack.c.b16 %v9067_v27, %v9066_v41  ;;  %v9069_v27 = vunpack.c.l.b16 %v9001_v33 }
 0x509   : > { %v9473_v1 = vadd.f32 %v10513_v6, %v9441_v52  ;;  %v10515_v52 = vld [vmem:[%s10633_s12 + $0x20] sm:$0xff]  ;;  %v9188_v9 = vshll.u32 %v9087_v22, 16 }
 0x50a   : > { %v9294_v53 = vpop.f32.mrf.mxu1 }
 0x50b   : > { %v9505_v42 = vmax.f32 %v9473_v1, 0.0  ;;  %v9370_v55 = vadd.f32 %v9294_v53, %v8912_v25  ;;  %v8914_v1 = vadd.f32 %v14807_v59, %v14787_v48  ;;  %v15029_v25 = vpop.f32.mrf.mxu3  ;;  %v10516_v48 = vld [vmem:[%s10633_s12 + $0x28] sm:$0xff] }
 0x50d   : > { %9537 = vst.msk [vmem:[%s14969_s19 + $0x10] sm:$0xff] %vm16951_vm2, %v9505_v42  ;;  %v9406_v56 = vmul.f32 %v14944_v10, %v9370_v55  ;;  %v15035_v17 = vpop.f32.mrf.mxu0  ;;  %vm16969_vm2 = vmmov %vm16916_vm0 }
 0x50f   : > { %v9442_v4 = vadd.f32 %v14951_v18, %v9406_v56  ;;  %v15042_v50 = vpop.f32.mrf.mxu2 }
 0x511   : > { %v9474_v45 = vadd.f32 %v10514_v43, %v9442_v4  ;;  %v9190_v43 = vrot.slane %v9188_v9, 1 }
 0x512   : > { %v9297_v7 = vpop.f32.mrf.mxu1 }
 0x513   : > { %v9506_v61 = vmax.f32 %v9474_v45, 0.0  ;;  %v9371_v29 = vadd.f32 %v9297_v7, %v8913_v46  ;;  %v8967_v45 = vld [vmem:[#allocation2 + $0x80] sm:$0xf]  ;;  %v8915_v46 = vadd.f32 %v14871_v44, %v14813_v3  ;;  %v15046_v39 = vpop.f32.mrf.mxu3 }
 0x514   : > { %v9000_v35 = vsel %vm16958_vm14, %v8967_v45, 0  ;;  %v9192_v45 = vshrl.u32 %v9087_v22, 16  ;;  %vm16979_vm14 = vmmov %vm16969_vm2 }
 0x515   : > { %9538 = vst.msk [vmem:[%s14969_s19 + $0x18] sm:$0xff] %vm16916_vm0, %v9506_v61  ;;  %v9407_v8 = vmul.f32 %v14944_v10, %v9371_v29  ;;  %10369 = vmatmul.msk.bf16.gmra.mxu1 %vm16955_vm12, %v9183_v23  ;;  %v9191_v23 = vsel %vm16941_vm1, %v9186_v62, %v9190_v43  ;;  %v9068_v3 = vunpack.c.l.b16 %v9000_v35  ;;  %vm16975_vm12 = vmmov %vm16941_vm1 }
 0x516   : > { %v9194_v62 = vor.u32 %v9192_v45, %v9190_v43  ;;  %v8971_v45 = vld [vmem:[#allocation2 + $0x90] sm:$0xf] }
 0x517   : > { %v9443_v11 = vadd.f32 %v14951_v18, %v9407_v8  ;;  %v15054_v14 = vpack.c.b16 %v9069_v27, %v9068_v3  ;;  %v10517_v8 = vld [vmem:[%s10633_s12 + $0x30] sm:$0xff]  ;;  %v15063_v9 = vpop.f32.mrf.mxu2 }
 0x519   : > { %v9475_v6 = vadd.f32 %v10515_v52, %v9443_v11  ;;  %v8916_v11 = vadd.f32 %v14887_v37, %v14833_v38  ;;  %v15059_v52 = vpop.f32.mrf.mxu0  ;;  %v8970_v37 = vld [vmem:[#allocation2 + $0x8c] sm:$0xf] }
 0x51a   : > { %v9299_v53 = vpop.f32.mrf.mxu1 }
 0x51b   : > { %v9507_v42 = vmax.f32 %v9475_v6, 0.0  ;;  %v9372_v55 = vadd.f32 %v9299_v53, %v8914_v1  ;;  %v16961_v1 = vld [vmem:[#allocation98_spill] sm:$0xff]  ;;  %v15070_v38 = vpop.f32.mrf.mxu3 }
 0x51c   : > { %v8182_v53 = vadd.f32 %v14962_v12, %v16961_v1  ;;  %v8969_v12 = vld [vmem:[#allocation2 + $0x88] sm:$0xf] }
 0x51d   : > { %9539 = vst.msk [vmem:[%s14969_s19 + $0x20] sm:$0xff] %vm16956_vm11, %v9507_v42  ;;  %v9408_v56 = vmul.f32 %v14944_v10, %v9372_v55  ;;  %vm16977_vm11 = vmmov %vm16969_vm2 }
 0x51e   : > { %v8660_v21 = vadd.f32 %v14971_v16, %v8182_v53  ;;  %v9003_v16 = vsel %vm16963_vm6, %v8970_v37, 0  ;;  %v16970_v53 = vld [vmem:[#allocation60_spill] sm:$0xff]  ;;  %vm16987_vm6 = vmmov %vm16969_vm2 }
 0x51f   : > { %v9444_v4 = vadd.f32 %v14951_v18, %v9408_v56  ;;  %v9196_v56 = vshll.u32 %v15054_v14, 16  ;;  %v9071_v3 = vunpack.c.l.b16 %v9003_v16 }
 0x520   : > { %v8917_v33 = vadd.f32 %v14982_v32, %v8660_v21 }
 0x521   : > { %v9476_v59 = vadd.f32 %v10516_v48, %v9444_v4  ;;  %v9198_v48 = vrot.slane %v9196_v56, 1  ;;  %v15081_v27 = vpop.f32.mrf.mxu0 }
 0x522   : > { %v9302_v7 = vpop.f32.mrf.mxu1 }
 0x523   : > { %v9508_v61 = vmax.f32 %v9476_v59, 0.0  ;;  %v9373_v29 = vadd.f32 %v9302_v7, %v8915_v46  ;;  %v10518_v59 = vld [vmem:[%s10633_s12 + $0x38] sm:$0xff] }
 0x525   : > { %9540 = vst.msk [vmem:[%s14969_s19 + $0x28] sm:$0xff] %vm16959_vm4, %v9508_v61  ;;  %v9409_v49 = vmul.f32 %v14944_v10, %v9373_v29  ;;  %10370 = vmatmul.msk.bf16.gmra.mxu1 %vm16960_vm10, %v9191_v23  ;;  %v16964_v61 = vld [vmem:[#allocation63_spill] sm:$0xff]  ;;  %v16965_v23 = vld [vmem:[#allocation84_spill] sm:$0xff]  ;;  %vm16982_vm4 = vmmov %vm16969_vm2 }
 0x526   : > { %v8183_v29 = vadd.f32 %v14986_v34, %v16964_v61  ;;  %vm16966_vm13 = vnez %v16965_v23  ;;  %v15089_v34 = vpop.f32.mrf.mxu2  ;;  %v16974_v23 = vld [vmem:[#allocation67_spill] sm:$0xff]  ;;  %vm16984_vm10 = vmmov %vm16969_vm2 }
 0x527   : > { %v9445_v44 = vadd.f32 %v14951_v18, %v9409_v49  ;;  %v9002_v22 = vsel %vm16966_vm13, %v8969_v12, 0  ;;  %v9199_v49 = vsel %vm16967_vm5, %v9194_v62, %v9198_v48  ;;  %v8972_v12 = vld [vmem:[#allocation2 + $0x94] sm:$0xf]  ;;  %v16972_v62 = vld [vmem:[#allocation87_spill] sm:$0xff]  ;;  %vm16988_vm13 = vmmov %vm16969_vm2 }
 0x528   : > { %v8661_v32 = vadd.f32 %v14993_v28, %v8183_v29  ;;  %v9070_v43 = vunpack.c.l.b16 %v9002_v22  ;;  %vm16973_vm0 = vnez %v16972_v62  ;;  %vm16990_vm5 = vmmov %vm16969_vm2 }
 0x529   : > { %v9477_v41 = vadd.f32 %v10517_v8, %v9445_v44  ;;  %v15092_v8 = vpop.f32.mrf.mxu3  ;;  %v9005_v61 = vsel %vm16973_vm0, %v8972_v12, 0  ;;  %vm16997_vm0 = vmmov %vm16969_vm2 }
 0x52a   : > { %v9304_v6 = vpop.f32.mrf.mxu1  ;;  %v8918_v1 = vadd.f32 %v14999_v57, %v8661_v32 }
 0x52b   : > { %v9509_v42 = vmax.f32 %v9477_v41, 0.0  ;;  %v9374_v55 = vadd.f32 %v9304_v6, %v8916_v11  ;;  %v9089_v41 = vpack.c.b16 %v9071_v3, %v9070_v43  ;;  %v10519_v11 = vld [vmem:[%s10633_s12 + $0x40] sm:$0xff] }
 0x52d   : > { %9541 = vst.msk [vmem:[%s14969_s19 + $0x30] sm:$0xff] %vm16962_vm15, %v9509_v42  ;;  %v9410_v4 = vmul.f32 %v14944_v10, %v9374_v55  ;;  %v8184_v42 = vadd.f32 %v15004_v54, %v16970_v53  ;;  %v9204_v21 = vshll.u32 %v9089_v41, 16  ;;  %vm16985_vm15 = vmmov %vm16941_vm1 }
 0x52f   : > { %v9446_v0 = vadd.f32 %v14951_v18, %v9410_v4  ;;  %v8662_v4 = vadd.f32 %v15007_v58, %v8184_v42  ;;  %v9206_v54 = vrot.slane %v9204_v21, 1 }
 0x531   : > { %v9478_v46 = vadd.f32 %v10518_v59, %v9446_v0  ;;  %v15102_v0 = vpop.f32.mrf.mxu0  ;;  %v15105_v59 = vpop.f32.mrf.mxu2  ;;  %v8919_v58 = vadd.f32 %v15021_v2, %v8662_v4  ;;  %v9073_v2 = vunpack.c.l.b16 %v9005_v61  ;;  %v16980_v61 = vld [vmem:[#allocation71_spill] sm:$0xff] }
 0x532   : > { %v9307_v7 = vpop.f32.mrf.mxu1  ;;  %v15114_v29 = vpop.f32.mrf.mxu3 }
 0x533   : > { %v9510_v5 = vmax.f32 %v9478_v46, 0.0  ;;  %v9375_v35 = vadd.f32 %v9307_v7, %v8917_v33  ;;  %v9200_v46 = vshrl.u32 %v15054_v14, 16  ;;  %v10520_v33 = vld [vmem:[%s10633_s12 + $0x48] sm:$0xff]  ;;  %v9004_v7 = vsel %vm16897_vm3, %v8971_v45, 0  ;;  %vm16976_vm3 = vmmov %vm16969_vm2  ;;  %v8973_v45 = vld [vmem:[#allocation2 + $0x98] sm:$0x1] }
 0x534   : > { %v8185_v14 = vadd.f32 %v15024_v31, %v16974_v23  ;;  %v9072_v32 = vunpack.c.l.b16 %v9004_v7 }
 0x535   : > { %9542 = vst.msk [vmem:[%s14969_s19 + $0x38] sm:$0xff] %vm16968_vm9, %v9510_v5  ;;  %v9411_v24 = vmul.f32 %v14944_v10, %v9375_v35  ;;  %10371 = vmatmul.msk.bf16.gmra.mxu1 %vm16969_vm2, %v9199_v49  ;;  %v9202_v35 = vor.u32 %v9200_v46, %v9198_v48  ;;  %vm16992_vm9 = vmmov %vm16969_vm2 }
 0x536   : > { %v8663_v36 = vadd.f32 %v15029_v25, %v8185_v14  ;;  %v9090_v31 = vpack.c.b16 %v9073_v2, %v9072_v32 }
 0x537   : > { %v9447_v44 = vadd.f32 %v14951_v18, %v9411_v24  ;;  %v9207_v3 = vsel %vm16975_vm12, %v9202_v35, %v9206_v54  ;;  %vm16999_vm12 = vmmov %vm16997_vm0 }
 0x538   : > { %v9212_v21 = vshll.u32 %v9090_v31, 16 }
 0x539   : > { %v9479_v6 = vadd.f32 %v10519_v11, %v9447_v44  ;;  %v15125_v43 = vpop.f32.mrf.mxu0  ;;  %v10521_v44 = vld [vmem:[%s10633_s12 + $0x50] sm:$0xff] }
 0x53a   : > { %v9309_v28 = vpop.f32.mrf.mxu1  ;;  %v9214_v46 = vrot.slane %v9212_v21, 1  ;;  %v10524_v21 = vld [vmem:[%s10633_s12 + $0x68] sm:$0xff] }
 0x53b   : > { %v9511_v55 = vmax.f32 %v9479_v6, 0.0  ;;  %v9376_v56 = vadd.f32 %v9309_v28, %v8918_v1  ;;  %v8920_v6 = vadd.f32 %v15035_v17, %v8663_v36  ;;  %v15129_v1 = vpop.f32.mrf.mxu2  ;;  %v16978_v28 = vld [vmem:[#allocation64_spill] sm:$0xff]  ;;  %v9208_v17 = vshrl.u32 %v9089_v41, 16 }
 0x53c   : > { %v8186_v53 = vadd.f32 %v15042_v50, %v16978_v28  ;;  %v8187_v41 = vadd.f32 %v15063_v9, %v16980_v61  ;;  %v9216_v36 = vshrl.u32 %v9090_v31, 16 }
 0x53d   : > { %9543 = vst.msk [vmem:[%s14969_s19 + $0x40] sm:$0xff] %vm16971_vm8, %v9511_v55  ;;  %v9412_v37 = vmul.f32 %v14944_v10, %v9376_v56  ;;  %v15133_v56 = vpop.f32.mrf.mxu3  ;;  %v9210_v50 = vor.u32 %v9208_v17, %v9206_v54  ;;  %vm16995_vm8 = vmmov %vm16969_vm2 }
 0x53e   : > { %v8664_v4 = vadd.f32 %v15046_v39, %v8186_v53  ;;  %v8665_v54 = vadd.f32 %v15070_v38, %v8187_v41  ;;  %v16983_v38 = vld [vmem:[#allocation101_spill] sm:$0xff]  ;;  %v16989_v41 = vld [vmem:[#allocation79_spill] sm:$0xff] }
 0x53f   : > { %v9448_v57 = vadd.f32 %v14951_v18, %v9412_v37  ;;  %v9215_v13 = vsel %vm16941_vm1, %v9210_v50, %v9214_v46  ;;  %vm17003_vm1 = vmmov %vm16997_vm0 }
 0x540   : > { %v8922_v32 = vadd.f32 %v15081_v27, %v8665_v54 }
 0x541   : > { %v9480_v16 = vadd.f32 %v10520_v33, %v9448_v57  ;;  %v9006_v57 = vsel %vm16910_vm7, %v8973_v45, 0  ;;  %v10522_v33 = vld [vmem:[%s10633_s12 + $0x58] sm:$0xff]  ;;  %v15144_v39 = vpop.f32.mrf.mxu0  ;;  %vm16981_vm7 = vmmov %vm16969_vm2 }
 0x542   : > { %v9312_v5 = vpop.f32.mrf.mxu1  ;;  %v9074_v62 = vunpack.c.l.b16 %v9006_v57 }
 0x543   : > { %v9512_v22 = vmax.f32 %v9480_v16, 0.0  ;;  %v9377_v49 = vadd.f32 %v9312_v5, %v8919_v58  ;;  %v8921_v58 = vadd.f32 %v15059_v52, %v8664_v4  ;;  %v8136_v23 = vpop.f32.mrf.mxu2 }
 0x545   : > { %9544 = vst.msk [vmem:[%s14969_s19 + $0x48] sm:$0xff] %vm16976_vm3, %v9512_v22  ;;  %v9413_v24 = vmul.f32 %v14944_v10, %v9377_v49  ;;  %10372 = vmatmul.msk.bf16.gmra.mxu1 %vm16977_vm11, %v9207_v3  ;;  %v8614_v52 = vpop.f32.mrf.mxu3  ;;  %v9091_v22 = vpack.c.b16 %v9074_v62, %v9074_v62  ;;  %v10523_v3 = vld [vmem:[%s10633_s12 + $0x60] sm:$0xff]  ;;  %vm17000_vm3 = vmmov %vm16997_vm0 }
 0x546   : > { %vm17001_vm11 = vmmov %vm16997_vm0 }
 0x547   : > { %v9449_v48 = vadd.f32 %v14951_v18, %v9413_v24  ;;  %v9220_v24 = vshll.u32 %v9091_v22, 16 }
 0x549   : > { %v9481_v11 = vadd.f32 %v10521_v44, %v9449_v48  ;;  %v8188_v48 = vadd.f32 %v15089_v34, %v16983_v38  ;;  %v9222_v27 = vrot.slane %v9220_v24, 1 }
 0x54a   : > { %v9314_v25 = vpop.f32.mrf.mxu1 }
 0x54b   : > { %v9513_v42 = vmax.f32 %v9481_v11, 0.0  ;;  %v9378_v55 = vadd.f32 %v9314_v25, %v8920_v6  ;;  %v8871_v6 = vpop.f32.mrf.mxu0  ;;  %v8666_v25 = vadd.f32 %v15092_v8, %v8188_v48  ;;  %v8139_v53 = vpop.f32.mrf.mxu2  ;;  %v16986_v8 = vld [vmem:[#allocation75_spill] sm:$0xff] }
 0x54c   : > { %v8189_v17 = vadd.f32 %v15105_v59, %v16986_v8  ;;  %v10528_v8 = vld [vmem:[%s10633_s12 + $0x88] sm:$0xff] }
 0x54d   : > { %9545 = vst.msk [vmem:[%s14969_s19 + $0x50] sm:$0xff] %vm16979_vm14, %v9513_v42  ;;  %v9414_v37 = vmul.f32 %v14944_v10, %v9378_v55  ;;  %v9218_v42 = vor.u32 %v9216_v36, %v9214_v46  ;;  %v8617_v31 = vpop.f32.mrf.mxu3  ;;  %v8923_v34 = vadd.f32 %v15102_v0, %v8666_v25  ;;  %vm17002_vm14 = vmmov %vm16997_vm0 }
 0x54e   : > { %v8667_v50 = vadd.f32 %v15114_v29, %v8189_v17  ;;  %v8190_v29 = vadd.f32 %v15129_v1, %v16989_v41  ;;  %v16991_v1 = vld [vmem:[#allocation78_spill] sm:$0xff]  ;;  %v10529_v41 = vld [vmem:[%s10633_s12 + $0x90] sm:$0xff] }
 0x54f   : > { %v9450_v12 = vadd.f32 %v14951_v18, %v9414_v37  ;;  %v9223_v45 = vsel %vm16985_vm15, %v9218_v42, %v9222_v27  ;;  %v16993_v27 = vld [vmem:[#allocation102_spill] sm:$0xff]  ;;  %vm17007_vm15 = vmmov %vm16997_vm0 }
 0x550   : > { %v8924_v59 = vadd.f32 %v15125_v43, %v8667_v50 }
 0x551   : > { %v9482_v16 = vadd.f32 %v10522_v33, %v9450_v12 }
 0x552   : > { %v9317_v7 = vpop.f32.mrf.mxu1 }
 0x553   : > { %v9514_v5 = vmax.f32 %v9482_v16, 0.0  ;;  %v9379_v35 = vadd.f32 %v9317_v7, %v8921_v58  ;;  %v8874_v33 = vpop.f32.mrf.mxu0  ;;  %v8141_v16 = vpop.f32.mrf.mxu2  ;;  %v10525_v58 = vld [vmem:[%s10633_s12 + $0x70] sm:$0xff] }
 0x555   : > { %9546 = vst.msk [vmem:[%s14969_s19 + $0x58] sm:$0xff] %vm16981_vm7, %v9514_v5  ;;  %v9415_v14 = vmul.f32 %v14944_v10, %v9379_v35  ;;  %10373 = vmatmul.msk.bf16.gmra.mxu1 %vm16982_vm4, %v9215_v13  ;;  %v8619_v62 = vpop.f32.mrf.mxu3  ;;  %v8668_v13 = vadd.f32 %v15133_v56, %v8190_v29  ;;  %vm17004_vm7 = vmmov %vm16997_vm0 }
 0x556   : > { %vm17005_vm4 = vmmov %vm16997_vm0 }
 0x557   : > { %v9451_v49 = vadd.f32 %v14951_v18, %v9415_v14 }
 0x559   : > { %v9483_v9 = vadd.f32 %v10523_v3, %v9451_v49  ;;  %v10526_v49 = vld [vmem:[%s10633_s12 + $0x78] sm:$0xff]  ;;  %v8925_v3 = vadd.f32 %v15144_v39, %v8668_v13 }
 0x55a   : > { %v9319_v2 = vpop.f32.mrf.mxu1 }
 0x55b   : > { %v9515_v44 = vmax.f32 %v9483_v9, 0.0  ;;  %v9380_v11 = vadd.f32 %v9319_v2, %v8922_v32  ;;  %v8876_v22 = vpop.f32.mrf.mxu0  ;;  %v8144_v9 = vpop.f32.mrf.mxu2  ;;  %v8191_v2 = vadd.f32 %v8136_v23, %v16991_v1 }
 0x55d   : > { %9547 = vst.msk [vmem:[%s14969_s19 + $0x60] sm:$0xff] %vm16984_vm10, %v9515_v44  ;;  %v9416_v28 = vmul.f32 %v14944_v10, %v9380_v11  ;;  %v8622_v56 = vpop.f32.mrf.mxu3  ;;  %v8669_v38 = vadd.f32 %v8614_v52, %v8191_v2  ;;  %v10527_v11 = vld [vmem:[%s10633_s12 + $0x80] sm:$0xff]  ;;  %vm17006_vm10 = vmmov %vm16997_vm0 }
 0x55f   : > { %v9452_v55 = vadd.f32 %v14951_v18, %v9416_v28  ;;  %v8926_v28 = vadd.f32 %v8871_v6, %v8669_v38 }
 0x561   : > { %v9484_v4 = vadd.f32 %v10524_v21, %v9452_v55  ;;  %v8192_v55 = vadd.f32 %v8139_v53, %v16993_v27 }
 0x562   : > { %v9322_v37 = vpop.f32.mrf.mxu1 }
 0x563   : > { %v9516_v12 = vmax.f32 %v9484_v4, 0.0  ;;  %v9381_v57 = vadd.f32 %v9322_v37, %v8923_v34  ;;  %v8879_v39 = vpop.f32.mrf.mxu0  ;;  %v8146_v4 = vpop.f32.mrf.mxu2  ;;  %v8670_v34 = vadd.f32 %v8617_v31, %v8192_v55 }
 0x565   : > { %9548 = vst.msk [vmem:[%s14969_s19 + $0x68] sm:$0xff] %vm16987_vm6, %v9516_v12  ;;  %v9417_v46 = vmul.f32 %v14944_v10, %v9381_v57  ;;  %10374 = vmatmul.msk.bf16.gmra.mxu1 %vm16988_vm13, %v9223_v45  ;;  %v8624_v37 = vpop.f32.mrf.mxu3  ;;  %v8927_v6 = vadd.f32 %v8874_v33, %v8670_v34  ;;  %v16994_v57 = vld [vmem:[#allocation103_spill] sm:$0xff]  ;;  %vm17008_vm6 = vmmov %vm16997_vm0 }
 0x566   : > { %v8193_v50 = vadd.f32 %v8141_v16, %v16994_v57  ;;  %vm17009_vm13 = vmmov %vm16997_vm0 }
 0x567   : > { %v9453_v0 = vadd.f32 %v14951_v18, %v9417_v46 }
 0x569   : > { %v9485_v7 = vadd.f32 %v10525_v58, %v9453_v0  ;;  %v8671_v58 = vadd.f32 %v8619_v62, %v8193_v50 }
 0x56a   : > { %v9324_v61 = vpop.f32.mrf.mxu1 }
 0x56b   : > { %v9517_v5 = vmax.f32 %v9485_v7, 0.0  ;;  %v9382_v35 = vadd.f32 %v9324_v61, %v8924_v59  ;;  %v8881_v0 = vpop.f32.mrf.mxu0  ;;  %v8149_v7 = vpop.f32.mrf.mxu2  ;;  %v8928_v33 = vadd.f32 %v8876_v22, %v8671_v58 }
 0x56d   : > { %9549 = vst.msk [vmem:[%s14969_s19 + $0x70] sm:$0xff] %vm16990_vm5, %v9517_v5  ;;  %v9418_v54 = vmul.f32 %v14944_v10, %v9382_v35  ;;  %v8627_v61 = vpop.f32.mrf.mxu3  ;;  %v16996_v35 = vld [vmem:[#allocation6_spill] sm:$0xff]  ;;  %vm17010_vm5 = vmmov %vm16997_vm0 }
 0x56e   : > { %v8194_v16 = vadd.f32 %v8144_v9, %v16996_v35 }
 0x56f   : > { %v9454_v14 = vadd.f32 %v14951_v18, %v9418_v54 }
 0x571   : > { %v9486_v43 = vadd.f32 %v10526_v49, %v9454_v14  ;;  %v8672_v14 = vadd.f32 %v8622_v56, %v8194_v16 }
 0x572   : > { %v9327_v32 = vpop.f32.mrf.mxu1 }
 0x573   : > { %v9518_v36 = vmax.f32 %v9486_v43, 0.0  ;;  %v9383_v24 = vadd.f32 %v9327_v32, %v8925_v3  ;;  %v8884_v49 = vpop.f32.mrf.mxu0  ;;  %v8151_v3 = vpop.f32.mrf.mxu2  ;;  %v10530_v32 = vld [vmem:[%s10633_s12 + $0x98] sm:$0xff]  ;;  %v8929_v2 = vadd.f32 %v8879_v39, %v8672_v14 }
 0x574   : > { %v8197_v50 = vadd.f32 %v8151_v3, %v14855_v60 }
 0x575   : > { %9550 = vst.msk [vmem:[%s14969_s19 + $0x78] sm:$0xff] %vm16992_vm9, %v9518_v36  ;;  %v9419_v48 = vmul.f32 %v14944_v10, %v9383_v24  ;;  %v8629_v22 = vpop.f32.mrf.mxu3  ;;  %v16998_v24 = vld [vmem:[#allocation5_spill] sm:$0xff]  ;;  %vm17011_vm9 = vmmov %vm16997_vm0 }
 0x576   : > { %v8195_v9 = vadd.f32 %v8146_v4, %v16998_v24 }
 0x577   : > { %v9455_v44 = vadd.f32 %v14951_v18, %v9419_v48 }
 0x578   : > { %v8673_v56 = vadd.f32 %v8624_v37, %v8195_v9 }
 0x579   : > { %v9487_v25 = vadd.f32 %v10527_v11, %v9455_v44 }
 0x57a   : > { %v9329_v42 = vpop.f32.mrf.mxu1  ;;  %v8930_v27 = vadd.f32 %v8881_v0, %v8673_v56  ;;  %v8675_v0 = vadd.f32 %v8629_v22, %v8197_v50  ;;  %v10537_v50 = vld [vmem:[%s10633_s12 + $0xd0] sm:$0xff] }
 0x57b   : > { %v9519_v23 = vmax.f32 %v9487_v25, 0.0  ;;  %v9384_v21 = vadd.f32 %v9329_v42, %v8926_v28  ;;  %v8886_v25 = vpop.f32.mrf.mxu0  ;;  %v10531_v28 = vld [vmem:[%s10633_s12 + $0xa0] sm:$0xff]  ;;  %v8154_v39 = vpop.f32.mrf.mxu2 }
 0x57d   : > { %9551 = vst.msk [vmem:[%s14969_s19 + $0x80] sm:$0xff] %vm16969_vm2, %v9519_v23  ;;  %v9420_v52 = vmul.f32 %v14944_v10, %v9384_v21  ;;  %v8196_v23 = vadd.f32 %v8149_v7, %v14841_v47  ;;  %v8632_v34 = vpop.f32.mrf.mxu3 }
 0x57f   : > { %v9456_v45 = vadd.f32 %v14951_v18, %v9420_v52  ;;  %v8674_v52 = vadd.f32 %v8627_v61, %v8196_v23 }
 0x581   : > { %v9488_v17 = vadd.f32 %v10528_v8, %v9456_v45  ;;  %v10532_v8 = vld [vmem:[%s10633_s12 + $0xa8] sm:$0xff] }
 0x582   : > { %v9332_v12 = vpop.f32.mrf.mxu1 }
 0x583   : > { %v9520_v53 = vmax.f32 %v9488_v17, 0.0  ;;  %v9385_v46 = vadd.f32 %v9332_v12, %v8927_v6  ;;  %v8931_v6 = vadd.f32 %v8884_v49, %v8674_v52  ;;  %v8889_v12 = vpop.f32.mrf.mxu0  ;;  %v10534_v49 = vld [vmem:[%s10633_s12 + $0xb8] sm:$0xff] }
 0x585   : > { %9552 = vst.msk [vmem:[%s14969_s19 + $0x88] sm:$0xff] %vm16995_vm8, %v9520_v53  ;;  %v9421_v31 = vmul.f32 %v14944_v10, %v9385_v46  ;;  %v8156_v46 = vpop.f32.mrf.mxu2 }
 0x587   : > { %v9457_v59 = vadd.f32 %v14951_v18, %v9421_v31  ;;  %v8634_v31 = vpop.f32.mrf.mxu3 }
 0x589   : > { %v9489_v29 = vadd.f32 %v10529_v41, %v9457_v59  ;;  %v10533_v59 = vld [vmem:[%s10633_s12 + $0xb0] sm:$0xff]  ;;  %v8932_v41 = vadd.f32 %v8886_v25, %v8675_v0 }
 0x58a   : > { %v9334_v5 = vpop.f32.mrf.mxu1 }
 0x58b   : > { %v9521_v13 = vmax.f32 %v9489_v29, 0.0  ;;  %v9386_v54 = vadd.f32 %v9334_v5, %v8928_v33  ;;  %v8198_v33 = vadd.f32 %v8154_v39, %v14873_v15  ;;  %v8891_v35 = vpop.f32.mrf.mxu0  ;;  %v8199_v15 = vadd.f32 %v8156_v46, %v14883_v30 }
 0x58d   : > { %9553 = vst.msk [vmem:[%s14969_s19 + $0x90] sm:$0xff] %vm16997_vm0, %v9521_v13  ;;  %v9422_v62 = vmul.f32 %v14944_v10, %v9386_v54  ;;  %v8676_v16 = vadd.f32 %v8632_v34, %v8198_v33  ;;  %v8159_v54 = vpop.f32.mrf.mxu2  ;;  %v8677_v22 = vadd.f32 %v8634_v31, %v8199_v15  ;;  %v10538_v33 = vld [vmem:[%s10633_s12 + $0xd8] sm:$0xff] }
 0x58e   : > { %v8200_v30 = vadd.f32 %v8159_v54, %v14897_v63 }
 0x58f   : > { %v9458_v43 = vadd.f32 %v14951_v18, %v9422_v62  ;;  %v8637_v62 = vpop.f32.mrf.mxu3  ;;  %v8933_v3 = vadd.f32 %v8889_v12, %v8676_v16 }
 0x591   : > { %v9490_v1 = vadd.f32 %v10530_v32, %v9458_v43 }
 0x592   : > { %v9337_v36 = vpop.f32.mrf.mxu1 }
 0x593   : > { %v9522_v38 = vmax.f32 %v9490_v1, 0.0  ;;  %v9387_v48 = vadd.f32 %v9337_v36, %v8929_v2  ;;  %v8894_v24 = vpop.f32.mrf.mxu0 }
 0x595   : > { %9554 = vst.msk [vmem:[%s14969_s19 + $0x98] sm:$0xff] %vm16999_vm12, %v9522_v38  ;;  %v9423_v44 = vmul.f32 %v14944_v10, %v9387_v48  ;;  %v8161_v38 = vpop.f32.mrf.mxu2  ;;  %v10535_v48 = vld [vmem:[%s10633_s12 + $0xc0] sm:$0xff] }
 0x597   : > { %v9459_v11 = vadd.f32 %v14951_v18, %v9423_v44  ;;  %v8934_v44 = vadd.f32 %v8891_v35, %v8677_v22 }
 0x599   : > { %v9491_v42 = vadd.f32 %v10531_v28, %v9459_v11  ;;  %v8639_v11 = vpop.f32.mrf.mxu3 }
 0x59a   : > { %v9339_v55 = vpop.f32.mrf.mxu1 }
 0x59b   : > { %v9523_v21 = vmax.f32 %v9491_v42, 0.0  ;;  %v9388_v4 = vadd.f32 %v9339_v55, %v8930_v27  ;;  %v8678_v27 = vadd.f32 %v8637_v62, %v8200_v30  ;;  %v8896_v23 = vpop.f32.mrf.mxu0 }
 0x59d   : > { %9555 = vst.msk [vmem:[%s14969_s19 + $0xa0] sm:$0xff] %vm17000_vm3, %v9523_v21  ;;  %v9424_v37 = vmul.f32 %v14944_v10, %v9388_v4  ;;  %v10536_v21 = vld [vmem:[%s10633_s12 + $0xc8] sm:$0xff]  ;;  %v8935_v34 = vadd.f32 %v8894_v24, %v8678_v27  ;;  %v8164_v52 = vpop.f32.mrf.mxu2 }
 0x59f   : > { %v9460_v45 = vadd.f32 %v14951_v18, %v9424_v37 }
 0x5a1   : > { %v9492_v17 = vadd.f32 %v10532_v8, %v9460_v45  ;;  %v8201_v45 = vadd.f32 %v8161_v38, %v14907_v26 }
 0x5a2   : > { %v9342_v57 = vpop.f32.mrf.mxu1 }
 0x5a3   : > { %v9524_v47 = vmax.f32 %v9492_v17, 0.0  ;;  %v9389_v53 = vadd.f32 %v9342_v57, %v8931_v6  ;;  %v8642_v17 = vpop.f32.mrf.mxu3  ;;  %v8679_v6 = vadd.f32 %v8639_v11, %v8201_v45  ;;  %v8899_v46 = vpop.f32.mrf.mxu0  ;;  %v10540_v11 = vld [vmem:[%s10633_s12 + $0xe8] sm:$0xff] }
 0x5a5   : > { %9556 = vst.msk [vmem:[%s14969_s19 + $0xa8] sm:$0xff] %vm17001_vm11, %v9524_v47  ;;  %v9425_v58 = vmul.f32 %v14944_v10, %v9389_v53  ;;  %v8936_v53 = vadd.f32 %v8896_v23, %v8679_v6 }
 0x5a7   : > { %v9461_v7 = vadd.f32 %v14951_v18, %v9425_v58  ;;  %v8202_v58 = vadd.f32 %v8164_v52, %v14913_v19 }
 0x5a9   : > { %v9493_v61 = vadd.f32 %v10533_v59, %v9461_v7  ;;  %v8166_v7 = vpop.f32.mrf.mxu2  ;;  %v8680_v59 = vadd.f32 %v8642_v17, %v8202_v58  ;;  %v10542_v17 = vld [vmem:[%s10633_s12 + $0xf8] sm:$0xff] }
 0x5aa   : > { %v9344_v29 = vpop.f32.mrf.mxu1  ;;  %v8203_v16 = vadd.f32 %v8166_v7, %v14923_v51 }
 0x5ab   : > { %v9525_v60 = vmax.f32 %v9493_v61, 0.0  ;;  %v9390_v5 = vadd.f32 %v9344_v29, %v8932_v41  ;;  %v8644_v41 = vpop.f32.mrf.mxu3  ;;  %v8901_v54 = vpop.f32.mrf.mxu0 }
 0x5ad   : > { %9557 = vst.msk [vmem:[%s14969_s19 + $0xb0] sm:$0xff] %vm17002_vm14, %v9525_v60  ;;  %v9426_v13 = vmul.f32 %v14944_v10, %v9390_v5  ;;  %v8937_v5 = vadd.f32 %v8899_v46, %v8680_v59 }
 0x5af   : > { %v9462_v14 = vadd.f32 %v14951_v18, %v9426_v13 }
 0x5b1   : > { %v9494_v43 = vadd.f32 %v10534_v49, %v9462_v14  ;;  %v8681_v14 = vadd.f32 %v8644_v41, %v8203_v16  ;;  %v8169_v49 = vpop.f32.mrf.mxu2 }
 0x5b2   : > { %v9347_v32 = vpop.f32.mrf.mxu1  ;;  %v8204_v51 = vadd.f32 %v8169_v49, %v14929_v20 }
 0x5b3   : > { %v9526_v1 = vmax.f32 %v9494_v43, 0.0  ;;  %v9391_v2 = vadd.f32 %v9347_v32, %v8933_v3  ;;  %v8647_v3 = vpop.f32.mrf.mxu3  ;;  %v10539_v32 = vld [vmem:[%s10633_s12 + $0xe0] sm:$0xff]  ;;  %v8904_v24 = vpop.f32.mrf.mxu0 }
 0x5b5   : > { %9558 = vst.msk [vmem:[%s14969_s19 + $0xb8] sm:$0xff] %vm17003_vm1, %v9526_v1  ;;  %v9427_v36 = vmul.f32 %v14944_v10, %v9391_v2  ;;  %v8938_v1 = vadd.f32 %v8901_v54, %v8681_v14 }
 0x5b7   : > { %v9463_v9 = vadd.f32 %v14951_v18, %v9427_v36 }
 0x5b9   : > { %v9495_v56 = vadd.f32 %v10535_v48, %v9463_v9  ;;  %v8682_v9 = vadd.f32 %v8647_v3, %v8204_v51 }
 0x5ba   : > { %v9349_v25 = vpop.f32.mrf.mxu1 }
 0x5bb   : > { %v9527_v28 = vmax.f32 %v9495_v56, 0.0  ;;  %v9392_v42 = vadd.f32 %v9349_v25, %v8934_v44  ;;  %v8171_v56 = vpop.f32.mrf.mxu2  ;;  %v8939_v44 = vadd.f32 %v8904_v24, %v8682_v9  ;;  %v8649_v30 = vpop.f32.mrf.mxu3 }
 0x5bc   : > { %v8205_v20 = vadd.f32 %v8171_v56, %v14937_v40  ;;  %v8906_v23 = vpop.f32.mrf.mxu0 }
 0x5bd   : > { %9559 = vst.msk [vmem:[%s14969_s19 + $0xc0] sm:$0xff] %vm17004_vm7, %v9527_v28  ;;  %v9428_v39 = vmul.f32 %v14944_v10, %v9392_v42 }
 0x5bf   : > { %v9464_v55 = vadd.f32 %v14951_v18, %v9428_v39  ;;  %v8683_v39 = vadd.f32 %v8649_v30, %v8205_v20 }
 0x5c1   : > { %v9496_v4 = vadd.f32 %v10536_v21, %v9464_v55 }
 0x5c2   : > { %v9352_v37 = vpop.f32.mrf.mxu1 }
 0x5c3   : > { %v9528_v63 = vmax.f32 %v9496_v4, 0.0  ;;  %v9393_v8 = vadd.f32 %v9352_v37, %v8935_v34  ;;  %v8940_v4 = vadd.f32 %v8906_v23, %v8683_v39  ;;  %v10541_v34 = vld [vmem:[%s10633_s12 + $0xf0] sm:$0xff] }
 0x5c5   : > { %9560 = vst.msk [vmem:[%s14969_s19 + $0xc8] sm:$0xff] %vm17005_vm4, %v9528_v63  ;;  %v9429_v12 = vmul.f32 %v14944_v10, %v9393_v8 }
 0x5c7   : > { %v9465_v57 = vadd.f32 %v14951_v18, %v9429_v12 }
 0x5c9   : > { %v9497_v47 = vadd.f32 %v10537_v50, %v9465_v57 }
 0x5ca   : > { %v9354_v0 = vpop.f32.mrf.mxu1 }
 0x5cb   : > { %v9529_v26 = vmax.f32 %v9497_v47, 0.0  ;;  %v9394_v31 = vadd.f32 %v9354_v0, %v8936_v53 }
 0x5cd   : > { %9561 = vst.msk [vmem:[%s14969_s19 + $0xd0] sm:$0xff] %vm17006_vm10, %v9529_v26  ;;  %v9430_v61 = vmul.f32 %v14944_v10, %v9394_v31 }
 0x5cf   : > { %v9466_v29 = vadd.f32 %v14951_v18, %v9430_v61 }
 0x5d1   : > { %v9498_v60 = vadd.f32 %v10538_v33, %v9466_v29 }
 0x5d2   : > { %v9357_v35 = vpop.f32.mrf.mxu1 }
 0x5d3   : > { %v9530_v19 = vmax.f32 %v9498_v60, 0.0  ;;  %v9395_v13 = vadd.f32 %v9357_v35, %v8937_v5 }
 0x5d5   : > { %9562 = vst.msk [vmem:[%s14969_s19 + $0xd8] sm:$0xff] %vm17007_vm15, %v9530_v19  ;;  %v9431_v62 = vmul.f32 %v14944_v10, %v9395_v13 }
 0x5d7   : > { %v9467_v43 = vadd.f32 %v14951_v18, %v9431_v62 }
 0x5d9   : > { %v9499_v15 = vadd.f32 %v10539_v32, %v9467_v43 }
 0x5da   : > { %v9359_v2 = vpop.f32.mrf.mxu1 }
 0x5db   : > { %v9531_v22 = vmax.f32 %v9499_v15, 0.0  ;;  %v9396_v36 = vadd.f32 %v9359_v2, %v8938_v1 }
 0x5dd   : > { %9563 = vst.msk [vmem:[%s14969_s19 + $0xe0] sm:$0xff] %vm17008_vm6, %v9531_v22  ;;  %v9432_v38 = vmul.f32 %v14944_v10, %v9396_v36 }
 0x5df   : > { %v9468_v48 = vadd.f32 %v14951_v18, %v9432_v38 }
 0x5e1   : > { %v9500_v25 = vadd.f32 %v10540_v11, %v9468_v48 }
 0x5e2   : > { %v9362_v28 = vpop.f32.mrf.mxu1 }
 0x5e3   : > { %v9532_v42 = vmax.f32 %v9500_v25, 0.0  ;;  %v9397_v27 = vadd.f32 %v9362_v28, %v8939_v44 }
 0x5e5   : > { %9564 = vst.msk [vmem:[%s14969_s19 + $0xe8] sm:$0xff] %vm17009_vm13, %v9532_v42  ;;  %v9433_v55 = vmul.f32 %v14944_v10, %v9397_v27 }
 0x5e7   : > { %v9469_v21 = vadd.f32 %v14951_v18, %v9433_v55 }
 0x5e9   : > { %v9501_v52 = vadd.f32 %v10541_v34, %v9469_v21 }
 0x5ea   : > { %v9364_v37 = vpop.f32.mrf.mxu1 }
 0x5eb   : > { %v9533_v45 = vmax.f32 %v9501_v52, 0.0  ;;  %v9398_v63 = vadd.f32 %v9364_v37, %v8940_v4 }
 0x5ed   : > { %9565 = vst.msk [vmem:[%s14969_s19 + $0xf0] sm:$0xff] %vm17010_vm5, %v9533_v45  ;;  %v9434_v40 = vmul.f32 %v14944_v10, %v9398_v63 }
 0x5ef   : > { %v9470_v8 = vadd.f32 %v14951_v18, %v9434_v40 }
 0x5f1   : > { %v9502_v6 = vadd.f32 %v10542_v17, %v9470_v8 }
 0x5f3   : > { %v9534_v12 = vmax.f32 %v9502_v6, 0.0 }
 0x5f5   : > { %9566 = vst.msk [vmem:[%s14969_s19 + $0xf8] sm:$0xff] %vm17011_vm9, %v9534_v12 }
 0x5f6 PF: > { %s17_s24 = sadd.s32 1, %s10549_s24  }
 0x5f7   : > { %p14_p4 = scmp.ge.s32.totalorder %s17_s24, 4  }
 0x5f9   :  { %16 = sbr.rel (!%p14_p4) target bundleno = 1 (0x1), region = 78 }

</bundles_post_ra>
